<compile_context>
chip_gen: v5e
topology: v5e:2x2
jax: 0.10.0
libtpu: 0.0.40
codegen_flags: <defaults>
</compile_context>

<pallas_src>
import jax
import jax.numpy as jnp
from jax.experimental import pallas as pl
from jax.experimental.pallas import tpu as pltpu

D_MODEL = 128
N_HEAD = 4
HEAD_DIM = D_MODEL // N_HEAD
D_FF = 2048
PATCH = 8
C_IN = 256
N_COOR = 4
PE_LEN = 224
N_LAYERS = 2


def _layer_norm(h, g, b, eps=1e-5):
    mu = jnp.mean(h, axis=-1, keepdims=True)
    var = jnp.mean((h - mu) ** 2, axis=-1, keepdims=True)
    return (h - mu) * jax.lax.rsqrt(var + eps) * g + b


# ---------------------------------------------------------------------------
# ONE fused kernel: conv-as-matmul K reduction + (on last K step) 2 encoder
# layers + final head.  All projections / FFN run over B*S rows at once.
# ---------------------------------------------------------------------------
def _fused_kernel(p_ref, w_ref, b_ref, cemb_ref, coor_ref,
                  wqkv_ref, bqkv_ref, wo_ref, bo_ref,
                  w1_ref, b1_ref, w2_ref, b2_ref,
                  g1_ref, be1_ref, g2_ref, be2_ref,
                  fpw_ref, fpb_ref,
                  o_ref,
                  acc_ref, att_ref):
    k_step = pl.program_id(0)

    # ------------- conv-as-matmul: patches @ W^T + b, K-tiled -------------
    @pl.when(k_step == 0)
    def _():
        acc_ref[...] = jnp.broadcast_to(b_ref[...], acc_ref.shape)

    acc_ref[...] += jnp.dot(p_ref[...], w_ref[...],
                            preferred_element_type=jnp.float32)

    # ------------- last K step: run the encoder + head --------------------
    @pl.when(k_step == pl.num_programs(0) - 1)
    def _():
        B = cemb_ref.shape[0]
        n_patch = acc_ref.shape[0] // B
        S = cemb_ref.shape[1] + n_patch
        D = D_MODEL

        # assemble seq = concat([coor_embed_b, patch_embed_b]) per batch row
        acc = acc_ref[...]                       # (B*n_patch, D) f32
        cemb = cemb_ref[...]                     # (B, N_COOR, D) f32
        rows = []
        for b in range(B):
            rows.append(cemb[b])                                 # (N_COOR, D)
            rows.append(acc[b * n_patch:(b + 1) * n_patch])      # (n_patch, D)
        x = jnp.concatenate(rows, axis=0)        # (B*S, D) f32

        scale = 1.0 / (HEAD_DIM ** 0.5)
        for l in range(N_LAYERS):                # static 2-layer unroll
            xb = x.astype(jnp.bfloat16)
            # fused QKV projection over all B*S rows
            qkv = jnp.dot(xb, wqkv_ref[l],
                          preferred_element_type=jnp.float32) + bqkv_ref[l]
            q3 = qkv[:, 0 * D:1 * D].reshape(B, S, D)
            k3 = qkv[:, 1 * D:2 * D].reshape(B, S, D)
            v3 = qkv[:, 2 * D:3 * D].reshape(B, S, D)

            # batch all heads on the leading axis -> one scores / one pv einsum
            qh = jnp.concatenate(
                [q3[:, :, h * HEAD_DIM:(h + 1) * HEAD_DIM] for h in range(N_HEAD)],
                axis=0)                                          # (H*B, S, Hd)
            kh = jnp.concatenate(
                [k3[:, :, h * HEAD_DIM:(h + 1) * HEAD_DIM] for h in range(N_HEAD)],
                axis=0)
            vh = jnp.concatenate(
                [v3[:, :, h * HEAD_DIM:(h + 1) * HEAD_DIM] for h in range(N_HEAD)],
                axis=0)

            sc = jnp.einsum('bqd,bkd->bqk', qh, kh,
                            preferred_element_type=jnp.float32) * scale
            sc = sc - jnp.max(sc, axis=-1, keepdims=True)
            p = jnp.exp(sc)
            p = p / jnp.sum(p, axis=-1, keepdims=True)           # exact softmax
            pv = jnp.einsum('bqk,bkd->bqd', p, vh,
                            preferred_element_type=jnp.float32)  # (H*B, S, Hd)

            # recombine heads into (B, S, D) via static 32-lane stores
            for h in range(N_HEAD):
                att_ref[:, :, h * HEAD_DIM:(h + 1) * HEAD_DIM] = \
                    pv[h * B:(h + 1) * B]
            att = att_ref[...].reshape(B * S, D)

            att = jnp.dot(att.astype(jnp.bfloat16), wo_ref[l],
                          preferred_element_type=jnp.float32) + bo_ref[l]

            # residual + LayerNorm 1 (post-norm)
            h1 = _layer_norm(x + att, g1_ref[l], be1_ref[l])

            # feed-forward (ReLU)   TODO(synk): dropout treated as eval identity
            f = jnp.dot(h1.astype(jnp.bfloat16), w1_ref[l],
                        preferred_element_type=jnp.float32) + b1_ref[l]
            f = jnp.maximum(f, 0.0)
            f = jnp.dot(f.astype(jnp.bfloat16), w2_ref[l],
                        preferred_element_type=jnp.float32) + b2_ref[l]

            # residual + LayerNorm 2
            x = _layer_norm(h1 + f, g2_ref[l], be2_ref[l])

        # ---- head: final_proj(seq[:, 0, :]) -> 50*sigmoid -> clip & rescale
        s0 = x.reshape(B, S, D)[:, 0, :]                              # (B, D)
        val = jnp.dot(s0, fpw_ref[...],
                      preferred_element_type=jnp.float32) + fpb_ref[...]  # (B,1)
        val = 50.0 / (1.0 + jnp.exp(-val))                            # exact sigmoid*50
        refined = jnp.clip(val[:, :, None] + coor_ref[...], 0.0, 223.0)
        o_ref[...] = refined / 224.0 * 1024.0


def fused_forward(patches, c_emb, coor, params, *, tk=8192):
    M, K = patches.shape
    tk = min(tk, K)
    assert K % tk == 0
    B, n_coor, _ = c_emb.shape
    S = n_coor + M // B

    const2 = lambda k: (0, 0)
    const3 = lambda k: (0, 0, 0)
    full = lambda a: pl.BlockSpec(a.shape, const3 if a.ndim == 3 else const2)

    wstack = [params[n] for n in ("wqkv_s", "bqkv_s", "wo_s", "bo_s",
                                  "w1_s", "b1_s", "w2_s", "b2_s",
                                  "g1_s", "be1_s", "g2_s", "be2_s")]

    return pl.pallas_call(
        _fused_kernel,
        out_shape=jax.ShapeDtypeStruct(coor.shape, jnp.float32),
        grid=(K // tk,),
        in_specs=[
            pl.BlockSpec((M, tk), lambda k: (0, k)),            # patches (K-tiled)
            pl.BlockSpec((tk, D_MODEL), lambda k: (k, 0)),      # conv weight (K-tiled)
            pl.BlockSpec((1, D_MODEL), const2),                 # conv bias
            full(c_emb),                                        # coord PE embeddings
            full(coor),                                         # raw coordinates
            *[full(w) for w in wstack],                         # stacked encoder params
            pl.BlockSpec((D_MODEL, 1), const2),                 # final_proj weight (col)
            pl.BlockSpec((1, 1), const2),                       # final_proj bias
        ],
        out_specs=pl.BlockSpec(coor.shape, const3),
        scratch_shapes=[pltpu.VMEM((M, D_MODEL), jnp.float32),       # conv accumulator
                        pltpu.VMEM((B, S, D_MODEL), jnp.float32)],   # head recombine
        compiler_params=pltpu.CompilerParams(
            dimension_semantics=("arbitrary",),
            vmem_limit_bytes=32 * 1024 * 1024),
    )(patches, params["conv_w_t"], params["conv_b"].reshape(1, D_MODEL),
      c_emb, coor, *wstack,
      params["fp_w_col"], params["fp_b"].reshape(1, 1))


# ---------------------------------------------------------------------------
# Parameters & positional-encoding table (deterministic, synthetic)
# ---------------------------------------------------------------------------
def make_pe():
    position = jnp.arange(PE_LEN, dtype=jnp.float32)[:, None]
    div_term = jnp.exp(jnp.arange(0, D_MODEL, 2, dtype=jnp.float32)
                       * -(jnp.log(10000.0) / D_MODEL))
    pe = jnp.zeros((PE_LEN, D_MODEL), jnp.float32)
    pe = pe.at[:, 0::2].set(jnp.sin(position * div_term))
    pe = pe.at[:, 1::2].set(jnp.cos(position * div_term))
    return pe


def init_params(key):
    keys = iter(jax.random.split(key, 24))

    def rn(shape, scale=0.02):
        return scale * jax.random.normal(next(keys), shape, dtype=jnp.float32)

    conv_w = rn((D_MODEL, C_IN, PATCH, PATCH))
    fp_w = rn((1, D_MODEL))
    params = {
        # conv weight pre-flattened/transposed and cast to bf16 for the matmul
        "conv_w_t": conv_w.reshape(D_MODEL, C_IN * PATCH * PATCH).T.astype(jnp.bfloat16),
        "conv_b": rn((D_MODEL,)),
        "offet": jnp.zeros((1, N_COOR, D_MODEL), jnp.float32),   # nn.Parameter(zeros)
        "fp_w_col": fp_w.T,                                       # (D_MODEL, 1) f32
        "fp_b": rn((1,)),
        "pe": make_pe(),
    }

    layers = []
    for _ in range(N_LAYERS):
        wqkv = rn((3 * D_MODEL, D_MODEL))
        wo = rn((D_MODEL, D_MODEL))
        w1 = rn((D_FF, D_MODEL))
        w2 = rn((D_MODEL, D_FF))
        layers.append(dict(
            wqkv_t=wqkv.T, bqkv=rn((3 * D_MODEL,)),
            wo_t=wo.T, bo=rn((D_MODEL,)),
            w1_t=w1.T, b1=rn((D_FF,)),
            w2_t=w2.T, b2=rn((D_MODEL,)),
            g1=jnp.ones((D_MODEL,), jnp.float32),
            be1=jnp.zeros((D_MODEL,), jnp.float32),
            g2=jnp.ones((D_MODEL,), jnp.float32),
            be2=jnp.zeros((D_MODEL,), jnp.float32),
        ))

    def stack(name, dtype, shape2d):
        return jnp.stack(
            [layers[l][name].reshape(shape2d) for l in range(N_LAYERS)]
        ).astype(dtype)

    params.update({
        "wqkv_s": stack("wqkv_t", jnp.bfloat16, (D_MODEL, 3 * D_MODEL)),
        "bqkv_s": stack("bqkv", jnp.float32, (1, 3 * D_MODEL)),
        "wo_s":   stack("wo_t", jnp.bfloat16, (D_MODEL, D_MODEL)),
        "bo_s":   stack("bo", jnp.float32, (1, D_MODEL)),
        "w1_s":   stack("w1_t", jnp.bfloat16, (D_MODEL, D_FF)),
        "b1_s":   stack("b1", jnp.float32, (1, D_FF)),
        "w2_s":   stack("w2_t", jnp.bfloat16, (D_FF, D_MODEL)),
        "b2_s":   stack("b2", jnp.float32, (1, D_MODEL)),
        "g1_s":   stack("g1", jnp.float32, (1, D_MODEL)),
        "be1_s":  stack("be1", jnp.float32, (1, D_MODEL)),
        "g2_s":   stack("g2", jnp.float32, (1, D_MODEL)),
        "be2_s":  stack("be2", jnp.float32, (1, D_MODEL)),
    })
    return params


# ---------------------------------------------------------------------------
# Forward pass (thin plain-JAX glue; the hot path is one fused Pallas kernel)
# ---------------------------------------------------------------------------
def coordinate_refine(x, coor, params):
    B, C, H, W = x.shape
    nH, nW = H // PATCH, W // PATCH

    # Conv2d(k=8,s=8,p=0) == non-overlapping patch extraction + matmul.
    patches = x.reshape(B, C, nH, PATCH, nW, PATCH)
    patches = patches.transpose(0, 2, 4, 1, 3, 5).reshape(
        B * nH * nW, C * PATCH * PATCH).astype(jnp.bfloat16)

    # Positional-encoding table gather stays in plain JAX (glue).
    idx = coor[:, 0, :].astype(jnp.int32)                  # (B, N_COOR)
    c_emb = params["offet"] + params["pe"][idx]            # (B, N_COOR, D)

    # conv + 2-layer encoder + head: single fused pallas_call
    return fused_forward(patches, c_emb, coor, params)


if __name__ == "__main__":
    key = jax.random.PRNGKey(0)
    kx, kc = jax.random.split(key)
    B, H, W = 2, 16, 16
    x = jax.random.normal(kx, (B, C_IN, H, W), dtype=jnp.float32)
    coor = jax.random.randint(kc, (B, 2, N_COOR), 0, PE_LEN).astype(jnp.float32)

    params = init_params(jax.random.PRNGKey(42))

    fwd = jax.jit(coordinate_refine)
    out = jax.block_until_ready(fwd(x, coor, params))

    assert out.shape == (B, 2, N_COOR), out.shape
    assert bool(jnp.all(jnp.isfinite(out)))
    print("KERNEL_OK")
</pallas_src>

<mosaic_0001>
module attributes {stable_mosaic.version = 11 : i64} {
  func.func @_fused_kernel(%arg0: i32, %arg1: memref<8x8192xbf16, #tpu.memory_space<vmem>>, %arg2: memref<8192x128xbf16, #tpu.memory_space<vmem>>, %arg3: memref<1x128xf32, #tpu.memory_space<vmem>>, %arg4: memref<2x4x128xf32, #tpu.memory_space<vmem>>, %arg5: memref<2x2x4xf32, #tpu.memory_space<vmem>>, %arg6: memref<2x128x384xbf16, #tpu.memory_space<vmem>>, %arg7: memref<2x1x384xf32, #tpu.memory_space<vmem>>, %arg8: memref<2x128x128xbf16, #tpu.memory_space<vmem>>, %arg9: memref<2x1x128xf32, #tpu.memory_space<vmem>>, %arg10: memref<2x128x2048xbf16, #tpu.memory_space<vmem>>, %arg11: memref<2x1x2048xf32, #tpu.memory_space<vmem>>, %arg12: memref<2x2048x128xbf16, #tpu.memory_space<vmem>>, %arg13: memref<2x1x128xf32, #tpu.memory_space<vmem>>, %arg14: memref<2x1x128xf32, #tpu.memory_space<vmem>>, %arg15: memref<2x1x128xf32, #tpu.memory_space<vmem>>, %arg16: memref<2x1x128xf32, #tpu.memory_space<vmem>>, %arg17: memref<2x1x128xf32, #tpu.memory_space<vmem>>, %arg18: memref<128x1xf32, #tpu.memory_space<vmem>>, %arg19: memref<1x1xf32, #tpu.memory_space<vmem>>, %arg20: memref<2x2x4xf32, #tpu.memory_space<vmem>>, %arg21: memref<8x128xf32, #tpu.memory_space<vmem>>, %arg22: memref<2x8x128xf32, #tpu.memory_space<vmem>>) attributes {dimension_semantics = [#tpu.dimension_semantics<arbitrary>], iteration_bounds = array<i64: 2>, scalar_prefetch = 0 : i64, scratch_operands = 2 : i64, tpu.core_type = #tpu.core_type<tc>, window_params = [{transform_indices = @transform_0, window_bounds = array<i64: 8, 8192>}, {transform_indices = @transform_1, window_bounds = array<i64: 8192, 128>}, {pipeline_mode = #tpu.pipeline_mode<synchronous>, transform_indices = @transform_2, window_bounds = array<i64: 1, 128>}, {pipeline_mode = #tpu.pipeline_mode<synchronous>, transform_indices = @transform_3, window_bounds = array<i64: 2, 4, 128>}, {pipeline_mode = #tpu.pipeline_mode<synchronous>, transform_indices = @transform_4, window_bounds = array<i64: 2, 2, 4>}, {pipeline_mode = #tpu.pipeline_mode<synchronous>, transform_indices = @transform_5, window_bounds = array<i64: 2, 128, 384>}, {pipeline_mode = #tpu.pipeline_mode<synchronous>, transform_indices = @transform_6, window_bounds = array<i64: 2, 1, 384>}, {pipeline_mode = #tpu.pipeline_mode<synchronous>, transform_indices = @transform_7, window_bounds = array<i64: 2, 128, 128>}, {pipeline_mode = #tpu.pipeline_mode<synchronous>, transform_indices = @transform_8, window_bounds = array<i64: 2, 1, 128>}, {pipeline_mode = #tpu.pipeline_mode<synchronous>, transform_indices = @transform_9, window_bounds = array<i64: 2, 128, 2048>}, {pipeline_mode = #tpu.pipeline_mode<synchronous>, transform_indices = @transform_10, window_bounds = array<i64: 2, 1, 2048>}, {pipeline_mode = #tpu.pipeline_mode<synchronous>, transform_indices = @transform_11, window_bounds = array<i64: 2, 2048, 128>}, {pipeline_mode = #tpu.pipeline_mode<synchronous>, transform_indices = @transform_12, window_bounds = array<i64: 2, 1, 128>}, {pipeline_mode = #tpu.pipeline_mode<synchronous>, transform_indices = @transform_13, window_bounds = array<i64: 2, 1, 128>}, {pipeline_mode = #tpu.pipeline_mode<synchronous>, transform_indices = @transform_14, window_bounds = array<i64: 2, 1, 128>}, {pipeline_mode = #tpu.pipeline_mode<synchronous>, transform_indices = @transform_15, window_bounds = array<i64: 2, 1, 128>}, {pipeline_mode = #tpu.pipeline_mode<synchronous>, transform_indices = @transform_16, window_bounds = array<i64: 2, 1, 128>}, {pipeline_mode = #tpu.pipeline_mode<synchronous>, transform_indices = @transform_17, window_bounds = array<i64: 128, 1>}, {pipeline_mode = #tpu.pipeline_mode<synchronous>, transform_indices = @transform_18, window_bounds = array<i64: 1, 1>}, {pipeline_mode = #tpu.pipeline_mode<synchronous>, transform_indices = @transform_19, window_bounds = array<i64: 2, 2, 4>}]} {
    %c0_i32 = arith.constant 0 : i32
    %0 = arith.cmpi eq, %arg0, %c0_i32 : i32
    %1 = arith.extui %0 : i1 to i32
    %c0_i32_0 = arith.constant 0 : i32
    %2 = arith.cmpi ne, %1, %c0_i32_0 : i32
    scf.if %2 {
      %c0_9 = arith.constant 0 : index
      %c0_10 = arith.constant 0 : index
      %12 = vector.load %arg3[%c0_9, %c0_10] : memref<1x128xf32, #tpu.memory_space<vmem>>, vector<1x128xf32>
      %13 = vector.shape_cast %12 : vector<1x128xf32> to vector<1x128xf32>
      %14 = vector.broadcast %13 : vector<1x128xf32> to vector<8x128xf32>
      %c0_11 = arith.constant 0 : index
      %c0_12 = arith.constant 0 : index
      %15 = vector.load %arg21[%c0_11, %c0_12] : memref<8x128xf32, #tpu.memory_space<vmem>>, vector<8x128xf32>
      tpu.vector_store %arg21[%c0_11, %c0_12], %14 {strides = array<i32>} : memref<8x128xf32, #tpu.memory_space<vmem>>, vector<8x128xf32>,
    } else {
    }
    %c0 = arith.constant 0 : index
    %c0_1 = arith.constant 0 : index
    %3 = vector.load %arg21[%c0, %c0_1] : memref<8x128xf32, #tpu.memory_space<vmem>>, vector<8x128xf32>
    %c0_2 = arith.constant 0 : index
    %c0_3 = arith.constant 0 : index
    %4 = vector.load %arg1[%c0_2, %c0_3] : memref<8x8192xbf16, #tpu.memory_space<vmem>>, vector<8x8192xbf16>
    %c0_4 = arith.constant 0 : index
    %c0_5 = arith.constant 0 : index
    %5 = vector.load %arg2[%c0_4, %c0_5] : memref<8192x128xbf16, #tpu.memory_space<vmem>>, vector<8192x128xbf16>
    %cst = arith.constant dense<0.000000e+00> : vector<8x128xf32>
    %6 = tpu.matmul %4, %5, %cst {dimension_numbers = #tpu.dot_dimension_numbers<[1], [0], [0], [1], [0, 0, 1, 1], [], []>} : vector<8x8192xbf16>, vector<8192x128xbf16>, vector<8x128xf32> -> vector<8x128xf32>
    %7 = arith.addf %3, %6 : vector<8x128xf32>
    %c0_6 = arith.constant 0 : index
    %c0_7 = arith.constant 0 : index
    %8 = vector.load %arg21[%c0_6, %c0_7] : memref<8x128xf32, #tpu.memory_space<vmem>>, vector<8x128xf32>
    tpu.vector_store %arg21[%c0_6, %c0_7], %7 {strides = array<i32>} : memref<8x128xf32, #tpu.memory_space<vmem>>, vector<8x128xf32>,
    %c1_i32 = arith.constant 1 : i32
    %9 = arith.cmpi eq, %arg0, %c1_i32 : i32
    %10 = arith.extui %9 : i1 to i32
    %c0_i32_8 = arith.constant 0 : i32
    %11 = arith.cmpi ne, %10, %c0_i32_8 : i32
    scf.if %11 {
      %c0_9 = arith.constant 0 : index
      %c0_10 = arith.constant 0 : index
      %12 = vector.load %arg21[%c0_9, %c0_10] : memref<8x128xf32, #tpu.memory_space<vmem>>, vector<8x128xf32>
      %c0_11 = arith.constant 0 : index
      %c0_12 = arith.constant 0 : index
      %c0_13 = arith.constant 0 : index
      %13 = vector.load %arg4[%c0_11, %c0_12, %c0_13] : memref<2x4x128xf32, #tpu.memory_space<vmem>>, vector<2x4x128xf32>
      %14 = vector.extract_strided_slice %13 {offsets = [0, 0, 0], sizes = [1, 4, 128], strides = [1, 1, 1]} : vector<2x4x128xf32> to vector<1x4x128xf32>
      %15 = vector.shape_cast %14 : vector<1x4x128xf32> to vector<4x128xf32>
      %16 = vector.extract_strided_slice %12 {offsets = [0, 0], sizes = [4, 128], strides = [1, 1]} : vector<8x128xf32> to vector<4x128xf32>
      %17 = vector.extract_strided_slice %13 {offsets = [1, 0, 0], sizes = [1, 4, 128], strides = [1, 1, 1]} : vector<2x4x128xf32> to vector<1x4x128xf32>
      %18 = vector.shape_cast %17 : vector<1x4x128xf32> to vector<4x128xf32>
      %19 = vector.extract_strided_slice %12 {offsets = [4, 0], sizes = [4, 128], strides = [1, 1]} : vector<8x128xf32> to vector<4x128xf32>
      %20 = tpu.concatenate %15, %16, %18, %19 in 0 : vector<4x128xf32>, vector<4x128xf32>, vector<4x128xf32>, vector<4x128xf32> -> vector<16x128xf32>
      %21 = arith.truncf %20 : vector<16x128xf32> to vector<16x128xbf16>
      %c0_14 = arith.constant 0 : index
      %c0_15 = arith.constant 0 : index
      %c0_16 = arith.constant 0 : index
      %22 = vector.load %arg6[%c0_14, %c0_15, %c0_16] : memref<2x128x384xbf16, #tpu.memory_space<vmem>>, vector<1x128x384xbf16>
      %23 = vector.shape_cast %22 : vector<1x128x384xbf16> to vector<128x384xbf16>
      %cst_17 = arith.constant dense<0.000000e+00> : vector<16x384xf32>
      %24 = tpu.matmul %21, %23, %cst_17 {dimension_numbers = #tpu.dot_dimension_numbers<[1], [0], [0], [1], [0, 0, 1, 1], [], []>} : vector<16x128xbf16>, vector<128x384xbf16>, vector<16x384xf32> -> vector<16x384xf32>
      %c0_18 = arith.constant 0 : index
      %c0_19 = arith.constant 0 : index
      %c0_20 = arith.constant 0 : index
      %25 = vector.load %arg7[%c0_18, %c0_19, %c0_20] : memref<2x1x384xf32, #tpu.memory_space<vmem>>, vector<1x1x384xf32>
      %26 = vector.shape_cast %25 : vector<1x1x384xf32> to vector<1x384xf32>
      %27 = vector.broadcast %26 : vector<1x384xf32> to vector<16x384xf32>
      %28 = arith.addf %24, %27 : vector<16x384xf32>
      %29 = vector.extract_strided_slice %28 {offsets = [0, 0], sizes = [16, 128], strides = [1, 1]} : vector<16x384xf32> to vector<16x128xf32>
      %30 = vector.shape_cast %29 : vector<16x128xf32> to vector<2x8x128xf32>
      %31 = vector.extract_strided_slice %28 {offsets = [0, 128], sizes = [16, 128], strides = [1, 1]} : vector<16x384xf32> to vector<16x128xf32>
      %32 = vector.shape_cast %31 : vector<16x128xf32> to vector<2x8x128xf32>
      %33 = vector.extract_strided_slice %28 {offsets = [0, 256], sizes = [16, 128], strides = [1, 1]} : vector<16x384xf32> to vector<16x128xf32>
      %34 = vector.shape_cast %33 : vector<16x128xf32> to vector<2x8x128xf32>
      %35 = vector.extract_strided_slice %30 {offsets = [0, 0, 0], sizes = [2, 8, 32], strides = [1, 1, 1]} : vector<2x8x128xf32> to vector<2x8x32xf32>
      %36 = vector.extract_strided_slice %30 {offsets = [0, 0, 32], sizes = [2, 8, 32], strides = [1, 1, 1]} : vector<2x8x128xf32> to vector<2x8x32xf32>
      %37 = vector.extract_strided_slice %30 {offsets = [0, 0, 64], sizes = [2, 8, 32], strides = [1, 1, 1]} : vector<2x8x128xf32> to vector<2x8x32xf32>
      %38 = vector.extract_strided_slice %30 {offsets = [0, 0, 96], sizes = [2, 8, 32], strides = [1, 1, 1]} : vector<2x8x128xf32> to vector<2x8x32xf32>
      %39 = tpu.concatenate %35, %36, %37, %38 in 0 : vector<2x8x32xf32>, vector<2x8x32xf32>, vector<2x8x32xf32>, vector<2x8x32xf32> -> vector<8x8x32xf32>
      %40 = vector.extract_strided_slice %32 {offsets = [0, 0, 0], sizes = [2, 8, 32], strides = [1, 1, 1]} : vector<2x8x128xf32> to vector<2x8x32xf32>
      %41 = vector.extract_strided_slice %32 {offsets = [0, 0, 32], sizes = [2, 8, 32], strides = [1, 1, 1]} : vector<2x8x128xf32> to vector<2x8x32xf32>
      %42 = vector.extract_strided_slice %32 {offsets = [0, 0, 64], sizes = [2, 8, 32], strides = [1, 1, 1]} : vector<2x8x128xf32> to vector<2x8x32xf32>
      %43 = vector.extract_strided_slice %32 {offsets = [0, 0, 96], sizes = [2, 8, 32], strides = [1, 1, 1]} : vector<2x8x128xf32> to vector<2x8x32xf32>
      %44 = tpu.concatenate %40, %41, %42, %43 in 0 : vector<2x8x32xf32>, vector<2x8x32xf32>, vector<2x8x32xf32>, vector<2x8x32xf32> -> vector<8x8x32xf32>
      %45 = vector.extract_strided_slice %34 {offsets = [0, 0, 0], sizes = [2, 8, 32], strides = [1, 1, 1]} : vector<2x8x128xf32> to vector<2x8x32xf32>
      %46 = vector.extract_strided_slice %34 {offsets = [0, 0, 32], sizes = [2, 8, 32], strides = [1, 1, 1]} : vector<2x8x128xf32> to vector<2x8x32xf32>
      %47 = vector.extract_strided_slice %34 {offsets = [0, 0, 64], sizes = [2, 8, 32], strides = [1, 1, 1]} : vector<2x8x128xf32> to vector<2x8x32xf32>
      %48 = vector.extract_strided_slice %34 {offsets = [0, 0, 96], sizes = [2, 8, 32], strides = [1, 1, 1]} : vector<2x8x128xf32> to vector<2x8x32xf32>
      %49 = tpu.concatenate %45, %46, %47, %48 in 0 : vector<2x8x32xf32>, vector<2x8x32xf32>, vector<2x8x32xf32>, vector<2x8x32xf32> -> vector<8x8x32xf32>
      "tpu.trace_start"() <{level = 10 : i32, message = "bqd,bkd->bqk"}> : () -> ()
      %cst_21 = arith.constant dense<0.000000e+00> : vector<8x8x8xf32>
      %50 = tpu.matmul %39, %44, %cst_21 {dimension_numbers = #tpu.dot_dimension_numbers<[2], [2], [1], [1], [0, 0, 0, 1, 1, 1], [0], [0]>} : vector<8x8x32xf32>, vector<8x8x32xf32>, vector<8x8x8xf32> -> vector<8x8x8xf32>
      "tpu.trace_stop"() : () -> ()
      %cst_22 = arith.constant 0.176776692 : f32
      %51 = vector.broadcast %cst_22 : f32 to vector<8x8x8xf32>
      %52 = arith.mulf %50, %51 : vector<8x8x8xf32>
      %cst_23 = arith.constant dense<0xFF800000> : vector<8x8xf32>
      %53 = vector.multi_reduction <maximumf>, %52, %cst_23 [2] : vector<8x8x8xf32> to vector<8x8xf32>
      %54 = vector.shape_cast %53 : vector<8x8xf32> to vector<8x8x1xf32>
      %55 = vector.broadcast %54 : vector<8x8x1xf32> to vector<8x8x8xf32>
      %56 = arith.subf %52, %55 : vector<8x8x8xf32>
      %57 = math.exp %56 : vector<8x8x8xf32>
      %cst_24 = arith.constant dense<0.000000e+00> : vector<8x8xf32>
      %58 = vector.multi_reduction <add>, %57, %cst_24 [2] : vector<8x8x8xf32> to vector<8x8xf32>
      %59 = vector.shape_cast %58 : vector<8x8xf32> to vector<8x8x1xf32>
      %60 = vector.broadcast %59 : vector<8x8x1xf32> to vector<8x8x8xf32>
      %61 = arith.divf %57, %60 : vector<8x8x8xf32>
      "tpu.trace_start"() <{level = 10 : i32, message = "bqk,bkd->bqd"}> : () -> ()
      %cst_25 = arith.constant dense<0.000000e+00> : vector<8x8x32xf32>
      %62 = tpu.matmul %61, %49, %cst_25 {dimension_numbers = #tpu.dot_dimension_numbers<[2], [1], [1], [2], [0, 0, 0, 1, 1, 2], [0], [0]>} : vector<8x8x8xf32>, vector<8x8x32xf32>, vector<8x8x32xf32> -> vector<8x8x32xf32>
      "tpu.trace_stop"() : () -> ()
      %63 = vector.extract_strided_slice %62 {offsets = [0, 0, 0], sizes = [2, 8, 32], strides = [1, 1, 1]} : vector<8x8x32xf32> to vector<2x8x32xf32>
      %c0_26 = arith.constant 0 : index
      %c0_27 = arith.constant 0 : index
      %c0_28 = arith.constant 0 : index
      %64 = vector.load %arg22[%c0_26, %c0_27, %c0_28] : memref<2x8x128xf32, #tpu.memory_space<vmem>>, vector<2x8x32xf32>
      tpu.vector_store %arg22[%c0_26, %c0_27, %c0_28], %63 {strides = array<i32>} : memref<2x8x128xf32, #tpu.memory_space<vmem>>, vector<2x8x32xf32>,
      %65 = vector.extract_strided_slice %62 {offsets = [2, 0, 0], sizes = [2, 8, 32], strides = [1, 1, 1]} : vector<8x8x32xf32> to vector<2x8x32xf32>
      %c0_29 = arith.constant 0 : index
      %c0_30 = arith.constant 0 : index
      %c32 = arith.constant 32 : index
      %66 = vector.load %arg22[%c0_29, %c0_30, %c32] : memref<2x8x128xf32, #tpu.memory_space<vmem>>, vector<2x8x32xf32>
      tpu.vector_store %arg22[%c0_29, %c0_30, %c32], %65 {strides = array<i32>} : memref<2x8x128xf32, #tpu.memory_space<vmem>>, vector<2x8x32xf32>,
      %67 = vector.extract_strided_slice %62 {offsets = [4, 0, 0], sizes = [2, 8, 32], strides = [1, 1, 1]} : vector<8x8x32xf32> to vector<2x8x32xf32>
      %c0_31 = arith.constant 0 : index
      %c0_32 = arith.constant 0 : index
      %c64 = arith.constant 64 : index
      %68 = vector.load %arg22[%c0_31, %c0_32, %c64] : memref<2x8x128xf32, #tpu.memory_space<vmem>>, vector<2x8x32xf32>
      tpu.vector_store %arg22[%c0_31, %c0_32, %c64], %67 {strides = array<i32>} : memref<2x8x128xf32, #tpu.memory_space<vmem>>, vector<2x8x32xf32>,
      %69 = vector.extract_strided_slice %62 {offsets = [6, 0, 0], sizes = [2, 8, 32], strides = [1, 1, 1]} : vector<8x8x32xf32> to vector<2x8x32xf32>
      %c0_33 = arith.constant 0 : index
      %c0_34 = arith.constant 0 : index
      %c96 = arith.constant 96 : index
      %70 = vector.load %arg22[%c0_33, %c0_34, %c96] : memref<2x8x128xf32, #tpu.memory_space<vmem>>, vector<2x8x32xf32>
      tpu.vector_store %arg22[%c0_33, %c0_34, %c96], %69 {strides = array<i32>} : memref<2x8x128xf32, #tpu.memory_space<vmem>>, vector<2x8x32xf32>,
      %c0_35 = arith.constant 0 : index
      %c0_36 = arith.constant 0 : index
      %c0_37 = arith.constant 0 : index
      %71 = vector.load %arg22[%c0_35, %c0_36, %c0_37] : memref<2x8x128xf32, #tpu.memory_space<vmem>>, vector<2x8x128xf32>
      %72 = vector.shape_cast %71 : vector<2x8x128xf32> to vector<16x128xf32>
      %73 = arith.truncf %72 : vector<16x128xf32> to vector<16x128xbf16>
      %c0_38 = arith.constant 0 : index
      %c0_39 = arith.constant 0 : index
      %c0_40 = arith.constant 0 : index
      %74 = vector.load %arg8[%c0_38, %c0_39, %c0_40] : memref<2x128x128xbf16, #tpu.memory_space<vmem>>, vector<1x128x128xbf16>
      %75 = vector.shape_cast %74 : vector<1x128x128xbf16> to vector<128x128xbf16>
      %cst_41 = arith.constant dense<0.000000e+00> : vector<16x128xf32>
      %76 = tpu.matmul %73, %75, %cst_41 {dimension_numbers = #tpu.dot_dimension_numbers<[1], [0], [0], [1], [0, 0, 1, 1], [], []>} : vector<16x128xbf16>, vector<128x128xbf16>, vector<16x128xf32> -> vector<16x128xf32>
      %c0_42 = arith.constant 0 : index
      %c0_43 = arith.constant 0 : index
      %c0_44 = arith.constant 0 : index
      %77 = vector.load %arg9[%c0_42, %c0_43, %c0_44] : memref<2x1x128xf32, #tpu.memory_space<vmem>>, vector<1x1x128xf32>
      %78 = vector.shape_cast %77 : vector<1x1x128xf32> to vector<1x128xf32>
      %79 = vector.broadcast %78 : vector<1x128xf32> to vector<16x128xf32>
      %80 = arith.addf %76, %79 : vector<16x128xf32>
      %81 = arith.addf %20, %80 : vector<16x128xf32>
      %c0_45 = arith.constant 0 : index
      %c0_46 = arith.constant 0 : index
      %c0_47 = arith.constant 0 : index
      %82 = vector.load %arg14[%c0_45, %c0_46, %c0_47] : memref<2x1x128xf32, #tpu.memory_space<vmem>>, vector<1x1x128xf32>
      %83 = vector.shape_cast %82 : vector<1x1x128xf32> to vector<1x128xf32>
      %c0_48 = arith.constant 0 : index
      %c0_49 = arith.constant 0 : index
      %c0_50 = arith.constant 0 : index
      %84 = vector.load %arg15[%c0_48, %c0_49, %c0_50] : memref<2x1x128xf32, #tpu.memory_space<vmem>>, vector<1x1x128xf32>
      %85 = vector.shape_cast %84 : vector<1x1x128xf32> to vector<1x128xf32>
      %cst_51 = arith.constant dense<0.000000e+00> : vector<16xf32>
      %86 = vector.multi_reduction <add>, %81, %cst_51 [1] : vector<16x128xf32> to vector<16xf32>
      %87 = vector.shape_cast %86 : vector<16xf32> to vector<16x1xf32>
      %cst_52 = arith.constant 1.280000e+02 : f32
      %88 = vector.broadcast %cst_52 : f32 to vector<16x1xf32>
      %89 = arith.divf %87, %88 : vector<16x1xf32>
      %90 = vector.broadcast %89 : vector<16x1xf32> to vector<16x128xf32>
      %91 = arith.subf %81, %90 : vector<16x128xf32>
      %92 = arith.mulf %91, %91 : vector<16x128xf32>
      %cst_53 = arith.constant dense<0.000000e+00> : vector<16xf32>
      %93 = vector.multi_reduction <add>, %92, %cst_53 [1] : vector<16x128xf32> to vector<16xf32>
      %94 = vector.shape_cast %93 : vector<16xf32> to vector<16x1xf32>
      %cst_54 = arith.constant 1.280000e+02 : f32
      %95 = vector.broadcast %cst_54 : f32 to vector<16x1xf32>
      %96 = arith.divf %94, %95 : vector<16x1xf32>
      %97 = vector.broadcast %89 : vector<16x1xf32> to vector<16x128xf32>
      %98 = arith.subf %81, %97 : vector<16x128xf32>
      %cst_55 = arith.constant 9.99999974E-6 : f32
      %99 = vector.broadcast %cst_55 : f32 to vector<16x1xf32>
      %100 = arith.addf %96, %99 : vector<16x1xf32>
      %101 = math.rsqrt %100 : vector<16x1xf32>
      %102 = vector.broadcast %101 : vector<16x1xf32> to vector<16x128xf32>
      %103 = arith.mulf %98, %102 : vector<16x128xf32>
      %104 = vector.broadcast %83 : vector<1x128xf32> to vector<16x128xf32>
      %105 = arith.mulf %103, %104 : vector<16x128xf32>
      %106 = vector.broadcast %85 : vector<1x128xf32> to vector<16x128xf32>
      %107 = arith.addf %105, %106 : vector<16x128xf32>
      %108 = arith.truncf %107 : vector<16x128xf32> to vector<16x128xbf16>
      %c0_56 = arith.constant 0 : index
      %c0_57 = arith.constant 0 : index
      %c0_58 = arith.constant 0 : index
      %109 = vector.load %arg10[%c0_56, %c0_57, %c0_58] : memref<2x128x2048xbf16, #tpu.memory_space<vmem>>, vector<1x128x2048xbf16>
      %110 = vector.shape_cast %109 : vector<1x128x2048xbf16> to vector<128x2048xbf16>
      %cst_59 = arith.constant dense<0.000000e+00> : vector<16x2048xf32>
      %111 = tpu.matmul %108, %110, %cst_59 {dimension_numbers = #tpu.dot_dimension_numbers<[1], [0], [0], [1], [0, 0, 1, 1], [], []>} : vector<16x128xbf16>, vector<128x2048xbf16>, vector<16x2048xf32> -> vector<16x2048xf32>
      %c0_60 = arith.constant 0 : index
      %c0_61 = arith.constant 0 : index
      %c0_62 = arith.constant 0 : index
      %112 = vector.load %arg11[%c0_60, %c0_61, %c0_62] : memref<2x1x2048xf32, #tpu.memory_space<vmem>>, vector<1x1x2048xf32>
      %113 = vector.shape_cast %112 : vector<1x1x2048xf32> to vector<1x2048xf32>
      %114 = vector.broadcast %113 : vector<1x2048xf32> to vector<16x2048xf32>
      %115 = arith.addf %111, %114 : vector<16x2048xf32>
      %cst_63 = arith.constant 0.000000e+00 : f32
      %116 = vector.broadcast %cst_63 : f32 to vector<16x2048xf32>
      %117 = arith.maximumf %115, %116 : vector<16x2048xf32>
      %118 = arith.truncf %117 : vector<16x2048xf32> to vector<16x2048xbf16>
      %c0_64 = arith.constant 0 : index
      %c0_65 = arith.constant 0 : index
      %c0_66 = arith.constant 0 : index
      %119 = vector.load %arg12[%c0_64, %c0_65, %c0_66] : memref<2x2048x128xbf16, #tpu.memory_space<vmem>>, vector<1x2048x128xbf16>
      %120 = vector.shape_cast %119 : vector<1x2048x128xbf16> to vector<2048x128xbf16>
      %cst_67 = arith.constant dense<0.000000e+00> : vector<16x128xf32>
      %121 = tpu.matmul %118, %120, %cst_67 {dimension_numbers = #tpu.dot_dimension_numbers<[1], [0], [0], [1], [0, 0, 1, 1], [], []>} : vector<16x2048xbf16>, vector<2048x128xbf16>, vector<16x128xf32> -> vector<16x128xf32>
      %c0_68 = arith.constant 0 : index
      %c0_69 = arith.constant 0 : index
      %c0_70 = arith.constant 0 : index
      %122 = vector.load %arg13[%c0_68, %c0_69, %c0_70] : memref<2x1x128xf32, #tpu.memory_space<vmem>>, vector<1x1x128xf32>
      %123 = vector.shape_cast %122 : vector<1x1x128xf32> to vector<1x128xf32>
      %124 = vector.broadcast %123 : vector<1x128xf32> to vector<16x128xf32>
      %125 = arith.addf %121, %124 : vector<16x128xf32>
      %126 = arith.addf %107, %125 : vector<16x128xf32>
      %c0_71 = arith.constant 0 : index
      %c0_72 = arith.constant 0 : index
      %c0_73 = arith.constant 0 : index
      %127 = vector.load %arg16[%c0_71, %c0_72, %c0_73] : memref<2x1x128xf32, #tpu.memory_space<vmem>>, vector<1x1x128xf32>
      %128 = vector.shape_cast %127 : vector<1x1x128xf32> to vector<1x128xf32>
      %c0_74 = arith.constant 0 : index
      %c0_75 = arith.constant 0 : index
      %c0_76 = arith.constant 0 : index
      %129 = vector.load %arg17[%c0_74, %c0_75, %c0_76] : memref<2x1x128xf32, #tpu.memory_space<vmem>>, vector<1x1x128xf32>
      %130 = vector.shape_cast %129 : vector<1x1x128xf32> to vector<1x128xf32>
      %cst_77 = arith.constant dense<0.000000e+00> : vector<16xf32>
      %131 = vector.multi_reduction <add>, %126, %cst_77 [1] : vector<16x128xf32> to vector<16xf32>
      %132 = vector.shape_cast %131 : vector<16xf32> to vector<16x1xf32>
      %cst_78 = arith.constant 1.280000e+02 : f32
      %133 = vector.broadcast %cst_78 : f32 to vector<16x1xf32>
      %134 = arith.divf %132, %133 : vector<16x1xf32>
      %135 = vector.broadcast %134 : vector<16x1xf32> to vector<16x128xf32>
      %136 = arith.subf %126, %135 : vector<16x128xf32>
      %137 = arith.mulf %136, %136 : vector<16x128xf32>
      %cst_79 = arith.constant dense<0.000000e+00> : vector<16xf32>
      %138 = vector.multi_reduction <add>, %137, %cst_79 [1] : vector<16x128xf32> to vector<16xf32>
      %139 = vector.shape_cast %138 : vector<16xf32> to vector<16x1xf32>
      %cst_80 = arith.constant 1.280000e+02 : f32
      %140 = vector.broadcast %cst_80 : f32 to vector<16x1xf32>
      %141 = arith.divf %139, %140 : vector<16x1xf32>
      %142 = vector.broadcast %134 : vector<16x1xf32> to vector<16x128xf32>
      %143 = arith.subf %126, %142 : vector<16x128xf32>
      %cst_81 = arith.constant 9.99999974E-6 : f32
      %144 = vector.broadcast %cst_81 : f32 to vector<16x1xf32>
      %145 = arith.addf %141, %144 : vector<16x1xf32>
      %146 = math.rsqrt %145 : vector<16x1xf32>
      %147 = vector.broadcast %146 : vector<16x1xf32> to vector<16x128xf32>
      %148 = arith.mulf %143, %147 : vector<16x128xf32>
      %149 = vector.broadcast %128 : vector<1x128xf32> to vector<16x128xf32>
      %150 = arith.mulf %148, %149 : vector<16x128xf32>
      %151 = vector.broadcast %130 : vector<1x128xf32> to vector<16x128xf32>
      %152 = arith.addf %150, %151 : vector<16x128xf32>
      %153 = arith.truncf %152 : vector<16x128xf32> to vector<16x128xbf16>
      %c1 = arith.constant 1 : index
      %c0_82 = arith.constant 0 : index
      %c0_83 = arith.constant 0 : index
      %154 = vector.load %arg6[%c1, %c0_82, %c0_83] : memref<2x128x384xbf16, #tpu.memory_space<vmem>>, vector<1x128x384xbf16>
      %155 = vector.shape_cast %154 : vector<1x128x384xbf16> to vector<128x384xbf16>
      %cst_84 = arith.constant dense<0.000000e+00> : vector<16x384xf32>
      %156 = tpu.matmul %153, %155, %cst_84 {dimension_numbers = #tpu.dot_dimension_numbers<[1], [0], [0], [1], [0, 0, 1, 1], [], []>} : vector<16x128xbf16>, vector<128x384xbf16>, vector<16x384xf32> -> vector<16x384xf32>
      %c1_85 = arith.constant 1 : index
      %c0_86 = arith.constant 0 : index
      %c0_87 = arith.constant 0 : index
      %157 = vector.load %arg7[%c1_85, %c0_86, %c0_87] : memref<2x1x384xf32, #tpu.memory_space<vmem>>, vector<1x1x384xf32>
      %158 = vector.shape_cast %157 : vector<1x1x384xf32> to vector<1x384xf32>
      %159 = vector.broadcast %158 : vector<1x384xf32> to vector<16x384xf32>
      %160 = arith.addf %156, %159 : vector<16x384xf32>
      %161 = vector.extract_strided_slice %160 {offsets = [0, 0], sizes = [16, 128], strides = [1, 1]} : vector<16x384xf32> to vector<16x128xf32>
      %162 = vector.shape_cast %161 : vector<16x128xf32> to vector<2x8x128xf32>
      %163 = vector.extract_strided_slice %160 {offsets = [0, 128], sizes = [16, 128], strides = [1, 1]} : vector<16x384xf32> to vector<16x128xf32>
      %164 = vector.shape_cast %163 : vector<16x128xf32> to vector<2x8x128xf32>
      %165 = vector.extract_strided_slice %160 {offsets = [0, 256], sizes = [16, 128], strides = [1, 1]} : vector<16x384xf32> to vector<16x128xf32>
      %166 = vector.shape_cast %165 : vector<16x128xf32> to vector<2x8x128xf32>
      %167 = vector.extract_strided_slice %162 {offsets = [0, 0, 0], sizes = [2, 8, 32], strides = [1, 1, 1]} : vector<2x8x128xf32> to vector<2x8x32xf32>
      %168 = vector.extract_strided_slice %162 {offsets = [0, 0, 32], sizes = [2, 8, 32], strides = [1, 1, 1]} : vector<2x8x128xf32> to vector<2x8x32xf32>
      %169 = vector.extract_strided_slice %162 {offsets = [0, 0, 64], sizes = [2, 8, 32], strides = [1, 1, 1]} : vector<2x8x128xf32> to vector<2x8x32xf32>
      %170 = vector.extract_strided_slice %162 {offsets = [0, 0, 96], sizes = [2, 8, 32], strides = [1, 1, 1]} : vector<2x8x128xf32> to vector<2x8x32xf32>
      %171 = tpu.concatenate %167, %168, %169, %170 in 0 : vector<2x8x32xf32>, vector<2x8x32xf32>, vector<2x8x32xf32>, vector<2x8x32xf32> -> vector<8x8x32xf32>
      %172 = vector.extract_strided_slice %164 {offsets = [0, 0, 0], sizes = [2, 8, 32], strides = [1, 1, 1]} : vector<2x8x128xf32> to vector<2x8x32xf32>
      %173 = vector.extract_strided_slice %164 {offsets = [0, 0, 32], sizes = [2, 8, 32], strides = [1, 1, 1]} : vector<2x8x128xf32> to vector<2x8x32xf32>
      %174 = vector.extract_strided_slice %164 {offsets = [0, 0, 64], sizes = [2, 8, 32], strides = [1, 1, 1]} : vector<2x8x128xf32> to vector<2x8x32xf32>
      %175 = vector.extract_strided_slice %164 {offsets = [0, 0, 96], sizes = [2, 8, 32], strides = [1, 1, 1]} : vector<2x8x128xf32> to vector<2x8x32xf32>
      %176 = tpu.concatenate %172, %173, %174, %175 in 0 : vector<2x8x32xf32>, vector<2x8x32xf32>, vector<2x8x32xf32>, vector<2x8x32xf32> -> vector<8x8x32xf32>
      %177 = vector.extract_strided_slice %166 {offsets = [0, 0, 0], sizes = [2, 8, 32], strides = [1, 1, 1]} : vector<2x8x128xf32> to vector<2x8x32xf32>
      %178 = vector.extract_strided_slice %166 {offsets = [0, 0, 32], sizes = [2, 8, 32], strides = [1, 1, 1]} : vector<2x8x128xf32> to vector<2x8x32xf32>
      %179 = vector.extract_strided_slice %166 {offsets = [0, 0, 64], sizes = [2, 8, 32], strides = [1, 1, 1]} : vector<2x8x128xf32> to vector<2x8x32xf32>
      %180 = vector.extract_strided_slice %166 {offsets = [0, 0, 96], sizes = [2, 8, 32], strides = [1, 1, 1]} : vector<2x8x128xf32> to vector<2x8x32xf32>
      %181 = tpu.concatenate %177, %178, %179, %180 in 0 : vector<2x8x32xf32>, vector<2x8x32xf32>, vector<2x8x32xf32>, vector<2x8x32xf32> -> vector<8x8x32xf32>
      "tpu.trace_start"() <{level = 10 : i32, message = "bqd,bkd->bqk"}> : () -> ()
      %cst_88 = arith.constant dense<0.000000e+00> : vector<8x8x8xf32>
      %182 = tpu.matmul %171, %176, %cst_88 {dimension_numbers = #tpu.dot_dimension_numbers<[2], [2], [1], [1], [0, 0, 0, 1, 1, 1], [0], [0]>} : vector<8x8x32xf32>, vector<8x8x32xf32>, vector<8x8x8xf32> -> vector<8x8x8xf32>
      "tpu.trace_stop"() : () -> ()
      %cst_89 = arith.constant 0.176776692 : f32
      %183 = vector.broadcast %cst_89 : f32 to vector<8x8x8xf32>
      %184 = arith.mulf %182, %183 : vector<8x8x8xf32>
      %cst_90 = arith.constant dense<0xFF800000> : vector<8x8xf32>
      %185 = vector.multi_reduction <maximumf>, %184, %cst_90 [2] : vector<8x8x8xf32> to vector<8x8xf32>
      %186 = vector.shape_cast %185 : vector<8x8xf32> to vector<8x8x1xf32>
      %187 = vector.broadcast %186 : vector<8x8x1xf32> to vector<8x8x8xf32>
      %188 = arith.subf %184, %187 : vector<8x8x8xf32>
      %189 = math.exp %188 : vector<8x8x8xf32>
      %cst_91 = arith.constant dense<0.000000e+00> : vector<8x8xf32>
      %190 = vector.multi_reduction <add>, %189, %cst_91 [2] : vector<8x8x8xf32> to vector<8x8xf32>
      %191 = vector.shape_cast %190 : vector<8x8xf32> to vector<8x8x1xf32>
      %192 = vector.broadcast %191 : vector<8x8x1xf32> to vector<8x8x8xf32>
      %193 = arith.divf %189, %192 : vector<8x8x8xf32>
      "tpu.trace_start"() <{level = 10 : i32, message = "bqk,bkd->bqd"}> : () -> ()
      %cst_92 = arith.constant dense<0.000000e+00> : vector<8x8x32xf32>
      %194 = tpu.matmul %193, %181, %cst_92 {dimension_numbers = #tpu.dot_dimension_numbers<[2], [1], [1], [2], [0, 0, 0, 1, 1, 2], [0], [0]>} : vector<8x8x8xf32>, vector<8x8x32xf32>, vector<8x8x32xf32> -> vector<8x8x32xf32>
      "tpu.trace_stop"() : () -> ()
      %195 = vector.extract_strided_slice %194 {offsets = [0, 0, 0], sizes = [2, 8, 32], strides = [1, 1, 1]} : vector<8x8x32xf32> to vector<2x8x32xf32>
      %c0_93 = arith.constant 0 : index
      %c0_94 = arith.constant 0 : index
      %c0_95 = arith.constant 0 : index
      %196 = vector.load %arg22[%c0_93, %c0_94, %c0_95] : memref<2x8x128xf32, #tpu.memory_space<vmem>>, vector<2x8x32xf32>
      tpu.vector_store %arg22[%c0_93, %c0_94, %c0_95], %195 {strides = array<i32>} : memref<2x8x128xf32, #tpu.memory_space<vmem>>, vector<2x8x32xf32>,
      %197 = vector.extract_strided_slice %194 {offsets = [2, 0, 0], sizes = [2, 8, 32], strides = [1, 1, 1]} : vector<8x8x32xf32> to vector<2x8x32xf32>
      %c0_96 = arith.constant 0 : index
      %c0_97 = arith.constant 0 : index
      %c32_98 = arith.constant 32 : index
      %198 = vector.load %arg22[%c0_96, %c0_97, %c32_98] : memref<2x8x128xf32, #tpu.memory_space<vmem>>, vector<2x8x32xf32>
      tpu.vector_store %arg22[%c0_96, %c0_97, %c32_98], %197 {strides = array<i32>} : memref<2x8x128xf32, #tpu.memory_space<vmem>>, vector<2x8x32xf32>,
      %199 = vector.extract_strided_slice %194 {offsets = [4, 0, 0], sizes = [2, 8, 32], strides = [1, 1, 1]} : vector<8x8x32xf32> to vector<2x8x32xf32>
      %c0_99 = arith.constant 0 : index
      %c0_100 = arith.constant 0 : index
      %c64_101 = arith.constant 64 : index
      %200 = vector.load %arg22[%c0_99, %c0_100, %c64_101] : memref<2x8x128xf32, #tpu.memory_space<vmem>>, vector<2x8x32xf32>
      tpu.vector_store %arg22[%c0_99, %c0_100, %c64_101], %199 {strides = array<i32>} : memref<2x8x128xf32, #tpu.memory_space<vmem>>, vector<2x8x32xf32>,
      %201 = vector.extract_strided_slice %194 {offsets = [6, 0, 0], sizes = [2, 8, 32], strides = [1, 1, 1]} : vector<8x8x32xf32> to vector<2x8x32xf32>
      %c0_102 = arith.constant 0 : index
      %c0_103 = arith.constant 0 : index
      %c96_104 = arith.constant 96 : index
      %202 = vector.load %arg22[%c0_102, %c0_103, %c96_104] : memref<2x8x128xf32, #tpu.memory_space<vmem>>, vector<2x8x32xf32>
      tpu.vector_store %arg22[%c0_102, %c0_103, %c96_104], %201 {strides = array<i32>} : memref<2x8x128xf32, #tpu.memory_space<vmem>>, vector<2x8x32xf32>,
      %c0_105 = arith.constant 0 : index
      %c0_106 = arith.constant 0 : index
      %c0_107 = arith.constant 0 : index
      %203 = vector.load %arg22[%c0_105, %c0_106, %c0_107] : memref<2x8x128xf32, #tpu.memory_space<vmem>>, vector<2x8x128xf32>
      %204 = vector.shape_cast %203 : vector<2x8x128xf32> to vector<16x128xf32>
      %205 = arith.truncf %204 : vector<16x128xf32> to vector<16x128xbf16>
      %c1_108 = arith.constant 1 : index
      %c0_109 = arith.constant 0 : index
      %c0_110 = arith.constant 0 : index
      %206 = vector.load %arg8[%c1_108, %c0_109, %c0_110] : memref<2x128x128xbf16, #tpu.memory_space<vmem>>, vector<1x128x128xbf16>
      %207 = vector.shape_cast %206 : vector<1x128x128xbf16> to vector<128x128xbf16>
      %cst_111 = arith.constant dense<0.000000e+00> : vector<16x128xf32>
      %208 = tpu.matmul %205, %207, %cst_111 {dimension_numbers = #tpu.dot_dimension_numbers<[1], [0], [0], [1], [0, 0, 1, 1], [], []>} : vector<16x128xbf16>, vector<128x128xbf16>, vector<16x128xf32> -> vector<16x128xf32>
      %c1_112 = arith.constant 1 : index
      %c0_113 = arith.constant 0 : index
      %c0_114 = arith.constant 0 : index
      %209 = vector.load %arg9[%c1_112, %c0_113, %c0_114] : memref<2x1x128xf32, #tpu.memory_space<vmem>>, vector<1x1x128xf32>
      %210 = vector.shape_cast %209 : vector<1x1x128xf32> to vector<1x128xf32>
      %211 = vector.broadcast %210 : vector<1x128xf32> to vector<16x128xf32>
      %212 = arith.addf %208, %211 : vector<16x128xf32>
      %213 = arith.addf %152, %212 : vector<16x128xf32>
      %c1_115 = arith.constant 1 : index
      %c0_116 = arith.constant 0 : index
      %c0_117 = arith.constant 0 : index
      %214 = vector.load %arg14[%c1_115, %c0_116, %c0_117] : memref<2x1x128xf32, #tpu.memory_space<vmem>>, vector<1x1x128xf32>
      %215 = vector.shape_cast %214 : vector<1x1x128xf32> to vector<1x128xf32>
      %c1_118 = arith.constant 1 : index
      %c0_119 = arith.constant 0 : index
      %c0_120 = arith.constant 0 : index
      %216 = vector.load %arg15[%c1_118, %c0_119, %c0_120] : memref<2x1x128xf32, #tpu.memory_space<vmem>>, vector<1x1x128xf32>
      %217 = vector.shape_cast %216 : vector<1x1x128xf32> to vector<1x128xf32>
      %cst_121 = arith.constant dense<0.000000e+00> : vector<16xf32>
      %218 = vector.multi_reduction <add>, %213, %cst_121 [1] : vector<16x128xf32> to vector<16xf32>
      %219 = vector.shape_cast %218 : vector<16xf32> to vector<16x1xf32>
      %cst_122 = arith.constant 1.280000e+02 : f32
      %220 = vector.broadcast %cst_122 : f32 to vector<16x1xf32>
      %221 = arith.divf %219, %220 : vector<16x1xf32>
      %222 = vector.broadcast %221 : vector<16x1xf32> to vector<16x128xf32>
      %223 = arith.subf %213, %222 : vector<16x128xf32>
      %224 = arith.mulf %223, %223 : vector<16x128xf32>
      %cst_123 = arith.constant dense<0.000000e+00> : vector<16xf32>
      %225 = vector.multi_reduction <add>, %224, %cst_123 [1] : vector<16x128xf32> to vector<16xf32>
      %226 = vector.shape_cast %225 : vector<16xf32> to vector<16x1xf32>
      %cst_124 = arith.constant 1.280000e+02 : f32
      %227 = vector.broadcast %cst_124 : f32 to vector<16x1xf32>
      %228 = arith.divf %226, %227 : vector<16x1xf32>
      %229 = vector.broadcast %221 : vector<16x1xf32> to vector<16x128xf32>
      %230 = arith.subf %213, %229 : vector<16x128xf32>
      %cst_125 = arith.constant 9.99999974E-6 : f32
      %231 = vector.broadcast %cst_125 : f32 to vector<16x1xf32>
      %232 = arith.addf %228, %231 : vector<16x1xf32>
      %233 = math.rsqrt %232 : vector<16x1xf32>
      %234 = vector.broadcast %233 : vector<16x1xf32> to vector<16x128xf32>
      %235 = arith.mulf %230, %234 : vector<16x128xf32>
      %236 = vector.broadcast %215 : vector<1x128xf32> to vector<16x128xf32>
      %237 = arith.mulf %235, %236 : vector<16x128xf32>
      %238 = vector.broadcast %217 : vector<1x128xf32> to vector<16x128xf32>
      %239 = arith.addf %237, %238 : vector<16x128xf32>
      %240 = arith.truncf %239 : vector<16x128xf32> to vector<16x128xbf16>
      %c1_126 = arith.constant 1 : index
      %c0_127 = arith.constant 0 : index
      %c0_128 = arith.constant 0 : index
      %241 = vector.load %arg10[%c1_126, %c0_127, %c0_128] : memref<2x128x2048xbf16, #tpu.memory_space<vmem>>, vector<1x128x2048xbf16>
      %242 = vector.shape_cast %241 : vector<1x128x2048xbf16> to vector<128x2048xbf16>
      %cst_129 = arith.constant dense<0.000000e+00> : vector<16x2048xf32>
      %243 = tpu.matmul %240, %242, %cst_129 {dimension_numbers = #tpu.dot_dimension_numbers<[1], [0], [0], [1], [0, 0, 1, 1], [], []>} : vector<16x128xbf16>, vector<128x2048xbf16>, vector<16x2048xf32> -> vector<16x2048xf32>
      %c1_130 = arith.constant 1 : index
      %c0_131 = arith.constant 0 : index
      %c0_132 = arith.constant 0 : index
      %244 = vector.load %arg11[%c1_130, %c0_131, %c0_132] : memref<2x1x2048xf32, #tpu.memory_space<vmem>>, vector<1x1x2048xf32>
      %245 = vector.shape_cast %244 : vector<1x1x2048xf32> to vector<1x2048xf32>
      %246 = vector.broadcast %245 : vector<1x2048xf32> to vector<16x2048xf32>
      %247 = arith.addf %243, %246 : vector<16x2048xf32>
      %cst_133 = arith.constant 0.000000e+00 : f32
      %248 = vector.broadcast %cst_133 : f32 to vector<16x2048xf32>
      %249 = arith.maximumf %247, %248 : vector<16x2048xf32>
      %250 = arith.truncf %249 : vector<16x2048xf32> to vector<16x2048xbf16>
      %c1_134 = arith.constant 1 : index
      %c0_135 = arith.constant 0 : index
      %c0_136 = arith.constant 0 : index
      %251 = vector.load %arg12[%c1_134, %c0_135, %c0_136] : memref<2x2048x128xbf16, #tpu.memory_space<vmem>>, vector<1x2048x128xbf16>
      %252 = vector.shape_cast %251 : vector<1x2048x128xbf16> to vector<2048x128xbf16>
      %cst_137 = arith.constant dense<0.000000e+00> : vector<16x128xf32>
      %253 = tpu.matmul %250, %252, %cst_137 {dimension_numbers = #tpu.dot_dimension_numbers<[1], [0], [0], [1], [0, 0, 1, 1], [], []>} : vector<16x2048xbf16>, vector<2048x128xbf16>, vector<16x128xf32> -> vector<16x128xf32>
      %c1_138 = arith.constant 1 : index
      %c0_139 = arith.constant 0 : index
      %c0_140 = arith.constant 0 : index
      %254 = vector.load %arg13[%c1_138, %c0_139, %c0_140] : memref<2x1x128xf32, #tpu.memory_space<vmem>>, vector<1x1x128xf32>
      %255 = vector.shape_cast %254 : vector<1x1x128xf32> to vector<1x128xf32>
      %256 = vector.broadcast %255 : vector<1x128xf32> to vector<16x128xf32>
      %257 = arith.addf %253, %256 : vector<16x128xf32>
      %258 = arith.addf %239, %257 : vector<16x128xf32>
      %c1_141 = arith.constant 1 : index
      %c0_142 = arith.constant 0 : index
      %c0_143 = arith.constant 0 : index
      %259 = vector.load %arg16[%c1_141, %c0_142, %c0_143] : memref<2x1x128xf32, #tpu.memory_space<vmem>>, vector<1x1x128xf32>
      %260 = vector.shape_cast %259 : vector<1x1x128xf32> to vector<1x128xf32>
      %c1_144 = arith.constant 1 : index
      %c0_145 = arith.constant 0 : index
      %c0_146 = arith.constant 0 : index
      %261 = vector.load %arg17[%c1_144, %c0_145, %c0_146] : memref<2x1x128xf32, #tpu.memory_space<vmem>>, vector<1x1x128xf32>
      %262 = vector.shape_cast %261 : vector<1x1x128xf32> to vector<1x128xf32>
      %cst_147 = arith.constant dense<0.000000e+00> : vector<16xf32>
      %263 = vector.multi_reduction <add>, %258, %cst_147 [1] : vector<16x128xf32> to vector<16xf32>
      %264 = vector.shape_cast %263 : vector<16xf32> to vector<16x1xf32>
      %cst_148 = arith.constant 1.280000e+02 : f32
      %265 = vector.broadcast %cst_148 : f32 to vector<16x1xf32>
      %266 = arith.divf %264, %265 : vector<16x1xf32>
      %267 = vector.broadcast %266 : vector<16x1xf32> to vector<16x128xf32>
      %268 = arith.subf %258, %267 : vector<16x128xf32>
      %269 = arith.mulf %268, %268 : vector<16x128xf32>
      %cst_149 = arith.constant dense<0.000000e+00> : vector<16xf32>
      %270 = vector.multi_reduction <add>, %269, %cst_149 [1] : vector<16x128xf32> to vector<16xf32>
      %271 = vector.shape_cast %270 : vector<16xf32> to vector<16x1xf32>
      %cst_150 = arith.constant 1.280000e+02 : f32
      %272 = vector.broadcast %cst_150 : f32 to vector<16x1xf32>
      %273 = arith.divf %271, %272 : vector<16x1xf32>
      %274 = vector.broadcast %266 : vector<16x1xf32> to vector<16x128xf32>
      %275 = arith.subf %258, %274 : vector<16x128xf32>
      %cst_151 = arith.constant 9.99999974E-6 : f32
      %276 = vector.broadcast %cst_151 : f32 to vector<16x1xf32>
      %277 = arith.addf %273, %276 : vector<16x1xf32>
      %278 = math.rsqrt %277 : vector<16x1xf32>
      %279 = vector.broadcast %278 : vector<16x1xf32> to vector<16x128xf32>
      %280 = arith.mulf %275, %279 : vector<16x128xf32>
      %281 = vector.broadcast %260 : vector<1x128xf32> to vector<16x128xf32>
      %282 = arith.mulf %280, %281 : vector<16x128xf32>
      %283 = vector.broadcast %262 : vector<1x128xf32> to vector<16x128xf32>
      %284 = arith.addf %282, %283 : vector<16x128xf32>
      %285 = vector.shape_cast %284 : vector<16x128xf32> to vector<2x8x128xf32>
      %286 = vector.extract_strided_slice %285 {offsets = [0, 0, 0], sizes = [2, 1, 128], strides = [1, 1, 1]} : vector<2x8x128xf32> to vector<2x1x128xf32>
      %287 = vector.shape_cast %286 : vector<2x1x128xf32> to vector<2x128xf32>
      %c0_152 = arith.constant 0 : index
      %c0_153 = arith.constant 0 : index
      %288 = vector.load %arg18[%c0_152, %c0_153] : memref<128x1xf32, #tpu.memory_space<vmem>>, vector<128x1xf32>
      %cst_154 = arith.constant dense<0.000000e+00> : vector<2x1xf32>
      %289 = tpu.matmul %287, %288, %cst_154 {dimension_numbers = #tpu.dot_dimension_numbers<[1], [0], [0], [1], [0, 0, 1, 1], [], []>} : vector<2x128xf32>, vector<128x1xf32>, vector<2x1xf32> -> vector<2x1xf32>
      %c0_155 = arith.constant 0 : index
      %c0_156 = arith.constant 0 : index
      %290 = vector.load %arg19[%c0_155, %c0_156] : memref<1x1xf32, #tpu.memory_space<vmem>>, vector<1x1xf32>
      %291 = vector.broadcast %290 : vector<1x1xf32> to vector<2x1xf32>
      %292 = arith.addf %289, %291 : vector<2x1xf32>
      %cst_157 = arith.constant 0.000000e+00 : f32
      %293 = vector.broadcast %cst_157 : f32 to vector<2x1xf32>
      %294 = arith.subf %293, %292 : vector<2x1xf32>
      %295 = math.exp %294 : vector<2x1xf32>
      %cst_158 = arith.constant 1.000000e+00 : f32
      %296 = vector.broadcast %cst_158 : f32 to vector<2x1xf32>
      %297 = arith.addf %296, %295 : vector<2x1xf32>
      %cst_159 = arith.constant 5.000000e+01 : f32
      %298 = vector.broadcast %cst_159 : f32 to vector<2x1xf32>
      %299 = arith.divf %298, %297 : vector<2x1xf32>
      %300 = vector.shape_cast %299 : vector<2x1xf32> to vector<2x1x1xf32>
      %c0_160 = arith.constant 0 : index
      %c0_161 = arith.constant 0 : index
      %c0_162 = arith.constant 0 : index
      %301 = vector.load %arg5[%c0_160, %c0_161, %c0_162] : memref<2x2x4xf32, #tpu.memory_space<vmem>>, vector<2x2x4xf32>
      %302 = vector.broadcast %300 : vector<2x1x1xf32> to vector<2x2x4xf32>
      %303 = arith.addf %302, %301 : vector<2x2x4xf32>
      %cst_163 = arith.constant 0.000000e+00 : f32
      %cst_164 = arith.constant 2.230000e+02 : f32
      %304 = vector.broadcast %cst_163 : f32 to vector<2x2x4xf32>
      %305 = arith.maximumf %304, %303 : vector<2x2x4xf32>
      %306 = vector.broadcast %cst_164 : f32 to vector<2x2x4xf32>
      %307 = arith.minimumf %306, %305 : vector<2x2x4xf32>
      %cst_165 = arith.constant 2.240000e+02 : f32
      %308 = vector.broadcast %cst_165 : f32 to vector<2x2x4xf32>
      %309 = arith.divf %307, %308 : vector<2x2x4xf32>
      %cst_166 = arith.constant 1.024000e+03 : f32
      %310 = vector.broadcast %cst_166 : f32 to vector<2x2x4xf32>
      %311 = arith.mulf %309, %310 : vector<2x2x4xf32>
      %c0_167 = arith.constant 0 : index
      %c0_168 = arith.constant 0 : index
      %c0_169 = arith.constant 0 : index
      %312 = vector.load %arg20[%c0_167, %c0_168, %c0_169] : memref<2x2x4xf32, #tpu.memory_space<vmem>>, vector<2x2x4xf32>
      tpu.vector_store %arg20[%c0_167, %c0_168, %c0_169], %311 {strides = array<i32>} : memref<2x2x4xf32, #tpu.memory_space<vmem>>, vector<2x2x4xf32>,
    } else {
    }
    return
  }
  func.func @transform_0(%arg0: i32) -> (i32, i32) {
    %c0_i32 = arith.constant 0 : i32
    %c0_i32_0 = arith.constant 0 : i32
    return %c0_i32, %arg0 : i32, i32
  }
  func.func @transform_1(%arg0: i32) -> (i32, i32) {
    %c0_i32 = arith.constant 0 : i32
    %c0_i32_0 = arith.constant 0 : i32
    return %arg0, %c0_i32 : i32, i32
  }
  func.func @transform_2(%arg0: i32) -> (i32, i32) {
    %c0_i32 = arith.constant 0 : i32
    %c0_i32_0 = arith.constant 0 : i32
    %c0_i32_1 = arith.constant 0 : i32
    return %c0_i32, %c0_i32_0 : i32, i32
  }
  func.func @transform_3(%arg0: i32) -> (i32, i32, i32) {
    %c0_i32 = arith.constant 0 : i32
    %c0_i32_0 = arith.constant 0 : i32
    %c0_i32_1 = arith.constant 0 : i32
    %c0_i32_2 = arith.constant 0 : i32
    return %c0_i32, %c0_i32_0, %c0_i32_1 : i32, i32, i32
  }
  func.func @transform_4(%arg0: i32) -> (i32, i32, i32) {
    %c0_i32 = arith.constant 0 : i32
    %c0_i32_0 = arith.constant 0 : i32
    %c0_i32_1 = arith.constant 0 : i32
    %c0_i32_2 = arith.constant 0 : i32
    return %c0_i32, %c0_i32_0, %c0_i32_1 : i32, i32, i32
  }
  func.func @transform_5(%arg0: i32) -> (i32, i32, i32) {
    %c0_i32 = arith.constant 0 : i32
    %c0_i32_0 = arith.constant 0 : i32
    %c0_i32_1 = arith.constant 0 : i32
    %c0_i32_2 = arith.constant 0 : i32
    return %c0_i32, %c0_i32_0, %c0_i32_1 : i32, i32, i32
  }
  func.func @transform_6(%arg0: i32) -> (i32, i32, i32) {
    %c0_i32 = arith.constant 0 : i32
    %c0_i32_0 = arith.constant 0 : i32
    %c0_i32_1 = arith.constant 0 : i32
    %c0_i32_2 = arith.constant 0 : i32
    return %c0_i32, %c0_i32_0, %c0_i32_1 : i32, i32, i32
  }
  func.func @transform_7(%arg0: i32) -> (i32, i32, i32) {
    %c0_i32 = arith.constant 0 : i32
    %c0_i32_0 = arith.constant 0 : i32
    %c0_i32_1 = arith.constant 0 : i32
    %c0_i32_2 = arith.constant 0 : i32
    return %c0_i32, %c0_i32_0, %c0_i32_1 : i32, i32, i32
  }
  func.func @transform_8(%arg0: i32) -> (i32, i32, i32) {
    %c0_i32 = arith.constant 0 : i32
    %c0_i32_0 = arith.constant 0 : i32
    %c0_i32_1 = arith.constant 0 : i32
    %c0_i32_2 = arith.constant 0 : i32
    return %c0_i32, %c0_i32_0, %c0_i32_1 : i32, i32, i32
  }
  func.func @transform_9(%arg0: i32) -> (i32, i32, i32) {
    %c0_i32 = arith.constant 0 : i32
    %c0_i32_0 = arith.constant 0 : i32
    %c0_i32_1 = arith.constant 0 : i32
    %c0_i32_2 = arith.constant 0 : i32
    return %c0_i32, %c0_i32_0, %c0_i32_1 : i32, i32, i32
  }
  func.func @transform_10(%arg0: i32) -> (i32, i32, i32) {
    %c0_i32 = arith.constant 0 : i32
    %c0_i32_0 = arith.constant 0 : i32
    %c0_i32_1 = arith.constant 0 : i32
    %c0_i32_2 = arith.constant 0 : i32
    return %c0_i32, %c0_i32_0, %c0_i32_1 : i32, i32, i32
  }
  func.func @transform_11(%arg0: i32) -> (i32, i32, i32) {
    %c0_i32 = arith.constant 0 : i32
    %c0_i32_0 = arith.constant 0 : i32
    %c0_i32_1 = arith.constant 0 : i32
    %c0_i32_2 = arith.constant 0 : i32
    return %c0_i32, %c0_i32_0, %c0_i32_1 : i32, i32, i32
  }
  func.func @transform_12(%arg0: i32) -> (i32, i32, i32) {
    %c0_i32 = arith.constant 0 : i32
    %c0_i32_0 = arith.constant 0 : i32
    %c0_i32_1 = arith.constant 0 : i32
    %c0_i32_2 = arith.constant 0 : i32
    return %c0_i32, %c0_i32_0, %c0_i32_1 : i32, i32, i32
  }
  func.func @transform_13(%arg0: i32) -> (i32, i32, i32) {
    %c0_i32 = arith.constant 0 : i32
    %c0_i32_0 = arith.constant 0 : i32
    %c0_i32_1 = arith.constant 0 : i32
    %c0_i32_2 = arith.constant 0 : i32
    return %c0_i32, %c0_i32_0, %c0_i32_1 : i32, i32, i32
  }
  func.func @transform_14(%arg0: i32) -> (i32, i32, i32) {
    %c0_i32 = arith.constant 0 : i32
    %c0_i32_0 = arith.constant 0 : i32
    %c0_i32_1 = arith.constant 0 : i32
    %c0_i32_2 = arith.constant 0 : i32
    return %c0_i32, %c0_i32_0, %c0_i32_1 : i32, i32, i32
  }
  func.func @transform_15(%arg0: i32) -> (i32, i32, i32) {
    %c0_i32 = arith.constant 0 : i32
    %c0_i32_0 = arith.constant 0 : i32
    %c0_i32_1 = arith.constant 0 : i32
    %c0_i32_2 = arith.constant 0 : i32
    return %c0_i32, %c0_i32_0, %c0_i32_1 : i32, i32, i32
  }
  func.func @transform_16(%arg0: i32) -> (i32, i32, i32) {
    %c0_i32 = arith.constant 0 : i32
    %c0_i32_0 = arith.constant 0 : i32
    %c0_i32_1 = arith.constant 0 : i32
    %c0_i32_2 = arith.constant 0 : i32
    return %c0_i32, %c0_i32_0, %c0_i32_1 : i32, i32, i32
  }
  func.func @transform_17(%arg0: i32) -> (i32, i32) {
    %c0_i32 = arith.constant 0 : i32
    %c0_i32_0 = arith.constant 0 : i32
    %c0_i32_1 = arith.constant 0 : i32
    return %c0_i32, %c0_i32_0 : i32, i32
  }
  func.func @transform_18(%arg0: i32) -> (i32, i32) {
    %c0_i32 = arith.constant 0 : i32
    %c0_i32_0 = arith.constant 0 : i32
    %c0_i32_1 = arith.constant 0 : i32
    return %c0_i32, %c0_i32_0 : i32, i32
  }
  func.func @transform_19(%arg0: i32) -> (i32, i32, i32) {
    %c0_i32 = arith.constant 0 : i32
    %c0_i32_0 = arith.constant 0 : i32
    %c0_i32_1 = arith.constant 0 : i32
    %c0_i32_2 = arith.constant 0 : i32
    return %c0_i32, %c0_i32_0, %c0_i32_1 : i32, i32, i32
  }
}

</mosaic_0001>

<bundles_post_ra>
// kernel: coordinate_refine.1
= control target key start
LH: loop header
LB: loop body
LE: loop exit
PB: predicated region body
PF: predicated region fallthrough
CT: control target
= control target key end

     0   :  { %s22950_s0 = inlined_call_operand.vmem [shape: bf16[8,16384], index: 0, kind: input, shape index: {}]   ;;  %s22951_s1 = inlined_call_operand.vmem [shape: bf16[16384,128], index: 1, kind: input, shape index: {}]   ;;  %s22952_s2 = inlined_call_operand.vmem [shape: f32[1,128], index: 2, kind: input, shape index: {}]   ;;  %s22953_s3 = inlined_call_operand.vmem [shape: f32[2,4,128], index: 3, kind: input, shape index: {}]   ;;  %s22954_s4 = inlined_call_operand.vmem [shape: f32[2,2,4], index: 4, kind: input, shape index: {}]   ;;  %s22955_s5 = inlined_call_operand.vmem [shape: bf16[2,128,384], index: 5, kind: input, shape index: {}]   ;;  %s22956_s6 = inlined_call_operand.vmem [shape: f32[2,1,384], index: 6, kind: input, shape index: {}]   ;;  %s22957_s7 = inlined_call_operand.vmem [shape: bf16[2,128,128], index: 7, kind: input, shape index: {}]   ;;  %s22958_s8 = inlined_call_operand.vmem [shape: f32[2,1,128], index: 8, kind: input, shape index: {}]   ;;  %s22959_s9 = inlined_call_operand.vmem [shape: bf16[2,128,2048], index: 9, kind: input, shape index: {}]   ;;  %s22960_s10 = inlined_call_operand.vmem [shape: f32[2,1,2048], index: 10, kind: input, shape index: {}]   ;;  %s22961_s11 = inlined_call_operand.vmem [shape: bf16[2,2048,128], index: 11, kind: input, shape index: {}]   ;;  %s22962_s12 = inlined_call_operand.vmem [shape: f32[2,1,128], index: 12, kind: input, shape index: {}]   ;;  %s22963_s13 = inlined_call_operand.vmem [shape: f32[2,1,128], index: 13, kind: input, shape index: {}]   ;;  %s22964_s14 = inlined_call_operand.vmem [shape: f32[2,1,128], index: 14, kind: input, shape index: {}]   ;;  %s22965_s15 = inlined_call_operand.vmem [shape: f32[2,1,128], index: 15, kind: input, shape index: {}]   ;;  %s22966_s16 = inlined_call_operand.vmem [shape: f32[2,1,128], index: 16, kind: input, shape index: {}]   ;;  %s22967_s17 = inlined_call_operand.vmem [shape: f32[128,1], index: 17, kind: input, shape index: {}]   ;;  %s22968_s18 = inlined_call_operand.<no memory space> [shape: f32[1,1], index: 18, kind: input, shape index: {}]   ;;  %s22969_s19 = inlined_call_operand.hbm [shape: f32[2,2,4], index: 19, kind: output, shape index: {}]  }
   0x1   :  { %22974 = sst [smem:[#allocation9_spill]] %s22950_s0  ;;  %v24_v0 = vstv %s22968_s18 }
   0x2   :  { %22975 = sst [smem:[#allocation10_spill]] %s22951_s1  ;;  %25 = vst [vmem:[#allocation4] sm:$0x1] %v24_v0 }
   0x3   :  { %22976 = sst [smem:[#allocation11_spill]] %s22952_s2 }
   0x4   :  { %22977 = sst [smem:[#allocation12_spill]] %s22953_s3 }
   0x5   :  { %26 = vsyncpa [#allocation6], 0  ;;  %s19039_s20 = smov 0  }
   0x6 LB: > { %22978 = sst [smem:[#allocation8_spill]] %s18925_s20  ;;  %s19045_s21 = sadd.s32 4294967295, %s18925_s20   ;;  %s18925_s20 = sphi %s19039_s20, %s32_s20  }
   0x7   : > { %p12790_p0 = scmp.ge.s32.totalorder %s18925_s20, 1  ;;  %p547_p1 = scmp.lt.s32.totalorder %s18925_s20, 3 }
   0x9   : > { %p548_p2 = pnand %p12790_p0, %p547_p1 }
   0xa   : > { %s12791_s18 = sshll.u32 (!%p548_p2), %s19045_s21, 6  ;;  %s12793_s1 = sshll.u32 (!%p548_p2), %s19045_s21, 10 }
   0xb   : > { %551 = sbr.rel (%p548_p2) target bundleno = 4981 (0x1375), region = 96  ;;  %p604_p3 = scmp.lt.s32.totalorder (!%p548_p2), %s12791_s18, 127 }
   0xc   : > { %p610_p4 = scmp.lt.s32.totalorder (!%p548_p2), %s12793_s1, 2047  ;;  %s22979_s24 = sld [smem:[#allocation9_spill]] (!%p548_p2) }
   0xd   : > { %s22980_s28 = sld [smem:[#allocation10_spill]] (!%p548_p2)  ;;  %p12795_p5 = scmp.ne.s32.totalorder (!%p548_p2), %s19045_s21, 0 }
  0x10   : > { %s22994_s18 = smov (!%p604_p3, %s12791_s18), 127  ;;  %s22996_s1 = smov (!%p610_p4, %s12793_s1), 2047 }
  0x11   : > { %s12792_s22 = sshll.u32 %s22994_s18, 2  ;;  %s12794_s3 = sshll.u32 %s22996_s1, 2 }
  0x12   : > { %s19054_s25 = scalar_lea.vmem %s22979_s24, %s12792_s22  ;;  %618 = sbr.rel (%p12795_p5) target bundleno = 27 (0x1b), region = 100 }
  0x13   : > { %s19059_s29 = scalar_lea.vmem %s22980_s28, %s12794_s3  ;;  %s22981_s20 = sld [smem:[#allocation11_spill]] (!%p12795_p5) }
  0x19   : > { %v18753_v1 = vld [vmem:[%s22981_s20] ss:$0 sm:$0xff] }
  0x1a   : > { %623 = vst [vmem:[#allocation2] sm:$0xff] %v18753_v1 }
  0x1b PF: > { %v17649_v2 = vld [vmem:[%s19059_s29 + $0x38] sm:$0xff]  ;;  %v17648_v6 = vld [vmem:[%s19059_s29 + $0x30] sm:$0xff]  ;;  %v17647_v10 = vld [vmem:[%s19059_s29 + $0x28] sm:$0xff]  ;;  %p14844_p6 = scmp.ne.s32.totalorder %s19045_s21, 1 }
  0x1c   : > { %v17657_v3 = vld [vmem:[%s19059_s29 + $0x78] sm:$0xff]  ;;  %4977 = vmatpush.bf16.msra.mxu0 %v17649_v2  ;;  %v17656_v7 = vld [vmem:[%s19059_s29 + $0x70] sm:$0xff]  ;;  %v17655_v11 = vld [vmem:[%s19059_s29 + $0x68] sm:$0xff]  ;;  %s22982_s1 = sld [smem:[#allocation12_spill]] (!%p14844_p6)  ;;  %s18927_s28 = smov (!%p14844_p6), 64  }
  0x1d   : > { %v17665_v4 = vld [vmem:[%s19059_s29 + $0xb8] sm:$0xff]  ;;  %4990 = vmatpush.bf16.msra.mxu1 %v17657_v3  ;;  %v17664_v8 = vld [vmem:[%s19059_s29 + $0xb0] sm:$0xff]  ;;  %v17663_v12 = vld [vmem:[%s19059_s29 + $0xa8] sm:$0xff]  ;;  %s22972_s0 = smov (!%p14844_p6), 32  }
  0x1e   : > { %v17673_v5 = vld [vmem:[%s19059_s29 + $0xf8] sm:$0xff]  ;;  %5003 = vmatpush.bf16.msra.mxu2 %v17665_v4  ;;  %v17672_v9 = vld [vmem:[%s19059_s29 + $0xf0] sm:$0xff]  ;;  %v17671_v13 = vld [vmem:[%s19059_s29 + $0xe8] sm:$0xff] }
  0x1f   : > { %5016 = vmatpush.bf16.msra.mxu3 %v17673_v5  ;;  %v17646_v14 = vld [vmem:[%s19059_s29 + $0x20] sm:$0xff]  ;;  %v17645_v18 = vld [vmem:[%s19059_s29 + $0x18] sm:$0xff]  ;;  %v17644_v22 = vld [vmem:[%s19059_s29 + $0x10] sm:$0xff] }
  0x20   : > { %4978 = vmatpush.bf16.msra.mxu0 %v17648_v6  ;;  %v17654_v15 = vld [vmem:[%s19059_s29 + $0x60] sm:$0xff]  ;;  %v17653_v19 = vld [vmem:[%s19059_s29 + $0x58] sm:$0xff]  ;;  %v17652_v23 = vld [vmem:[%s19059_s29 + $0x50] sm:$0xff] }
  0x21   : > { %4991 = vmatpush.bf16.msra.mxu1 %v17656_v7  ;;  %v17662_v16 = vld [vmem:[%s19059_s29 + $0xa0] sm:$0xff]  ;;  %v17661_v20 = vld [vmem:[%s19059_s29 + $0x98] sm:$0xff]  ;;  %v17660_v24 = vld [vmem:[%s19059_s29 + $0x90] sm:$0xff] }
  0x22   : > { %5004 = vmatpush.bf16.msra.mxu2 %v17664_v8  ;;  %v17670_v17 = vld [vmem:[%s19059_s29 + $0xe0] sm:$0xff]  ;;  %v17669_v21 = vld [vmem:[%s19059_s29 + $0xd8] sm:$0xff]  ;;  %v17668_v25 = vld [vmem:[%s19059_s29 + $0xd0] sm:$0xff] }
  0x23   : > { %5017 = vmatpush.bf16.msra.mxu3 %v17672_v9  ;;  %v17643_v26 = vld [vmem:[%s19059_s29 + $0x8] sm:$0xff]  ;;  %v625_v31 = vld [vmem:[%s19054_s25] sm:$0xff]  ;;  %v17681_v40 = vld [vmem:[%s19059_s29 + $0x138] sm:$0xff] }
  0x24   : > { %4979 = vmatpush.bf16.msra.mxu0 %v17647_v10  ;;  %v17651_v27 = vld [vmem:[%s19059_s29 + $0x48] sm:$0xff]  ;;  %v17642_v32 = vld [vmem:[%s19059_s29] sm:$0xff]  ;;  %v1713_v35 = vunpack.c.l.b16 %v625_v31  ;;  %v1714_v39 = vunpack.c.h.b16 %v625_v31  ;;  %v17689_v41 = vld [vmem:[%s19059_s29 + $0x178] sm:$0xff] }
  0x25   : > { %4992 = vmatpush.bf16.msra.mxu1 %v17655_v11  ;;  %v17659_v28 = vld [vmem:[%s19059_s29 + $0x88] sm:$0xff]  ;;  %v17650_v33 = vld [vmem:[%s19059_s29 + $0x40] sm:$0xff]  ;;  %v17697_v42 = vld [vmem:[%s19059_s29 + $0x1b8] sm:$0xff] }
  0x26   : > { %5005 = vmatpush.bf16.msra.mxu2 %v17663_v12  ;;  %v17667_v29 = vld [vmem:[%s19059_s29 + $0xc8] sm:$0xff]  ;;  %v17658_v36 = vld [vmem:[%s19059_s29 + $0x80] sm:$0xff]  ;;  %v17705_v43 = vld [vmem:[%s19059_s29 + $0x1f8] sm:$0xff]  ;;  %v1777_v45 = vpack.c.b16 %v1713_v35, %v1713_v35  ;;  %v1778_v47 = vpack.c.b16 %v1714_v39, %v1714_v39 }
  0x27   : > { %5018 = vmatpush.bf16.msra.mxu3 %v17671_v13  ;;  %v626_v30 = vld [vmem:[%s19054_s25 + $0x8] sm:$0xff]  ;;  %v17666_v37 = vld [vmem:[%s19059_s29 + $0xc0] sm:$0xff]  ;;  %v17680_v48 = vld [vmem:[%s19059_s29 + $0x130] sm:$0xff] }
  0x28   : > { %4980 = vmatpush.bf16.msra.mxu0 %v17646_v14  ;;  %v1715_v34 = vunpack.c.l.b16 %v626_v30  ;;  %v1716_v38 = vunpack.c.h.b16 %v626_v30  ;;  %v17688_v49 = vld [vmem:[%s19059_s29 + $0x170] sm:$0xff]  ;;  %v17679_v52 = vld [vmem:[%s19059_s29 + $0x128] sm:$0xff]  ;;  %v17678_v56 = vld [vmem:[%s19059_s29 + $0x120] sm:$0xff] }
  0x29   : > { %4993 = vmatpush.bf16.msra.mxu1 %v17654_v15  ;;  %v17696_v50 = vld [vmem:[%s19059_s29 + $0x1b0] sm:$0xff]  ;;  %v17687_v53 = vld [vmem:[%s19059_s29 + $0x168] sm:$0xff]  ;;  %v17686_v57 = vld [vmem:[%s19059_s29 + $0x160] sm:$0xff] }
  0x2a   : > { %5006 = vmatpush.bf16.msra.mxu2 %v17662_v16  ;;  %v1779_v44 = vpack.c.b16 %v1715_v34, %v1715_v34  ;;  %v1780_v46 = vpack.c.b16 %v1716_v38, %v1716_v38  ;;  %v17704_v51 = vld [vmem:[%s19059_s29 + $0x1f0] sm:$0xff]  ;;  %v17695_v54 = vld [vmem:[%s19059_s29 + $0x1a8] sm:$0xff]  ;;  %v17694_v58 = vld [vmem:[%s19059_s29 + $0x1a0] sm:$0xff] }
  0x2b   : > { %5019 = vmatpush.bf16.msra.mxu3 %v17670_v17  ;;  %v17703_v55 = vld [vmem:[%s19059_s29 + $0x1e8] sm:$0xff]  ;;  %v17702_v59 = vld [vmem:[%s19059_s29 + $0x1e0] sm:$0xff]  ;;  %v17677_v60 = vld [vmem:[%s19059_s29 + $0x118] sm:$0xff] }
  0x2c   : > { %4981 = vmatpush.bf16.msra.mxu0 %v17645_v18  ;;  %v17685_v61 = vld [vmem:[%s19059_s29 + $0x158] sm:$0xff]  ;;  %v17676_v0 = vld [vmem:[%s19059_s29 + $0x110] sm:$0xff]  ;;  %v17675_v4 = vld [vmem:[%s19059_s29 + $0x108] sm:$0xff] }
  0x2d   : > { %4994 = vmatpush.bf16.msra.mxu1 %v17653_v19  ;;  %v17693_v62 = vld [vmem:[%s19059_s29 + $0x198] sm:$0xff]  ;;  %v17684_v1 = vld [vmem:[%s19059_s29 + $0x150] sm:$0xff]  ;;  %v17683_v5 = vld [vmem:[%s19059_s29 + $0x148] sm:$0xff] }
  0x2e   : > { %5007 = vmatpush.bf16.msra.mxu2 %v17661_v20  ;;  %v17701_v63 = vld [vmem:[%s19059_s29 + $0x1d8] sm:$0xff]  ;;  %v17692_v2 = vld [vmem:[%s19059_s29 + $0x190] sm:$0xff]  ;;  %v17691_v6 = vld [vmem:[%s19059_s29 + $0x188] sm:$0xff] }
  0x2f   : > { %5020 = vmatpush.bf16.msra.mxu3 %v17669_v21  ;;  %v17700_v3 = vld [vmem:[%s19059_s29 + $0x1d0] sm:$0xff]  ;;  %v17699_v7 = vld [vmem:[%s19059_s29 + $0x1c8] sm:$0xff]  ;;  %v628_v8 = vld [vmem:[%s19054_s25 + $0x18] sm:$0xff] }
  0x30   : > { %4982 = vmatpush.bf16.msra.mxu0 %v17644_v22  ;;  %v627_v9 = vld [vmem:[%s19054_s25 + $0x10] sm:$0xff]  ;;  %v17674_v10 = vld [vmem:[%s19059_s29 + $0x100] sm:$0xff]  ;;  %v1719_v12 = vunpack.c.l.b16 %v628_v8  ;;  %v1720_v16 = vunpack.c.h.b16 %v628_v8  ;;  %v17713_v18 = vld [vmem:[%s19059_s29 + $0x238] sm:$0xff] }
  0x31   : > { %4995 = vmatpush.bf16.msra.mxu1 %v17652_v23  ;;  %v17682_v11 = vld [vmem:[%s19059_s29 + $0x140] sm:$0xff]  ;;  %v1717_v13 = vunpack.c.l.b16 %v627_v9  ;;  %v1718_v17 = vunpack.c.h.b16 %v627_v9  ;;  %v17721_v19 = vld [vmem:[%s19059_s29 + $0x278] sm:$0xff]  ;;  %v17711_v30 = vld [vmem:[%s19059_s29 + $0x228] sm:$0xff] }
  0x32   : > { %5008 = vmatpush.bf16.msra.mxu2 %v17660_v24  ;;  %v17690_v14 = vld [vmem:[%s19059_s29 + $0x180] sm:$0xff]  ;;  %v17729_v20 = vld [vmem:[%s19059_s29 + $0x2b8] sm:$0xff]  ;;  %v1783_v22 = vpack.c.b16 %v1719_v12, %v1719_v12  ;;  %v1784_v24 = vpack.c.b16 %v1720_v16, %v1720_v16  ;;  %v17719_v31 = vld [vmem:[%s19059_s29 + $0x268] sm:$0xff] }
  0x33   : > { %5021 = vmatpush.bf16.msra.mxu3 %v17668_v25  ;;  %v17698_v15 = vld [vmem:[%s19059_s29 + $0x1c0] sm:$0xff]  ;;  %v17737_v21 = vld [vmem:[%s19059_s29 + $0x2f8] sm:$0xff]  ;;  %v1781_v23 = vpack.c.b16 %v1717_v13, %v1717_v13  ;;  %v1782_v25 = vpack.c.b16 %v1718_v17, %v1718_v17  ;;  %v17743_v8 = vld [vmem:[%s19059_s29 + $0x328] sm:$0xff] }
  0x34   : > { %4983 = vmatpush.bf16.msra.mxu0 %v17643_v26  ;;  %v17712_v26 = vld [vmem:[%s19059_s29 + $0x230] sm:$0xff]  ;;  %v17710_v34 = vld [vmem:[%s19059_s29 + $0x220] sm:$0xff]  ;;  %v17709_v38 = vld [vmem:[%s19059_s29 + $0x218] sm:$0xff] }
  0x35   : > { %4996 = vmatpush.bf16.msra.mxu1 %v17651_v27  ;;  %v17720_v27 = vld [vmem:[%s19059_s29 + $0x270] sm:$0xff]  ;;  %v17718_v35 = vld [vmem:[%s19059_s29 + $0x260] sm:$0xff]  ;;  %v17717_v39 = vld [vmem:[%s19059_s29 + $0x258] sm:$0xff] }
  0x36   : > { %5009 = vmatpush.bf16.msra.mxu2 %v17659_v28  ;;  %v17728_v28 = vld [vmem:[%s19059_s29 + $0x2b0] sm:$0xff]  ;;  %v17751_v9 = vld [vmem:[%s19059_s29 + $0x368] sm:$0xff]  ;;  %v17742_v12 = vld [vmem:[%s19059_s29 + $0x320] sm:$0xff] }
  0x37   : > { %5022 = vmatpush.bf16.msra.mxu3 %v17667_v29  ;;  %v17736_v29 = vld [vmem:[%s19059_s29 + $0x2f0] sm:$0xff]  ;;  %v17750_v13 = vld [vmem:[%s19059_s29 + $0x360] sm:$0xff]  ;;  %v17741_v16 = vld [vmem:[%s19059_s29 + $0x318] sm:$0xff] }
  0x38   : > { %4984 = vmatpush.bf16.msra.mxu0 %v17642_v32  ;;  %v17727_v32 = vld [vmem:[%s19059_s29 + $0x2a8] sm:$0xff]  ;;  %v17749_v17 = vld [vmem:[%s19059_s29 + $0x358] sm:$0xff] }
  0x39   : > { %4997 = vmatpush.bf16.msra.mxu1 %v17650_v33  ;;  %v17735_v33 = vld [vmem:[%s19059_s29 + $0x2e8] sm:$0xff] }
  0x3a   : > { %5010 = vmatpush.bf16.msra.mxu2 %v17658_v36  ;;  %v17726_v36 = vld [vmem:[%s19059_s29 + $0x2a0] sm:$0xff] }
  0x3b   : > { %5023 = vmatpush.bf16.msra.mxu3 %v17666_v37  ;;  %4985 = vmatmul.bf16.vlgmr.msra.gmra.mxu0 %v1777_v45  ;;  %v17734_v37 = vld [vmem:[%s19059_s29 + $0x2e0] sm:$0xff]  ;;  %v17732_v45 = vld [vmem:[%s19059_s29 + $0x2d0] sm:$0xff] }
  0x3c   : > { %5029 = vmatpush.bf16.msrb.mxu0 %v17681_v40  ;;  %4998 = vmatmul.bf16.vlgmr.msra.gmra.mxu1 %v1778_v47  ;;  %v17725_v40 = vld [vmem:[%s19059_s29 + $0x298] sm:$0xff]  ;;  %v17715_v47 = vld [vmem:[%s19059_s29 + $0x248] sm:$0xff] }
  0x3d   : > { %5042 = vmatpush.bf16.msrb.mxu1 %v17689_v41  ;;  %5011 = vmatmul.bf16.vlgmr.msra.gmra.mxu2 %v1779_v44  ;;  %v17733_v41 = vld [vmem:[%s19059_s29 + $0x2d8] sm:$0xff]  ;;  %v17724_v44 = vld [vmem:[%s19059_s29 + $0x290] sm:$0xff] }
  0x3e   : > { %5055 = vmatpush.bf16.msrb.mxu2 %v17697_v42  ;;  %5024 = vmatmul.bf16.vlgmr.msra.gmra.mxu3 %v1780_v46  ;;  %v17708_v42 = vld [vmem:[%s19059_s29 + $0x210] sm:$0xff]  ;;  %v17707_v46 = vld [vmem:[%s19059_s29 + $0x208] sm:$0xff] }
  0x3f   : > { %5068 = vmatpush.bf16.msrb.mxu3 %v17705_v43  ;;  %v17716_v43 = vld [vmem:[%s19059_s29 + $0x250] sm:$0xff] }
  0x40   : > { %5030 = vmatpush.bf16.msrb.mxu0 %v17680_v48  ;;  %v17723_v48 = vld [vmem:[%s19059_s29 + $0x288] sm:$0xff] }
  0x41   : > { %5043 = vmatpush.bf16.msrb.mxu1 %v17688_v49  ;;  %v17731_v49 = vld [vmem:[%s19059_s29 + $0x2c8] sm:$0xff] }
  0x42   : > { %5056 = vmatpush.bf16.msrb.mxu2 %v17696_v50  ;;  %v629_v50 = vld [vmem:[%s19054_s25 + $0x20] sm:$0xff] }
  0x43   : > { %5069 = vmatpush.bf16.msrb.mxu3 %v17704_v51  ;;  %v630_v51 = vld [vmem:[%s19054_s25 + $0x28] sm:$0xff] }
  0x44   : > { %5031 = vmatpush.bf16.msrb.mxu0 %v17679_v52  ;;  %v17706_v52 = vld [vmem:[%s19059_s29 + $0x200] sm:$0xff] }
  0x45   : > { %5044 = vmatpush.bf16.msrb.mxu1 %v17687_v53  ;;  %v17714_v53 = vld [vmem:[%s19059_s29 + $0x240] sm:$0xff] }
  0x46   : > { %5057 = vmatpush.bf16.msrb.mxu2 %v17695_v54  ;;  %v1721_v54 = vunpack.c.l.b16 %v629_v50 }
  0x47   : > { %5070 = vmatpush.bf16.msrb.mxu3 %v17703_v55  ;;  %v1723_v55 = vunpack.c.l.b16 %v630_v51 }
  0x48   : > { %5032 = vmatpush.bf16.msrb.mxu0 %v17678_v56  ;;  %v17722_v56 = vld [vmem:[%s19059_s29 + $0x280] sm:$0xff] }
  0x49   : > { %5045 = vmatpush.bf16.msrb.mxu1 %v17686_v57  ;;  %v17730_v57 = vld [vmem:[%s19059_s29 + $0x2c0] sm:$0xff] }
  0x4a   : > { %5058 = vmatpush.bf16.msrb.mxu2 %v17694_v58  ;;  %v1722_v58 = vunpack.c.h.b16 %v629_v50  ;;  %v17775_v50 = vld [vmem:[%s19059_s29 + $0x428] sm:$0xff] }
  0x4b   : > { %5071 = vmatpush.bf16.msrb.mxu3 %v17702_v59  ;;  %v1724_v59 = vunpack.c.h.b16 %v630_v51  ;;  %v17783_v51 = vld [vmem:[%s19059_s29 + $0x468] sm:$0xff] }
  0x4c   : > { %5033 = vmatpush.bf16.msrb.mxu0 %v17677_v60  ;;  %v17745_v60 = vld [vmem:[%s19059_s29 + $0x338] sm:$0xff] }
  0x4d   : > { %5046 = vmatpush.bf16.msrb.mxu1 %v17685_v61  ;;  %v17753_v61 = vld [vmem:[%s19059_s29 + $0x378] sm:$0xff] }
  0x4e   : > { %5059 = vmatpush.bf16.msrb.mxu2 %v17693_v62  ;;  %v17761_v62 = vld [vmem:[%s19059_s29 + $0x3b8] sm:$0xff] }
  0x4f   : > { %5072 = vmatpush.bf16.msrb.mxu3 %v17701_v63  ;;  %v17769_v63 = vld [vmem:[%s19059_s29 + $0x3f8] sm:$0xff] }
  0x50   : > { %5034 = vmatpush.bf16.msrb.mxu0 %v17676_v0  ;;  %v1785_v0 = vpack.c.b16 %v1721_v54, %v1721_v54  ;;  %v17774_v54 = vld [vmem:[%s19059_s29 + $0x420] sm:$0xff] }
  0x51   : > { %5047 = vmatpush.bf16.msrb.mxu1 %v17684_v1  ;;  %v1787_v1 = vpack.c.b16 %v1723_v55, %v1723_v55  ;;  %v17782_v55 = vld [vmem:[%s19059_s29 + $0x460] sm:$0xff] }
  0x52   : > { %5060 = vmatpush.bf16.msrb.mxu2 %v17692_v2  ;;  %v1786_v2 = vpack.c.b16 %v1722_v58, %v1722_v58  ;;  %v17773_v58 = vld [vmem:[%s19059_s29 + $0x418] sm:$0xff] }
  0x53   : > { %5073 = vmatpush.bf16.msrb.mxu3 %v17700_v3  ;;  %v1788_v3 = vpack.c.b16 %v1724_v59, %v1724_v59  ;;  %v17781_v59 = vld [vmem:[%s19059_s29 + $0x458] sm:$0xff] }
  0x54   : > { %5035 = vmatpush.bf16.msrb.mxu0 %v17675_v4  ;;  %v17744_v4 = vld [vmem:[%s19059_s29 + $0x330] sm:$0xff] }
  0x55   : > { %5048 = vmatpush.bf16.msrb.mxu1 %v17683_v5  ;;  %v17752_v5 = vld [vmem:[%s19059_s29 + $0x370] sm:$0xff] }
  0x56   : > { %5061 = vmatpush.bf16.msrb.mxu2 %v17691_v6  ;;  %v17760_v6 = vld [vmem:[%s19059_s29 + $0x3b0] sm:$0xff] }
  0x57   : > { %5074 = vmatpush.bf16.msrb.mxu3 %v17699_v7  ;;  %v17768_v7 = vld [vmem:[%s19059_s29 + $0x3f0] sm:$0xff] }
  0x58   : > { %5036 = vmatpush.bf16.msrb.mxu0 %v17674_v10  ;;  %v17759_v10 = vld [vmem:[%s19059_s29 + $0x3a8] sm:$0xff] }
  0x59   : > { %5049 = vmatpush.bf16.msrb.mxu1 %v17682_v11  ;;  %v17767_v11 = vld [vmem:[%s19059_s29 + $0x3e8] sm:$0xff] }
  0x5a   : > { %5062 = vmatpush.bf16.msrb.mxu2 %v17690_v14  ;;  %v17758_v14 = vld [vmem:[%s19059_s29 + $0x3a0] sm:$0xff] }
  0x5b   : > { %5075 = vmatpush.bf16.msrb.mxu3 %v17698_v15  ;;  %5037 = vmatmul.bf16.vlgmr.msrb.gmra.mxu0 %v1781_v23  ;;  %v17766_v15 = vld [vmem:[%s19059_s29 + $0x3e0] sm:$0xff]  ;;  %v17764_v23 = vld [vmem:[%s19059_s29 + $0x3d0] sm:$0xff] }
  0x5c   : > { %5081 = vmatpush.bf16.msra.mxu0 %v17713_v18  ;;  %5050 = vmatmul.bf16.vlgmr.msrb.gmra.mxu1 %v1782_v25  ;;  %v17757_v18 = vld [vmem:[%s19059_s29 + $0x398] sm:$0xff]  ;;  %v17747_v25 = vld [vmem:[%s19059_s29 + $0x348] sm:$0xff] }
  0x5d   : > { %5094 = vmatpush.bf16.msra.mxu1 %v17721_v19  ;;  %5063 = vmatmul.bf16.vlgmr.msrb.gmra.mxu2 %v1783_v22  ;;  %v17765_v19 = vld [vmem:[%s19059_s29 + $0x3d8] sm:$0xff]  ;;  %v17756_v22 = vld [vmem:[%s19059_s29 + $0x390] sm:$0xff] }
  0x5e   : > { %5107 = vmatpush.bf16.msra.mxu2 %v17729_v20  ;;  %5076 = vmatmul.bf16.vlgmr.msrb.gmra.mxu3 %v1784_v24  ;;  %v17740_v20 = vld [vmem:[%s19059_s29 + $0x310] sm:$0xff]  ;;  %v17739_v24 = vld [vmem:[%s19059_s29 + $0x308] sm:$0xff] }
  0x5f   : > { %5120 = vmatpush.bf16.msra.mxu3 %v17737_v21  ;;  %v17748_v21 = vld [vmem:[%s19059_s29 + $0x350] sm:$0xff] }
  0x60   : > { %5082 = vmatpush.bf16.msra.mxu0 %v17712_v26  ;;  %v17755_v26 = vld [vmem:[%s19059_s29 + $0x388] sm:$0xff] }
  0x61   : > { %5095 = vmatpush.bf16.msra.mxu1 %v17720_v27  ;;  %v17763_v27 = vld [vmem:[%s19059_s29 + $0x3c8] sm:$0xff] }
  0x62   : > { %5108 = vmatpush.bf16.msra.mxu2 %v17728_v28  ;;  %v631_v28 = vld [vmem:[%s19054_s25 + $0x30] sm:$0xff] }
  0x63   : > { %5121 = vmatpush.bf16.msra.mxu3 %v17736_v29  ;;  %v632_v29 = vld [vmem:[%s19054_s25 + $0x38] sm:$0xff] }
  0x64   : > { %5083 = vmatpush.bf16.msra.mxu0 %v17711_v30  ;;  %v17738_v30 = vld [vmem:[%s19059_s29 + $0x300] sm:$0xff] }
  0x65   : > { %5096 = vmatpush.bf16.msra.mxu1 %v17719_v31  ;;  %v17746_v31 = vld [vmem:[%s19059_s29 + $0x340] sm:$0xff] }
  0x66   : > { %5109 = vmatpush.bf16.msra.mxu2 %v17727_v32  ;;  %v1725_v32 = vunpack.c.l.b16 %v631_v28 }
  0x67   : > { %5122 = vmatpush.bf16.msra.mxu3 %v17735_v33  ;;  %v1727_v33 = vunpack.c.l.b16 %v632_v29 }
  0x68   : > { %5084 = vmatpush.bf16.msra.mxu0 %v17710_v34  ;;  %v17754_v34 = vld [vmem:[%s19059_s29 + $0x380] sm:$0xff] }
  0x69   : > { %5097 = vmatpush.bf16.msra.mxu1 %v17718_v35  ;;  %v17762_v35 = vld [vmem:[%s19059_s29 + $0x3c0] sm:$0xff] }
  0x6a   : > { %5110 = vmatpush.bf16.msra.mxu2 %v17726_v36  ;;  %v1726_v36 = vunpack.c.h.b16 %v631_v28  ;;  %v17807_v28 = vld [vmem:[%s19059_s29 + $0x528] sm:$0xff] }
  0x6b   : > { %5123 = vmatpush.bf16.msra.mxu3 %v17734_v37  ;;  %v1728_v37 = vunpack.c.h.b16 %v632_v29  ;;  %v17815_v29 = vld [vmem:[%s19059_s29 + $0x568] sm:$0xff] }
  0x6c   : > { %5085 = vmatpush.bf16.msra.mxu0 %v17709_v38  ;;  %v17777_v38 = vld [vmem:[%s19059_s29 + $0x438] sm:$0xff] }
  0x6d   : > { %5098 = vmatpush.bf16.msra.mxu1 %v17717_v39  ;;  %v17785_v39 = vld [vmem:[%s19059_s29 + $0x478] sm:$0xff] }
  0x6e   : > { %5111 = vmatpush.bf16.msra.mxu2 %v17725_v40  ;;  %v17793_v40 = vld [vmem:[%s19059_s29 + $0x4b8] sm:$0xff] }
  0x6f   : > { %5124 = vmatpush.bf16.msra.mxu3 %v17733_v41  ;;  %v17801_v41 = vld [vmem:[%s19059_s29 + $0x4f8] sm:$0xff] }
  0x70   : > { %5086 = vmatpush.bf16.msra.mxu0 %v17708_v42  ;;  %v1789_v42 = vpack.c.b16 %v1725_v32, %v1725_v32 }
  0x71   : > { %5099 = vmatpush.bf16.msra.mxu1 %v17716_v43  ;;  %v1791_v43 = vpack.c.b16 %v1727_v33, %v1727_v33  ;;  %v17806_v33 = vld [vmem:[%s19059_s29 + $0x520] sm:$0xff] }
  0x72   : > { %5112 = vmatpush.bf16.msra.mxu2 %v17724_v44  ;;  %v1790_v44 = vpack.c.b16 %v1726_v36, %v1726_v36  ;;  %v17822_v36 = vld [vmem:[%s19059_s29 + $0x5a0] sm:$0xff] }
  0x73   : > { %5125 = vmatpush.bf16.msra.mxu3 %v17732_v45  ;;  %v1792_v45 = vpack.c.b16 %v1728_v37, %v1728_v37  ;;  %v17830_v37 = vld [vmem:[%s19059_s29 + $0x5e0] sm:$0xff] }
  0x74   : > { %5087 = vmatpush.bf16.msra.mxu0 %v17707_v46  ;;  %v17776_v46 = vld [vmem:[%s19059_s29 + $0x430] sm:$0xff] }
  0x75   : > { %5100 = vmatpush.bf16.msra.mxu1 %v17715_v47  ;;  %v17784_v47 = vld [vmem:[%s19059_s29 + $0x470] sm:$0xff] }
  0x76   : > { %5113 = vmatpush.bf16.msra.mxu2 %v17723_v48  ;;  %v17792_v48 = vld [vmem:[%s19059_s29 + $0x4b0] sm:$0xff] }
  0x77   : > { %5126 = vmatpush.bf16.msra.mxu3 %v17731_v49  ;;  %v17800_v49 = vld [vmem:[%s19059_s29 + $0x4f0] sm:$0xff] }
  0x78   : > { %5088 = vmatpush.bf16.msra.mxu0 %v17706_v52  ;;  %v17791_v52 = vld [vmem:[%s19059_s29 + $0x4a8] sm:$0xff] }
  0x79   : > { %5101 = vmatpush.bf16.msra.mxu1 %v17714_v53  ;;  %v17799_v53 = vld [vmem:[%s19059_s29 + $0x4e8] sm:$0xff] }
  0x7a   : > { %5114 = vmatpush.bf16.msra.mxu2 %v17722_v56  ;;  %v17790_v56 = vld [vmem:[%s19059_s29 + $0x4a0] sm:$0xff] }
  0x7b   : > { %5127 = vmatpush.bf16.msra.mxu3 %v17730_v57  ;;  %5089 = vmatmul.bf16.vlgmr.msra.gmra.mxu0 %v1785_v0  ;;  %v17798_v57 = vld [vmem:[%s19059_s29 + $0x4e0] sm:$0xff]  ;;  %v17788_v0 = vld [vmem:[%s19059_s29 + $0x490] sm:$0xff] }
  0x7c   : > { %5133 = vmatpush.bf16.msrb.mxu0 %v17745_v60  ;;  %5102 = vmatmul.bf16.vlgmr.msra.gmra.mxu1 %v1786_v2  ;;  %v17789_v60 = vld [vmem:[%s19059_s29 + $0x498] sm:$0xff]  ;;  %v17771_v2 = vld [vmem:[%s19059_s29 + $0x408] sm:$0xff] }
  0x7d   : > { %5146 = vmatpush.bf16.msrb.mxu1 %v17753_v61  ;;  %5115 = vmatmul.bf16.vlgmr.msra.gmra.mxu2 %v1787_v1  ;;  %v17797_v61 = vld [vmem:[%s19059_s29 + $0x4d8] sm:$0xff]  ;;  %v17796_v1 = vld [vmem:[%s19059_s29 + $0x4d0] sm:$0xff] }
  0x7e   : > { %5159 = vmatpush.bf16.msrb.mxu2 %v17761_v62  ;;  %5128 = vmatmul.bf16.vlgmr.msra.gmra.mxu3 %v1788_v3  ;;  %v17772_v62 = vld [vmem:[%s19059_s29 + $0x410] sm:$0xff]  ;;  %v17779_v3 = vld [vmem:[%s19059_s29 + $0x448] sm:$0xff] }
  0x7f   : > { %5172 = vmatpush.bf16.msrb.mxu3 %v17769_v63  ;;  %v17780_v63 = vld [vmem:[%s19059_s29 + $0x450] sm:$0xff] }
  0x80   : > { %5134 = vmatpush.bf16.msrb.mxu0 %v17744_v4  ;;  %v17787_v4 = vld [vmem:[%s19059_s29 + $0x488] sm:$0xff] }
  0x81   : > { %5147 = vmatpush.bf16.msrb.mxu1 %v17752_v5  ;;  %v17795_v5 = vld [vmem:[%s19059_s29 + $0x4c8] sm:$0xff] }
  0x82   : > { %5160 = vmatpush.bf16.msrb.mxu2 %v17760_v6  ;;  %v633_v6 = vld [vmem:[%s19054_s25 + $0x40] sm:$0xff] }
  0x83   : > { %5173 = vmatpush.bf16.msrb.mxu3 %v17768_v7  ;;  %v634_v7 = vld [vmem:[%s19054_s25 + $0x48] sm:$0xff] }
  0x84   : > { %5135 = vmatpush.bf16.msrb.mxu0 %v17743_v8  ;;  %v17770_v8 = vld [vmem:[%s19059_s29 + $0x400] sm:$0xff] }
  0x85   : > { %5148 = vmatpush.bf16.msrb.mxu1 %v17751_v9  ;;  %v17778_v9 = vld [vmem:[%s19059_s29 + $0x440] sm:$0xff] }
  0x86   : > { %5161 = vmatpush.bf16.msrb.mxu2 %v17759_v10  ;;  %v1729_v10 = vunpack.c.l.b16 %v633_v6 }
  0x87   : > { %5174 = vmatpush.bf16.msrb.mxu3 %v17767_v11  ;;  %v1731_v11 = vunpack.c.l.b16 %v634_v7 }
  0x88   : > { %5136 = vmatpush.bf16.msrb.mxu0 %v17742_v12  ;;  %v17786_v12 = vld [vmem:[%s19059_s29 + $0x480] sm:$0xff] }
  0x89   : > { %5149 = vmatpush.bf16.msrb.mxu1 %v17750_v13  ;;  %v17794_v13 = vld [vmem:[%s19059_s29 + $0x4c0] sm:$0xff] }
  0x8a   : > { %5162 = vmatpush.bf16.msrb.mxu2 %v17758_v14  ;;  %v1730_v14 = vunpack.c.h.b16 %v633_v6  ;;  %v17849_v6 = vld [vmem:[%s19059_s29 + $0x678] sm:$0xff] }
  0x8b   : > { %5175 = vmatpush.bf16.msrb.mxu3 %v17766_v15  ;;  %v1732_v15 = vunpack.c.h.b16 %v634_v7  ;;  %v17857_v7 = vld [vmem:[%s19059_s29 + $0x6b8] sm:$0xff] }
  0x8c   : > { %5137 = vmatpush.bf16.msrb.mxu0 %v17741_v16  ;;  %v17809_v16 = vld [vmem:[%s19059_s29 + $0x538] sm:$0xff] }
  0x8d   : > { %5150 = vmatpush.bf16.msrb.mxu1 %v17749_v17  ;;  %v17817_v17 = vld [vmem:[%s19059_s29 + $0x578] sm:$0xff] }
  0x8e   : > { %5163 = vmatpush.bf16.msrb.mxu2 %v17757_v18  ;;  %v17825_v18 = vld [vmem:[%s19059_s29 + $0x5b8] sm:$0xff] }
  0x8f   : > { %5176 = vmatpush.bf16.msrb.mxu3 %v17765_v19  ;;  %v17833_v19 = vld [vmem:[%s19059_s29 + $0x5f8] sm:$0xff] }
  0x90   : > { %5138 = vmatpush.bf16.msrb.mxu0 %v17740_v20  ;;  %v1793_v20 = vpack.c.b16 %v1729_v10, %v1729_v10 }
  0x91   : > { %5151 = vmatpush.bf16.msrb.mxu1 %v17748_v21  ;;  %v1795_v21 = vpack.c.b16 %v1731_v11, %v1731_v11 }
  0x92   : > { %5164 = vmatpush.bf16.msrb.mxu2 %v17756_v22  ;;  %v1794_v22 = vpack.c.b16 %v1730_v14, %v1730_v14  ;;  %v17848_v14 = vld [vmem:[%s19059_s29 + $0x670] sm:$0xff] }
  0x93   : > { %5177 = vmatpush.bf16.msrb.mxu3 %v17764_v23  ;;  %v1796_v23 = vpack.c.b16 %v1732_v15, %v1732_v15  ;;  %v17856_v15 = vld [vmem:[%s19059_s29 + $0x6b0] sm:$0xff] }
  0x94   : > { %5139 = vmatpush.bf16.msrb.mxu0 %v17739_v24  ;;  %v17808_v24 = vld [vmem:[%s19059_s29 + $0x530] sm:$0xff] }
  0x95   : > { %5152 = vmatpush.bf16.msrb.mxu1 %v17747_v25  ;;  %v17816_v25 = vld [vmem:[%s19059_s29 + $0x570] sm:$0xff] }
  0x96   : > { %5165 = vmatpush.bf16.msrb.mxu2 %v17755_v26  ;;  %v17824_v26 = vld [vmem:[%s19059_s29 + $0x5b0] sm:$0xff] }
  0x97   : > { %5178 = vmatpush.bf16.msrb.mxu3 %v17763_v27  ;;  %v17832_v27 = vld [vmem:[%s19059_s29 + $0x5f0] sm:$0xff] }
  0x98   : > { %5140 = vmatpush.bf16.msrb.mxu0 %v17738_v30  ;;  %v17823_v30 = vld [vmem:[%s19059_s29 + $0x5a8] sm:$0xff] }
  0x99   : > { %5153 = vmatpush.bf16.msrb.mxu1 %v17746_v31  ;;  %v17831_v31 = vld [vmem:[%s19059_s29 + $0x5e8] sm:$0xff] }
  0x9a   : > { %5166 = vmatpush.bf16.msrb.mxu2 %v17754_v34  ;;  %v17814_v34 = vld [vmem:[%s19059_s29 + $0x560] sm:$0xff] }
  0x9b   : > { %5179 = vmatpush.bf16.msrb.mxu3 %v17762_v35  ;;  %5141 = vmatmul.bf16.vlgmr.msrb.gmra.mxu0 %v1789_v42  ;;  %v17829_v42 = vld [vmem:[%s19059_s29 + $0x5d8] sm:$0xff] }
  0x9c   : > { %5185 = vmatpush.bf16.msra.mxu0 %v17777_v38  ;;  %5154 = vmatmul.bf16.vlgmr.msrb.gmra.mxu1 %v1790_v44 }
  0x9d   : > { %5198 = vmatpush.bf16.msra.mxu1 %v17785_v39  ;;  %5167 = vmatmul.bf16.vlgmr.msrb.gmra.mxu2 %v1791_v43  ;;  %v17805_v39 = vld [vmem:[%s19059_s29 + $0x518] sm:$0xff] }
  0x9e   : > { %5211 = vmatpush.bf16.msra.mxu2 %v17793_v40  ;;  %5180 = vmatmul.bf16.vlgmr.msrb.gmra.mxu3 %v1792_v45  ;;  %v17813_v40 = vld [vmem:[%s19059_s29 + $0x558] sm:$0xff] }
  0x9f   : > { %5224 = vmatpush.bf16.msra.mxu3 %v17801_v41  ;;  %v17821_v41 = vld [vmem:[%s19059_s29 + $0x598] sm:$0xff] }
  0xa0   : > { %5186 = vmatpush.bf16.msra.mxu0 %v17776_v46 }
  0xa1   : > { %5199 = vmatpush.bf16.msra.mxu1 %v17784_v47  ;;  %v17804_v47 = vld [vmem:[%s19059_s29 + $0x510] sm:$0xff] }
  0xa2   : > { %5212 = vmatpush.bf16.msra.mxu2 %v17792_v48  ;;  %v17812_v48 = vld [vmem:[%s19059_s29 + $0x550] sm:$0xff] }
  0xa3   : > { %5225 = vmatpush.bf16.msra.mxu3 %v17800_v49 }
  0xa4   : > { %5187 = vmatpush.bf16.msra.mxu0 %v17775_v50 }
  0xa5   : > { %5200 = vmatpush.bf16.msra.mxu1 %v17783_v51  ;;  %v17820_v51 = vld [vmem:[%s19059_s29 + $0x590] sm:$0xff] }
  0xa6   : > { %5213 = vmatpush.bf16.msra.mxu2 %v17791_v52  ;;  %v17828_v52 = vld [vmem:[%s19059_s29 + $0x5d0] sm:$0xff] }
  0xa7   : > { %5226 = vmatpush.bf16.msra.mxu3 %v17799_v53  ;;  %v17803_v53 = vld [vmem:[%s19059_s29 + $0x508] sm:$0xff] }
  0xa8   : > { %5188 = vmatpush.bf16.msra.mxu0 %v17774_v54  ;;  %v17811_v54 = vld [vmem:[%s19059_s29 + $0x548] sm:$0xff] }
  0xa9   : > { %5201 = vmatpush.bf16.msra.mxu1 %v17782_v55  ;;  %v17819_v55 = vld [vmem:[%s19059_s29 + $0x588] sm:$0xff] }
  0xaa   : > { %5214 = vmatpush.bf16.msra.mxu2 %v17790_v56  ;;  %v17827_v56 = vld [vmem:[%s19059_s29 + $0x5c8] sm:$0xff] }
  0xab   : > { %5227 = vmatpush.bf16.msra.mxu3 %v17798_v57  ;;  %v635_v57 = vld [vmem:[%s19054_s25 + $0x50] sm:$0xff] }
  0xac   : > { %5189 = vmatpush.bf16.msra.mxu0 %v17773_v58  ;;  %v636_v58 = vld [vmem:[%s19054_s25 + $0x58] sm:$0xff] }
  0xad   : > { %5202 = vmatpush.bf16.msra.mxu1 %v17781_v59 }
  0xae   : > { %5215 = vmatpush.bf16.msra.mxu2 %v17789_v60 }
  0xaf   : > { %5228 = vmatpush.bf16.msra.mxu3 %v17797_v61  ;;  %v17802_v61 = vld [vmem:[%s19059_s29 + $0x500] sm:$0xff] }
  0xb0   : > { %5190 = vmatpush.bf16.msra.mxu0 %v17772_v62  ;;  %v17810_v62 = vld [vmem:[%s19059_s29 + $0x540] sm:$0xff] }
  0xb1   : > { %5203 = vmatpush.bf16.msra.mxu1 %v17780_v63  ;;  %v1733_v63 = vunpack.c.l.b16 %v635_v57 }
  0xb2   : > { %5216 = vmatpush.bf16.msra.mxu2 %v17788_v0  ;;  %v1735_v0 = vunpack.c.l.b16 %v636_v58 }
  0xb3   : > { %5229 = vmatpush.bf16.msra.mxu3 %v17796_v1  ;;  %v17818_v1 = vld [vmem:[%s19059_s29 + $0x580] sm:$0xff] }
  0xb4   : > { %5191 = vmatpush.bf16.msra.mxu0 %v17771_v2  ;;  %v17826_v2 = vld [vmem:[%s19059_s29 + $0x5c0] sm:$0xff]  ;;  %v1799_v10 = vpack.c.b16 %v1735_v0, %v1735_v0 }
  0xb5   : > { %5204 = vmatpush.bf16.msra.mxu1 %v17779_v3  ;;  %v1734_v3 = vunpack.c.h.b16 %v635_v57 }
  0xb6   : > { %5217 = vmatpush.bf16.msra.mxu2 %v17787_v4  ;;  %v1736_v4 = vunpack.c.h.b16 %v636_v58 }
  0xb7   : > { %5230 = vmatpush.bf16.msra.mxu3 %v17795_v5  ;;  %v17841_v5 = vld [vmem:[%s19059_s29 + $0x638] sm:$0xff]  ;;  %v1798_v11 = vpack.c.b16 %v1734_v3, %v1734_v3  ;;  %v17872_v3 = vld [vmem:[%s19059_s29 + $0x730] sm:$0xff] }
  0xb8   : > { %5192 = vmatpush.bf16.msra.mxu0 %v17770_v8  ;;  %v4986_v32 = vpop.f32.mrf.mxu0  ;;  %v17865_v8 = vld [vmem:[%s19059_s29 + $0x6f8] sm:$0xff] }
  0xb9   : > { %5205 = vmatpush.bf16.msra.mxu1 %v17778_v9  ;;  %v4999_v35 = vpop.f32.mrf.mxu1  ;;  %v1797_v9 = vpack.c.b16 %v1733_v63, %v1733_v63 }
  0xba   : > { %5218 = vmatpush.bf16.msra.mxu2 %v17786_v12  ;;  %v5000_v38 = vadd.f32 %v4999_v35, %v4986_v32  ;;  %v1800_v12 = vpack.c.b16 %v1736_v4, %v1736_v4  ;;  %v17861_v32 = vld [vmem:[%s19059_s29 + $0x6d8] sm:$0xff]  ;;  %v17880_v4 = vld [vmem:[%s19059_s29 + $0x770] sm:$0xff] }
  0xbb   : > { %5231 = vmatpush.bf16.msra.mxu3 %v17794_v13  ;;  %5193 = vmatmul.bf16.vlgmr.msra.gmra.mxu0 %v1793_v20  ;;  %v17840_v13 = vld [vmem:[%s19059_s29 + $0x630] sm:$0xff]  ;;  %v17863_v20 = vld [vmem:[%s19059_s29 + $0x6e8] sm:$0xff] }
  0xbc   : > { %5237 = vmatpush.bf16.msrb.mxu0 %v17809_v16  ;;  %5206 = vmatmul.bf16.vlgmr.msra.gmra.mxu1 %v1794_v22  ;;  %v17864_v16 = vld [vmem:[%s19059_s29 + $0x6f0] sm:$0xff]  ;;  %v17838_v22 = vld [vmem:[%s19059_s29 + $0x620] sm:$0xff] }
  0xbd   : > { %5250 = vmatpush.bf16.msrb.mxu1 %v17817_v17  ;;  %5219 = vmatmul.bf16.vlgmr.msra.gmra.mxu2 %v1795_v21  ;;  %v17839_v17 = vld [vmem:[%s19059_s29 + $0x628] sm:$0xff] }
  0xbe   : > { %5263 = vmatpush.bf16.msrb.mxu2 %v17825_v18  ;;  %5232 = vmatmul.bf16.vlgmr.msra.gmra.mxu3 %v1796_v23  ;;  %v17847_v18 = vld [vmem:[%s19059_s29 + $0x668] sm:$0xff]  ;;  %v17846_v23 = vld [vmem:[%s19059_s29 + $0x660] sm:$0xff] }
  0xbf   : > { %5276 = vmatpush.bf16.msrb.mxu3 %v17833_v19  ;;  %v17855_v19 = vld [vmem:[%s19059_s29 + $0x6a8] sm:$0xff] }
  0xc0   : > { %5238 = vmatpush.bf16.msrb.mxu0 %v17808_v24  ;;  %v5012_v43 = vpop.f32.mrf.mxu2  ;;  %v4988_v46 = vpop.f32.mrf.mxu0 }
  0xc1   : > { %5251 = vmatpush.bf16.msrb.mxu1 %v17816_v25  ;;  %v5013_v44 = vadd.f32 %v5012_v43, %v5000_v38  ;;  %v5025_v45 = vpop.f32.mrf.mxu3  ;;  %v5001_v50 = vpop.f32.mrf.mxu1  ;;  %v17844_v38 = vld [vmem:[%s19059_s29 + $0x650] sm:$0xff]  ;;  %v17835_v43 = vld [vmem:[%s19059_s29 + $0x608] sm:$0xff] }
  0xc2   : > { %5264 = vmatpush.bf16.msrb.mxu2 %v17824_v26  ;;  %v17854_v26 = vld [vmem:[%s19059_s29 + $0x6a0] sm:$0xff]  ;;  %v17859_v46 = vld [vmem:[%s19059_s29 + $0x6c8] sm:$0xff] }
  0xc3   : > { %5277 = vmatpush.bf16.msrb.mxu3 %v17832_v27  ;;  %v19257_v49 = vadd.f32 %v5025_v45, %v5013_v44  ;;  %v17862_v27 = vld [vmem:[%s19059_s29 + $0x6e0] sm:$0xff]  ;;  %v17843_v44 = vld [vmem:[%s19059_s29 + $0x648] sm:$0xff] }
  0xc4   : > { %5239 = vmatpush.bf16.msrb.mxu0 %v17807_v28  ;;  %v17851_v45 = vld [vmem:[%s19059_s29 + $0x688] sm:$0xff] }
  0xc5   : > { %5252 = vmatpush.bf16.msrb.mxu1 %v17815_v29  ;;  %v17837_v29 = vld [vmem:[%s19059_s29 + $0x618] sm:$0xff] }
  0xc6   : > { %5265 = vmatpush.bf16.msrb.mxu2 %v17823_v30  ;;  %v17845_v30 = vld [vmem:[%s19059_s29 + $0x658] sm:$0xff] }
  0xc7   : > { %5278 = vmatpush.bf16.msrb.mxu3 %v17831_v31  ;;  %v17853_v31 = vld [vmem:[%s19059_s29 + $0x698] sm:$0xff] }
  0xc8   : > { %5240 = vmatpush.bf16.msrb.mxu0 %v17806_v33  ;;  %v5014_v59 = vpop.f32.mrf.mxu2 }
  0xc9   : > { %5253 = vmatpush.bf16.msrb.mxu1 %v17814_v34  ;;  %v5027_v60 = vpop.f32.mrf.mxu3  ;;  %v17873_v59 = vld [vmem:[%s19059_s29 + $0x738] sm:$0xff] }
  0xca   : > { %5266 = vmatpush.bf16.msrb.mxu2 %v17822_v36  ;;  %v17881_v60 = vld [vmem:[%s19059_s29 + $0x778] sm:$0xff] }
  0xcb   : > { %5279 = vmatpush.bf16.msrb.mxu3 %v17830_v37  ;;  %v17836_v37 = vld [vmem:[%s19059_s29 + $0x610] sm:$0xff] }
  0xcc   : > { %5241 = vmatpush.bf16.msrb.mxu0 %v17805_v39 }
  0xcd   : > { %5254 = vmatpush.bf16.msrb.mxu1 %v17813_v40 }
  0xce   : > { %5267 = vmatpush.bf16.msrb.mxu2 %v17821_v41  ;;  %v17852_v41 = vld [vmem:[%s19059_s29 + $0x690] sm:$0xff] }
  0xcf   : > { %5280 = vmatpush.bf16.msrb.mxu3 %v17829_v42  ;;  %v17860_v42 = vld [vmem:[%s19059_s29 + $0x6d0] sm:$0xff] }
  0xd0   : > { %5242 = vmatpush.bf16.msrb.mxu0 %v17804_v47  ;;  %v637_v47 = vld [vmem:[%s19054_s25 + $0x60] sm:$0xff] }
  0xd1   : > { %5255 = vmatpush.bf16.msrb.mxu1 %v17812_v48  ;;  %v638_v48 = vld [vmem:[%s19054_s25 + $0x68] sm:$0xff]  ;;  %v1738_v57 = vunpack.c.h.b16 %v637_v47 }
  0xd2   : > { %5268 = vmatpush.bf16.msrb.mxu2 %v17820_v51  ;;  %v17834_v51 = vld [vmem:[%s19059_s29 + $0x600] sm:$0xff]  ;;  %v1740_v58 = vunpack.c.h.b16 %v638_v48 }
  0xd3   : > { %5281 = vmatpush.bf16.msrb.mxu3 %v17828_v52  ;;  %v17842_v52 = vld [vmem:[%s19059_s29 + $0x640] sm:$0xff] }
  0xd4   : > { %5243 = vmatpush.bf16.msrb.mxu0 %v17803_v53  ;;  %v1737_v53 = vunpack.c.l.b16 %v637_v47 }
  0xd5   : > { %5256 = vmatpush.bf16.msrb.mxu1 %v17811_v54  ;;  %v1739_v54 = vunpack.c.l.b16 %v638_v48 }
  0xd6   : > { %5269 = vmatpush.bf16.msrb.mxu2 %v17819_v55  ;;  %v17850_v55 = vld [vmem:[%s19059_s29 + $0x680] sm:$0xff]  ;;  %v1801_v63 = vpack.c.b16 %v1737_v53, %v1737_v53 }
  0xd7   : > { %5282 = vmatpush.bf16.msrb.mxu3 %v17827_v56  ;;  %v17858_v56 = vld [vmem:[%s19059_s29 + $0x6c0] sm:$0xff]  ;;  %v1803_v0 = vpack.c.b16 %v1739_v54, %v1739_v54 }
  0xd8   : > { %5244 = vmatpush.bf16.msrb.mxu0 %v17802_v61  ;;  %v5038_v21 = vpop.f32.mrf.mxu0  ;;  %v17889_v61 = vld [vmem:[%s19059_s29 + $0x7b8] sm:$0xff] }
  0xd9   : > { %5257 = vmatpush.bf16.msrb.mxu1 %v17810_v62  ;;  %v5039_v24 = vadd.f32 %v5038_v21, %v19257_v49  ;;  %v5051_v25 = vpop.f32.mrf.mxu1  ;;  %v17897_v62 = vld [vmem:[%s19059_s29 + $0x7f8] sm:$0xff] }
  0xda   : > { %5270 = vmatpush.bf16.msrb.mxu2 %v17818_v1  ;;  %v1802_v1 = vpack.c.b16 %v1738_v57, %v1738_v57  ;;  %v17885_v21 = vld [vmem:[%s19059_s29 + $0x798] sm:$0xff]  ;;  %v17904_v57 = vld [vmem:[%s19059_s29 + $0x830] sm:$0xff] }
  0xdb   : > { %5283 = vmatpush.bf16.msrb.mxu3 %v17826_v2  ;;  %5245 = vmatmul.bf16.vlgmr.msrb.gmra.mxu0 %v1797_v9  ;;  %v5052_v28 = vadd.f32 %v5051_v25, %v5039_v24  ;;  %v1804_v2 = vpack.c.b16 %v1740_v58, %v1740_v58  ;;  %v17887_v9 = vld [vmem:[%s19059_s29 + $0x7a8] sm:$0xff]  ;;  %v17912_v58 = vld [vmem:[%s19059_s29 + $0x870] sm:$0xff] }
  0xdc   : > { %5289 = vmatpush.bf16.msra.mxu0 %v17841_v5  ;;  %5258 = vmatmul.bf16.vlgmr.msrb.gmra.mxu1 %v1798_v11  ;;  %v17888_v5 = vld [vmem:[%s19059_s29 + $0x7b0] sm:$0xff] }
  0xdd   : > { %5302 = vmatpush.bf16.msra.mxu1 %v17849_v6  ;;  %5271 = vmatmul.bf16.vlgmr.msrb.gmra.mxu2 %v1799_v10  ;;  %v17896_v6 = vld [vmem:[%s19059_s29 + $0x7f0] sm:$0xff]  ;;  %v17895_v10 = vld [vmem:[%s19059_s29 + $0x7e8] sm:$0xff] }
  0xde   : > { %5315 = vmatpush.bf16.msra.mxu2 %v17857_v7  ;;  %5284 = vmatmul.bf16.vlgmr.msrb.gmra.mxu3 %v1800_v12  ;;  %v17871_v7 = vld [vmem:[%s19059_s29 + $0x728] sm:$0xff] }
  0xdf   : > { %5328 = vmatpush.bf16.msra.mxu3 %v17865_v8  ;;  %v17879_v8 = vld [vmem:[%s19059_s29 + $0x768] sm:$0xff] }
  0xe0   : > { %5290 = vmatpush.bf16.msra.mxu0 %v17840_v13  ;;  %v5064_v33 = vpop.f32.mrf.mxu2  ;;  %v5040_v36 = vpop.f32.mrf.mxu0  ;;  %v17870_v13 = vld [vmem:[%s19059_s29 + $0x720] sm:$0xff] }
  0xe1   : > { %5303 = vmatpush.bf16.msra.mxu1 %v17848_v14  ;;  %v5065_v34 = vadd.f32 %v5064_v33, %v5052_v28  ;;  %v5077_v35 = vpop.f32.mrf.mxu3  ;;  %v5053_v40 = vpop.f32.mrf.mxu1  ;;  %v17878_v14 = vld [vmem:[%s19059_s29 + $0x760] sm:$0xff]  ;;  %v17868_v28 = vld [vmem:[%s19059_s29 + $0x710] sm:$0xff]  ;;  %v17867_v33 = vld [vmem:[%s19059_s29 + $0x708] sm:$0xff] }
  0xe2   : > { %5316 = vmatpush.bf16.msra.mxu2 %v17856_v15  ;;  %v17891_v36 = vld [vmem:[%s19059_s29 + $0x7c8] sm:$0xff] }
  0xe3   : > { %5329 = vmatpush.bf16.msra.mxu3 %v17864_v16  ;;  %v19294_v39 = vadd.f32 %v5077_v35, %v5065_v34  ;;  %v17886_v16 = vld [vmem:[%s19059_s29 + $0x7a0] sm:$0xff]  ;;  %v17875_v34 = vld [vmem:[%s19059_s29 + $0x748] sm:$0xff] }
  0xe4   : > { %5291 = vmatpush.bf16.msra.mxu0 %v17839_v17  ;;  %v17894_v17 = vld [vmem:[%s19059_s29 + $0x7e0] sm:$0xff]  ;;  %v17883_v35 = vld [vmem:[%s19059_s29 + $0x788] sm:$0xff] }
  0xe5   : > { %5304 = vmatpush.bf16.msra.mxu1 %v17847_v18 }
  0xe6   : > { %5317 = vmatpush.bf16.msra.mxu2 %v17855_v19  ;;  %v17869_v19 = vld [vmem:[%s19059_s29 + $0x718] sm:$0xff] }
  0xe7   : > { %5330 = vmatpush.bf16.msra.mxu3 %v17863_v20  ;;  %v17877_v20 = vld [vmem:[%s19059_s29 + $0x758] sm:$0xff] }
  0xe8   : > { %5292 = vmatpush.bf16.msra.mxu0 %v17838_v22  ;;  %v5066_v49 = vpop.f32.mrf.mxu2  ;;  %v17893_v22 = vld [vmem:[%s19059_s29 + $0x7d8] sm:$0xff] }
  0xe9   : > { %5305 = vmatpush.bf16.msra.mxu1 %v17846_v23  ;;  %v5079_v50 = vpop.f32.mrf.mxu3  ;;  %v17905_v49 = vld [vmem:[%s19059_s29 + $0x838] sm:$0xff] }
  0xea   : > { %5318 = vmatpush.bf16.msra.mxu2 %v17854_v26  ;;  %v17913_v50 = vld [vmem:[%s19059_s29 + $0x878] sm:$0xff] }
  0xeb   : > { %5331 = vmatpush.bf16.msra.mxu3 %v17862_v27 }
  0xec   : > { %5293 = vmatpush.bf16.msra.mxu0 %v17837_v29  ;;  %v17876_v29 = vld [vmem:[%s19059_s29 + $0x750] sm:$0xff] }
  0xed   : > { %5306 = vmatpush.bf16.msra.mxu1 %v17845_v30 }
  0xee   : > { %5319 = vmatpush.bf16.msra.mxu2 %v17853_v31  ;;  %v17884_v31 = vld [vmem:[%s19059_s29 + $0x790] sm:$0xff] }
  0xef   : > { %5332 = vmatpush.bf16.msra.mxu3 %v17861_v32  ;;  %v17892_v32 = vld [vmem:[%s19059_s29 + $0x7d0] sm:$0xff] }
  0xf0   : > { %5294 = vmatpush.bf16.msra.mxu0 %v17836_v37  ;;  %v639_v37 = vld [vmem:[%s19054_s25 + $0x70] sm:$0xff] }
  0xf1   : > { %5307 = vmatpush.bf16.msra.mxu1 %v17844_v38  ;;  %v640_v38 = vld [vmem:[%s19054_s25 + $0x78] sm:$0xff]  ;;  %v1742_v47 = vunpack.c.h.b16 %v639_v37 }
  0xf2   : > { %5320 = vmatpush.bf16.msra.mxu2 %v17852_v41  ;;  %v17866_v41 = vld [vmem:[%s19059_s29 + $0x700] sm:$0xff]  ;;  %v1744_v48 = vunpack.c.h.b16 %v640_v38 }
  0xf3   : > { %5333 = vmatpush.bf16.msra.mxu3 %v17860_v42  ;;  %v17874_v42 = vld [vmem:[%s19059_s29 + $0x740] sm:$0xff] }
  0xf4   : > { %5295 = vmatpush.bf16.msra.mxu0 %v17835_v43  ;;  %v1741_v43 = vunpack.c.l.b16 %v639_v37 }
  0xf5   : > { %5308 = vmatpush.bf16.msra.mxu1 %v17843_v44  ;;  %v1743_v44 = vunpack.c.l.b16 %v640_v38 }
  0xf6   : > { %5321 = vmatpush.bf16.msra.mxu2 %v17851_v45  ;;  %v17882_v45 = vld [vmem:[%s19059_s29 + $0x780] sm:$0xff]  ;;  %v1805_v53 = vpack.c.b16 %v1741_v43, %v1741_v43 }
  0xf7   : > { %5334 = vmatpush.bf16.msra.mxu3 %v17859_v46  ;;  %v17890_v46 = vld [vmem:[%s19059_s29 + $0x7c0] sm:$0xff]  ;;  %v1807_v54 = vpack.c.b16 %v1743_v44, %v1743_v44 }
  0xf8   : > { %5296 = vmatpush.bf16.msra.mxu0 %v17834_v51  ;;  %v5090_v11 = vpop.f32.mrf.mxu0  ;;  %v17921_v51 = vld [vmem:[%s19059_s29 + $0x8b8] sm:$0xff] }
  0xf9   : > { %5309 = vmatpush.bf16.msra.mxu1 %v17842_v52  ;;  %v5091_v12 = vadd.f32 %v5090_v11, %v19294_v39  ;;  %v5103_v15 = vpop.f32.mrf.mxu1  ;;  %v17929_v52 = vld [vmem:[%s19059_s29 + $0x8f8] sm:$0xff] }
  0xfa   : > { %5322 = vmatpush.bf16.msra.mxu2 %v17850_v55  ;;  %v1806_v55 = vpack.c.b16 %v1742_v47, %v1742_v47  ;;  %v17917_v11 = vld [vmem:[%s19059_s29 + $0x898] sm:$0xff]  ;;  %v17936_v47 = vld [vmem:[%s19059_s29 + $0x930] sm:$0xff] }
  0xfb   : > { %5335 = vmatpush.bf16.msra.mxu3 %v17858_v56  ;;  %5297 = vmatmul.bf16.vlgmr.msra.gmra.mxu0 %v1801_v63  ;;  %v5104_v18 = vadd.f32 %v5103_v15, %v5091_v12  ;;  %v1808_v56 = vpack.c.b16 %v1744_v48, %v1744_v48  ;;  %v17919_v63 = vld [vmem:[%s19059_s29 + $0x8a8] sm:$0xff]  ;;  %v17925_v12 = vld [vmem:[%s19059_s29 + $0x8d8] sm:$0xff]  ;;  %v17944_v48 = vld [vmem:[%s19059_s29 + $0x970] sm:$0xff] }
  0xfc   : > { %5341 = vmatpush.bf16.msrb.mxu0 %v17873_v59  ;;  %5310 = vmatmul.bf16.vlgmr.msra.gmra.mxu1 %v1802_v1  ;;  %v17920_v59 = vld [vmem:[%s19059_s29 + $0x8b0] sm:$0xff] }
  0xfd   : > { %5354 = vmatpush.bf16.msrb.mxu1 %v17881_v60  ;;  %5323 = vmatmul.bf16.vlgmr.msra.gmra.mxu2 %v1803_v0  ;;  %v17928_v60 = vld [vmem:[%s19059_s29 + $0x8f0] sm:$0xff]  ;;  %v17927_v0 = vld [vmem:[%s19059_s29 + $0x8e8] sm:$0xff] }
  0xfe   : > { %5367 = vmatpush.bf16.msrb.mxu2 %v17889_v61  ;;  %5336 = vmatmul.bf16.vlgmr.msra.gmra.mxu3 %v1804_v2  ;;  %v17903_v61 = vld [vmem:[%s19059_s29 + $0x828] sm:$0xff] }
  0xff   : > { %5380 = vmatpush.bf16.msrb.mxu3 %v17897_v62  ;;  %v17911_v62 = vld [vmem:[%s19059_s29 + $0x868] sm:$0xff] }
 0x100   : > { %5342 = vmatpush.bf16.msrb.mxu0 %v17872_v3  ;;  %v5116_v23 = vpop.f32.mrf.mxu2  ;;  %v5092_v26 = vpop.f32.mrf.mxu0  ;;  %v17902_v3 = vld [vmem:[%s19059_s29 + $0x820] sm:$0xff] }
 0x101   : > { %5355 = vmatpush.bf16.msrb.mxu1 %v17880_v4  ;;  %v5117_v24 = vadd.f32 %v5116_v23, %v5104_v18  ;;  %v5129_v25 = vpop.f32.mrf.mxu3  ;;  %v5105_v30 = vpop.f32.mrf.mxu1  ;;  %v17910_v4 = vld [vmem:[%s19059_s29 + $0x860] sm:$0xff]  ;;  %v17900_v18 = vld [vmem:[%s19059_s29 + $0x810] sm:$0xff]  ;;  %v17899_v23 = vld [vmem:[%s19059_s29 + $0x808] sm:$0xff] }
 0x102   : > { %5368 = vmatpush.bf16.msrb.mxu2 %v17888_v5  ;;  %v17923_v26 = vld [vmem:[%s19059_s29 + $0x8c8] sm:$0xff] }
 0x103   : > { %5381 = vmatpush.bf16.msrb.mxu3 %v17896_v6  ;;  %v19329_v27 = vadd.f32 %v5129_v25, %v5117_v24  ;;  %v17918_v6 = vld [vmem:[%s19059_s29 + $0x8a0] sm:$0xff]  ;;  %v17907_v24 = vld [vmem:[%s19059_s29 + $0x848] sm:$0xff] }
 0x104   : > { %5343 = vmatpush.bf16.msrb.mxu0 %v17871_v7  ;;  %v17926_v7 = vld [vmem:[%s19059_s29 + $0x8e0] sm:$0xff]  ;;  %v17915_v25 = vld [vmem:[%s19059_s29 + $0x888] sm:$0xff] }
 0x105   : > { %5356 = vmatpush.bf16.msrb.mxu1 %v17879_v8 }
 0x106   : > { %5369 = vmatpush.bf16.msrb.mxu2 %v17887_v9  ;;  %v17901_v9 = vld [vmem:[%s19059_s29 + $0x818] sm:$0xff] }
 0x107   : > { %5382 = vmatpush.bf16.msrb.mxu3 %v17895_v10  ;;  %v17909_v10 = vld [vmem:[%s19059_s29 + $0x858] sm:$0xff] }
 0x108   : > { %5344 = vmatpush.bf16.msrb.mxu0 %v17870_v13  ;;  %v5118_v39 = vpop.f32.mrf.mxu2 }
 0x109   : > { %5357 = vmatpush.bf16.msrb.mxu1 %v17878_v14  ;;  %v5131_v40 = vpop.f32.mrf.mxu3  ;;  %v17937_v39 = vld [vmem:[%s19059_s29 + $0x938] sm:$0xff] }
 0x10a   : > { %5370 = vmatpush.bf16.msrb.mxu2 %v17886_v16  ;;  %v17945_v40 = vld [vmem:[%s19059_s29 + $0x978] sm:$0xff] }
 0x10b   : > { %5383 = vmatpush.bf16.msrb.mxu3 %v17894_v17 }
 0x10c   : > { %5345 = vmatpush.bf16.msrb.mxu0 %v17869_v19  ;;  %v17908_v19 = vld [vmem:[%s19059_s29 + $0x850] sm:$0xff] }
 0x10d   : > { %5358 = vmatpush.bf16.msrb.mxu1 %v17877_v20 }
 0x10e   : > { %5371 = vmatpush.bf16.msrb.mxu2 %v17885_v21  ;;  %v17916_v21 = vld [vmem:[%s19059_s29 + $0x890] sm:$0xff] }
 0x10f   : > { %5384 = vmatpush.bf16.msrb.mxu3 %v17893_v22  ;;  %v17924_v22 = vld [vmem:[%s19059_s29 + $0x8d0] sm:$0xff] }
 0x110   : > { %5346 = vmatpush.bf16.msrb.mxu0 %v17868_v28  ;;  %v642_v28 = vld [vmem:[%s19054_s25 + $0x88] sm:$0xff] }
 0x111   : > { %5359 = vmatpush.bf16.msrb.mxu1 %v17876_v29  ;;  %v1748_v38 = vunpack.c.h.b16 %v642_v28 }
 0x112   : > { %5372 = vmatpush.bf16.msrb.mxu2 %v17884_v31  ;;  %v17898_v31 = vld [vmem:[%s19059_s29 + $0x800] sm:$0xff] }
 0x113   : > { %5385 = vmatpush.bf16.msrb.mxu3 %v17892_v32  ;;  %v17906_v32 = vld [vmem:[%s19059_s29 + $0x840] sm:$0xff] }
 0x114   : > { %5347 = vmatpush.bf16.msrb.mxu0 %v17867_v33 }
 0x115   : > { %5360 = vmatpush.bf16.msrb.mxu1 %v17875_v34  ;;  %v1747_v34 = vunpack.c.l.b16 %v642_v28 }
 0x116   : > { %5373 = vmatpush.bf16.msrb.mxu2 %v17883_v35  ;;  %v17914_v35 = vld [vmem:[%s19059_s29 + $0x880] sm:$0xff] }
 0x117   : > { %5386 = vmatpush.bf16.msrb.mxu3 %v17891_v36  ;;  %v17922_v36 = vld [vmem:[%s19059_s29 + $0x8c0] sm:$0xff]  ;;  %v1811_v44 = vpack.c.b16 %v1747_v34, %v1747_v34 }
 0x118   : > { %5348 = vmatpush.bf16.msrb.mxu0 %v17866_v41  ;;  %v5142_v1 = vpop.f32.mrf.mxu0  ;;  %v17953_v41 = vld [vmem:[%s19059_s29 + $0x9b8] sm:$0xff] }
 0x119   : > { %5361 = vmatpush.bf16.msrb.mxu1 %v17874_v42  ;;  %v5143_v2 = vadd.f32 %v5142_v1, %v19329_v27  ;;  %v5155_v5 = vpop.f32.mrf.mxu1  ;;  %v641_v27 = vld [vmem:[%s19054_s25 + $0x80] sm:$0xff]  ;;  %v17961_v42 = vld [vmem:[%s19059_s29 + $0x9f8] sm:$0xff] }
 0x11a   : > { %5374 = vmatpush.bf16.msrb.mxu2 %v17882_v45  ;;  %v1745_v33 = vunpack.c.l.b16 %v641_v27  ;;  %v1746_v37 = vunpack.c.h.b16 %v641_v27  ;;  %v17949_v1 = vld [vmem:[%s19059_s29 + $0x998] sm:$0xff] }
 0x11b   : > { %5387 = vmatpush.bf16.msrb.mxu3 %v17890_v46  ;;  %5349 = vmatmul.bf16.vlgmr.msrb.gmra.mxu0 %v1805_v53  ;;  %v5156_v8 = vadd.f32 %v5155_v5, %v5143_v2  ;;  %v1812_v46 = vpack.c.b16 %v1748_v38, %v1748_v38  ;;  %v17951_v53 = vld [vmem:[%s19059_s29 + $0x9a8] sm:$0xff]  ;;  %v17957_v2 = vld [vmem:[%s19059_s29 + $0x9d8] sm:$0xff]  ;;  %v17976_v38 = vld [vmem:[%s19059_s29 + $0xa70] sm:$0xff] }
 0x11c   : > { %5393 = vmatpush.bf16.msra.mxu0 %v17905_v49  ;;  %5362 = vmatmul.bf16.vlgmr.msrb.gmra.mxu1 %v1806_v55  ;;  %v1809_v43 = vpack.c.b16 %v1745_v33, %v1745_v33  ;;  %v1810_v45 = vpack.c.b16 %v1746_v37, %v1746_v37  ;;  %v17952_v49 = vld [vmem:[%s19059_s29 + $0x9b0] sm:$0xff] }
 0x11d   : > { %5406 = vmatpush.bf16.msra.mxu1 %v17913_v50  ;;  %5375 = vmatmul.bf16.vlgmr.msrb.gmra.mxu2 %v1807_v54  ;;  %v17960_v50 = vld [vmem:[%s19059_s29 + $0x9f0] sm:$0xff]  ;;  %v17959_v54 = vld [vmem:[%s19059_s29 + $0x9e8] sm:$0xff] }
 0x11e   : > { %5419 = vmatpush.bf16.msra.mxu2 %v17921_v51  ;;  %5388 = vmatmul.bf16.vlgmr.msrb.gmra.mxu3 %v1808_v56  ;;  %v17935_v51 = vld [vmem:[%s19059_s29 + $0x928] sm:$0xff]  ;;  %v17968_v37 = vld [vmem:[%s19059_s29 + $0xa30] sm:$0xff] }
 0x11f   : > { %5432 = vmatpush.bf16.msra.mxu3 %v17929_v52  ;;  %v17943_v52 = vld [vmem:[%s19059_s29 + $0x968] sm:$0xff] }
 0x120   : > { %5394 = vmatpush.bf16.msra.mxu0 %v17904_v57  ;;  %v5168_v13 = vpop.f32.mrf.mxu2  ;;  %v5144_v16 = vpop.f32.mrf.mxu0  ;;  %v17934_v57 = vld [vmem:[%s19059_s29 + $0x920] sm:$0xff] }
 0x121   : > { %5407 = vmatpush.bf16.msra.mxu1 %v17912_v58  ;;  %v5169_v14 = vadd.f32 %v5168_v13, %v5156_v8  ;;  %v5181_v15 = vpop.f32.mrf.mxu3  ;;  %v5157_v20 = vpop.f32.mrf.mxu1  ;;  %v17942_v58 = vld [vmem:[%s19059_s29 + $0x960] sm:$0xff]  ;;  %v17932_v8 = vld [vmem:[%s19059_s29 + $0x910] sm:$0xff]  ;;  %v17931_v13 = vld [vmem:[%s19059_s29 + $0x908] sm:$0xff] }
 0x122   : > { %5420 = vmatpush.bf16.msra.mxu2 %v17920_v59  ;;  %v17955_v16 = vld [vmem:[%s19059_s29 + $0x9c8] sm:$0xff] }
 0x123   : > { %5433 = vmatpush.bf16.msra.mxu3 %v17928_v60  ;;  %v19366_v17 = vadd.f32 %v5181_v15, %v5169_v14  ;;  %v17950_v60 = vld [vmem:[%s19059_s29 + $0x9a0] sm:$0xff]  ;;  %v17939_v14 = vld [vmem:[%s19059_s29 + $0x948] sm:$0xff] }
 0x124   : > { %5395 = vmatpush.bf16.msra.mxu0 %v17903_v61  ;;  %v17958_v61 = vld [vmem:[%s19059_s29 + $0x9e0] sm:$0xff]  ;;  %v17947_v15 = vld [vmem:[%s19059_s29 + $0x988] sm:$0xff] }
 0x125   : > { %5408 = vmatpush.bf16.msra.mxu1 %v17911_v62 }
 0x126   : > { %5421 = vmatpush.bf16.msra.mxu2 %v17919_v63  ;;  %v17933_v63 = vld [vmem:[%s19059_s29 + $0x918] sm:$0xff] }
 0x127   : > { %5434 = vmatpush.bf16.msra.mxu3 %v17927_v0  ;;  %v17941_v0 = vld [vmem:[%s19059_s29 + $0x958] sm:$0xff] }
 0x128   : > { %5396 = vmatpush.bf16.msra.mxu0 %v17902_v3  ;;  %v5170_v29 = vpop.f32.mrf.mxu2 }
 0x129   : > { %5409 = vmatpush.bf16.msra.mxu1 %v17910_v4  ;;  %v5183_v30 = vpop.f32.mrf.mxu3  ;;  %v17969_v29 = vld [vmem:[%s19059_s29 + $0xa38] sm:$0xff] }
 0x12a   : > { %5422 = vmatpush.bf16.msra.mxu2 %v17918_v6  ;;  %v17977_v30 = vld [vmem:[%s19059_s29 + $0xa78] sm:$0xff] }
 0x12b   : > { %5435 = vmatpush.bf16.msra.mxu3 %v17926_v7 }
 0x12c   : > { %5397 = vmatpush.bf16.msra.mxu0 %v17901_v9  ;;  %v17940_v9 = vld [vmem:[%s19059_s29 + $0x950] sm:$0xff] }
 0x12d   : > { %5410 = vmatpush.bf16.msra.mxu1 %v17909_v10 }
 0x12e   : > { %5423 = vmatpush.bf16.msra.mxu2 %v17917_v11  ;;  %v17948_v11 = vld [vmem:[%s19059_s29 + $0x990] sm:$0xff] }
 0x12f   : > { %5436 = vmatpush.bf16.msra.mxu3 %v17925_v12  ;;  %v17956_v12 = vld [vmem:[%s19059_s29 + $0x9d0] sm:$0xff] }
 0x130   : > { %5398 = vmatpush.bf16.msra.mxu0 %v17900_v18  ;;  %v644_v18 = vld [vmem:[%s19054_s25 + $0x98] sm:$0xff] }
 0x131   : > { %5411 = vmatpush.bf16.msra.mxu1 %v17908_v19  ;;  %v1752_v28 = vunpack.c.h.b16 %v644_v18 }
 0x132   : > { %5424 = vmatpush.bf16.msra.mxu2 %v17916_v21  ;;  %v17930_v21 = vld [vmem:[%s19059_s29 + $0x900] sm:$0xff] }
 0x133   : > { %5437 = vmatpush.bf16.msra.mxu3 %v17924_v22  ;;  %v17938_v22 = vld [vmem:[%s19059_s29 + $0x940] sm:$0xff] }
 0x134   : > { %5399 = vmatpush.bf16.msra.mxu0 %v17899_v23 }
 0x135   : > { %5412 = vmatpush.bf16.msra.mxu1 %v17907_v24  ;;  %v1751_v24 = vunpack.c.l.b16 %v644_v18 }
 0x136   : > { %5425 = vmatpush.bf16.msra.mxu2 %v17915_v25  ;;  %v17946_v25 = vld [vmem:[%s19059_s29 + $0x980] sm:$0xff] }
 0x137   : > { %5438 = vmatpush.bf16.msra.mxu3 %v17923_v26  ;;  %v17954_v26 = vld [vmem:[%s19059_s29 + $0x9c0] sm:$0xff]  ;;  %v1815_v34 = vpack.c.b16 %v1751_v24, %v1751_v24 }
 0x138   : > { %5400 = vmatpush.bf16.msra.mxu0 %v17898_v31  ;;  %v5194_v55 = vpop.f32.mrf.mxu0  ;;  %v17985_v31 = vld [vmem:[%s19059_s29 + $0xab8] sm:$0xff] }
 0x139   : > { %5413 = vmatpush.bf16.msra.mxu1 %v17906_v32  ;;  %v5195_v56 = vadd.f32 %v5194_v55, %v19366_v17  ;;  %v5207_v59 = vpop.f32.mrf.mxu1  ;;  %v643_v17 = vld [vmem:[%s19054_s25 + $0x90] sm:$0xff]  ;;  %v17993_v32 = vld [vmem:[%s19059_s29 + $0xaf8] sm:$0xff] }
 0x13a   : > { %5426 = vmatpush.bf16.msra.mxu2 %v17914_v35  ;;  %v1749_v23 = vunpack.c.l.b16 %v643_v17  ;;  %v1750_v27 = vunpack.c.h.b16 %v643_v17  ;;  %v17981_v55 = vld [vmem:[%s19059_s29 + $0xa98] sm:$0xff] }
 0x13b   : > { %5439 = vmatpush.bf16.msra.mxu3 %v17922_v36  ;;  %5401 = vmatmul.bf16.vlgmr.msra.gmra.mxu0 %v1809_v43  ;;  %v5208_v62 = vadd.f32 %v5207_v59, %v5195_v56  ;;  %v1816_v36 = vpack.c.b16 %v1752_v28, %v1752_v28  ;;  %v17983_v43 = vld [vmem:[%s19059_s29 + $0xaa8] sm:$0xff]  ;;  %v17989_v56 = vld [vmem:[%s19059_s29 + $0xad8] sm:$0xff]  ;;  %v18008_v28 = vld [vmem:[%s19059_s29 + $0xb70] sm:$0xff] }
 0x13c   : > { %5445 = vmatpush.bf16.msrb.mxu0 %v17937_v39  ;;  %5414 = vmatmul.bf16.vlgmr.msra.gmra.mxu1 %v1810_v45  ;;  %v1813_v33 = vpack.c.b16 %v1749_v23, %v1749_v23  ;;  %v1814_v35 = vpack.c.b16 %v1750_v27, %v1750_v27  ;;  %v17984_v39 = vld [vmem:[%s19059_s29 + $0xab0] sm:$0xff] }
 0x13d   : > { %5458 = vmatpush.bf16.msrb.mxu1 %v17945_v40  ;;  %5427 = vmatmul.bf16.vlgmr.msra.gmra.mxu2 %v1811_v44  ;;  %v17992_v40 = vld [vmem:[%s19059_s29 + $0xaf0] sm:$0xff]  ;;  %v17991_v44 = vld [vmem:[%s19059_s29 + $0xae8] sm:$0xff] }
 0x13e   : > { %5471 = vmatpush.bf16.msrb.mxu2 %v17953_v41  ;;  %5440 = vmatmul.bf16.vlgmr.msra.gmra.mxu3 %v1812_v46  ;;  %v17967_v41 = vld [vmem:[%s19059_s29 + $0xa28] sm:$0xff]  ;;  %v18000_v27 = vld [vmem:[%s19059_s29 + $0xb30] sm:$0xff] }
 0x13f   : > { %5484 = vmatpush.bf16.msrb.mxu3 %v17961_v42  ;;  %v17975_v42 = vld [vmem:[%s19059_s29 + $0xa68] sm:$0xff] }
 0x140   : > { %5446 = vmatpush.bf16.msrb.mxu0 %v17936_v47  ;;  %v5220_v3 = vpop.f32.mrf.mxu2  ;;  %v5196_v6 = vpop.f32.mrf.mxu0  ;;  %v17966_v47 = vld [vmem:[%s19059_s29 + $0xa20] sm:$0xff] }
 0x141   : > { %5459 = vmatpush.bf16.msrb.mxu1 %v17944_v48  ;;  %v5221_v4 = vadd.f32 %v5220_v3, %v5208_v62  ;;  %v5233_v5 = vpop.f32.mrf.mxu3  ;;  %v5209_v10 = vpop.f32.mrf.mxu1  ;;  %v17974_v48 = vld [vmem:[%s19059_s29 + $0xa60] sm:$0xff]  ;;  %v17964_v62 = vld [vmem:[%s19059_s29 + $0xa10] sm:$0xff]  ;;  %v17963_v3 = vld [vmem:[%s19059_s29 + $0xa08] sm:$0xff] }
 0x142   : > { %5472 = vmatpush.bf16.msrb.mxu2 %v17952_v49  ;;  %v17987_v6 = vld [vmem:[%s19059_s29 + $0xac8] sm:$0xff] }
 0x143   : > { %5485 = vmatpush.bf16.msrb.mxu3 %v17960_v50  ;;  %v19403_v7 = vadd.f32 %v5233_v5, %v5221_v4  ;;  %v17982_v50 = vld [vmem:[%s19059_s29 + $0xaa0] sm:$0xff]  ;;  %v17971_v4 = vld [vmem:[%s19059_s29 + $0xa48] sm:$0xff] }
 0x144   : > { %5447 = vmatpush.bf16.msrb.mxu0 %v17935_v51  ;;  %v17990_v51 = vld [vmem:[%s19059_s29 + $0xae0] sm:$0xff]  ;;  %v17979_v5 = vld [vmem:[%s19059_s29 + $0xa88] sm:$0xff] }
 0x145   : > { %5460 = vmatpush.bf16.msrb.mxu1 %v17943_v52 }
 0x146   : > { %5473 = vmatpush.bf16.msrb.mxu2 %v17951_v53  ;;  %v17965_v53 = vld [vmem:[%s19059_s29 + $0xa18] sm:$0xff] }
 0x147   : > { %5486 = vmatpush.bf16.msrb.mxu3 %v17959_v54  ;;  %v17973_v54 = vld [vmem:[%s19059_s29 + $0xa58] sm:$0xff] }
 0x148   : > { %5448 = vmatpush.bf16.msrb.mxu0 %v17934_v57  ;;  %v5222_v19 = vpop.f32.mrf.mxu2 }
 0x149   : > { %5461 = vmatpush.bf16.msrb.mxu1 %v17942_v58  ;;  %v5235_v20 = vpop.f32.mrf.mxu3  ;;  %v18001_v19 = vld [vmem:[%s19059_s29 + $0xb38] sm:$0xff] }
 0x14a   : > { %5474 = vmatpush.bf16.msrb.mxu2 %v17950_v60  ;;  %v18009_v20 = vld [vmem:[%s19059_s29 + $0xb78] sm:$0xff] }
 0x14b   : > { %5487 = vmatpush.bf16.msrb.mxu3 %v17958_v61 }
 0x14c   : > { %5449 = vmatpush.bf16.msrb.mxu0 %v17933_v63  ;;  %v17972_v63 = vld [vmem:[%s19059_s29 + $0xa50] sm:$0xff] }
 0x14d   : > { %5462 = vmatpush.bf16.msrb.mxu1 %v17941_v0 }
 0x14e   : > { %5475 = vmatpush.bf16.msrb.mxu2 %v17949_v1  ;;  %v17980_v1 = vld [vmem:[%s19059_s29 + $0xa90] sm:$0xff] }
 0x14f   : > { %5488 = vmatpush.bf16.msrb.mxu3 %v17957_v2  ;;  %v17988_v2 = vld [vmem:[%s19059_s29 + $0xad0] sm:$0xff] }
 0x150   : > { %5450 = vmatpush.bf16.msrb.mxu0 %v17932_v8  ;;  %v646_v8 = vld [vmem:[%s19054_s25 + $0xa8] sm:$0xff] }
 0x151   : > { %5463 = vmatpush.bf16.msrb.mxu1 %v17940_v9  ;;  %v1756_v18 = vunpack.c.h.b16 %v646_v8 }
 0x152   : > { %5476 = vmatpush.bf16.msrb.mxu2 %v17948_v11  ;;  %v17962_v11 = vld [vmem:[%s19059_s29 + $0xa00] sm:$0xff] }
 0x153   : > { %5489 = vmatpush.bf16.msrb.mxu3 %v17956_v12  ;;  %v17970_v12 = vld [vmem:[%s19059_s29 + $0xa40] sm:$0xff] }
 0x154   : > { %5451 = vmatpush.bf16.msrb.mxu0 %v17931_v13 }
 0x155   : > { %5464 = vmatpush.bf16.msrb.mxu1 %v17939_v14  ;;  %v1755_v14 = vunpack.c.l.b16 %v646_v8 }
 0x156   : > { %5477 = vmatpush.bf16.msrb.mxu2 %v17947_v15  ;;  %v17978_v15 = vld [vmem:[%s19059_s29 + $0xa80] sm:$0xff] }
 0x157   : > { %5490 = vmatpush.bf16.msrb.mxu3 %v17955_v16  ;;  %v17986_v16 = vld [vmem:[%s19059_s29 + $0xac0] sm:$0xff]  ;;  %v1819_v24 = vpack.c.b16 %v1755_v14, %v1755_v14 }
 0x158   : > { %5452 = vmatpush.bf16.msrb.mxu0 %v17930_v21  ;;  %v5246_v45 = vpop.f32.mrf.mxu0  ;;  %v18017_v21 = vld [vmem:[%s19059_s29 + $0xbb8] sm:$0xff] }
 0x159   : > { %5465 = vmatpush.bf16.msrb.mxu1 %v17938_v22  ;;  %v5247_v46 = vadd.f32 %v5246_v45, %v19403_v7  ;;  %v5259_v49 = vpop.f32.mrf.mxu1  ;;  %v645_v7 = vld [vmem:[%s19054_s25 + $0xa0] sm:$0xff]  ;;  %v18025_v22 = vld [vmem:[%s19059_s29 + $0xbf8] sm:$0xff] }
 0x15a   : > { %5478 = vmatpush.bf16.msrb.mxu2 %v17946_v25  ;;  %v1753_v13 = vunpack.c.l.b16 %v645_v7  ;;  %v1754_v17 = vunpack.c.h.b16 %v645_v7  ;;  %v18013_v45 = vld [vmem:[%s19059_s29 + $0xb98] sm:$0xff] }
 0x15b   : > { %5491 = vmatpush.bf16.msrb.mxu3 %v17954_v26  ;;  %5453 = vmatmul.bf16.vlgmr.msrb.gmra.mxu0 %v1813_v33  ;;  %v5260_v52 = vadd.f32 %v5259_v49, %v5247_v46  ;;  %v1820_v26 = vpack.c.b16 %v1756_v18, %v1756_v18  ;;  %v18015_v33 = vld [vmem:[%s19059_s29 + $0xba8] sm:$0xff]  ;;  %v18021_v46 = vld [vmem:[%s19059_s29 + $0xbd8] sm:$0xff]  ;;  %v18040_v18 = vld [vmem:[%s19059_s29 + $0xc70] sm:$0xff] }
 0x15c   : > { %5497 = vmatpush.bf16.msra.mxu0 %v17969_v29  ;;  %5466 = vmatmul.bf16.vlgmr.msrb.gmra.mxu1 %v1814_v35  ;;  %v1817_v23 = vpack.c.b16 %v1753_v13, %v1753_v13  ;;  %v1818_v25 = vpack.c.b16 %v1754_v17, %v1754_v17  ;;  %v18016_v29 = vld [vmem:[%s19059_s29 + $0xbb0] sm:$0xff] }
 0x15d   : > { %5510 = vmatpush.bf16.msra.mxu1 %v17977_v30  ;;  %5479 = vmatmul.bf16.vlgmr.msrb.gmra.mxu2 %v1815_v34  ;;  %v18024_v30 = vld [vmem:[%s19059_s29 + $0xbf0] sm:$0xff]  ;;  %v18023_v34 = vld [vmem:[%s19059_s29 + $0xbe8] sm:$0xff] }
 0x15e   : > { %5523 = vmatpush.bf16.msra.mxu2 %v17985_v31  ;;  %5492 = vmatmul.bf16.vlgmr.msrb.gmra.mxu3 %v1816_v36  ;;  %v17999_v31 = vld [vmem:[%s19059_s29 + $0xb28] sm:$0xff]  ;;  %v18032_v17 = vld [vmem:[%s19059_s29 + $0xc30] sm:$0xff] }
 0x15f   : > { %5536 = vmatpush.bf16.msra.mxu3 %v17993_v32  ;;  %v18007_v32 = vld [vmem:[%s19059_s29 + $0xb68] sm:$0xff] }
 0x160   : > { %5498 = vmatpush.bf16.msra.mxu0 %v17968_v37  ;;  %v5272_v57 = vpop.f32.mrf.mxu2  ;;  %v5248_v60 = vpop.f32.mrf.mxu0  ;;  %v17998_v37 = vld [vmem:[%s19059_s29 + $0xb20] sm:$0xff] }
 0x161   : > { %5511 = vmatpush.bf16.msra.mxu1 %v17976_v38  ;;  %v5273_v58 = vadd.f32 %v5272_v57, %v5260_v52  ;;  %v5285_v59 = vpop.f32.mrf.mxu3  ;;  %v5261_v0 = vpop.f32.mrf.mxu1  ;;  %v18006_v38 = vld [vmem:[%s19059_s29 + $0xb60] sm:$0xff]  ;;  %v17996_v52 = vld [vmem:[%s19059_s29 + $0xb10] sm:$0xff]  ;;  %v17995_v57 = vld [vmem:[%s19059_s29 + $0xb08] sm:$0xff] }
 0x162   : > { %5524 = vmatpush.bf16.msra.mxu2 %v17984_v39  ;;  %v18019_v60 = vld [vmem:[%s19059_s29 + $0xbc8] sm:$0xff] }
 0x163   : > { %5537 = vmatpush.bf16.msra.mxu3 %v17992_v40  ;;  %v19440_v61 = vadd.f32 %v5285_v59, %v5273_v58  ;;  %v18014_v40 = vld [vmem:[%s19059_s29 + $0xba0] sm:$0xff]  ;;  %v18003_v58 = vld [vmem:[%s19059_s29 + $0xb48] sm:$0xff] }
 0x164   : > { %5499 = vmatpush.bf16.msra.mxu0 %v17967_v41  ;;  %v18022_v41 = vld [vmem:[%s19059_s29 + $0xbe0] sm:$0xff]  ;;  %v18011_v59 = vld [vmem:[%s19059_s29 + $0xb88] sm:$0xff] }
 0x165   : > { %5512 = vmatpush.bf16.msra.mxu1 %v17975_v42 }
 0x166   : > { %5525 = vmatpush.bf16.msra.mxu2 %v17983_v43  ;;  %v17997_v43 = vld [vmem:[%s19059_s29 + $0xb18] sm:$0xff] }
 0x167   : > { %5538 = vmatpush.bf16.msra.mxu3 %v17991_v44  ;;  %v18005_v44 = vld [vmem:[%s19059_s29 + $0xb58] sm:$0xff] }
 0x168   : > { %5500 = vmatpush.bf16.msra.mxu0 %v17966_v47  ;;  %v5274_v9 = vpop.f32.mrf.mxu2 }
 0x169   : > { %5513 = vmatpush.bf16.msra.mxu1 %v17974_v48  ;;  %v5287_v10 = vpop.f32.mrf.mxu3  ;;  %v18033_v9 = vld [vmem:[%s19059_s29 + $0xc38] sm:$0xff] }
 0x16a   : > { %5526 = vmatpush.bf16.msra.mxu2 %v17982_v50  ;;  %v18041_v10 = vld [vmem:[%s19059_s29 + $0xc78] sm:$0xff] }
 0x16b   : > { %5539 = vmatpush.bf16.msra.mxu3 %v17990_v51 }
 0x16c   : > { %5501 = vmatpush.bf16.msra.mxu0 %v17965_v53  ;;  %v18004_v53 = vld [vmem:[%s19059_s29 + $0xb50] sm:$0xff] }
 0x16d   : > { %5514 = vmatpush.bf16.msra.mxu1 %v17973_v54 }
 0x16e   : > { %5527 = vmatpush.bf16.msra.mxu2 %v17981_v55  ;;  %v18012_v55 = vld [vmem:[%s19059_s29 + $0xb90] sm:$0xff] }
 0x16f   : > { %5540 = vmatpush.bf16.msra.mxu3 %v17989_v56  ;;  %v18020_v56 = vld [vmem:[%s19059_s29 + $0xbd0] sm:$0xff] }
 0x170   : > { %5502 = vmatpush.bf16.msra.mxu0 %v17964_v62  ;;  %v648_v62 = vld [vmem:[%s19054_s25 + $0xb8] sm:$0xff] }
 0x171   : > { %5515 = vmatpush.bf16.msra.mxu1 %v17972_v63  ;;  %v1760_v8 = vunpack.c.h.b16 %v648_v62 }
 0x172   : > { %5528 = vmatpush.bf16.msra.mxu2 %v17980_v1  ;;  %v17994_v1 = vld [vmem:[%s19059_s29 + $0xb00] sm:$0xff] }
 0x173   : > { %5541 = vmatpush.bf16.msra.mxu3 %v17988_v2  ;;  %v18002_v2 = vld [vmem:[%s19059_s29 + $0xb40] sm:$0xff] }
 0x174   : > { %5503 = vmatpush.bf16.msra.mxu0 %v17963_v3 }
 0x175   : > { %5516 = vmatpush.bf16.msra.mxu1 %v17971_v4  ;;  %v1759_v4 = vunpack.c.l.b16 %v648_v62 }
 0x176   : > { %5529 = vmatpush.bf16.msra.mxu2 %v17979_v5  ;;  %v18010_v5 = vld [vmem:[%s19059_s29 + $0xb80] sm:$0xff] }
 0x177   : > { %5542 = vmatpush.bf16.msra.mxu3 %v17987_v6  ;;  %v18018_v6 = vld [vmem:[%s19059_s29 + $0xbc0] sm:$0xff]  ;;  %v1823_v14 = vpack.c.b16 %v1759_v4, %v1759_v4 }
 0x178   : > { %5504 = vmatpush.bf16.msra.mxu0 %v17962_v11  ;;  %v5298_v35 = vpop.f32.mrf.mxu0  ;;  %v18049_v11 = vld [vmem:[%s19059_s29 + $0xcb8] sm:$0xff] }
 0x179   : > { %5517 = vmatpush.bf16.msra.mxu1 %v17970_v12  ;;  %v5299_v36 = vadd.f32 %v5298_v35, %v19440_v61  ;;  %v5311_v39 = vpop.f32.mrf.mxu1  ;;  %v647_v61 = vld [vmem:[%s19054_s25 + $0xb0] sm:$0xff]  ;;  %v18057_v12 = vld [vmem:[%s19059_s29 + $0xcf8] sm:$0xff] }
 0x17a   : > { %5530 = vmatpush.bf16.msra.mxu2 %v17978_v15  ;;  %v1757_v3 = vunpack.c.l.b16 %v647_v61  ;;  %v1758_v7 = vunpack.c.h.b16 %v647_v61  ;;  %v18045_v35 = vld [vmem:[%s19059_s29 + $0xc98] sm:$0xff] }
 0x17b   : > { %5543 = vmatpush.bf16.msra.mxu3 %v17986_v16  ;;  %5505 = vmatmul.bf16.vlgmr.msra.gmra.mxu0 %v1817_v23  ;;  %v5312_v42 = vadd.f32 %v5311_v39, %v5299_v36  ;;  %v1824_v16 = vpack.c.b16 %v1760_v8, %v1760_v8  ;;  %v18047_v23 = vld [vmem:[%s19059_s29 + $0xca8] sm:$0xff]  ;;  %v18053_v36 = vld [vmem:[%s19059_s29 + $0xcd8] sm:$0xff]  ;;  %v18072_v8 = vld [vmem:[%s19059_s29 + $0xd70] sm:$0xff] }
 0x17c   : > { %5549 = vmatpush.bf16.msrb.mxu0 %v18001_v19  ;;  %5518 = vmatmul.bf16.vlgmr.msra.gmra.mxu1 %v1818_v25  ;;  %v1821_v13 = vpack.c.b16 %v1757_v3, %v1757_v3  ;;  %v1822_v15 = vpack.c.b16 %v1758_v7, %v1758_v7  ;;  %v18048_v19 = vld [vmem:[%s19059_s29 + $0xcb0] sm:$0xff] }
 0x17d   : > { %5562 = vmatpush.bf16.msrb.mxu1 %v18009_v20  ;;  %5531 = vmatmul.bf16.vlgmr.msra.gmra.mxu2 %v1819_v24  ;;  %v18056_v20 = vld [vmem:[%s19059_s29 + $0xcf0] sm:$0xff]  ;;  %v18055_v24 = vld [vmem:[%s19059_s29 + $0xce8] sm:$0xff] }
 0x17e   : > { %5575 = vmatpush.bf16.msrb.mxu2 %v18017_v21  ;;  %5544 = vmatmul.bf16.vlgmr.msra.gmra.mxu3 %v1820_v26  ;;  %v18031_v21 = vld [vmem:[%s19059_s29 + $0xc28] sm:$0xff]  ;;  %v18064_v7 = vld [vmem:[%s19059_s29 + $0xd30] sm:$0xff] }
 0x17f   : > { %5588 = vmatpush.bf16.msrb.mxu3 %v18025_v22  ;;  %v18039_v22 = vld [vmem:[%s19059_s29 + $0xc68] sm:$0xff] }
 0x180   : > { %5550 = vmatpush.bf16.msrb.mxu0 %v18000_v27  ;;  %v5324_v47 = vpop.f32.mrf.mxu2  ;;  %v5300_v50 = vpop.f32.mrf.mxu0  ;;  %v18030_v27 = vld [vmem:[%s19059_s29 + $0xc20] sm:$0xff] }
 0x181   : > { %5563 = vmatpush.bf16.msrb.mxu1 %v18008_v28  ;;  %v5325_v48 = vadd.f32 %v5324_v47, %v5312_v42  ;;  %v5337_v49 = vpop.f32.mrf.mxu3  ;;  %v5313_v54 = vpop.f32.mrf.mxu1  ;;  %v18038_v28 = vld [vmem:[%s19059_s29 + $0xc60] sm:$0xff]  ;;  %v18028_v42 = vld [vmem:[%s19059_s29 + $0xc10] sm:$0xff]  ;;  %v18027_v47 = vld [vmem:[%s19059_s29 + $0xc08] sm:$0xff] }
 0x182   : > { %5576 = vmatpush.bf16.msrb.mxu2 %v18016_v29  ;;  %v18051_v50 = vld [vmem:[%s19059_s29 + $0xcc8] sm:$0xff] }
 0x183   : > { %5589 = vmatpush.bf16.msrb.mxu3 %v18024_v30  ;;  %v19477_v51 = vadd.f32 %v5337_v49, %v5325_v48  ;;  %v18046_v30 = vld [vmem:[%s19059_s29 + $0xca0] sm:$0xff]  ;;  %v18035_v48 = vld [vmem:[%s19059_s29 + $0xc48] sm:$0xff] }
 0x184   : > { %5551 = vmatpush.bf16.msrb.mxu0 %v17999_v31  ;;  %v18054_v31 = vld [vmem:[%s19059_s29 + $0xce0] sm:$0xff]  ;;  %v18043_v49 = vld [vmem:[%s19059_s29 + $0xc88] sm:$0xff] }
 0x185   : > { %5564 = vmatpush.bf16.msrb.mxu1 %v18007_v32 }
 0x186   : > { %5577 = vmatpush.bf16.msrb.mxu2 %v18015_v33  ;;  %v18029_v33 = vld [vmem:[%s19059_s29 + $0xc18] sm:$0xff] }
 0x187   : > { %5590 = vmatpush.bf16.msrb.mxu3 %v18023_v34  ;;  %v18037_v34 = vld [vmem:[%s19059_s29 + $0xc58] sm:$0xff] }
 0x188   : > { %5552 = vmatpush.bf16.msrb.mxu0 %v17998_v37  ;;  %v5326_v63 = vpop.f32.mrf.mxu2 }
 0x189   : > { %5565 = vmatpush.bf16.msrb.mxu1 %v18006_v38  ;;  %v5339_v0 = vpop.f32.mrf.mxu3  ;;  %v18065_v63 = vld [vmem:[%s19059_s29 + $0xd38] sm:$0xff] }
 0x18a   : > { %5578 = vmatpush.bf16.msrb.mxu2 %v18014_v40  ;;  %v18073_v0 = vld [vmem:[%s19059_s29 + $0xd78] sm:$0xff] }
 0x18b   : > { %5591 = vmatpush.bf16.msrb.mxu3 %v18022_v41 }
 0x18c   : > { %5553 = vmatpush.bf16.msrb.mxu0 %v17997_v43  ;;  %v18036_v43 = vld [vmem:[%s19059_s29 + $0xc50] sm:$0xff] }
 0x18d   : > { %5566 = vmatpush.bf16.msrb.mxu1 %v18005_v44 }
 0x18e   : > { %5579 = vmatpush.bf16.msrb.mxu2 %v18013_v45  ;;  %v18044_v45 = vld [vmem:[%s19059_s29 + $0xc90] sm:$0xff] }
 0x18f   : > { %5592 = vmatpush.bf16.msrb.mxu3 %v18021_v46  ;;  %v18052_v46 = vld [vmem:[%s19059_s29 + $0xcd0] sm:$0xff] }
 0x190   : > { %5554 = vmatpush.bf16.msrb.mxu0 %v17996_v52  ;;  %v650_v52 = vld [vmem:[%s19054_s25 + $0xc8] sm:$0xff] }
 0x191   : > { %5567 = vmatpush.bf16.msrb.mxu1 %v18004_v53  ;;  %v1764_v62 = vunpack.c.h.b16 %v650_v52 }
 0x192   : > { %5580 = vmatpush.bf16.msrb.mxu2 %v18012_v55  ;;  %v18026_v55 = vld [vmem:[%s19059_s29 + $0xc00] sm:$0xff] }
 0x193   : > { %5593 = vmatpush.bf16.msrb.mxu3 %v18020_v56  ;;  %v18034_v56 = vld [vmem:[%s19059_s29 + $0xc40] sm:$0xff] }
 0x194   : > { %5555 = vmatpush.bf16.msrb.mxu0 %v17995_v57 }
 0x195   : > { %5568 = vmatpush.bf16.msrb.mxu1 %v18003_v58  ;;  %v1763_v58 = vunpack.c.l.b16 %v650_v52 }
 0x196   : > { %5581 = vmatpush.bf16.msrb.mxu2 %v18011_v59  ;;  %v18042_v59 = vld [vmem:[%s19059_s29 + $0xc80] sm:$0xff] }
 0x197   : > { %5594 = vmatpush.bf16.msrb.mxu3 %v18019_v60  ;;  %v18050_v60 = vld [vmem:[%s19059_s29 + $0xcc0] sm:$0xff]  ;;  %v1827_v4 = vpack.c.b16 %v1763_v58, %v1763_v58 }
 0x198   : > { %5556 = vmatpush.bf16.msrb.mxu0 %v17994_v1  ;;  %v5350_v25 = vpop.f32.mrf.mxu0  ;;  %v18081_v1 = vld [vmem:[%s19059_s29 + $0xdb8] sm:$0xff] }
 0x199   : > { %5569 = vmatpush.bf16.msrb.mxu1 %v18002_v2  ;;  %v5351_v26 = vadd.f32 %v5350_v25, %v19477_v51  ;;  %v5363_v29 = vpop.f32.mrf.mxu1  ;;  %v649_v51 = vld [vmem:[%s19054_s25 + $0xc0] sm:$0xff]  ;;  %v18089_v2 = vld [vmem:[%s19059_s29 + $0xdf8] sm:$0xff] }
 0x19a   : > { %5582 = vmatpush.bf16.msrb.mxu2 %v18010_v5  ;;  %v1761_v57 = vunpack.c.l.b16 %v649_v51  ;;  %v1762_v61 = vunpack.c.h.b16 %v649_v51  ;;  %v18077_v25 = vld [vmem:[%s19059_s29 + $0xd98] sm:$0xff] }
 0x19b   : > { %5595 = vmatpush.bf16.msrb.mxu3 %v18018_v6  ;;  %5557 = vmatmul.bf16.vlgmr.msrb.gmra.mxu0 %v1821_v13  ;;  %v5364_v32 = vadd.f32 %v5363_v29, %v5351_v26  ;;  %v1828_v6 = vpack.c.b16 %v1764_v62, %v1764_v62  ;;  %v18079_v13 = vld [vmem:[%s19059_s29 + $0xda8] sm:$0xff]  ;;  %v18085_v26 = vld [vmem:[%s19059_s29 + $0xdd8] sm:$0xff]  ;;  %v18104_v62 = vld [vmem:[%s19059_s29 + $0xe70] sm:$0xff] }
 0x19c   : > { %5601 = vmatpush.bf16.msra.mxu0 %v18033_v9  ;;  %5570 = vmatmul.bf16.vlgmr.msrb.gmra.mxu1 %v1822_v15  ;;  %v1825_v3 = vpack.c.b16 %v1761_v57, %v1761_v57  ;;  %v1826_v5 = vpack.c.b16 %v1762_v61, %v1762_v61  ;;  %v18080_v9 = vld [vmem:[%s19059_s29 + $0xdb0] sm:$0xff] }
 0x19d   : > { %5614 = vmatpush.bf16.msra.mxu1 %v18041_v10  ;;  %5583 = vmatmul.bf16.vlgmr.msrb.gmra.mxu2 %v1823_v14  ;;  %v18088_v10 = vld [vmem:[%s19059_s29 + $0xdf0] sm:$0xff]  ;;  %v18087_v14 = vld [vmem:[%s19059_s29 + $0xde8] sm:$0xff] }
 0x19e   : > { %5627 = vmatpush.bf16.msra.mxu2 %v18049_v11  ;;  %5596 = vmatmul.bf16.vlgmr.msrb.gmra.mxu3 %v1824_v16  ;;  %v18063_v11 = vld [vmem:[%s19059_s29 + $0xd28] sm:$0xff]  ;;  %v18096_v61 = vld [vmem:[%s19059_s29 + $0xe30] sm:$0xff] }
 0x19f   : > { %5640 = vmatpush.bf16.msra.mxu3 %v18057_v12  ;;  %v18071_v12 = vld [vmem:[%s19059_s29 + $0xd68] sm:$0xff] }
 0x1a0   : > { %5602 = vmatpush.bf16.msra.mxu0 %v18032_v17  ;;  %v5376_v37 = vpop.f32.mrf.mxu2  ;;  %v5352_v40 = vpop.f32.mrf.mxu0  ;;  %v18062_v17 = vld [vmem:[%s19059_s29 + $0xd20] sm:$0xff] }
 0x1a1   : > { %5615 = vmatpush.bf16.msra.mxu1 %v18040_v18  ;;  %v5377_v38 = vadd.f32 %v5376_v37, %v5364_v32  ;;  %v5389_v39 = vpop.f32.mrf.mxu3  ;;  %v5365_v44 = vpop.f32.mrf.mxu1  ;;  %v18070_v18 = vld [vmem:[%s19059_s29 + $0xd60] sm:$0xff]  ;;  %v18060_v32 = vld [vmem:[%s19059_s29 + $0xd10] sm:$0xff]  ;;  %v18059_v37 = vld [vmem:[%s19059_s29 + $0xd08] sm:$0xff] }
 0x1a2   : > { %5628 = vmatpush.bf16.msra.mxu2 %v18048_v19  ;;  %v18083_v40 = vld [vmem:[%s19059_s29 + $0xdc8] sm:$0xff] }
 0x1a3   : > { %5641 = vmatpush.bf16.msra.mxu3 %v18056_v20  ;;  %v19514_v41 = vadd.f32 %v5389_v39, %v5377_v38  ;;  %v18078_v20 = vld [vmem:[%s19059_s29 + $0xda0] sm:$0xff]  ;;  %v18067_v38 = vld [vmem:[%s19059_s29 + $0xd48] sm:$0xff] }
 0x1a4   : > { %5603 = vmatpush.bf16.msra.mxu0 %v18031_v21  ;;  %v18086_v21 = vld [vmem:[%s19059_s29 + $0xde0] sm:$0xff]  ;;  %v18075_v39 = vld [vmem:[%s19059_s29 + $0xd88] sm:$0xff] }
 0x1a5   : > { %5616 = vmatpush.bf16.msra.mxu1 %v18039_v22 }
 0x1a6   : > { %5629 = vmatpush.bf16.msra.mxu2 %v18047_v23  ;;  %v18061_v23 = vld [vmem:[%s19059_s29 + $0xd18] sm:$0xff] }
 0x1a7   : > { %5642 = vmatpush.bf16.msra.mxu3 %v18055_v24  ;;  %v18069_v24 = vld [vmem:[%s19059_s29 + $0xd58] sm:$0xff] }
 0x1a8   : > { %5604 = vmatpush.bf16.msra.mxu0 %v18030_v27  ;;  %v5378_v53 = vpop.f32.mrf.mxu2 }
 0x1a9   : > { %5617 = vmatpush.bf16.msra.mxu1 %v18038_v28  ;;  %v5391_v54 = vpop.f32.mrf.mxu3  ;;  %v18097_v53 = vld [vmem:[%s19059_s29 + $0xe38] sm:$0xff] }
 0x1aa   : > { %5630 = vmatpush.bf16.msra.mxu2 %v18046_v30  ;;  %v18105_v54 = vld [vmem:[%s19059_s29 + $0xe78] sm:$0xff] }
 0x1ab   : > { %5643 = vmatpush.bf16.msra.mxu3 %v18054_v31 }
 0x1ac   : > { %5605 = vmatpush.bf16.msra.mxu0 %v18029_v33  ;;  %v18068_v33 = vld [vmem:[%s19059_s29 + $0xd50] sm:$0xff] }
 0x1ad   : > { %5618 = vmatpush.bf16.msra.mxu1 %v18037_v34 }
 0x1ae   : > { %5631 = vmatpush.bf16.msra.mxu2 %v18045_v35  ;;  %v18076_v35 = vld [vmem:[%s19059_s29 + $0xd90] sm:$0xff] }
 0x1af   : > { %5644 = vmatpush.bf16.msra.mxu3 %v18053_v36  ;;  %v18084_v36 = vld [vmem:[%s19059_s29 + $0xdd0] sm:$0xff] }
 0x1b0   : > { %5606 = vmatpush.bf16.msra.mxu0 %v18028_v42  ;;  %v652_v42 = vld [vmem:[%s19054_s25 + $0xd8] sm:$0xff] }
 0x1b1   : > { %5619 = vmatpush.bf16.msra.mxu1 %v18036_v43  ;;  %v1768_v52 = vunpack.c.h.b16 %v652_v42 }
 0x1b2   : > { %5632 = vmatpush.bf16.msra.mxu2 %v18044_v45  ;;  %v18058_v45 = vld [vmem:[%s19059_s29 + $0xd00] sm:$0xff] }
 0x1b3   : > { %5645 = vmatpush.bf16.msra.mxu3 %v18052_v46  ;;  %v18066_v46 = vld [vmem:[%s19059_s29 + $0xd40] sm:$0xff] }
 0x1b4   : > { %5607 = vmatpush.bf16.msra.mxu0 %v18027_v47 }
 0x1b5   : > { %5620 = vmatpush.bf16.msra.mxu1 %v18035_v48  ;;  %v1767_v48 = vunpack.c.l.b16 %v652_v42 }
 0x1b6   : > { %5633 = vmatpush.bf16.msra.mxu2 %v18043_v49  ;;  %v18074_v49 = vld [vmem:[%s19059_s29 + $0xd80] sm:$0xff] }
 0x1b7   : > { %5646 = vmatpush.bf16.msra.mxu3 %v18051_v50  ;;  %v18082_v50 = vld [vmem:[%s19059_s29 + $0xdc0] sm:$0xff]  ;;  %v1831_v58 = vpack.c.b16 %v1767_v48, %v1767_v48 }
 0x1b8   : > { %5608 = vmatpush.bf16.msra.mxu0 %v18026_v55  ;;  %v5402_v15 = vpop.f32.mrf.mxu0  ;;  %v18113_v55 = vld [vmem:[%s19059_s29 + $0xeb8] sm:$0xff] }
 0x1b9   : > { %5621 = vmatpush.bf16.msra.mxu1 %v18034_v56  ;;  %v5403_v16 = vadd.f32 %v5402_v15, %v19514_v41  ;;  %v5415_v19 = vpop.f32.mrf.mxu1  ;;  %v651_v41 = vld [vmem:[%s19054_s25 + $0xd0] sm:$0xff]  ;;  %v18121_v56 = vld [vmem:[%s19059_s29 + $0xef8] sm:$0xff] }
 0x1ba   : > { %5634 = vmatpush.bf16.msra.mxu2 %v18042_v59  ;;  %v1765_v47 = vunpack.c.l.b16 %v651_v41  ;;  %v1766_v51 = vunpack.c.h.b16 %v651_v41  ;;  %v18109_v15 = vld [vmem:[%s19059_s29 + $0xe98] sm:$0xff] }
 0x1bb   : > { %5647 = vmatpush.bf16.msra.mxu3 %v18050_v60  ;;  %5609 = vmatmul.bf16.vlgmr.msra.gmra.mxu0 %v1825_v3  ;;  %v5416_v22 = vadd.f32 %v5415_v19, %v5403_v16  ;;  %v1832_v60 = vpack.c.b16 %v1768_v52, %v1768_v52  ;;  %v18111_v3 = vld [vmem:[%s19059_s29 + $0xea8] sm:$0xff]  ;;  %v18117_v16 = vld [vmem:[%s19059_s29 + $0xed8] sm:$0xff]  ;;  %v18136_v52 = vld [vmem:[%s19059_s29 + $0xf70] sm:$0xff] }
 0x1bc   : > { %5653 = vmatpush.bf16.msrb.mxu0 %v18065_v63  ;;  %5622 = vmatmul.bf16.vlgmr.msra.gmra.mxu1 %v1826_v5  ;;  %v1829_v57 = vpack.c.b16 %v1765_v47, %v1765_v47  ;;  %v1830_v59 = vpack.c.b16 %v1766_v51, %v1766_v51  ;;  %v18112_v63 = vld [vmem:[%s19059_s29 + $0xeb0] sm:$0xff] }
 0x1bd   : > { %5666 = vmatpush.bf16.msrb.mxu1 %v18073_v0  ;;  %5635 = vmatmul.bf16.vlgmr.msra.gmra.mxu2 %v1827_v4  ;;  %v18120_v0 = vld [vmem:[%s19059_s29 + $0xef0] sm:$0xff]  ;;  %v18119_v4 = vld [vmem:[%s19059_s29 + $0xee8] sm:$0xff] }
 0x1be   : > { %5679 = vmatpush.bf16.msrb.mxu2 %v18081_v1  ;;  %5648 = vmatmul.bf16.vlgmr.msra.gmra.mxu3 %v1828_v6  ;;  %v18095_v1 = vld [vmem:[%s19059_s29 + $0xe28] sm:$0xff]  ;;  %v18128_v51 = vld [vmem:[%s19059_s29 + $0xf30] sm:$0xff] }
 0x1bf   : > { %5692 = vmatpush.bf16.msrb.mxu3 %v18089_v2  ;;  %v18103_v2 = vld [vmem:[%s19059_s29 + $0xe68] sm:$0xff] }
 0x1c0   : > { %5654 = vmatpush.bf16.msrb.mxu0 %v18064_v7  ;;  %v5428_v27 = vpop.f32.mrf.mxu2  ;;  %v5404_v30 = vpop.f32.mrf.mxu0  ;;  %v18094_v7 = vld [vmem:[%s19059_s29 + $0xe20] sm:$0xff] }
 0x1c1   : > { %5667 = vmatpush.bf16.msrb.mxu1 %v18072_v8  ;;  %v5429_v28 = vadd.f32 %v5428_v27, %v5416_v22  ;;  %v5441_v29 = vpop.f32.mrf.mxu3  ;;  %v5417_v34 = vpop.f32.mrf.mxu1  ;;  %v18102_v8 = vld [vmem:[%s19059_s29 + $0xe60] sm:$0xff]  ;;  %v18092_v22 = vld [vmem:[%s19059_s29 + $0xe10] sm:$0xff]  ;;  %v18091_v27 = vld [vmem:[%s19059_s29 + $0xe08] sm:$0xff] }
 0x1c2   : > { %5680 = vmatpush.bf16.msrb.mxu2 %v18080_v9  ;;  %v18115_v30 = vld [vmem:[%s19059_s29 + $0xec8] sm:$0xff] }
 0x1c3   : > { %5693 = vmatpush.bf16.msrb.mxu3 %v18088_v10  ;;  %v19551_v31 = vadd.f32 %v5441_v29, %v5429_v28  ;;  %v18110_v10 = vld [vmem:[%s19059_s29 + $0xea0] sm:$0xff]  ;;  %v18099_v28 = vld [vmem:[%s19059_s29 + $0xe48] sm:$0xff] }
 0x1c4   : > { %5655 = vmatpush.bf16.msrb.mxu0 %v18063_v11  ;;  %v18118_v11 = vld [vmem:[%s19059_s29 + $0xee0] sm:$0xff]  ;;  %v18107_v29 = vld [vmem:[%s19059_s29 + $0xe88] sm:$0xff] }
 0x1c5   : > { %5668 = vmatpush.bf16.msrb.mxu1 %v18071_v12 }
 0x1c6   : > { %5681 = vmatpush.bf16.msrb.mxu2 %v18079_v13  ;;  %v18093_v13 = vld [vmem:[%s19059_s29 + $0xe18] sm:$0xff] }
 0x1c7   : > { %5694 = vmatpush.bf16.msrb.mxu3 %v18087_v14  ;;  %v18101_v14 = vld [vmem:[%s19059_s29 + $0xe58] sm:$0xff] }
 0x1c8   : > { %5656 = vmatpush.bf16.msrb.mxu0 %v18062_v17  ;;  %v5430_v43 = vpop.f32.mrf.mxu2 }
 0x1c9   : > { %5669 = vmatpush.bf16.msrb.mxu1 %v18070_v18  ;;  %v5443_v44 = vpop.f32.mrf.mxu3  ;;  %v18129_v43 = vld [vmem:[%s19059_s29 + $0xf38] sm:$0xff] }
 0x1ca   : > { %5682 = vmatpush.bf16.msrb.mxu2 %v18078_v20  ;;  %v18137_v44 = vld [vmem:[%s19059_s29 + $0xf78] sm:$0xff] }
 0x1cb   : > { %5695 = vmatpush.bf16.msrb.mxu3 %v18086_v21 }
 0x1cc   : > { %5657 = vmatpush.bf16.msrb.mxu0 %v18061_v23  ;;  %v18100_v23 = vld [vmem:[%s19059_s29 + $0xe50] sm:$0xff] }
 0x1cd   : > { %5670 = vmatpush.bf16.msrb.mxu1 %v18069_v24 }
 0x1ce   : > { %5683 = vmatpush.bf16.msrb.mxu2 %v18077_v25  ;;  %v18108_v25 = vld [vmem:[%s19059_s29 + $0xe90] sm:$0xff] }
 0x1cf   : > { %5696 = vmatpush.bf16.msrb.mxu3 %v18085_v26  ;;  %v18116_v26 = vld [vmem:[%s19059_s29 + $0xed0] sm:$0xff] }
 0x1d0   : > { %5658 = vmatpush.bf16.msrb.mxu0 %v18060_v32  ;;  %v654_v32 = vld [vmem:[%s19054_s25 + $0xe8] sm:$0xff] }
 0x1d1   : > { %5671 = vmatpush.bf16.msrb.mxu1 %v18068_v33  ;;  %v1772_v42 = vunpack.c.h.b16 %v654_v32 }
 0x1d2   : > { %5684 = vmatpush.bf16.msrb.mxu2 %v18076_v35  ;;  %v18090_v35 = vld [vmem:[%s19059_s29 + $0xe00] sm:$0xff] }
 0x1d3   : > { %5697 = vmatpush.bf16.msrb.mxu3 %v18084_v36  ;;  %v18098_v36 = vld [vmem:[%s19059_s29 + $0xe40] sm:$0xff] }
 0x1d4   : > { %5659 = vmatpush.bf16.msrb.mxu0 %v18059_v37 }
 0x1d5   : > { %5672 = vmatpush.bf16.msrb.mxu1 %v18067_v38  ;;  %v1771_v38 = vunpack.c.l.b16 %v654_v32  ;;  %v18146_v32 = vld [vmem:[%s19059_s29 + $0xfc0] sm:$0xff] }
 0x1d6   : > { %5685 = vmatpush.bf16.msrb.mxu2 %v18075_v39  ;;  %v18106_v39 = vld [vmem:[%s19059_s29 + $0xe80] sm:$0xff] }
 0x1d7   : > { %5698 = vmatpush.bf16.msrb.mxu3 %v18083_v40  ;;  %v18114_v40 = vld [vmem:[%s19059_s29 + $0xec0] sm:$0xff]  ;;  %v1835_v48 = vpack.c.b16 %v1771_v38, %v1771_v38 }
 0x1d8   : > { %5660 = vmatpush.bf16.msrb.mxu0 %v18058_v45  ;;  %v5454_v5 = vpop.f32.mrf.mxu0  ;;  %v18145_v45 = vld [vmem:[%s19059_s29 + $0xfb8] sm:$0xff] }
 0x1d9   : > { %5673 = vmatpush.bf16.msrb.mxu1 %v18066_v46  ;;  %v5455_v6 = vadd.f32 %v5454_v5, %v19551_v31  ;;  %v5467_v9 = vpop.f32.mrf.mxu1  ;;  %v653_v31 = vld [vmem:[%s19054_s25 + $0xe0] sm:$0xff]  ;;  %v18153_v46 = vld [vmem:[%s19059_s29 + $0xff8] sm:$0xff] }
 0x1da   : > { %5686 = vmatpush.bf16.msrb.mxu2 %v18074_v49  ;;  %v1769_v37 = vunpack.c.l.b16 %v653_v31  ;;  %v1770_v41 = vunpack.c.h.b16 %v653_v31  ;;  %v18141_v5 = vld [vmem:[%s19059_s29 + $0xf98] sm:$0xff]  ;;  %v18138_v31 = vld [vmem:[%s19059_s29 + $0xf80] sm:$0xff] }
 0x1db   : > { %5699 = vmatpush.bf16.msrb.mxu3 %v18082_v50  ;;  %5661 = vmatmul.bf16.vlgmr.msrb.gmra.mxu0 %v1829_v57  ;;  %v5468_v12 = vadd.f32 %v5467_v9, %v5455_v6  ;;  %v1836_v50 = vpack.c.b16 %v1772_v42, %v1772_v42  ;;  %v18143_v57 = vld [vmem:[%s19059_s29 + $0xfa8] sm:$0xff]  ;;  %v18149_v6 = vld [vmem:[%s19059_s29 + $0xfd8] sm:$0xff] }
 0x1dc   : > { %5705 = vmatpush.bf16.msra.mxu0 %v18097_v53  ;;  %5674 = vmatmul.bf16.vlgmr.msrb.gmra.mxu1 %v1830_v59  ;;  %v1833_v47 = vpack.c.b16 %v1769_v37, %v1769_v37  ;;  %v1834_v49 = vpack.c.b16 %v1770_v41, %v1770_v41  ;;  %v18144_v53 = vld [vmem:[%s19059_s29 + $0xfb0] sm:$0xff] }
 0x1dd   : > { %5718 = vmatpush.bf16.msra.mxu1 %v18105_v54  ;;  %5687 = vmatmul.bf16.vlgmr.msrb.gmra.mxu2 %v1831_v58  ;;  %v18152_v54 = vld [vmem:[%s19059_s29 + $0xff0] sm:$0xff]  ;;  %v18151_v58 = vld [vmem:[%s19059_s29 + $0xfe8] sm:$0xff] }
 0x1de   : > { %5731 = vmatpush.bf16.msra.mxu2 %v18113_v55  ;;  %5700 = vmatmul.bf16.vlgmr.msrb.gmra.mxu3 %v1832_v60  ;;  %v18127_v55 = vld [vmem:[%s19059_s29 + $0xf28] sm:$0xff] }
 0x1df   : > { %5744 = vmatpush.bf16.msra.mxu3 %v18121_v56  ;;  %v18135_v56 = vld [vmem:[%s19059_s29 + $0xf68] sm:$0xff] }
 0x1e0   : > { %5706 = vmatpush.bf16.msra.mxu0 %v18096_v61  ;;  %v5480_v17 = vpop.f32.mrf.mxu2  ;;  %v5456_v20 = vpop.f32.mrf.mxu0  ;;  %v18126_v61 = vld [vmem:[%s19059_s29 + $0xf20] sm:$0xff] }
 0x1e1   : > { %5719 = vmatpush.bf16.msra.mxu1 %v18104_v62  ;;  %v5481_v18 = vadd.f32 %v5480_v17, %v5468_v12  ;;  %v5493_v19 = vpop.f32.mrf.mxu3  ;;  %v5469_v24 = vpop.f32.mrf.mxu1  ;;  %v18134_v62 = vld [vmem:[%s19059_s29 + $0xf60] sm:$0xff]  ;;  %v18124_v12 = vld [vmem:[%s19059_s29 + $0xf10] sm:$0xff]  ;;  %v18123_v17 = vld [vmem:[%s19059_s29 + $0xf08] sm:$0xff] }
 0x1e2   : > { %5732 = vmatpush.bf16.msra.mxu2 %v18112_v63  ;;  %v18139_v20 = vld [vmem:[%s19059_s29 + $0xf88] sm:$0xff] }
 0x1e3   : > { %5745 = vmatpush.bf16.msra.mxu3 %v18120_v0  ;;  %v19588_v21 = vadd.f32 %v5493_v19, %v5481_v18  ;;  %v18142_v0 = vld [vmem:[%s19059_s29 + $0xfa0] sm:$0xff]  ;;  %v18131_v18 = vld [vmem:[%s19059_s29 + $0xf48] sm:$0xff]  ;;  %v655_v19 = vld [vmem:[%s19054_s25 + $0xf0] sm:$0xff] }
 0x1e4   : > { %5707 = vmatpush.bf16.msra.mxu0 %v18095_v1  ;;  %v18150_v1 = vld [vmem:[%s19059_s29 + $0xfe0] sm:$0xff] }
 0x1e5   : > { %5720 = vmatpush.bf16.msra.mxu1 %v18103_v2 }
 0x1e6   : > { %5733 = vmatpush.bf16.msra.mxu2 %v18111_v3  ;;  %v18125_v3 = vld [vmem:[%s19059_s29 + $0xf18] sm:$0xff] }
 0x1e7   : > { %5746 = vmatpush.bf16.msra.mxu3 %v18119_v4  ;;  %v18133_v4 = vld [vmem:[%s19059_s29 + $0xf58] sm:$0xff] }
 0x1e8   : > { %5708 = vmatpush.bf16.msra.mxu0 %v18094_v7  ;;  %v5482_v33 = vpop.f32.mrf.mxu2 }
 0x1e9   : > { %5721 = vmatpush.bf16.msra.mxu1 %v18102_v8  ;;  %v5495_v34 = vpop.f32.mrf.mxu3 }
 0x1ea   : > { %5734 = vmatpush.bf16.msra.mxu2 %v18110_v10 }
 0x1eb   : > { %5747 = vmatpush.bf16.msra.mxu3 %v18118_v11 }
 0x1ec   : > { %5709 = vmatpush.bf16.msra.mxu0 %v18093_v13  ;;  %v18132_v13 = vld [vmem:[%s19059_s29 + $0xf50] sm:$0xff] }
 0x1ed   : > { %5722 = vmatpush.bf16.msra.mxu1 %v18101_v14 }
 0x1ee   : > { %5735 = vmatpush.bf16.msra.mxu2 %v18109_v15  ;;  %v18140_v15 = vld [vmem:[%s19059_s29 + $0xf90] sm:$0xff] }
 0x1ef   : > { %5748 = vmatpush.bf16.msra.mxu3 %v18117_v16  ;;  %v18148_v16 = vld [vmem:[%s19059_s29 + $0xfd0] sm:$0xff] }
 0x1f0   : > { %5710 = vmatpush.bf16.msra.mxu0 %v18092_v22  ;;  %v656_v22 = vld [vmem:[%s19054_s25 + $0xf8] sm:$0xff] }
 0x1f1   : > { %5723 = vmatpush.bf16.msra.mxu1 %v18100_v23 }
 0x1f2   : > { %5736 = vmatpush.bf16.msra.mxu2 %v18108_v25  ;;  %v1773_v25 = vunpack.c.l.b16 %v655_v19 }
 0x1f3   : > { %5749 = vmatpush.bf16.msra.mxu3 %v18116_v26  ;;  %v1774_v26 = vunpack.c.h.b16 %v655_v19 }
 0x1f4   : > { %5711 = vmatpush.bf16.msra.mxu0 %v18091_v27  ;;  %v18122_v27 = vld [vmem:[%s19059_s29 + $0xf00] sm:$0xff]  ;;  %v1837_v33 = vpack.c.b16 %v1773_v25, %v1773_v25 }
 0x1f5   : > { %5724 = vmatpush.bf16.msra.mxu1 %v18099_v28  ;;  %v18130_v28 = vld [vmem:[%s19059_s29 + $0xf40] sm:$0xff]  ;;  %v1838_v34 = vpack.c.b16 %v1774_v26, %v1774_v26 }
 0x1f6   : > { %5737 = vmatpush.bf16.msra.mxu2 %v18107_v29  ;;  %v1775_v29 = vunpack.c.l.b16 %v656_v22 }
 0x1f7   : > { %5750 = vmatpush.bf16.msra.mxu3 %v18115_v30  ;;  %v1776_v30 = vunpack.c.h.b16 %v656_v22 }
 0x1f8   : > { %5712 = vmatpush.bf16.msra.mxu0 %v18090_v35  ;;  %v5506_v59 = vpop.f32.mrf.mxu0  ;;  %v1839_v35 = vpack.c.b16 %v1775_v29, %v1775_v29 }
 0x1f9   : > { %5725 = vmatpush.bf16.msra.mxu1 %v18098_v36  ;;  %v5507_v60 = vadd.f32 %v5506_v59, %v19588_v21  ;;  %v5519_v63 = vpop.f32.mrf.mxu1  ;;  %v18147_v21 = vld [vmem:[%s19059_s29 + $0xfc8] sm:$0xff]  ;;  %v1840_v36 = vpack.c.b16 %v1776_v30, %v1776_v30  ;;  %v624_v30 = vld [vmem:[#allocation2] sm:$0xff]  ;;  %s18928_s29 = smov (!%p14844_p6), 96  }
 0x1fa   : > { %5738 = vmatpush.bf16.msra.mxu2 %v18106_v39 }
 0x1fb   : > { %5751 = vmatpush.bf16.msra.mxu3 %v18114_v40  ;;  %5713 = vmatmul.bf16.vlgmr.msra.gmra.mxu0 %v1833_v47  ;;  %v5520_v2 = vadd.f32 %v5519_v63, %v5507_v60 }
 0x1fc   : > { %5757 = vmatpush.bf16.msrb.mxu0 %v18129_v43  ;;  %5726 = vmatmul.bf16.vlgmr.msra.gmra.mxu1 %v1834_v49 }
 0x1fd   : > { %5770 = vmatpush.bf16.msrb.mxu1 %v18137_v44  ;;  %5739 = vmatmul.bf16.vlgmr.msra.gmra.mxu2 %v1835_v48 }
 0x1fe   : > { %5783 = vmatpush.bf16.msrb.mxu2 %v18145_v45  ;;  %5752 = vmatmul.bf16.vlgmr.msra.gmra.mxu3 %v1836_v50 }
 0x1ff   : > { %5796 = vmatpush.bf16.msrb.mxu3 %v18153_v46 }
 0x200   : > { %5758 = vmatpush.bf16.msrb.mxu0 %v18128_v51  ;;  %v5532_v7 = vpop.f32.mrf.mxu2  ;;  %v5508_v10 = vpop.f32.mrf.mxu0 }
 0x201   : > { %5771 = vmatpush.bf16.msrb.mxu1 %v18136_v52  ;;  %v5533_v8 = vadd.f32 %v5532_v7, %v5520_v2  ;;  %v5545_v9 = vpop.f32.mrf.mxu3  ;;  %v5521_v14 = vpop.f32.mrf.mxu1 }
 0x202   : > { %5784 = vmatpush.bf16.msrb.mxu2 %v18144_v53 }
 0x203   : > { %5797 = vmatpush.bf16.msrb.mxu3 %v18152_v54  ;;  %v5546_v11 = vadd.f32 %v5545_v9, %v5533_v8 }
 0x204   : > { %5759 = vmatpush.bf16.msrb.mxu0 %v18127_v55 }
 0x205   : > { %5772 = vmatpush.bf16.msrb.mxu1 %v18135_v56 }
 0x206   : > { %5785 = vmatpush.bf16.msrb.mxu2 %v18143_v57 }
 0x207   : > { %5798 = vmatpush.bf16.msrb.mxu3 %v18151_v58 }
 0x208   : > { %5760 = vmatpush.bf16.msrb.mxu0 %v18126_v61  ;;  %v5534_v23 = vpop.f32.mrf.mxu2 }
 0x209   : > { %5773 = vmatpush.bf16.msrb.mxu1 %v18134_v62  ;;  %v5547_v24 = vpop.f32.mrf.mxu3 }
 0x20a   : > { %5786 = vmatpush.bf16.msrb.mxu2 %v18142_v0 }
 0x20b   : > { %5799 = vmatpush.bf16.msrb.mxu3 %v18150_v1 }
 0x20c   : > { %5761 = vmatpush.bf16.msrb.mxu0 %v18125_v3 }
 0x20d   : > { %5774 = vmatpush.bf16.msrb.mxu1 %v18133_v4 }
 0x20e   : > { %5787 = vmatpush.bf16.msrb.mxu2 %v18141_v5 }
 0x20f   : > { %5800 = vmatpush.bf16.msrb.mxu3 %v18149_v6 }
 0x210   : > { %5762 = vmatpush.bf16.msrb.mxu0 %v18124_v12 }
 0x211   : > { %5775 = vmatpush.bf16.msrb.mxu1 %v18132_v13 }
 0x212   : > { %5788 = vmatpush.bf16.msrb.mxu2 %v18140_v15 }
 0x213   : > { %5801 = vmatpush.bf16.msrb.mxu3 %v18148_v16 }
 0x214   : > { %5763 = vmatpush.bf16.msrb.mxu0 %v18123_v17 }
 0x215   : > { %5776 = vmatpush.bf16.msrb.mxu1 %v18131_v18 }
 0x216   : > { %5789 = vmatpush.bf16.msrb.mxu2 %v18139_v20 }
 0x217   : > { %5802 = vmatpush.bf16.msrb.mxu3 %v18147_v21 }
 0x218   : > { %5764 = vmatpush.bf16.msrb.mxu0 %v18122_v27  ;;  %v5558_v37 = vpop.f32.mrf.mxu0 }
 0x219   : > { %5777 = vmatpush.bf16.msrb.mxu1 %v18130_v28  ;;  %v5559_v38 = vadd.f32 %v5558_v37, %v5546_v11  ;;  %v5571_v39 = vpop.f32.mrf.mxu1 }
 0x21a   : > { %5790 = vmatpush.bf16.msrb.mxu2 %v18138_v31 }
 0x21b   : > { %5803 = vmatpush.bf16.msrb.mxu3 %v18146_v32  ;;  %5765 = vmatmul.bf16.vlgmr.msrb.gmra.mxu0 %v1837_v33  ;;  %v5572_v40 = vadd.f32 %v5571_v39, %v5559_v38 }
 0x21c   : > { %5778 = vmatmul.bf16.vlgmr.msrb.gmra.mxu1 %v1838_v34 }
 0x21d   : > { %5791 = vmatmul.bf16.vlgmr.msrb.gmra.mxu2 %v1839_v35 }
 0x21e   : > { %5804 = vmatmul.bf16.vlgmr.msrb.gmra.mxu3 %v1840_v36 }
 0x220   : > { %v5584_v41 = vpop.f32.mrf.mxu2  ;;  %v5560_v44 = vpop.f32.mrf.mxu0 }
 0x221   : > { %v5585_v42 = vadd.f32 %v5584_v41, %v5572_v40  ;;  %v5597_v43 = vpop.f32.mrf.mxu3  ;;  %v5573_v46 = vpop.f32.mrf.mxu1 }
 0x223   : > { %v5598_v45 = vadd.f32 %v5597_v43, %v5585_v42 }
 0x228   : > { %v5586_v47 = vpop.f32.mrf.mxu2 }
 0x229   : > { %v5599_v48 = vpop.f32.mrf.mxu3 }
 0x238   : > { %v5610_v49 = vpop.f32.mrf.mxu0 }
 0x239   : > { %v5611_v50 = vadd.f32 %v5610_v49, %v5598_v45  ;;  %v5623_v51 = vpop.f32.mrf.mxu1 }
 0x23b   : > { %v5624_v52 = vadd.f32 %v5623_v51, %v5611_v50 }
 0x240   : > { %v5636_v53 = vpop.f32.mrf.mxu2  ;;  %v5612_v56 = vpop.f32.mrf.mxu0 }
 0x241   : > { %v5637_v54 = vadd.f32 %v5636_v53, %v5624_v52  ;;  %v5649_v55 = vpop.f32.mrf.mxu3  ;;  %v5625_v58 = vpop.f32.mrf.mxu1 }
 0x243   : > { %v5650_v57 = vadd.f32 %v5649_v55, %v5637_v54 }
 0x248   : > { %v5638_v59 = vpop.f32.mrf.mxu2 }
 0x249   : > { %v5651_v60 = vpop.f32.mrf.mxu3 }
 0x258   : > { %v5662_v61 = vpop.f32.mrf.mxu0 }
 0x259   : > { %v5675_v62 = vpop.f32.mrf.mxu1  ;;  %v5663_v8 = vadd.f32 %v5662_v61, %v5650_v57 }
 0x25b   : > { %v5676_v12 = vadd.f32 %v5675_v62, %v5663_v8 }
 0x260   : > { %v5688_v63 = vpop.f32.mrf.mxu2  ;;  %v5664_v1 = vpop.f32.mrf.mxu0 }
 0x261   : > { %v5701_v0 = vpop.f32.mrf.mxu3  ;;  %v5677_v2 = vpop.f32.mrf.mxu1  ;;  %v5689_v13 = vadd.f32 %v5688_v63, %v5676_v12 }
 0x263   : > { %v5702_v16 = vadd.f32 %v5701_v0, %v5689_v13 }
 0x268   : > { %v5690_v3 = vpop.f32.mrf.mxu2 }
 0x269   : > { %v5703_v4 = vpop.f32.mrf.mxu3 }
 0x278   : > { %v5714_v5 = vpop.f32.mrf.mxu0 }
 0x279   : > { %v5727_v6 = vpop.f32.mrf.mxu1  ;;  %v5715_v17 = vadd.f32 %v5714_v5, %v5702_v16 }
 0x27b   : > { %v5728_v18 = vadd.f32 %v5727_v6, %v5715_v17 }
 0x280   : > { %v5740_v7 = vpop.f32.mrf.mxu2  ;;  %v5716_v10 = vpop.f32.mrf.mxu0 }
 0x281   : > { %v5753_v9 = vpop.f32.mrf.mxu3  ;;  %v5729_v11 = vpop.f32.mrf.mxu1  ;;  %v5741_v19 = vadd.f32 %v5740_v7, %v5728_v18 }
 0x283   : > { %v5754_v20 = vadd.f32 %v5753_v9, %v5741_v19 }
 0x288   : > { %v5742_v14 = vpop.f32.mrf.mxu2 }
 0x289   : > { %v5755_v15 = vpop.f32.mrf.mxu3 }
 0x298   : > { %v5766_v21 = vpop.f32.mrf.mxu0 }
 0x299   : > { %v5779_v22 = vpop.f32.mrf.mxu1  ;;  %v5767_v23 = vadd.f32 %v5766_v21, %v5754_v20 }
 0x29b   : > { %v5780_v24 = vadd.f32 %v5779_v22, %v5767_v23 }
 0x2a0   : > { %v5792_v25 = vpop.f32.mrf.mxu2  ;;  %v5768_v28 = vpop.f32.mrf.mxu0 }
 0x2a1   : > { %v5805_v26 = vpop.f32.mrf.mxu3  ;;  %v5793_v27 = vadd.f32 %v5792_v25, %v5780_v24  ;;  %v5781_v29 = vpop.f32.mrf.mxu1 }
 0x2a3   : > { %v5806_v31 = vadd.f32 %v5805_v26, %v5793_v27 }
 0x2a5   : > { %v5809_v32 = vadd.f32 %v5806_v31, %v624_v30  ;;  %5814 = sbr.rel (%p14844_p6) target bundleno = 4975 (0x136f), region = 104 }
 0x2a7   : > { %5810 = vst [vmem:[#allocation2] sm:$0xff] %v5809_v32 }
 0x2a8   : > { %v5794_v33 = vpop.f32.mrf.mxu2 }
 0x2a9   : > { %v5807_v34 = vpop.f32.mrf.mxu3 }
 0x2aa   : > { %v14931_v35 = vld [vmem:[%s22955_s5 + $0xa8] sm:$0xf]  ;;  %v18176_v36 = vld [vmem:[%s22955_s5 + $0xb0] sm:$0xf0]  ;;  %v18175_v37 = vld [vmem:[%s22955_s5 + $0xac] sm:$0xf] }
 0x2ab   : > { %v14932_v38 = vor.u32 %v18176_v36, %v14931_v35  ;;  %v14933_v39 = vld [vmem:[%s22955_s5 + $0xb4] sm:$0xf0]  ;;  %v14919_v40 = vld [vmem:[%s22955_s5 + $0x90] sm:$0xf]  ;;  %v18173_v41 = vld [vmem:[%s22955_s5 + $0x98] sm:$0xf0] }
 0x2ac   : > { %v14936_v42 = vor.u32 %v18175_v37, %v14933_v39  ;;  %v18172_v43 = vld [vmem:[%s22955_s5 + $0x94] sm:$0xf]  ;;  %v14921_v44 = vld [vmem:[%s22955_s5 + $0x9c] sm:$0xf0]  ;;  %v14920_v45 = vor.u32 %v18173_v41, %v14919_v40  ;;  %v14907_v47 = vld [vmem:[%s22955_s5 + $0x78] sm:$0xf] }
 0x2ad   : > { %5993 = vmatpush.bf16.msra.mxu0 %v14932_v38  ;;  %v14924_v46 = vor.u32 %v18172_v43, %v14921_v44  ;;  %v18170_v48 = vld [vmem:[%s22955_s5 + $0x80] sm:$0xf0]  ;;  %v18169_v49 = vld [vmem:[%s22955_s5 + $0x7c] sm:$0xf]  ;;  %v14909_v50 = vld [vmem:[%s22955_s5 + $0x84] sm:$0xf0] }
 0x2ae   : > { %6007 = vmatpush.bf16.msra.mxu1 %v14936_v42  ;;  %v14908_v51 = vor.u32 %v18170_v48, %v14907_v47  ;;  %v14912_v52 = vor.u32 %v18169_v49, %v14909_v50  ;;  %v14895_v53 = vld [vmem:[%s22955_s5 + $0x60] sm:$0xf]  ;;  %v18167_v54 = vld [vmem:[%s22955_s5 + $0x68] sm:$0xf0]  ;;  %v18166_v55 = vld [vmem:[%s22955_s5 + $0x64] sm:$0xf] }
 0x2af   : > { %v14897_v56 = vld [vmem:[%s22955_s5 + $0x6c] sm:$0xf0]  ;;  %v14896_v57 = vor.u32 %v18167_v54, %v14895_v53  ;;  %v14883_v58 = vld [vmem:[%s22955_s5 + $0x48] sm:$0xf]  ;;  %v18164_v59 = vld [vmem:[%s22955_s5 + $0x50] sm:$0xf0] }
 0x2b0   : > { %v14900_v60 = vor.u32 %v18166_v55, %v14897_v56  ;;  %v18163_v61 = vld [vmem:[%s22955_s5 + $0x4c] sm:$0xf]  ;;  %v14885_v62 = vld [vmem:[%s22955_s5 + $0x54] sm:$0xf0]  ;;  %v14871_v63 = vld [vmem:[%s22955_s5 + $0x30] sm:$0xf]  ;;  %v14884_v1 = vor.u32 %v18164_v59, %v14883_v58 }
 0x2b1   : > { %5994 = vmatpush.bf16.msra.mxu0 %v14920_v45  ;;  %v18161_v0 = vld [vmem:[%s22955_s5 + $0x38] sm:$0xf0]  ;;  %v14888_v2 = vor.u32 %v18163_v61, %v14885_v62  ;;  %v18160_v3 = vld [vmem:[%s22955_s5 + $0x34] sm:$0xf]  ;;  %v14873_v4 = vld [vmem:[%s22955_s5 + $0x3c] sm:$0xf0] }
 0x2b2   : > { %6008 = vmatpush.bf16.msra.mxu1 %v14924_v46  ;;  %v14872_v5 = vor.u32 %v18161_v0, %v14871_v63  ;;  %v14876_v6 = vor.u32 %v18160_v3, %v14873_v4  ;;  %v14859_v7 = vld [vmem:[%s22955_s5 + $0x18] sm:$0xf]  ;;  %v18158_v8 = vld [vmem:[%s22955_s5 + $0x20] sm:$0xf0]  ;;  %v18157_v10 = vld [vmem:[%s22955_s5 + $0x1c] sm:$0xf] }
 0x2b3   : > { %v5815_v9 = vld [vmem:[#allocation2] sm:$0xff]  ;;  %v14861_v11 = vld [vmem:[%s22955_s5 + $0x24] sm:$0xf0]  ;;  %v14860_v12 = vor.u32 %v18158_v8, %v14859_v7  ;;  %v18155_v14 = vld [vmem:[%s22955_s5 + $0x8] sm:$0xf0]  ;;  %vm5821_vm0 = vcmask 1043456  }
 0x2b4   : > { %v14847_v13 = vld [vmem:[%s22955_s5] sm:$0xf]  ;;  %v5819_v15 = vrot.slane %v5815_v9, 4  ;;  %v14864_v16 = vor.u32 %v18157_v10, %v14861_v11  ;;  %v5817_v18 = vld [vmem:[%s22982_s1 + $0x4] sm:$0xf]  ;;  %vm6083_vm1 = vcmask 261120  }
 0x2b5   : > { %5995 = vmatpush.bf16.msra.mxu0 %v14908_v51  ;;  %v5816_v17 = vld [vmem:[%s22982_s1] sm:$0xf]  ;;  %v18154_v19 = vld [vmem:[%s22955_s5 + $0x4] sm:$0xf]  ;;  %v14849_v20 = vld [vmem:[%s22955_s5 + $0xc] sm:$0xf0]  ;;  %v14848_v21 = vor.u32 %v18155_v14, %v14847_v13  ;;  %v19744_v23 = vsel %vm5821_vm0, %v5817_v18, %v5815_v9 }
 0x2b6   : > { %6009 = vmatpush.bf16.msra.mxu1 %v14912_v52  ;;  %v19742_v22 = vsel %vm5821_vm0, %v5816_v17, %v5819_v15  ;;  %v14852_v24 = vor.u32 %v18154_v19, %v14849_v20  ;;  %v19755_v26 = vld [vmem:[%s22956_s6] sm:$0x7]  ;;  %v14939_v41 = vld [vmem:[%s22955_s5 + $0xb0] sm:$0xf]  ;;  %v18177_v42 = vld [vmem:[%s22955_s5 + $0xb8] sm:$0xf0] }
 0x2b7   : > { %v19748_v25 = vpack.c.bf16 %v19744_v23, %v19742_v22  ;;  %v5860_v27 = vperm.slane %v19755_v26, 1  ;;  %v5859_v28 = vperm.slane %v19755_v26, 0  ;;  %v14940_v43 = vor.u32 %v18177_v42, %v14939_v41  ;;  %v14927_v58 = vld [vmem:[%s22955_s5 + $0x98] sm:$0xf]  ;;  %v18174_v59 = vld [vmem:[%s22955_s5 + $0xa0] sm:$0xf0] }
 0x2b8   : > { %vm6284_vm2 = vcmask 64512   ;;  %v14915_v61 = vld [vmem:[%s22955_s5 + $0x80] sm:$0xf]  ;;  %v18171_v62 = vld [vmem:[%s22955_s5 + $0x88] sm:$0xf0] }
 0x2b9   : > { %5996 = vmatpush.bf16.msra.mxu0 %v14896_v57  ;;  %6021 = vmatpush.bf16.msra.mxu2 %v14940_v43  ;;  %v14916_v63 = vor.u32 %v18171_v62, %v14915_v61  ;;  %v14903_v0 = vld [vmem:[%s22955_s5 + $0x68] sm:$0xf]  ;;  %v14891_v3 = vld [vmem:[%s22955_s5 + $0x50] sm:$0xf]  ;;  %v18165_v4 = vld [vmem:[%s22955_s5 + $0x58] sm:$0xf0] }
 0x2ba   : > { %6010 = vmatpush.bf16.msra.mxu1 %v14900_v60  ;;  %v14928_v60 = vor.u32 %v18174_v59, %v14927_v58  ;;  %v18162_v7 = vld [vmem:[%s22955_s5 + $0x40] sm:$0xf0]  ;;  %v14867_v9 = vld [vmem:[%s22955_s5 + $0x20] sm:$0xf]  ;;  %v18159_v10 = vld [vmem:[%s22955_s5 + $0x28] sm:$0xf0] }
 0x2bb   : > { %v14868_v11 = vor.u32 %v18159_v10, %v14867_v9  ;;  %v18156_v13 = vld [vmem:[%s22955_s5 + $0x10] sm:$0xf0] }
 0x2bd   : > { %5997 = vmatpush.bf16.msra.mxu0 %v14884_v1  ;;  %6022 = vmatpush.bf16.msra.mxu2 %v14928_v60  ;;  %v18168_v1 = vld [vmem:[%s22955_s5 + $0x70] sm:$0xf0] }
 0x2be   : > { %6011 = vmatpush.bf16.msra.mxu1 %v14888_v2  ;;  %v14904_v2 = vor.u32 %v18168_v1, %v14903_v0 }
 0x2c1   : > { %5998 = vmatpush.bf16.msra.mxu0 %v14872_v5  ;;  %6023 = vmatpush.bf16.msra.mxu2 %v14916_v63  ;;  %v14892_v5 = vor.u32 %v18165_v4, %v14891_v3 }
 0x2c2   : > { %6012 = vmatpush.bf16.msra.mxu1 %v14876_v6  ;;  %v14879_v6 = vld [vmem:[%s22955_s5 + $0x38] sm:$0xf] }
 0x2c3   : > { %v14880_v8 = vor.u32 %v18162_v7, %v14879_v6 }
 0x2c5   : > { %5999 = vmatpush.bf16.msra.mxu0 %v14860_v12  ;;  %6024 = vmatpush.bf16.msra.mxu2 %v14904_v2  ;;  %v14855_v12 = vld [vmem:[%s22955_s5 + $0x8] sm:$0xf] }
 0x2c6   : > { %6013 = vmatpush.bf16.msra.mxu1 %v14864_v16  ;;  %v14856_v14 = vor.u32 %v18156_v13, %v14855_v12 }
 0x2c9   : > { %6000 = vmatpush.bf16.msra.mxu0 %v14848_v21  ;;  %6025 = vmatpush.bf16.msra.mxu2 %v14892_v5 }
 0x2ca   : > { %6014 = vmatpush.bf16.msra.mxu1 %v14852_v24 }
 0x2cc   : > { %6001 = vmatmul.bf16.vlgmr.msra.gmra.mxu0 %v19748_v25 }
 0x2cd   : > { %6015 = vmatmul.bf16.vlgmr.msra.gmra.mxu1 %v19748_v25  ;;  %6026 = vmatpush.bf16.msra.mxu2 %v14880_v8 }
 0x2d1   : > { %6027 = vmatpush.bf16.msra.mxu2 %v14868_v11 }
 0x2d5   : > { %6028 = vmatpush.bf16.msra.mxu2 %v14856_v14 }
 0x2d8   : > { %6029 = vmatmul.bf16.vlgmr.msra.gmra.mxu2 %v19748_v25 }
 0x349   : > { %v6002_v29 = vpop.f32.mrf.mxu0 }
 0x34a   : > { %v6016_v30 = vpop.f32.mrf.mxu1  ;;  %v6003_v32 = vadd.f32 %v6002_v29, %v5859_v28 }
 0x34b   : > { %v6017_v31 = vadd.f32 %v6016_v30, %v5860_v27 }
 0x34d   : > { %6055 = vrot.lane.b32.xlu2 %v6017_v31, %s18927_s28  ;;  %6051 = vrot.lane.b32.xlu0 %v6017_v31, %s18928_s29 }
 0x34e   : > { %14941 = vmatpush.xpose.msk.msrb.mxu1 %vm6083_vm1, %v6017_v31 }
 0x351   : > { %14942 = vmatmul.msk.f32.vlgmr.msrb.gmra.mxu1 %vm6083_vm1, %v6003_v32  ;;  %v6004_v34 = vpop.f32.mrf.mxu0 }
 0x352   : > { %v6018_v33 = vpop.f32.mrf.mxu1  ;;  %v6005_v36 = vadd.f32 %v6004_v34, %v5859_v28 }
 0x353   : > { %v6019_v35 = vadd.f32 %v6018_v33, %v5860_v27 }
 0x355   : > { %6053 = vrot.lane.b32.xlu1 %v6019_v35, %s18928_s29  ;;  %14943 = vmatpush.xpose.msk.msra.mxu3 %vm6083_vm1, %v6019_v35 }
 0x356   : > { %6041 = vrot.lane.b32.xlu2 %v6003_v32, %s18927_s28  ;;  %6037 = vrot.lane.b32.xlu0 %v6003_v32, %s18928_s29 }
 0x358   : > { %14944 = vmatmul.msk.f32.vlgmr.msra.gmra.mxu3 %vm6083_vm1, %v6005_v36 }
 0x35d   : > { %6039 = vrot.lane.b32.xlu1 %v6005_v36, %s18928_s29 }
 0x35e   : > { %6059 = vrot.lane.b32.xlu2 %v6017_v31, %s22972_s0  ;;  %6057 = vrot.lane.b32.xlu0 %v6019_v35, %s18927_s28 }
 0x365   : > { %6043 = vrot.lane.b32.xlu1 %v6005_v36, %s18927_s28 }
 0x366   : > { %6047 = vrot.lane.b32.xlu2 %v6005_v36, %s22972_s0  ;;  %6061 = vrot.lane.b32.xlu0 %v6019_v35, %s22972_s0 }
 0x36d   : > { %6045 = vrot.lane.b32.xlu1 %v6003_v32, %s22972_s0 }
 0x3a7   : > { %v6056_v37 = vpop.permute.xlu2 %6055 }
 0x3b0   : > { %v6042_v38 = vpop.permute.xlu2 %6041 }
 0x3b8   : > { %v6060_v39 = vpop.permute.xlu2 %6059 }
 0x3b9   : > { %14953 = vmatpush.xpose.msk.msrb.mxu0 %vm6083_vm1, %v6060_v39 }
 0x3bf   : > { %v6052_v40 = vpop.permute.xlu0 %6051 }
 0x3c0   : > { %14945 = vmatpush.xpose.msk.msrb.mxu3 %vm6083_vm1, %v6052_v40  ;;  %v6048_v53 = vpop.permute.xlu2 %6047 }
 0x3c7   : > { %v6054_v44 = vpop.permute.xlu1 %6053 }
 0x3c8   : > { %v6038_v45 = vpop.permute.xlu0 %6037  ;;  %14947 = vmatpush.xpose.msk.msra.mxu3 %vm6083_vm1, %v6054_v44 }
 0x3c9   : > { %14946 = vmatmul.msk.f32.vlgmr.msrb.gmra.mxu3 %vm6083_vm1, %v6038_v45 }
 0x3cc   : > { %14949 = vmatpush.xpose.msk.msrb.mxu3 %vm6083_vm1, %v6056_v37 }
 0x3ce   : > { %v6105_v46 = vpop.f32.mrf.mxu1 }
 0x3cf   : > { %v19786_v47 = vmul.f32 0.17677669, %v6105_v46  ;;  %v6040_v48 = vpop.permute.xlu1 %6039 }
 0x3d0   : > { %v6058_v49 = vpop.permute.xlu0 %6057 }
 0x3d1   : > { %14948 = vmatmul.msk.f32.vlgmr.msra.gmra.mxu3 %vm6083_vm1, %v6040_v48  ;;  %v6285_v50 = vsel %vm6284_vm2, %v19786_v47, -inf }
 0x3d2   : > { %14951 = vmatpush.xpose.msk.msra.mxu3 %vm6083_vm1, %v6058_v49  ;;  %6286 = vmax.xlane.f32.xlu0 %v6285_v50  ;;  %v6030_v49 = vpop.f32.mrf.mxu2 }
 0x3d7   : > { %v6044_v51 = vpop.permute.xlu1 %6043 }
 0x3d8   : > { %v6062_v52 = vpop.permute.xlu0 %6061 }
 0x3d9   : > { %14950 = vmatmul.msk.f32.vlgmr.msrb.gmra.mxu3 %vm6083_vm1, %v6042_v38  ;;  %14955 = vmatpush.xpose.msk.msra.mxu1 %vm6083_vm1, %v6062_v52 }
 0x3db   : > { %v6129_v54 = vpop.f32.mrf.mxu3 }
 0x3dc   : > { %v6277_v55 = vmul.f32 0.17677669, %v6129_v54  ;;  %14956 = vmatmul.msk.f32.vlgmr.msra.gmra.mxu1 %vm6083_vm1, %v6048_v53  ;;  %v6032_v53 = vpop.f32.mrf.mxu2 }
 0x3de   : > { %v6288_v56 = vsel %vm6284_vm2, %v6277_v55, -inf }
 0x3df   : > { %6289 = vmax.xlane.f32.xlu1 %v6288_v56  ;;  %v6046_v57 = vpop.permute.xlu1 %6045 }
 0x3e0   : > { %14954 = vmatmul.msk.f32.vlgmr.msrb.gmra.mxu0 %vm6083_vm1, %v6046_v57 }
 0x3e1   : > { %14952 = vmatmul.msk.f32.vlgmr.msra.gmra.mxu3 %vm6083_vm1, %v6044_v51  ;;  %v5861_v51 = vperm.slane %v19755_v26, 2 }
 0x3e3   : > { %v19867_v58 = vadd.f32 %v6030_v49, %v5861_v51 }
 0x3e5   : > { %6495 = vmatpush.msra.mxu0 %v19867_v58 }
 0x445   : > { %v6287_v27 = vpop.xlane.xlu0 %6286 }
 0x446   : > { %v6309_v25 = vsub.f32 %v19786_v47, %v6287_v27 }
 0x448   : > { %v6317_v36 = vmul.f32 1.442695, %v6309_v25 }
 0x44c   : > { %v6153_v15 = vpop.f32.mrf.mxu3 }
 0x44d   : > { %v6278_v16 = vmul.f32 0.17677669, %v6153_v15 }
 0x44f   : > { %v6291_v17 = vsel %vm6284_vm2, %v6278_v16, -inf }
 0x450   : > { %6292 = vmax.xlane.f32.xlu2 %v6291_v17 }
 0x452   : > { %v6290_v18 = vpop.xlane.xlu1 %6289 }
 0x453   : > { %v6310_v21 = vsub.f32 %v6277_v55, %v6290_v18  ;;  %v19864_v55 = vadd.f32 %v6032_v53, %v5861_v51 }
 0x454   : > { %v6177_v19 = vpop.f32.mrf.mxu3 }
 0x455   : > { %v6279_v20 = vmul.f32 0.17677669, %v6177_v19  ;;  %v6319_v28 = vmul.f32 1.442695, %v6310_v21  ;;  %6518 = vmatpush.msrb.mxu3 %v19864_v55 }
 0x457   : > { %v6294_v24 = vsel %vm6284_vm2, %v6279_v20, -inf  ;;  %18799 = vpow2.f32 %v6319_v28 }
 0x458   : > { %6295 = vmax.xlane.f32.xlu2 %v6294_v24  ;;  %18801 = vpow2.f32 %v6317_v36 }
 0x459   : > { %v6273_v34 = vpop.f32.mrf.mxu1 }
 0x45a   : > { %v6283_v37 = vmul.f32 0.17677669, %v6273_v34 }
 0x45c   : > { %v6201_v29 = vpop.f32.mrf.mxu3  ;;  %v6306_v42 = vsel %vm6284_vm2, %v6283_v37, -inf }
 0x45d   : > { %v19843_v30 = vmul.f32 0.17677669, %v6201_v29  ;;  %v6249_v31 = vpop.f32.mrf.mxu0  ;;  %v19849_v39 = vpop.eup %18799 }
 0x45e   : > { %v6282_v32 = vmul.f32 0.17677669, %v6249_v31  ;;  %v6336_v43 = vsel %vm6284_vm2, %v19849_v39, 0.0  ;;  %v19855_v44 = vpop.eup %18801 }
 0x45f   : > { %v6297_v33 = vsel %vm6284_vm2, %v19843_v30, -inf  ;;  %v6333_v45 = vsel %vm6284_vm2, %v19855_v44, 0.0 }
 0x460   : > { %6298 = vmax.xlane.f32.xlu0 %v6297_v33  ;;  %v6303_v35 = vsel %vm6284_vm2, %v6282_v32, -inf }
 0x461   : > { %6304 = vmax.xlane.f32.xlu2 %v6303_v35 }
 0x464   : > { %v6225_v38 = vpop.f32.mrf.mxu3 }
 0x465   : > { %v6281_v40 = vmul.f32 0.17677669, %v6225_v38 }
 0x467   : > { %v6300_v41 = vsel %vm6284_vm2, %v6281_v40, -inf }
 0x468   : > { %6301 = vmax.xlane.f32.xlu1 %v6300_v41  ;;  %6307 = vmax.xlane.f32.xlu0 %v6306_v42 }
 0x469   : > { %6337 = vadd.xlane.f32.xlu2 %v6336_v43 }
 0x470   : > { %6334 = vadd.xlane.f32.xlu1 %v6333_v45 }
 0x4c3   : > { %v6293_v46 = vpop.xlane.xlu2 %6292 }
 0x4c4   : > { %v6311_v47 = vsub.f32 %v6278_v16, %v6293_v46 }
 0x4c6   : > { %v6321_v48 = vmul.f32 1.442695, %v6311_v47 }
 0x4c8   : > { %18803 = vpow2.f32 %v6321_v48 }
 0x4cb   : > { %v6296_v50 = vpop.xlane.xlu2 %6295 }
 0x4cc   : > { %v6312_v60 = vsub.f32 %v6279_v20, %v6296_v50 }
 0x4ce   : > { %v19860_v52 = vpop.eup %18803  ;;  %v6323_v61 = vmul.f32 1.442695, %v6312_v60 }
 0x4cf   : > { %v6339_v54 = vsel %vm6284_vm2, %v19860_v52, 0.0 }
 0x4d0   : > { %6340 = vadd.xlane.f32.xlu0 %v6339_v54 }
 0x4d3   : > { %v6299_v56 = vpop.xlane.xlu0 %6298 }
 0x4d4   : > { %v6305_v57 = vpop.xlane.xlu2 %6304  ;;  %v6313_v6 = vsub.f32 %v19843_v30, %v6299_v56 }
 0x4d5   : > { %v6315_v59 = vsub.f32 %v6282_v32, %v6305_v57 }
 0x4d6   : > { %v6325_v9 = vmul.f32 1.442695, %v6313_v6 }
 0x4d7   : > { %v6329_v26 = vmul.f32 1.442695, %v6315_v59 }
 0x4d9   : > { %18805 = vpow2.f32 %v6329_v26 }
 0x4db   : > { %v6302_v62 = vpop.xlane.xlu1 %6301  ;;  %v6308_v63 = vpop.xlane.xlu0 %6307 }
 0x4dc   : > { %v6314_v0 = vsub.f32 %v6281_v40, %v6302_v62  ;;  %v6316_v1 = vsub.f32 %v6283_v37, %v6308_v63  ;;  %v6338_v2 = vpop.xlane.xlu2 %6337 }
 0x4dd   : > { %18807 = vrcp.f32 %v6338_v2  ;;  %v6383_v16 = vand.u32 2147483648, %v6338_v2  ;;  %v6381_v20 = vand.u32 2147483647, %v6338_v2  ;;  %vm6377_vm4 = vweird.f32 %v6338_v2 }
 0x4de   : > { %18809 = vpow2.f32 %v6323_v61  ;;  %v6327_v3 = vmul.f32 1.442695, %v6314_v0  ;;  %v6331_v4 = vmul.f32 1.442695, %v6316_v1 }
 0x4df   : > { %v19870_v5 = vpop.eup %18805  ;;  %v6384_v28 = vor.u32 1.1754944e-38, %v6383_v16  ;;  %vm6382_vm6 = vcmp.eq.f32.partialorder %v6381_v20, 8.507059e+37 }
 0x4e0   : > { %18811 = vpow2.f32 %v6327_v3  ;;  %v6351_v7 = vsel %vm6284_vm2, %v19870_v5, 0.0 }
 0x4e1   : > { %18813 = vpow2.f32 %v6331_v4  ;;  %6352 = vadd.xlane.f32.xlu1 %v6351_v7 }
 0x4e3   : > { %v18808_v8 = vpop.eup %18807  ;;  %v6335_v10 = vpop.xlane.xlu1 %6334 }
 0x4e4   : > { %v19875_v11 = vpop.eup %18809  ;;  %v6373_v12 = vmul.f32 %v18808_v8, %v6338_v2  ;;  %18815 = vrcp.f32 %v6335_v10  ;;  %vm6378_vm3 = vweird.f32 %v18808_v8  ;;  %v6368_v33 = vand.u32 2147483648, %v6335_v10 }
 0x4e5   : > { %18817 = vpow2.f32 %v6325_v9  ;;  %v6342_v18 = vsel %vm6284_vm2, %v19875_v11, 0.0  ;;  %vm6379_vm5 = vmor %vm6377_vm4, %vm6378_vm3  ;;  %v6366_v36 = vand.u32 2147483647, %v6335_v10  ;;  %vm6362_vm8 = vweird.f32 %v6335_v10 }
 0x4e6   : > { %v19877_v13 = vpop.eup %18811  ;;  %v6374_v14 = vsub.f32 1.0, %v6373_v12  ;;  %v6369_v40 = vor.u32 1.1754944e-38, %v6368_v33 }
 0x4e7   : > { %v19879_v15 = vpop.eup %18813  ;;  %v6348_v17 = vsel %vm6284_vm2, %v19877_v13, 0.0  ;;  %vm6367_vm10 = vcmp.eq.f32.partialorder %v6366_v36, 8.507059e+37 }
 0x4e8   : > { %v6375_v19 = vmul.f32 %v18808_v8, %v6374_v14  ;;  %6349 = vadd.xlane.f32.xlu0 %v6348_v17  ;;  %v6354_v21 = vsel %vm6284_vm2, %v19879_v15, 0.0 }
 0x4e9   : > { %6355 = vadd.xlane.f32.xlu2 %v6354_v21  ;;  %6343 = vadd.xlane.f32.xlu1 %v6342_v18 }
 0x4ea   : > { %v18816_v24 = vpop.eup %18815  ;;  %v6376_v27 = vadd.f32 %v18808_v8, %v6375_v19 }
 0x4eb   : > { %v6358_v29 = vmul.f32 %v18816_v24, %v6335_v10  ;;  %v19887_v31 = vpop.eup %18817  ;;  %vm6363_vm7 = vweird.f32 %v18816_v24 }
 0x4ec   : > { %v6380_v30 = vsel %vm6379_vm5, %v18808_v8, %v6376_v27  ;;  %v6345_v37 = vsel %vm6284_vm2, %v19887_v31, 0.0  ;;  %vm6364_vm9 = vmor %vm6362_vm8, %vm6363_vm7 }
 0x4ed   : > { %v6385_v25 = vsel %vm6382_vm6, %v6384_v28, %v6380_v30  ;;  %v6359_v32 = vsub.f32 1.0, %v6358_v29 }
 0x4ee   : > { %v6386_v34 = vmul.f32 %v19849_v39, %v6385_v25  ;;  %v18754_v39 = vpack.i.bf16 %v19864_v55, %v19867_v58 }
 0x4ef   : > { %v6360_v35 = vmul.f32 %v18816_v24, %v6359_v32 }
 0x4f0   : > { %14958 = vmatmul.msk.f32.vlgmr.msrb.gmra.mxu3 %vm6284_vm2, %v6386_v34 }
 0x4f1   : > { %v6361_v38 = vadd.f32 %v18816_v24, %v6360_v35  ;;  %6346 = vadd.xlane.f32.xlu2 %v6345_v37 }
 0x4f3   : > { %v6365_v41 = vsel %vm6364_vm9, %v18816_v24, %v6361_v38 }
 0x4f4   : > { %v6370_v42 = vsel %vm6367_vm10, %v6369_v40, %v6365_v41 }
 0x4f5   : > { %v6371_v43 = vmul.f32 %v19855_v44, %v6370_v42  ;;  %v18930_v42 = vmov 128.0  }
 0x4f7   : > { %14957 = vmatmul.msk.f32.vlgmr.msra.gmra.mxu0 %vm6284_vm2, %v6371_v43 }
 0x4fc   : > { %18755 = vrot.lane.b32.xlu0 %v18754_v39, %s18928_s29 }
 0x502   : > { %18760 = vrot.lane.b32.xlu1 %v18754_v39, %s18927_s28 }
 0x509   : > { %18765 = vrot.lane.b32.xlu2 %v18754_v39, %s22972_s0 }
 0x543   : > { %v6341_v45 = vpop.xlane.xlu0 %6340 }
 0x544   : > { %18819 = vrcp.f32 %v6341_v45  ;;  %v6398_v56 = vand.u32 2147483648, %v6341_v45  ;;  %vm6392_vm12 = vweird.f32 %v6341_v45  ;;  %v6396_v57 = vand.u32 2147483647, %v6341_v45 }
 0x546   : > { %v6399_v61 = vor.u32 1.1754944e-38, %v6398_v56  ;;  %vm6397_vm14 = vcmp.eq.f32.partialorder %v6396_v57, 8.507059e+37 }
 0x54a   : > { %v18820_v46 = vpop.eup %18819 }
 0x54b   : > { %v6388_v47 = vmul.f32 %v18820_v46, %v6341_v45  ;;  %vm6393_vm11 = vweird.f32 %v18820_v46 }
 0x54c   : > { %vm6394_vm13 = vmor %vm6392_vm12, %vm6393_vm11 }
 0x54d   : > { %v6389_v49 = vsub.f32 1.0, %v6388_v47 }
 0x54f   : > { %v6390_v44 = vmul.f32 %v18820_v46, %v6389_v49 }
 0x551   : > { %v6391_v55 = vadd.f32 %v18820_v46, %v6390_v44 }
 0x553   : > { %v6395_v60 = vsel %vm6394_vm13, %v18820_v46, %v6391_v55 }
 0x554   : > { %v19900_v48 = vpop.xlane.xlu1 %6352  ;;  %v6400_v3 = vsel %vm6397_vm14, %v6399_v61, %v6395_v60 }
 0x555   : > { %18821 = vrcp.f32 %v19900_v48  ;;  %vm6452_vm15 = vweird.f32 %v19900_v48  ;;  %v6456_v8 = vand.u32 2147483647, %v19900_v48  ;;  %v6458_v9 = vand.u32 2147483648, %v19900_v48 }
 0x556   : > { %v6401_v17 = vmul.f32 %v19860_v52, %v6400_v3 }
 0x55b   : > { %v19903_v50 = vpop.xlane.xlu0 %6349  ;;  %v19908_v54 = vpop.eup %18821 }
 0x55c   : > { %v19905_v51 = vpop.xlane.xlu2 %6355  ;;  %18823 = vrcp.f32 %v19903_v50  ;;  %v6344_v53 = vpop.xlane.xlu1 %6343  ;;  %v6448_v58 = vmul.f32 %v19908_v54, %v19900_v48  ;;  %vm6453_vm0 = vweird.f32 %v19908_v54  ;;  %vm6437_vm5 = vweird.f32 %v19903_v50 }
 0x55d   : > { %18825 = vrcp.f32 %v19905_v51  ;;  %v6413_v16 = vand.u32 2147483648, %v6344_v53  ;;  %v6411_v19 = vand.u32 2147483647, %v6344_v53  ;;  %vm6467_vm4 = vweird.f32 %v19905_v51  ;;  %vm19946_vm10 = vmor %vm6452_vm15, %vm6453_vm0 }
 0x55e   : > { %18827 = vrcp.f32 %v6344_v53  ;;  %v6449_v0 = vsub.f32 1.0, %v6448_v58  ;;  %v6443_v21 = vand.u32 2147483648, %v19903_v50  ;;  %v6471_v24 = vand.u32 2147483647, %v19905_v51 }
 0x55f   : > { %v6473_v27 = vand.u32 2147483648, %v19905_v51  ;;  %vm6407_vm6 = vweird.f32 %v6344_v53  ;;  %v6414_v25 = vor.u32 1.1754944e-38, %v6413_v16  ;;  %v6441_v32 = vand.u32 2147483647, %v19903_v50  ;;  %v18183_v16 = vld [vmem:[%s22957_s7 + $0x28] sm:$0xff] }
 0x560   : > { %v6450_v12 = vmul.f32 %v19908_v54, %v6449_v0  ;;  %vm6412_vm9 = vcmp.eq.f32.partialorder %v6411_v19, 8.507059e+37  ;;  %v6444_v37 = vor.u32 1.1754944e-38, %v6443_v21  ;;  %vm6457_vm15 = vcmp.eq.f32.partialorder %v6456_v8, 8.507059e+37  ;;  %v18180_v19 = vld [vmem:[%s22957_s7 + $0x10] sm:$0xff]  ;;  %v18178_v21 = vld [vmem:[%s22957_s7] sm:$0xff] }
 0x561   : > { %vm6442_vm0 = vcmp.eq.f32.partialorder %v6441_v32, 8.507059e+37 }
 0x562   : > { %v19913_v59 = vpop.eup %18823  ;;  %v6451_v29 = vadd.f32 %v19908_v54, %v6450_v12 }
 0x563   : > { %v19915_v26 = vpop.eup %18825  ;;  %v6433_v62 = vmul.f32 %v19913_v59, %v19903_v50  ;;  %vm6438_vm7 = vweird.f32 %v19913_v59 }
 0x564   : > { %v18828_v63 = vpop.eup %18827  ;;  %v6463_v1 = vmul.f32 %v19915_v26, %v19905_v51  ;;  %v19921_v2 = vpop.xlane.xlu2 %6346  ;;  %vm6468_vm11 = vweird.f32 %v19915_v26  ;;  %vm19954_vm12 = vmor %vm6437_vm5, %vm6438_vm7  ;;  %v6455_v47 = vsel %vm19946_vm10, %v19908_v54, %v6451_v29  ;;  %v6459_v54 = vor.u32 1.1754944e-38, %v6458_v9 }
 0x565   : > { %v6434_v4 = vsub.f32 1.0, %v6433_v62  ;;  %v6403_v6 = vmul.f32 %v18828_v63, %v6344_v53  ;;  %18829 = vrcp.f32 %v19921_v2  ;;  %vm6408_vm3 = vweird.f32 %v18828_v63  ;;  %vm19969_vm13 = vmor %vm6467_vm4, %vm6468_vm11 }
 0x566   : > { %v6464_v7 = vsub.f32 1.0, %v6463_v1  ;;  %vm6409_vm8 = vmor %vm6407_vm6, %vm6408_vm3  ;;  %v6426_v49 = vand.u32 2147483647, %v19921_v2  ;;  %v6428_v44 = vand.u32 2147483648, %v19921_v2  ;;  %v6474_v51 = vor.u32 1.1754944e-38, %v6473_v27 }
 0x567   : > { %v6404_v10 = vsub.f32 1.0, %v6403_v6  ;;  %v6435_v14 = vmul.f32 %v19913_v59, %v6434_v4  ;;  %vm6422_vm3 = vweird.f32 %v19921_v2  ;;  %v6460_v60 = vsel %vm6457_vm15, %v6459_v54, %v6455_v47  ;;  %v15383_v54 = vld [vmem:[%s22959_s9 + $0x300] sm:$0xf] }
 0x568   : > { %v6465_v20 = vmul.f32 %v19915_v26, %v6464_v7  ;;  %vm6472_vm4 = vcmp.eq.f32.partialorder %v6471_v24, 8.507059e+37  ;;  %vm6427_vm6 = vcmp.eq.f32.partialorder %v6426_v49, 8.507059e+37  ;;  %v6429_v61 = vor.u32 1.1754944e-38, %v6428_v44  ;;  %v15455_v49 = vld [vmem:[%s22959_s9 + $0x388] sm:$0xf] }
 0x569   : > { %v6405_v18 = vmul.f32 %v18828_v63, %v6404_v10  ;;  %v6436_v30 = vadd.f32 %v19913_v59, %v6435_v14  ;;  %v6461_v7 = vmul.f32 %v19870_v5, %v6460_v60  ;;  %v18184_v14 = vld [vmem:[%s22957_s7 + $0x30] sm:$0xff]  ;;  %vm6671_vm7 = vcmask 523520   ;;  %v18307_v44 = vld [vmem:[%s22959_s9 + $0x3c4] sm:$0xf0] }
 0x56a   : > { %v6466_v36 = vadd.f32 %v19915_v26, %v6465_v20  ;;  %v18179_v20 = vld [vmem:[%s22957_s7 + $0x8] sm:$0xff]  ;;  %18831 = vrcp.f32 %v18930_v42 }
 0x56b   : > { %v6406_v28 = vadd.f32 %v18828_v63, %v6405_v18  ;;  %v18830_v52 = vpop.eup %18829  ;;  %v6440_v48 = vsel %vm19954_vm12, %v19913_v59, %v6436_v30  ;;  %v18181_v18 = vld [vmem:[%s22957_s7 + $0x18] sm:$0xff] }
 0x56c   : > { %v6418_v34 = vmul.f32 %v18830_v52, %v19921_v2  ;;  %v18766_v40 = vpop.permute.xlu2 %18765  ;;  %vm6423_vm14 = vweird.f32 %v18830_v52  ;;  %v6470_v56 = vsel %vm19969_vm13, %v19915_v26, %v6466_v36  ;;  %v6445_v57 = vsel %vm6442_vm0, %v6444_v37, %v6440_v48  ;;  %v15449_v48 = vld [vmem:[%s22959_s9 + $0x3c0] sm:$0xf0] }
 0x56d   : > { %v6410_v33 = vsel %vm6409_vm8, %v18828_v63, %v6406_v28  ;;  %v18767_v55 = vunpack.i.l.bf16 %v18766_v40  ;;  %vm6424_vm5 = vmor %vm6422_vm3, %vm6423_vm14  ;;  %v6475_v63 = vsel %vm6472_vm4, %v6474_v51, %v6470_v56  ;;  %v6446_v4 = vmul.f32 %v19877_v13, %v6445_v57  ;;  %v18290_v51 = vld [vmem:[%s22959_s9 + $0x33c] sm:$0xf0]  ;;  %v18282_v57 = vld [vmem:[%s22959_s9 + $0x304] sm:$0xf] }
 0x56e   : > { %v6415_v38 = vsel %vm6412_vm9, %v6414_v25, %v6410_v33  ;;  %v18756_v41 = vpop.permute.xlu0 %18755  ;;  %v6419_v43 = vsub.f32 1.0, %v6418_v34  ;;  %v6476_v8 = vmul.f32 %v19879_v15, %v6475_v63  ;;  %v18185_v15 = vld [vmem:[%s22957_s7 + $0x38] sm:$0xff]  ;;  %vm6682_vm8 = vcmask 785920   ;;  %v18786_v34 = vld [vmem:[%s22958_s8] ss:$0 sm:$0xff] }
 0x56f   : > { %v18758_v39 = vunpack.i.h.bf16 %v18756_v41  ;;  %v18757_v45 = vunpack.i.l.bf16 %v18756_v41  ;;  %v6416_v46 = vmul.f32 %v19875_v11, %v6415_v38  ;;  %v18768_v11 = vunpack.i.h.bf16 %v18766_v40 }
 0x570   : > { %v6420_v53 = vmul.f32 %v18830_v52, %v6419_v43  ;;  %vm6693_vm9 = vcmask 1048320   ;;  %v20037_v43 = vpop.eup %18831 }
 0x571   : > { %6541 = vmatpush.msrb.mxu0 %v18757_v45  ;;  %6564 = vmatpush.msrb.mxu1 %v18758_v39  ;;  %v6790_v39 = vmul.f32 128.0, %v20037_v43  ;;  %vm6794_vm10 = vweird.f32 %v20037_v43 }
 0x572   : > { %14959 = vmatmul.msk.f32.vlgmr.msrb.gmra.mxu0 %vm6284_vm2, %v6401_v17  ;;  %14960 = vmatmul.msk.f32.vlgmr.msrb.gmra.mxu1 %vm6284_vm2, %v6416_v46  ;;  %v6421_v58 = vadd.f32 %v18830_v52, %v6420_v53  ;;  %v18182_v17 = vld [vmem:[%s22957_s7 + $0x20] sm:$0xff]  ;;  %v15456_v53 = vor.u32 %v18307_v44, %v15455_v49 }
 0x573   : > { %6633 = vmatpush.msra.mxu0 %v18767_v55  ;;  %6656 = vmatpush.msra.mxu1 %v18768_v11  ;;  %v6520_v59 = vpop.f32.mrf.mxu3  ;;  %v6791_v45 = vsub.f32 1.0, %v6790_v39  ;;  %v18306_v46 = vld [vmem:[%s22959_s9 + $0x3bc] sm:$0xf0]  ;;  %v18299_v11 = vld [vmem:[%s22959_s9 + $0x38c] sm:$0xf] }
 0x574   : > { %v6497_v26 = vpop.f32.mrf.mxu0  ;;  %6662 = vst.msk [vmem:[#allocation3 + $0x8] sm:$0xff] %vm6083_vm1, %v6520_v59  ;;  %v18761_v62 = vpop.permute.xlu1 %18760  ;;  %v6425_v3 = vsel %vm6424_vm5, %v18830_v52, %v6421_v58  ;;  %v15457_v55 = vld [vmem:[%s22959_s9 + $0x3c8] sm:$0xf0]  ;;  %v15385_v58 = vld [vmem:[%s22959_s9 + $0x340] sm:$0xf0]  ;;  %v15384_v59 = vor.u32 %v18290_v51, %v15383_v54 }
 0x575   : > { %6661 = vst.msk [vmem:[#allocation3] sm:$0xff] %vm6083_vm1, %v6497_v26  ;;  %v18763_v0 = vunpack.i.h.bf16 %v18761_v62  ;;  %v18762_v1 = vunpack.i.l.bf16 %v18761_v62  ;;  %v6430_v2 = vsel %vm6427_vm6, %v6429_v61, %v6425_v3  ;;  %v15460_v56 = vor.u32 %v18299_v11, %v15457_v55  ;;  %7675 = vmatpush.bf16.msrb.mxu1 %v15456_v53  ;;  %v15391_v61 = vld [vmem:[%s22959_s9 + $0x308] sm:$0xf]  ;;  %v18283_v62 = vld [vmem:[%s22959_s9 + $0x30c] sm:$0xf] }
 0x576   : > { %v6431_v6 = vmul.f32 %v19887_v31, %v6430_v2  ;;  %v15388_v60 = vor.u32 %v18282_v57, %v15385_v58  ;;  %v18291_v26 = vld [vmem:[%s22959_s9 + $0x344] sm:$0xf0]  ;;  %v18274_v3 = vld [vmem:[%s22959_s9 + $0x2bc] sm:$0xf0]  ;;  %v18218_v55 = vld [vmem:[%s22959_s9 + $0x104] sm:$0xf] }
 0x577   : > { %6587 = vmatpush.msrb.mxu2 %v18762_v1  ;;  %6610 = vmatpush.msra.mxu3 %v18763_v0  ;;  %v15392_v63 = vor.u32 %v18291_v26, %v15391_v61  ;;  %v15393_v0 = vld [vmem:[%s22959_s9 + $0x348] sm:$0xf0]  ;;  %v15319_v1 = vld [vmem:[%s22959_s9 + $0x280] sm:$0xf]  ;;  %v18227_v51 = vld [vmem:[%s22959_s9 + $0x144] sm:$0xf0] }
 0x578   : > { %14962 = vmatmul.msk.f32.vlgmr.msra.gmra.mxu3 %vm6284_vm2, %v6446_v4  ;;  %14961 = vmatmul.msk.f32.vlgmr.msrb.gmra.mxu2 %vm6284_vm2, %v6431_v6  ;;  %v15396_v2 = vor.u32 %v18283_v62, %v15393_v0  ;;  %v18266_v4 = vld [vmem:[%s22959_s9 + $0x284] sm:$0xf]  ;;  %v18226_v11 = vld [vmem:[%s22959_s9 + $0x13c] sm:$0xf0] }
 0x579   : > { %6767 = vmatpush.bf16.msra.mxu2 %v18185_v15  ;;  %v15321_v6 = vld [vmem:[%s22959_s9 + $0x2c0] sm:$0xf0]  ;;  %7676 = vmatpush.bf16.msrb.mxu1 %v15392_v63  ;;  %v15255_v15 = vld [vmem:[%s22959_s9 + $0x200] sm:$0xf] }
 0x57a   : > { %14963 = vmatmul.msk.f32.vlgmr.msra.gmra.mxu0 %vm6284_vm2, %v6461_v7  ;;  %14964 = vmatmul.msk.f32.vlgmr.msra.gmra.mxu1 %vm6284_vm2, %v6476_v8  ;;  %v15327_v7 = vld [vmem:[%s22959_s9 + $0x288] sm:$0xf]  ;;  %v6792_v8 = vmul.f32 %v20037_v43, %v6791_v45  ;;  %v15063_v26 = vld [vmem:[%s22959_s9 + $0x80] sm:$0xf]  ;;  %v18202_v63 = vld [vmem:[%s22959_s9 + $0x84] sm:$0xf] }
 0x57b   : > { %v18210_v62 = vld [vmem:[%s22959_s9 + $0xbc] sm:$0xf0] }
 0x57c   : > { %v15064_v0 = vor.u32 %v18210_v62, %v15063_v26  ;;  %v18260_v26 = vld [vmem:[%s22959_s9 + $0x24c] sm:$0xf0]  ;;  %v18252_v62 = vld [vmem:[%s22959_s9 + $0x214] sm:$0xf] }
 0x57d   : > { %6768 = vmatpush.bf16.msra.mxu2 %v18184_v14  ;;  %v18258_v14 = vld [vmem:[%s22959_s9 + $0x23c] sm:$0xf0] }
 0x581   : > { %6769 = vmatpush.bf16.msra.mxu2 %v18183_v16  ;;  %v18250_v16 = vld [vmem:[%s22959_s9 + $0x204] sm:$0xf] }
 0x585   : > { %6770 = vmatpush.bf16.msra.mxu2 %v18182_v17 }
 0x589   : > { %6771 = vmatpush.bf16.msra.mxu2 %v18181_v18  ;;  %v15257_v18 = vld [vmem:[%s22959_s9 + $0x240] sm:$0xf0] }
 0x58d   : > { %6772 = vmatpush.bf16.msra.mxu2 %v18180_v19  ;;  %v15263_v19 = vld [vmem:[%s22959_s9 + $0x208] sm:$0xf] }
 0x591   : > { %6773 = vmatpush.bf16.msra.mxu2 %v18179_v20  ;;  %v18259_v20 = vld [vmem:[%s22959_s9 + $0x244] sm:$0xf0] }
 0x595   : > { %6774 = vmatpush.bf16.msra.mxu2 %v18178_v21  ;;  %v18251_v21 = vld [vmem:[%s22959_s9 + $0x20c] sm:$0xf] }
 0x599   : > { %7689 = vmatpush.bf16.msrb.mxu2 %v15460_v56  ;;  %v15135_v56 = vld [vmem:[%s22959_s9 + $0x108] sm:$0xf] }
 0x59a   : > { %v15136_v58 = vor.u32 %v18227_v51, %v15135_v56  ;;  %v18277_v56 = vld [vmem:[%s22959_s9 + $0x2d4] sm:$0xf0] }
 0x59d   : > { %7690 = vmatpush.bf16.msrb.mxu2 %v15396_v2  ;;  %v18211_v2 = vld [vmem:[%s22959_s9 + $0xc4] sm:$0xf0] }
 0x5ef   : > { %v6543_v9 = vpop.f32.mrf.mxu0  ;;  %v6566_v10 = vpop.f32.mrf.mxu1 }
 0x5f0   : > { %6667 = vrot.lane.b32.xlu1 %v6566_v10, %s22972_s0  ;;  %6665 = vrot.lane.b32.xlu0 %v6543_v9, %s22972_s0  ;;  %v15320_v9 = vor.u32 %v18274_v3, %v15319_v1  ;;  %v18275_v10 = vld [vmem:[%s22959_s9 + $0x2c4] sm:$0xf0]  ;;  %v15065_v1 = vld [vmem:[%s22959_s9 + $0xc0] sm:$0xf0]  ;;  %s22989_s0 = smov 32  }
 0x5f1   : > { %v15071_v3 = vld [vmem:[%s22959_s9 + $0x88] sm:$0xf] }
 0x5f7   : > { %v6635_v13 = vpop.f32.mrf.mxu0  ;;  %v6658_v5 = vpop.f32.mrf.mxu1 }
 0x5f8   : > { %6687 = vrot.lane.b32.xlu1 %v6635_v13, %s18928_s29  ;;  %v18267_v13 = vld [vmem:[%s22959_s9 + $0x28c] sm:$0xf] }
 0x5fb   : > { %v6612_v31 = vpop.f32.mrf.mxu3  ;;  %v6589_v12 = vpop.f32.mrf.mxu2 }
 0x5fc   : > { %6678 = vrot.lane.b32.xlu2 %v6612_v31, %s18927_s28  ;;  %6676 = vrot.lane.b32.xlu0 %v6589_v12, %s18927_s28  ;;  %v15329_v31 = vld [vmem:[%s22959_s9 + $0x2c8] sm:$0xf0]  ;;  %v15324_v12 = vor.u32 %v18266_v4, %v15321_v6  ;;  %v15068_v4 = vor.u32 %v18202_v63, %v15065_v1  ;;  %v15072_v6 = vor.u32 %v18211_v2, %v15071_v3  ;;  %v15279_v1 = vld [vmem:[%s22959_s9 + $0x218] sm:$0xf] }
 0x5fd   : > { %v15332_v17 = vor.u32 %v18267_v13, %v15329_v31  ;;  %v18194_v13 = vld [vmem:[%s22959_s9 + $0x3c] sm:$0xf0]  ;;  %v18186_v31 = vld [vmem:[%s22959_s9 + $0x4] sm:$0xf]  ;;  %v18261_v3 = vld [vmem:[%s22959_s9 + $0x254] sm:$0xf0] }
 0x5ff   : > { %7691 = vmatpush.bf16.msrb.mxu2 %v15332_v17 }
 0x604   : > { %6689 = vrot.lane.b32.xlu0 %v6658_v5, %s18928_s29  ;;  %v15328_v5 = vor.u32 %v18275_v10, %v15327_v7  ;;  %v18203_v7 = vld [vmem:[%s22959_s9 + $0x8c] sm:$0xf]  ;;  %v14999_v10 = vld [vmem:[%s22959_s9] sm:$0xf] }
 0x606   : > { %7677 = vmatpush.bf16.msrb.mxu1 %v15328_v5  ;;  %v15001_v5 = vld [vmem:[%s22959_s9 + $0x40] sm:$0xf0] }
 0x656   : > { %v6679_v28 = vpop.permute.xlu2 %6678 }
 0x662   : > { %v6668_v24 = vpop.permute.xlu1 %6667  ;;  %v6666_v27 = vpop.permute.xlu0 %6665 }
 0x663   : > { %6673 = vst.msk [vmem:[#allocation3 + $0x8] sm:$0xff] %vm6671_vm7, %v6668_v24  ;;  %v15265_v24 = vld [vmem:[%s22959_s9 + $0x248] sm:$0xf0] }
 0x664   : > { %6672 = vst.msk [vmem:[#allocation3] sm:$0xff] %vm6671_vm7, %v6666_v27  ;;  %v6793_v27 = vadd.f32 %v20037_v43, %v6792_v8  ;;  %v15073_v8 = vld [vmem:[%s22959_s9 + $0xc8] sm:$0xf0] }
 0x665   : > { %6684 = vst.msk [vmem:[#allocation3 + $0x8] sm:$0xff] %vm6682_vm8, %v6679_v28  ;;  %v15256_v28 = vor.u32 %v18258_v14, %v15255_v15  ;;  %v15007_v15 = vld [vmem:[%s22959_s9 + $0x8] sm:$0xf] }
 0x666   : > { %v20164_v42 = vsel %vm6794_vm10, %v20037_v43, %v6793_v27  ;;  %v18195_v14 = vld [vmem:[%s22959_s9 + $0x44] sm:$0xf0]  ;;  %v18300_v27 = vld [vmem:[%s22959_s9 + $0x394] sm:$0xf] }
 0x667   : > { %v15008_v17 = vor.u32 %v18195_v14, %v15007_v15  ;;  %v18245_v15 = vld [vmem:[%s22959_s9 + $0x1d4] sm:$0xf0] }
 0x66a   : > { %v6688_v29 = vpop.permute.xlu1 %6687 }
 0x66e   : > { %v6677_v52 = vpop.permute.xlu0 %6676 }
 0x66f   : > { %6683 = vst.msk [vmem:[#allocation3] sm:$0xff] %vm6682_vm8, %v6677_v52  ;;  %v15260_v52 = vor.u32 %v18250_v16, %v15257_v18  ;;  %v15004_v16 = vor.u32 %v18186_v31, %v15001_v5  ;;  %v18187_v18 = vld [vmem:[%s22959_s9 + $0xc] sm:$0xf]  ;;  %v15215_v5 = vld [vmem:[%s22959_s9 + $0x198] sm:$0xf] }
 0x670   : > { %6694 = vst.msk [vmem:[#allocation3] sm:$0xff] %vm6693_vm9, %v6688_v29  ;;  %v15264_v29 = vor.u32 %v18259_v20, %v15263_v19  ;;  %v15009_v19 = vld [vmem:[%s22959_s9 + $0x48] sm:$0xf0]  ;;  %v15463_v20 = vld [vmem:[%s22959_s9 + $0x390] sm:$0xf] }
 0x672   : > { %7678 = vmatpush.bf16.msrb.mxu1 %v15264_v29 }
 0x676   : > { %v6690_v30 = vpop.permute.xlu0 %6689 }
 0x677   : > { %6695 = vst.msk [vmem:[#allocation3 + $0x8] sm:$0xff] %vm6693_vm9, %v6690_v30  ;;  %v6696_v25 = vld [vmem:[#allocation3] sm:$0xff]  ;;  %v15191_v30 = vld [vmem:[%s22959_s9 + $0x180] sm:$0xf] }
 0x67e   : > { %v6697_v32 = vld [vmem:[#allocation3 + $0x8] sm:$0xff] }
 0x67f   : > { %v6698_v33 = vpack.c.bf16 %v6697_v32, %v6696_v25  ;;  %v18242_v25 = vld [vmem:[%s22959_s9 + $0x1bc] sm:$0xf0]  ;;  %v18234_v32 = vld [vmem:[%s22959_s9 + $0x184] sm:$0xf] }
 0x680   : > { %v15192_v39 = vor.u32 %v18242_v25, %v15191_v30  ;;  %v15471_v30 = vld [vmem:[%s22959_s9 + $0x398] sm:$0xf] }
 0x681   : > { %6775 = vmatmul.bf16.vlgmr.msra.gmra.mxu2 %v6698_v33  ;;  %v15268_v33 = vor.u32 %v18251_v21, %v15265_v24  ;;  %v15012_v21 = vor.u32 %v18187_v18, %v15009_v19  ;;  %v18308_v24 = vld [vmem:[%s22959_s9 + $0x3cc] sm:$0xf0]  ;;  %v18309_v25 = vld [vmem:[%s22959_s9 + $0x3d4] sm:$0xf0]  ;;  %v15217_v18 = vld [vmem:[%s22959_s9 + $0x1d8] sm:$0xf0] }
 0x683   : > { %7692 = vmatpush.bf16.msrb.mxu2 %v15268_v33  ;;  %v15472_v33 = vor.u32 %v18309_v25, %v15471_v30 }
 0x704   : > { %v6776_v35 = vpop.f32.mrf.mxu2 }
 0x705   : > { %v6777_v36 = vadd.f32 %v18786_v34, %v6776_v35  ;;  %v15199_v35 = vld [vmem:[%s22959_s9 + $0x188] sm:$0xf] }
 0x707   : > { %v20030_v37 = vadd.f32 %v6777_v36, %v19742_v22  ;;  %v15447_v22 = vld [vmem:[%s22959_s9 + $0x380] sm:$0xf]  ;;  %v18243_v36 = vld [vmem:[%s22959_s9 + $0x1c4] sm:$0xf0] }
 0x708   : > { %v15448_v47 = vor.u32 %v18306_v46, %v15447_v22  ;;  %v15200_v22 = vor.u32 %v18243_v36, %v15199_v35  ;;  %v15399_v35 = vld [vmem:[%s22959_s9 + $0x310] sm:$0xf] }
 0x709   : > { %6785 = vadd.xlane.f32.xlu2 %v20030_v37  ;;  %v18292_v36 = vld [vmem:[%s22959_s9 + $0x34c] sm:$0xf0] }
 0x70a   : > { %7647 = vmatpush.bf16.msrb.mxu3 %v15448_v47  ;;  %7679 = vmatpush.bf16.msrb.mxu1 %v15200_v22  ;;  %v15407_v22 = vld [vmem:[%s22959_s9 + $0x318] sm:$0xf] }
 0x70c   : > { %v6778_v38 = vpop.f32.mrf.mxu2 }
 0x70d   : > { %v6779_v40 = vadd.f32 %v18786_v34, %v6778_v38  ;;  %v15193_v34 = vld [vmem:[%s22959_s9 + $0x1c0] sm:$0xf0]  ;;  %v18235_v38 = vld [vmem:[%s22959_s9 + $0x18c] sm:$0xf] }
 0x70e   : > { %7648 = vmatpush.bf16.msrb.mxu3 %v15384_v59  ;;  %v15196_v45 = vor.u32 %v18234_v32, %v15193_v34  ;;  %v18219_v59 = vld [vmem:[%s22959_s9 + $0x10c] sm:$0xf]  ;;  %7680 = vmatpush.bf16.msrb.mxu1 %v15136_v58  ;;  %v18301_v32 = vld [vmem:[%s22959_s9 + $0x39c] sm:$0xf] }
 0x70f   : > { %v20034_v41 = vadd.f32 %v6779_v40, %v19744_v23  ;;  %v18298_v23 = vld [vmem:[%s22959_s9 + $0x384] sm:$0xf]  ;;  %v15201_v40 = vld [vmem:[%s22959_s9 + $0x1c8] sm:$0xf0]  ;;  %v15473_v34 = vld [vmem:[%s22959_s9 + $0x3d8] sm:$0xf0] }
 0x710   : > { %v15452_v50 = vor.u32 %v18298_v23, %v15449_v48  ;;  %v15204_v23 = vor.u32 %v18235_v38, %v15201_v40  ;;  %v15476_v38 = vor.u32 %v18301_v32, %v15473_v34  ;;  %v15400_v40 = vor.u32 %v18292_v36, %v15399_v35  ;;  %v18269_v58 = vld [vmem:[%s22959_s9 + $0x29c] sm:$0xf] }
 0x711   : > { %6787 = vadd.xlane.f32.xlu1 %v20034_v41  ;;  %v15153_v34 = vld [vmem:[%s22959_s9 + $0x158] sm:$0xf0] }
 0x712   : > { %7661 = vmatpush.bf16.msrb.mxu0 %v15452_v50  ;;  %7649 = vmatpush.bf16.msrb.mxu3 %v15320_v9  ;;  %v15076_v9 = vor.u32 %v18203_v7, %v15073_v8  ;;  %v15281_v7 = vld [vmem:[%s22959_s9 + $0x258] sm:$0xf0] }
 0x713   : > { %7693 = vmatpush.bf16.msrb.mxu2 %v15204_v23  ;;  %7681 = vmatpush.bf16.msrb.mxu1 %v15072_v6  ;;  %v18293_v23 = vld [vmem:[%s22959_s9 + $0x354] sm:$0xf0]  ;;  %v18253_v6 = vld [vmem:[%s22959_s9 + $0x21c] sm:$0xf] }
 0x714   : > { %v15284_v8 = vor.u32 %v18253_v6, %v15281_v7 }
 0x716   : > { %7662 = vmatpush.bf16.msrb.mxu0 %v15388_v60  ;;  %7650 = vmatpush.bf16.msrb.mxu3 %v15256_v28  ;;  %v15137_v60 = vld [vmem:[%s22959_s9 + $0x148] sm:$0xf0]  ;;  %v15465_v28 = vld [vmem:[%s22959_s9 + $0x3d0] sm:$0xf0] }
 0x717   : > { %v15140_v61 = vor.u32 %v18219_v59, %v15137_v60  ;;  %7682 = vmatpush.bf16.msrb.mxu1 %v15008_v17  ;;  %v15468_v29 = vor.u32 %v18300_v27, %v15465_v28  ;;  %v15345_v59 = vld [vmem:[%s22959_s9 + $0x2d8] sm:$0xf0]  ;;  %v15145_v28 = vld [vmem:[%s22959_s9 + $0x150] sm:$0xf0] }
 0x718   : > { %v15348_v60 = vor.u32 %v18269_v58, %v15345_v59  ;;  %v18237_v17 = vld [vmem:[%s22959_s9 + $0x19c] sm:$0xf] }
 0x719   : > { %7694 = vmatpush.bf16.msrb.mxu2 %v15140_v61  ;;  %v15271_v61 = vld [vmem:[%s22959_s9 + $0x210] sm:$0xf]  ;;  %v15220_v19 = vor.u32 %v18237_v17, %v15217_v18  ;;  %v18189_v59 = vld [vmem:[%s22959_s9 + $0x1c] sm:$0xf]  ;;  %v18788_v17 = vld [vmem:[%s22964_s14] ss:$0 sm:$0xff] }
 0x71a   : > { %7663 = vmatpush.bf16.msrb.mxu0 %v15324_v12  ;;  %7651 = vmatpush.bf16.msrb.mxu3 %v15192_v39  ;;  %v15000_v12 = vor.u32 %v18194_v13, %v14999_v10  ;;  %v18284_v39 = vld [vmem:[%s22959_s9 + $0x314] sm:$0xf]  ;;  %v15272_v63 = vor.u32 %v18260_v26, %v15271_v61  ;;  %v18244_v10 = vld [vmem:[%s22959_s9 + $0x1cc] sm:$0xf0] }
 0x71b   : > { %7731 = vmatpush.bf16.msra.mxu1 %v15472_v33  ;;  %v18236_v13 = vld [vmem:[%s22959_s9 + $0x194] sm:$0xf]  ;;  %v18221_v33 = vld [vmem:[%s22959_s9 + $0x11c] sm:$0xf] }
 0x71c   : > { %v15156_v36 = vor.u32 %v18221_v33, %v15153_v34 }
 0x71d   : > { %7695 = vmatpush.bf16.msrb.mxu2 %v15076_v9  ;;  %v15207_v9 = vld [vmem:[%s22959_s9 + $0x190] sm:$0xf] }
 0x71e   : > { %7664 = vmatpush.bf16.msrb.mxu0 %v15260_v52  ;;  %v15464_v52 = vor.u32 %v18308_v24, %v15463_v20  ;;  %v15208_v31 = vor.u32 %v18244_v10, %v15207_v9  ;;  %v15143_v20 = vld [vmem:[%s22959_s9 + $0x110] sm:$0xf]  ;;  %v18220_v24 = vld [vmem:[%s22959_s9 + $0x114] sm:$0xf] }
 0x71f   : > { %v15148_v25 = vor.u32 %v18220_v24, %v15145_v28  ;;  %v18302_v24 = vld [vmem:[%s22959_s9 + $0x3a4] sm:$0xf] }
 0x721   : > { %7696 = vmatpush.bf16.msrb.mxu2 %v15012_v21  ;;  %v18228_v21 = vld [vmem:[%s22959_s9 + $0x14c] sm:$0xf0] }
 0x722   : > { %7665 = vmatpush.bf16.msrb.mxu0 %v15196_v45  ;;  %v15401_v45 = vld [vmem:[%s22959_s9 + $0x350] sm:$0xf0]  ;;  %v15144_v27 = vor.u32 %v18228_v21, %v15143_v20  ;;  %v15479_v21 = vld [vmem:[%s22959_s9 + $0x3a0] sm:$0xf] }
 0x725   : > { %7745 = vmatpush.bf16.msra.mxu2 %v15476_v38  ;;  %v15079_v38 = vld [vmem:[%s22959_s9 + $0x90] sm:$0xf] }
 0x77c   : > { %v6786_v46 = vpop.xlane.xlu2 %6785 }
 0x77d   : > { %v6796_v47 = vmul.f32 %v20164_v42, %v6786_v46  ;;  %v15404_v46 = vor.u32 %v18284_v39, %v15401_v45  ;;  %v18204_v39 = vld [vmem:[%s22959_s9 + $0x94] sm:$0xf] }
 0x77f   : > { %v20168_v48 = vsub.f32 %v20030_v37, %v6796_v47  ;;  %v15127_v37 = vld [vmem:[%s22959_s9 + $0x100] sm:$0xf]  ;;  %v18285_v47 = vld [vmem:[%s22959_s9 + $0x31c] sm:$0xf] }
 0x780   : > { %v15128_v54 = vor.u32 %v18226_v11, %v15127_v37  ;;  %v18276_v37 = vld [vmem:[%s22959_s9 + $0x2cc] sm:$0xf0]  ;;  %v18268_v11 = vld [vmem:[%s22959_s9 + $0x294] sm:$0xf] }
 0x781   : > { %v6800_v43 = vmul.f32 %v20168_v48, %v20168_v48 }
 0x782   : > { %7652 = vmatpush.bf16.msrb.mxu3 %v15128_v54  ;;  %v15337_v54 = vld [vmem:[%s22959_s9 + $0x2d0] sm:$0xf0] }
 0x783   : > { %6802 = vadd.xlane.f32.xlu0 %v6800_v43  ;;  %v15409_v43 = vld [vmem:[%s22959_s9 + $0x358] sm:$0xf0]  ;;  %v15340_v51 = vor.u32 %v18268_v11, %v15337_v54  ;;  %v15015_v11 = vld [vmem:[%s22959_s9 + $0x10] sm:$0xf]  ;;  %v18188_v54 = vld [vmem:[%s22959_s9 + $0x14] sm:$0xf] }
 0x784   : > { %v6788_v49 = vpop.xlane.xlu1 %6787 }
 0x785   : > { %v6797_v44 = vmul.f32 %v20164_v42, %v6788_v49  ;;  %v15408_v49 = vor.u32 %v18293_v23, %v15407_v22  ;;  %v15087_v23 = vld [vmem:[%s22959_s9 + $0x98] sm:$0xf] }
 0x786   : > { %7653 = vmatpush.bf16.msrb.mxu3 %v15064_v0  ;;  %v15273_v0 = vld [vmem:[%s22959_s9 + $0x250] sm:$0xf0] }
 0x787   : > { %v20174_v50 = vsub.f32 %v20034_v41, %v6797_v44  ;;  %v15129_v41 = vld [vmem:[%s22959_s9 + $0x140] sm:$0xf0]  ;;  %v15412_v44 = vor.u32 %v18285_v47, %v15409_v43  ;;  %7732 = vmatpush.bf16.msra.mxu1 %v15408_v49  ;;  %v15276_v2 = vor.u32 %v18252_v62, %v15273_v0  ;;  %v18213_v43 = vld [vmem:[%s22959_s9 + $0xd4] sm:$0xf0]  ;;  %v18205_v49 = vld [vmem:[%s22959_s9 + $0x9c] sm:$0xf] }
 0x788   : > { %v15132_v57 = vor.u32 %v18218_v55, %v15129_v41  ;;  %v15343_v41 = vld [vmem:[%s22959_s9 + $0x298] sm:$0xf] }
 0x789   : > { %v6801_v53 = vmul.f32 %v20174_v50, %v20174_v50  ;;  %7746 = vmatpush.bf16.msra.mxu2 %v15412_v44  ;;  %v15089_v44 = vld [vmem:[%s22959_s9 + $0xd8] sm:$0xf0] }
 0x78a   : > { %7666 = vmatpush.bf16.msrb.mxu0 %v15132_v57  ;;  %7654 = vmatpush.bf16.msrb.mxu3 %v15000_v12  ;;  %v15344_v57 = vor.u32 %v18277_v56, %v15343_v41  ;;  %v15209_v12 = vld [vmem:[%s22959_s9 + $0x1d0] sm:$0xf0]  ;;  %v15023_v56 = vld [vmem:[%s22959_s9 + $0x18] sm:$0xf] }
 0x78b   : > { %6804 = vadd.xlane.f32.xlu2 %v6801_v53  ;;  %v15335_v53 = vld [vmem:[%s22959_s9 + $0x290] sm:$0xf]  ;;  %v15212_v14 = vor.u32 %v18236_v13, %v15209_v12  ;;  %v15017_v41 = vld [vmem:[%s22959_s9 + $0x50] sm:$0xf0] }
 0x78c   : > { %v15336_v55 = vor.u32 %v18276_v37, %v15335_v53  ;;  %7733 = vmatpush.bf16.msra.mxu1 %v15344_v57  ;;  %v15088_v53 = vor.u32 %v18213_v43, %v15087_v23  ;;  %v15092_v37 = vor.u32 %v18205_v49, %v15089_v44  ;;  %v15020_v58 = vor.u32 %v18188_v54, %v15017_v41  ;;  %v18287_v23 = vld [vmem:[%s22959_s9 + $0x32c] sm:$0xf]  ;;  %v15351_v44 = vld [vmem:[%s22959_s9 + $0x2a0] sm:$0xf]  ;;  %v15353_v54 = vld [vmem:[%s22959_s9 + $0x2e0] sm:$0xf0] }
 0x78d   : > { %7747 = vmatpush.bf16.msra.mxu2 %v15348_v60  ;;  %v15025_v60 = vld [vmem:[%s22959_s9 + $0x58] sm:$0xf0]  ;;  %v15359_v41 = vld [vmem:[%s22959_s9 + $0x2a8] sm:$0xf] }
 0x78e   : > { %7667 = vmatpush.bf16.msrb.mxu0 %v15068_v4  ;;  %7703 = vmatpush.bf16.msra.mxu3 %v15464_v52  ;;  %v15280_v4 = vor.u32 %v18261_v3, %v15279_v1  ;;  %v15151_v52 = vld [vmem:[%s22959_s9 + $0x118] sm:$0xf] }
 0x790   : > { %7734 = vmatpush.bf16.msra.mxu1 %v15280_v4 }
 0x791   : > { %7748 = vmatpush.bf16.msra.mxu2 %v15284_v8 }
 0x792   : > { %7668 = vmatpush.bf16.msrb.mxu0 %v15004_v16  ;;  %7704 = vmatpush.bf16.msra.mxu3 %v15400_v40  ;;  %v15216_v16 = vor.u32 %v18245_v15, %v15215_v5  ;;  %v18212_v40 = vld [vmem:[%s22959_s9 + $0xcc] sm:$0xf0]  ;;  %v18787_v5 = vld [vmem:[%s22963_s13] ss:$0 sm:$0xff] }
 0x793   : > { %v15080_v22 = vor.u32 %v18212_v40, %v15079_v38 }
 0x794   : > { %7735 = vmatpush.bf16.msra.mxu1 %v15216_v16 }
 0x795   : > { %7749 = vmatpush.bf16.msra.mxu2 %v15220_v19 }
 0x796   : > { %7717 = vmatpush.bf16.msra.mxu0 %v15468_v29  ;;  %7705 = vmatpush.bf16.msra.mxu3 %v15336_v55  ;;  %v18229_v29 = vld [vmem:[%s22959_s9 + $0x154] sm:$0xf0]  ;;  %v18196_v55 = vld [vmem:[%s22959_s9 + $0x4c] sm:$0xf0] }
 0x797   : > { %v15152_v32 = vor.u32 %v18229_v29, %v15151_v52  ;;  %v15016_v57 = vor.u32 %v18196_v55, %v15015_v11  ;;  %v18311_v29 = vld [vmem:[%s22959_s9 + $0x3e4] sm:$0xf0]  ;;  %v18270_v55 = vld [vmem:[%s22959_s9 + $0x2a4] sm:$0xf] }
 0x799   : > { %7736 = vmatpush.bf16.msra.mxu1 %v15152_v32  ;;  %7750 = vmatpush.bf16.msra.mxu2 %v15156_v36  ;;  %v18294_v36 = vld [vmem:[%s22959_s9 + $0x35c] sm:$0xf0] }
 0x79a   : > { %7718 = vmatpush.bf16.msra.mxu0 %v15404_v46  ;;  %7706 = vmatpush.bf16.msra.mxu3 %v15272_v63  ;;  %v15081_v46 = vld [vmem:[%s22959_s9 + $0xd0] sm:$0xf0]  ;;  %v15028_v63 = vor.u32 %v18189_v59, %v15025_v60  ;;  %v15356_v59 = vor.u32 %v18270_v55, %v15353_v54  ;;  %v15287_v60 = vld [vmem:[%s22959_s9 + $0x220] sm:$0xf] }
 0x79b   : > { %v15084_v47 = vor.u32 %v18204_v39, %v15081_v46  ;;  %v18286_v39 = vld [vmem:[%s22959_s9 + $0x324] sm:$0xf]  ;;  %v18295_v46 = vld [vmem:[%s22959_s9 + $0x364] sm:$0xf0] }
 0x79d   : > { %7737 = vmatpush.bf16.msra.mxu1 %v15088_v53  ;;  %7751 = vmatpush.bf16.msra.mxu2 %v15092_v37  ;;  %v18278_v53 = vld [vmem:[%s22959_s9 + $0x2dc] sm:$0xf0] }
 0x79e   : > { %7719 = vmatpush.bf16.msra.mxu0 %v15340_v51  ;;  %7707 = vmatpush.bf16.msra.mxu3 %v15208_v31  ;;  %v18197_v51 = vld [vmem:[%s22959_s9 + $0x54] sm:$0xf0] }
 0x79f   : > { %v15024_v26 = vor.u32 %v18197_v51, %v15023_v56  ;;  %v18279_v56 = vld [vmem:[%s22959_s9 + $0x2e4] sm:$0xf0]  ;;  %v18271_v51 = vld [vmem:[%s22959_s9 + $0x2ac] sm:$0xf] }
 0x7a1   : > { %7738 = vmatpush.bf16.msra.mxu1 %v15024_v26  ;;  %7752 = vmatpush.bf16.msra.mxu2 %v15028_v63  ;;  %v15360_v26 = vor.u32 %v18279_v56, %v15359_v41  ;;  %v18254_v63 = vld [vmem:[%s22959_s9 + $0x224] sm:$0xf]  ;;  %v15039_v41 = vld [vmem:[%s22959_s9 + $0x28] sm:$0xf] }
 0x7a2   : > { %7720 = vmatpush.bf16.msra.mxu0 %v15276_v2  ;;  %7708 = vmatpush.bf16.msra.mxu3 %v15144_v27  ;;  %v15481_v27 = vld [vmem:[%s22959_s9 + $0x3e0] sm:$0xf0]  ;;  %v18199_v56 = vld [vmem:[%s22959_s9 + $0x64] sm:$0xf0] }
 0x7a3   : > { %v15484_v34 = vor.u32 %v18302_v24, %v15481_v27  ;;  %v18222_v24 = vld [vmem:[%s22959_s9 + $0x124] sm:$0xf] }
 0x7a4   : > { %v15161_v27 = vld [vmem:[%s22959_s9 + $0x160] sm:$0xf0] }
 0x7a6   : > { %7721 = vmatpush.bf16.msra.mxu0 %v15212_v14  ;;  %7709 = vmatpush.bf16.msra.mxu3 %v15080_v22  ;;  %v15423_v22 = vld [vmem:[%s22959_s9 + $0x328] sm:$0xf] }
 0x7a7   : > { %v15424_v37 = vor.u32 %v18295_v46, %v15423_v22  ;;  %v15103_v22 = vld [vmem:[%s22959_s9 + $0xa8] sm:$0xf] }
 0x7a8   : > { %v18215_v46 = vld [vmem:[%s22959_s9 + $0xe4] sm:$0xf0] }
 0x7a9   : > { %v15104_v55 = vor.u32 %v18215_v46, %v15103_v22  ;;  %v15311_v22 = vld [vmem:[%s22959_s9 + $0x238] sm:$0xf] }
 0x7aa   : > { %7722 = vmatpush.bf16.msra.mxu0 %v15148_v25  ;;  %7710 = vmatpush.bf16.msra.mxu3 %v15016_v57  ;;  %v15489_v25 = vld [vmem:[%s22959_s9 + $0x3e8] sm:$0xf0]  ;;  %v18265_v46 = vld [vmem:[%s22959_s9 + $0x274] sm:$0xf0] }
 0x7ab   : > { %v15361_v57 = vld [vmem:[%s22959_s9 + $0x2e8] sm:$0xf0] }
 0x7ae   : > { %7723 = vmatpush.bf16.msra.mxu0 %v15084_v47  ;;  %v15425_v47 = vld [vmem:[%s22959_s9 + $0x368] sm:$0xf0] }
 0x7af   : > { %v15428_v11 = vor.u32 %v18287_v23, %v15425_v47  ;;  %v18207_v23 = vld [vmem:[%s22959_s9 + $0xac] sm:$0xf] }
 0x7b0   : > { %v15105_v47 = vld [vmem:[%s22959_s9 + $0xe8] sm:$0xf0] }
 0x7b1   : > { %v15108_v54 = vor.u32 %v18207_v23, %v15105_v47  ;;  %v18257_v23 = vld [vmem:[%s22959_s9 + $0x23c] sm:$0xf] }
 0x7b2   : > { %7724 = vmatpush.bf16.msra.mxu0 %v15020_v58  ;;  %v15352_v58 = vor.u32 %v18278_v53, %v15351_v44  ;;  %v18198_v53 = vld [vmem:[%s22959_s9 + $0x5c] sm:$0xf0]  ;;  %v15313_v47 = vld [vmem:[%s22959_s9 + $0x278] sm:$0xf0] }
 0x7f6   : > { %v6803_v30 = vpop.xlane.xlu0 %6802 }
 0x7f7   : > { %v6806_v35 = vmul.f32 %v6803_v30, %v20164_v42  ;;  %v18303_v30 = vld [vmem:[%s22959_s9 + $0x3ac] sm:$0xf] }
 0x7f8   : > { %v15492_v40 = vor.u32 %v18303_v30, %v15489_v25  ;;  %v18223_v30 = vld [vmem:[%s22959_s9 + $0x12c] sm:$0xf] }
 0x7f9   : > { %v6808_v45 = vadd.f32 1e-05, %v6806_v35  ;;  %v15415_v35 = vld [vmem:[%s22959_s9 + $0x320] sm:$0xf]  ;;  %v15169_v25 = vld [vmem:[%s22959_s9 + $0x168] sm:$0xf0] }
 0x7fa   : > { %v15416_v43 = vor.u32 %v18294_v36, %v15415_v35  ;;  %v15095_v35 = vld [vmem:[%s22959_s9 + $0xa0] sm:$0xf] }
 0x7fb   : > { %18833 = vrsqrt.f32 %v6808_v45  ;;  %vm6816_vm12 = vweird.f32 %v6808_v45  ;;  %v18214_v36 = vld [vmem:[%s22959_s9 + $0xdc] sm:$0xf0] }
 0x7fe   : > { %v6805_v61 = vpop.xlane.xlu2 %6804 }
 0x7ff   : > { %v6807_v62 = vmul.f32 %v6805_v61, %v20164_v42  ;;  %v18262_v61 = vld [vmem:[%s22959_s9 + $0x25c] sm:$0xf0] }
 0x801   : > { %v18834_v0 = vpop.eup %18833  ;;  %v6809_v1 = vadd.f32 1e-05, %v6807_v62  ;;  %v15364_v62 = vor.u32 %v18271_v51, %v15361_v57  ;;  %v18191_v51 = vld [vmem:[%s22959_s9 + $0x2c] sm:$0xf] }
 0x802   : > { %v6811_v3 = vmul.f32 %v18834_v0, %v6808_v45  ;;  %vm6817_vm11 = vweird.f32 %v18834_v0  ;;  %v15417_v45 = vld [vmem:[%s22959_s9 + $0x360] sm:$0xf0]  ;;  %v15041_v57 = vld [vmem:[%s22959_s9 + $0x68] sm:$0xf0] }
 0x803   : > { %18835 = vrsqrt.f32 %v6809_v1  ;;  %vm6818_vm13 = vmor %vm6816_vm12, %vm6817_vm11  ;;  %vm6826_vm15 = vweird.f32 %v6809_v1  ;;  %v15420_v49 = vor.u32 %v18286_v39, %v15417_v45  ;;  %v18206_v39 = vld [vmem:[%s22959_s9 + $0xa4] sm:$0xf] }
 0x804   : > { %v6812_v2 = vmul.f32 %v18834_v0, %v6811_v3  ;;  %v18263_v3 = vld [vmem:[%s22959_s9 + $0x264] sm:$0xf0]  ;;  %v15097_v45 = vld [vmem:[%s22959_s9 + $0xe0] sm:$0xf0] }
 0x805   : > { %v15100_v44 = vor.u32 %v18206_v39, %v15097_v45  ;;  %v18256_v39 = vld [vmem:[%s22959_s9 + $0x234] sm:$0xf] }
 0x806   : > { %v6813_v4 = vmul.f32 0.5, %v6812_v2  ;;  %v18255_v2 = vld [vmem:[%s22959_s9 + $0x22c] sm:$0xf]  ;;  %v15305_v45 = vld [vmem:[%s22959_s9 + $0x270] sm:$0xf0] }
 0x808   : > { %v6814_v6 = vsub.f32 1.5, %v6813_v4  ;;  %v15297_v4 = vld [vmem:[%s22959_s9 + $0x268] sm:$0xf0] }
 0x809   : > { %v18836_v7 = vpop.eup %18835 }
 0x80a   : > { %v6815_v8 = vmul.f32 %v18834_v0, %v6814_v6  ;;  %v6821_v9 = vmul.f32 %v18836_v7, %v6809_v1  ;;  %vm6827_vm14 = vweird.f32 %v18836_v7  ;;  %v15295_v1 = vld [vmem:[%s22959_s9 + $0x228] sm:$0xf]  ;;  %v15288_v6 = vor.u32 %v18262_v61, %v15287_v60  ;;  %v18304_v60 = vld [vmem:[%s22959_s9 + $0x3b4] sm:$0xf] }
 0x80b   : > { %vm6828_vm0 = vmor %vm6826_vm15, %vm6827_vm14  ;;  %v15497_v61 = vld [vmem:[%s22959_s9 + $0x3f0] sm:$0xf0] }
 0x80c   : > { %v6822_v10 = vmul.f32 %v18836_v7, %v6821_v9  ;;  %v6819_v13 = vsel %vm6818_vm13, %v18834_v0, %v6815_v8  ;;  %v15289_v0 = vld [vmem:[%s22959_s9 + $0x260] sm:$0xf0]  ;;  %v15223_v8 = vld [vmem:[%s22959_s9 + $0x1a0] sm:$0xf] }
 0x80d   : > { %v6830_v15 = vmul.f32 %v6819_v13, %v20168_v48  ;;  %v18310_v48 = vld [vmem:[%s22959_s9 + $0x3dc] sm:$0xf0]  ;;  %v15300_v13 = vor.u32 %v18255_v2, %v15297_v4  ;;  %v15040_v2 = vor.u32 %v18199_v56, %v15039_v41  ;;  %v15044_v4 = vor.u32 %v18191_v51, %v15041_v57  ;;  %v15247_v41 = vld [vmem:[%s22959_s9 + $0x1b8] sm:$0xf]  ;;  %v18241_v51 = vld [vmem:[%s22959_s9 + $0x1bc] sm:$0xf] }
 0x80e   : > { %v6823_v31 = vmul.f32 0.5, %v6822_v10  ;;  %v15480_v33 = vor.u32 %v18310_v48, %v15479_v21  ;;  %v18246_v9 = vld [vmem:[%s22959_s9 + $0x1dc] sm:$0xf0]  ;;  %v15296_v10 = vor.u32 %v18263_v3, %v15295_v1  ;;  %v18305_v1 = vld [vmem:[%s22959_s9 + $0x3bc] sm:$0xf] }
 0x80f   : > { %v6835_v18 = vmul.f32 %v18787_v5, %v6830_v15  ;;  %v18247_v15 = vld [vmem:[%s22959_s9 + $0x1e4] sm:$0xf0]  ;;  %v15505_v3 = vld [vmem:[%s22959_s9 + $0x3f8] sm:$0xf0]  ;;  %v18249_v56 = vld [vmem:[%s22959_s9 + $0x1f4] sm:$0xf0] }
 0x810   : > { %v6824_v12 = vsub.f32 1.5, %v6823_v31  ;;  %v18238_v31 = vld [vmem:[%s22959_s9 + $0x1a4] sm:$0xf]  ;;  %v15249_v57 = vld [vmem:[%s22959_s9 + $0x1f8] sm:$0xf0] }
 0x811   : > { %v20467_v28 = vadd.f32 %v18788_v17, %v6835_v18 }
 0x812   : > { %v6825_v14 = vmul.f32 %v18836_v7, %v6824_v12  ;;  %v15225_v12 = vld [vmem:[%s22959_s9 + $0x1e0] sm:$0xf0] }
 0x813   : > { %v15228_v18 = vor.u32 %v18238_v31, %v15225_v12  ;;  %v18288_v31 = vld [vmem:[%s22959_s9 + $0x334] sm:$0xf] }
 0x814   : > { %v6829_v16 = vsel %vm6828_vm0, %v18836_v7, %v6825_v14  ;;  %v15292_v7 = vor.u32 %v18254_v63, %v15289_v0  ;;  %v18239_v14 = vld [vmem:[%s22959_s9 + $0x1ac] sm:$0xf]  ;;  %v18313_v0 = vld [vmem:[%s22959_s9 + $0x3f4] sm:$0xf0]  ;;  %v15433_v12 = vld [vmem:[%s22959_s9 + $0x370] sm:$0xf0] }
 0x815   : > { %v6831_v19 = vmul.f32 %v6829_v16, %v20174_v50  ;;  %v15487_v50 = vld [vmem:[%s22959_s9 + $0x3a8] sm:$0xf]  ;;  %v15233_v16 = vld [vmem:[%s22959_s9 + $0x1e8] sm:$0xf0] }
 0x816   : > { %v15488_v38 = vor.u32 %v18311_v29, %v15487_v50  ;;  %v15236_v48 = vor.u32 %v18239_v14, %v15233_v16  ;;  %v15167_v50 = vld [vmem:[%s22959_s9 + $0x128] sm:$0xf]  ;;  %v18289_v14 = vld [vmem:[%s22959_s9 + $0x33c] sm:$0xf] }
 0x817   : > { %v6836_v20 = vmul.f32 %v18787_v5, %v6831_v19  ;;  %v15231_v5 = vld [vmem:[%s22959_s9 + $0x1a8] sm:$0xf]  ;;  %v15159_v19 = vld [vmem:[%s22959_s9 + $0x120] sm:$0xf]  ;;  %v15441_v16 = vld [vmem:[%s22959_s9 + $0x378] sm:$0xf0] }
 0x818   : > { %v15232_v21 = vor.u32 %v18247_v15, %v15231_v5  ;;  %v18231_v29 = vld [vmem:[%s22959_s9 + $0x164] sm:$0xf0]  ;;  %v15439_v5 = vld [vmem:[%s22959_s9 + $0x338] sm:$0xf] }
 0x819   : > { %v20469_v52 = vadd.f32 %v18788_v17, %v6836_v20  ;;  %v15224_v17 = vor.u32 %v18246_v9, %v15223_v8  ;;  %v18230_v20 = vld [vmem:[%s22959_s9 + $0x15c] sm:$0xf0]  ;;  %v15431_v8 = vld [vmem:[%s22959_s9 + $0x330] sm:$0xf]  ;;  %v18297_v15 = vld [vmem:[%s22959_s9 + $0x374] sm:$0xf0] }
 0x81a   : > { %v18296_v9 = vld [vmem:[%s22959_s9 + $0x36c] sm:$0xf0] }
 0x81b   : > { %v20482_v32 = vpack.c.bf16 %v20469_v52, %v20467_v28 }
 0x81d   : > { %7655 = vmatmul.bf16.vlgmr.msrb.gmra.mxu3 %v20482_v32  ;;  %7669 = vmatmul.bf16.vlgmr.msrb.gmra.mxu0 %v20482_v32 }
 0x81e   : > { %7683 = vmatmul.bf16.vlgmr.msrb.gmra.mxu1 %v20482_v32  ;;  %7697 = vmatmul.bf16.vlgmr.msrb.gmra.mxu2 %v20482_v32 }
 0x81f   : > { %7759 = vmatpush.bf16.msrb.mxu3 %v15480_v33  ;;  %7773 = vmatpush.bf16.msrb.mxu0 %v15484_v34  ;;  %v15160_v33 = vor.u32 %v18230_v20, %v15159_v19  ;;  %v15164_v34 = vor.u32 %v18222_v24, %v15161_v27  ;;  %v15367_v19 = vld [vmem:[%s22959_s9 + $0x2b0] sm:$0xf]  ;;  %v18272_v24 = vld [vmem:[%s22959_s9 + $0x2b4] sm:$0xf] }
 0x820   : > { %7787 = vmatpush.bf16.msrb.mxu1 %v15488_v38  ;;  %7801 = vmatpush.bf16.msrb.mxu2 %v15492_v40  ;;  %v15168_v38 = vor.u32 %v18231_v29, %v15167_v50  ;;  %v15172_v40 = vor.u32 %v18223_v30, %v15169_v25  ;;  %v18280_v20 = vld [vmem:[%s22959_s9 + $0x2ec] sm:$0xf0]  ;;  %v15369_v27 = vld [vmem:[%s22959_s9 + $0x2f0] sm:$0xf0]  ;;  %v15375_v50 = vld [vmem:[%s22959_s9 + $0x2b8] sm:$0xf] }
 0x821   : > { %v18281_v29 = vld [vmem:[%s22959_s9 + $0x2f4] sm:$0xf0]  ;;  %v18273_v30 = vld [vmem:[%s22959_s9 + $0x2bc] sm:$0xf] }
 0x822   : > { %v15377_v25 = vld [vmem:[%s22959_s9 + $0x2f8] sm:$0xf0] }
 0x823   : > { %7760 = vmatpush.bf16.msrb.mxu3 %v15416_v43  ;;  %7774 = vmatpush.bf16.msrb.mxu0 %v15420_v49  ;;  %v15031_v43 = vld [vmem:[%s22959_s9 + $0x20] sm:$0xf]  ;;  %v15096_v49 = vor.u32 %v18214_v36, %v15095_v35  ;;  %v15303_v35 = vld [vmem:[%s22959_s9 + $0x230] sm:$0xf] }
 0x824   : > { %7788 = vmatpush.bf16.msrb.mxu1 %v15424_v37  ;;  %7802 = vmatpush.bf16.msrb.mxu2 %v15428_v11  ;;  %v18190_v37 = vld [vmem:[%s22959_s9 + $0x24] sm:$0xf]  ;;  %v18264_v36 = vld [vmem:[%s22959_s9 + $0x26c] sm:$0xf0] }
 0x825   : > { %v15033_v11 = vld [vmem:[%s22959_s9 + $0x60] sm:$0xf0] }
 0x826   : > { %v15036_v63 = vor.u32 %v18190_v37, %v15033_v11  ;;  %v15312_v37 = vor.u32 %v18265_v46, %v15311_v22  ;;  %v15316_v11 = vor.u32 %v18257_v23, %v15313_v47  ;;  %v18328_v22 = vld [vmem:[%s22961_s11 + $0x70] sm:$0xff] }
 0x827   : > { %7761 = vmatpush.bf16.msrb.mxu3 %v15352_v58  ;;  %7775 = vmatpush.bf16.msrb.mxu0 %v15356_v59  ;;  %v15495_v58 = vld [vmem:[%s22959_s9 + $0x3b0] sm:$0xf] }
 0x828   : > { %7789 = vmatpush.bf16.msrb.mxu1 %v15360_v26  ;;  %7803 = vmatpush.bf16.msrb.mxu2 %v15364_v62  ;;  %v18312_v59 = vld [vmem:[%s22959_s9 + $0x3ec] sm:$0xf0]  ;;  %v15503_v26 = vld [vmem:[%s22959_s9 + $0x3b8] sm:$0xf]  ;;  %v15032_v62 = vor.u32 %v18198_v53, %v15031_v43  ;;  %v15304_v43 = vor.u32 %v18264_v36, %v15303_v35 }
 0x829   : > { %v18248_v53 = vld [vmem:[%s22959_s9 + $0x1ec] sm:$0xf0] }
 0x82a   : > { %v18336_v46 = vld [vmem:[%s22961_s11 + $0xb0] sm:$0xff] }
 0x82b   : > { %7762 = vmatpush.bf16.msrb.mxu3 %v15288_v6  ;;  %7776 = vmatpush.bf16.msrb.mxu0 %v15292_v7  ;;  %v15496_v6 = vor.u32 %v18312_v59, %v15495_v58  ;;  %v15500_v7 = vor.u32 %v18304_v60, %v15497_v61  ;;  %v15175_v60 = vld [vmem:[%s22959_s9 + $0x130] sm:$0xf] }
 0x82c   : > { %7790 = vmatpush.bf16.msrb.mxu1 %v15296_v10  ;;  %7804 = vmatpush.bf16.msrb.mxu2 %v15300_v13  ;;  %v15504_v10 = vor.u32 %v18313_v0, %v15503_v26  ;;  %v15508_v13 = vor.u32 %v18305_v1, %v15505_v3  ;;  %v18232_v61 = vld [vmem:[%s22959_s9 + $0x16c] sm:$0xf0]  ;;  %v15248_v26 = vor.u32 %v18249_v56, %v15247_v41  ;;  %v15177_v0 = vld [vmem:[%s22959_s9 + $0x170] sm:$0xf0]  ;;  %v15183_v1 = vld [vmem:[%s22959_s9 + $0x138] sm:$0xf] }
 0x82d   : > { %7711 = vmatmul.bf16.vlgmr.msra.gmra.mxu3 %v20482_v32  ;;  %7725 = vmatmul.bf16.vlgmr.msra.gmra.mxu0 %v20482_v32  ;;  %v18233_v3 = vld [vmem:[%s22959_s9 + $0x174] sm:$0xf0]  ;;  %v18320_v23 = vld [vmem:[%s22961_s11 + $0x30] sm:$0xff] }
 0x82e   : > { %7739 = vmatmul.bf16.vlgmr.msra.gmra.mxu1 %v20482_v32  ;;  %7753 = vmatmul.bf16.vlgmr.msra.gmra.mxu2 %v20482_v32  ;;  %v18344_v47 = vld [vmem:[%s22961_s11 + $0xf0] sm:$0xff]  ;;  %v18333_v41 = vld [vmem:[%s22961_s11 + $0x98] sm:$0xff] }
 0x82f   : > { %7763 = vmatpush.bf16.msrb.mxu3 %v15224_v17  ;;  %7777 = vmatpush.bf16.msrb.mxu0 %v15228_v18  ;;  %v15432_v17 = vor.u32 %v18296_v9, %v15431_v8  ;;  %v15436_v18 = vor.u32 %v18288_v31, %v15433_v12  ;;  %v15111_v8 = vld [vmem:[%s22959_s9 + $0xb0] sm:$0xf]  ;;  %v18208_v31 = vld [vmem:[%s22959_s9 + $0xb4] sm:$0xf]  ;;  %v18317_v56 = vld [vmem:[%s22961_s11 + $0x18] sm:$0xff] }
 0x830   : > { %7791 = vmatpush.bf16.msrb.mxu1 %v15232_v21  ;;  %7805 = vmatpush.bf16.msrb.mxu2 %v15236_v48  ;;  %v15440_v21 = vor.u32 %v18297_v15, %v15439_v5  ;;  %v15444_v48 = vor.u32 %v18289_v14, %v15441_v16  ;;  %v18216_v9 = vld [vmem:[%s22959_s9 + $0xec] sm:$0xf0]  ;;  %v15113_v12 = vld [vmem:[%s22959_s9 + $0xf0] sm:$0xf0]  ;;  %v15119_v5 = vld [vmem:[%s22959_s9 + $0xb8] sm:$0xf] }
 0x831   : > { %v18217_v15 = vld [vmem:[%s22959_s9 + $0xf4] sm:$0xf0]  ;;  %v18209_v14 = vld [vmem:[%s22959_s9 + $0xbc] sm:$0xf] }
 0x832   : > { %v15121_v16 = vld [vmem:[%s22959_s9 + $0xf8] sm:$0xf0] }
 0x833   : > { %7764 = vmatpush.bf16.msrb.mxu3 %v15160_v33  ;;  %7778 = vmatpush.bf16.msrb.mxu0 %v15164_v34  ;;  %v15368_v33 = vor.u32 %v18280_v20, %v15367_v19  ;;  %v15372_v34 = vor.u32 %v18272_v24, %v15369_v27  ;;  %v15047_v19 = vld [vmem:[%s22959_s9 + $0x30] sm:$0xf]  ;;  %v18192_v24 = vld [vmem:[%s22959_s9 + $0x34] sm:$0xf] }
 0x834   : > { %7792 = vmatpush.bf16.msrb.mxu1 %v15168_v38  ;;  %7806 = vmatpush.bf16.msrb.mxu2 %v15172_v40  ;;  %v15376_v38 = vor.u32 %v18281_v29, %v15375_v50  ;;  %v15380_v40 = vor.u32 %v18273_v30, %v15377_v25  ;;  %v18200_v20 = vld [vmem:[%s22959_s9 + $0x6c] sm:$0xf0]  ;;  %v15049_v27 = vld [vmem:[%s22959_s9 + $0x70] sm:$0xf0]  ;;  %v15055_v50 = vld [vmem:[%s22959_s9 + $0x38] sm:$0xf] }
 0x835   : > { %v18201_v29 = vld [vmem:[%s22959_s9 + $0x74] sm:$0xf0]  ;;  %v18193_v30 = vld [vmem:[%s22959_s9 + $0x3c] sm:$0xf] }
 0x836   : > { %v15057_v25 = vld [vmem:[%s22959_s9 + $0x78] sm:$0xf0]  ;;  %v15056_v35 = vor.u32 %v18201_v29, %v15055_v50  ;;  %v18364_v50 = vld [vmem:[%s22961_s11 + $0x190] sm:$0xff] }
 0x837   : > { %7765 = vmatpush.bf16.msrb.mxu3 %v15096_v49  ;;  %7779 = vmatpush.bf16.msrb.mxu0 %v15100_v44  ;;  %v15308_v49 = vor.u32 %v18256_v39, %v15305_v45  ;;  %v15239_v44 = vld [vmem:[%s22959_s9 + $0x1b0] sm:$0xf]  ;;  %v15060_v36 = vor.u32 %v18193_v30, %v15057_v25  ;;  %v18321_v39 = vld [vmem:[%s22961_s11 + $0x38] sm:$0xff]  ;;  %v18355_v25 = vld [vmem:[%s22961_s11 + $0x148] sm:$0xff] }
 0x838   : > { %7793 = vmatpush.bf16.msrb.mxu1 %v15104_v55  ;;  %7807 = vmatpush.bf16.msrb.mxu2 %v15108_v54  ;;  %v18240_v55 = vld [vmem:[%s22959_s9 + $0x1b4] sm:$0xf]  ;;  %v15240_v58 = vor.u32 %v18248_v53, %v15239_v44  ;;  %v18345_v45 = vld [vmem:[%s22961_s11 + $0xf8] sm:$0xff]  ;;  %v18343_v44 = vld [vmem:[%s22961_s11 + $0xe8] sm:$0xff] }
 0x839   : > { %v15241_v54 = vld [vmem:[%s22959_s9 + $0x1f0] sm:$0xf0]  ;;  %v18326_v53 = vld [vmem:[%s22961_s11 + $0x60] sm:$0xff] }
 0x83a   : > { %v15244_v59 = vor.u32 %v18240_v55, %v15241_v54  ;;  %v18342_v55 = vld [vmem:[%s22961_s11 + $0xe0] sm:$0xff]  ;;  %v18325_v54 = vld [vmem:[%s22961_s11 + $0x58] sm:$0xff]  ;;  %v18348_v29 = vld [vmem:[%s22961_s11 + $0x110] sm:$0xff] }
 0x83b   : > { %7766 = vmatpush.bf16.msrb.mxu3 %v15032_v62  ;;  %7780 = vmatpush.bf16.msrb.mxu0 %v15036_v63  ;;  %v15252_v62 = vor.u32 %v18241_v51, %v15249_v57  ;;  %v18224_v63 = vld [vmem:[%s22959_s9 + $0x134] sm:$0xf]  ;;  %v18341_v51 = vld [vmem:[%s22961_s11 + $0xd8] sm:$0xff] }
 0x83c   : > { %7794 = vmatpush.bf16.msrb.mxu1 %v15040_v2  ;;  %7808 = vmatpush.bf16.msrb.mxu2 %v15044_v4  ;;  %v18225_v2 = vld [vmem:[%s22959_s9 + $0x13c] sm:$0xf]  ;;  %v18324_v57 = vld [vmem:[%s22961_s11 + $0x50] sm:$0xff] }
 0x83d   : > { %v15185_v4 = vld [vmem:[%s22959_s9 + $0x178] sm:$0xf0]  ;;  %v18372_v30 = vld [vmem:[%s22961_s11 + $0x1d0] sm:$0xff] }
 0x83e   : > { %7767 = vmatmul.bf16.vlgmr.msrb.gmra.mxu3 %v20482_v32  ;;  %7781 = vmatmul.bf16.vlgmr.msrb.gmra.mxu0 %v20482_v32 }
 0x83f   : > { %7815 = vmatpush.bf16.msra.mxu3 %v15496_v6  ;;  %7829 = vmatpush.bf16.msra.mxu0 %v15500_v7  ;;  %v15176_v6 = vor.u32 %v18232_v61, %v15175_v60  ;;  %v15180_v7 = vor.u32 %v18224_v63, %v15177_v0  ;;  %v18340_v60 = vld [vmem:[%s22961_s11 + $0xd0] sm:$0xff]  ;;  %v18323_v61 = vld [vmem:[%s22961_s11 + $0x48] sm:$0xff]  ;;  %v18322_v0 = vld [vmem:[%s22961_s11 + $0x40] sm:$0xff] }
 0x840   : > { %7843 = vmatpush.bf16.msra.mxu1 %v15504_v10  ;;  %7857 = vmatpush.bf16.msra.mxu2 %v15508_v13  ;;  %v15184_v10 = vor.u32 %v18233_v3, %v15183_v1  ;;  %v15188_v13 = vor.u32 %v18225_v2, %v15185_v4  ;;  %v18339_v63 = vld [vmem:[%s22961_s11 + $0xc8] sm:$0xff]  ;;  %v18330_v1 = vld [vmem:[%s22961_s11 + $0x80] sm:$0xff]  ;;  %v18361_v3 = vld [vmem:[%s22961_s11 + $0x178] sm:$0xff] }
 0x841   : > { %7795 = vmatmul.bf16.vlgmr.msrb.gmra.mxu1 %v20482_v32  ;;  %7809 = vmatmul.bf16.vlgmr.msrb.gmra.mxu2 %v20482_v32  ;;  %v18369_v2 = vld [vmem:[%s22961_s11 + $0x1b8] sm:$0xff]  ;;  %v18314_v4 = vld [vmem:[%s22961_s11] sm:$0xff] }
 0x843   : > { %7816 = vmatpush.bf16.msra.mxu3 %v15432_v17  ;;  %7830 = vmatpush.bf16.msra.mxu0 %v15436_v18  ;;  %v15112_v17 = vor.u32 %v18216_v9, %v15111_v8  ;;  %v15116_v18 = vor.u32 %v18208_v31, %v15113_v12  ;;  %v18377_v8 = vld [vmem:[%s22961_s11 + $0x1f8] sm:$0xff]  ;;  %v18360_v9 = vld [vmem:[%s22961_s11 + $0x170] sm:$0xff]  ;;  %v18359_v12 = vld [vmem:[%s22961_s11 + $0x168] sm:$0xff] }
 0x844   : > { %7844 = vmatpush.bf16.msra.mxu1 %v15440_v21  ;;  %7858 = vmatpush.bf16.msra.mxu2 %v15444_v48  ;;  %v15120_v21 = vor.u32 %v18217_v15, %v15119_v5  ;;  %v15124_v48 = vor.u32 %v18209_v14, %v15121_v16  ;;  %v18376_v31 = vld [vmem:[%s22961_s11 + $0x1f0] sm:$0xff]  ;;  %v18367_v5 = vld [vmem:[%s22961_s11 + $0x1a8] sm:$0xff]  ;;  %v18358_v16 = vld [vmem:[%s22961_s11 + $0x160] sm:$0xff] }
 0x845   : > { %v18351_v15 = vld [vmem:[%s22961_s11 + $0x128] sm:$0xff] }
 0x846   : > { %v18375_v14 = vld [vmem:[%s22961_s11 + $0x1e8] sm:$0xff] }
 0x847   : > { %7817 = vmatpush.bf16.msra.mxu3 %v15368_v33  ;;  %7831 = vmatpush.bf16.msra.mxu0 %v15372_v34  ;;  %v15048_v33 = vor.u32 %v18200_v20, %v15047_v19  ;;  %v15052_v34 = vor.u32 %v18192_v24, %v15049_v27  ;;  %v18374_v19 = vld [vmem:[%s22961_s11 + $0x1e0] sm:$0xff]  ;;  %v18357_v20 = vld [vmem:[%s22961_s11 + $0x158] sm:$0xff]  ;;  %v18356_v27 = vld [vmem:[%s22961_s11 + $0x150] sm:$0xff] }
 0x848   : > { %7845 = vmatpush.bf16.msra.mxu1 %v15376_v38  ;;  %7859 = vmatpush.bf16.msra.mxu2 %v15380_v40  ;;  %v18329_v38 = vld [vmem:[%s22961_s11 + $0x78] sm:$0xff] }
 0x849   : > { %v18337_v40 = vld [vmem:[%s22961_s11 + $0xb8] sm:$0xff] }
 0x84a   : > { %v18373_v24 = vld [vmem:[%s22961_s11 + $0x1d8] sm:$0xff] }
 0x84b   : > { %7818 = vmatpush.bf16.msra.mxu3 %v15304_v43  ;;  %7832 = vmatpush.bf16.msra.mxu0 %v15308_v49  ;;  %v18327_v43 = vld [vmem:[%s22961_s11 + $0x68] sm:$0xff] }
 0x84c   : > { %7846 = vmatpush.bf16.msra.mxu1 %v15312_v37  ;;  %7860 = vmatpush.bf16.msra.mxu2 %v15316_v11  ;;  %v18319_v49 = vld [vmem:[%s22961_s11 + $0x28] sm:$0xff]  ;;  %v18334_v37 = vld [vmem:[%s22961_s11 + $0xa0] sm:$0xff] }
 0x84d   : > { %v18318_v11 = vld [vmem:[%s22961_s11 + $0x20] sm:$0xff] }
 0x84f   : > { %7819 = vmatpush.bf16.msra.mxu3 %v15240_v58  ;;  %7833 = vmatpush.bf16.msra.mxu0 %v15244_v59  ;;  %v18332_v58 = vld [vmem:[%s22961_s11 + $0x90] sm:$0xff] }
 0x850   : > { %7847 = vmatpush.bf16.msra.mxu1 %v15248_v26  ;;  %7861 = vmatpush.bf16.msra.mxu2 %v15252_v62  ;;  %v18316_v59 = vld [vmem:[%s22961_s11 + $0x10] sm:$0xff]  ;;  %v18331_v26 = vld [vmem:[%s22961_s11 + $0x88] sm:$0xff] }
 0x851   : > { %v18315_v62 = vld [vmem:[%s22961_s11 + $0x8] sm:$0xff] }
 0x853   : > { %7820 = vmatpush.bf16.msra.mxu3 %v15176_v6  ;;  %7834 = vmatpush.bf16.msra.mxu0 %v15180_v7  ;;  %v18338_v6 = vld [vmem:[%s22961_s11 + $0xc0] sm:$0xff]  ;;  %v18353_v7 = vld [vmem:[%s22961_s11 + $0x138] sm:$0xff] }
 0x854   : > { %7848 = vmatpush.bf16.msra.mxu1 %v15184_v10  ;;  %7862 = vmatpush.bf16.msra.mxu2 %v15188_v13  ;;  %v18368_v10 = vld [vmem:[%s22961_s11 + $0x1b0] sm:$0xff] }
 0x855   : > { %v18352_v13 = vld [vmem:[%s22961_s11 + $0x130] sm:$0xff] }
 0x857   : > { %7821 = vmatpush.bf16.msra.mxu3 %v15112_v17  ;;  %7835 = vmatpush.bf16.msra.mxu0 %v15116_v18  ;;  %v18366_v17 = vld [vmem:[%s22961_s11 + $0x1a0] sm:$0xff] }
 0x858   : > { %7849 = vmatpush.bf16.msra.mxu1 %v15120_v21  ;;  %7863 = vmatpush.bf16.msra.mxu2 %v15124_v48  ;;  %v18350_v18 = vld [vmem:[%s22961_s11 + $0x120] sm:$0xff]  ;;  %v18365_v21 = vld [vmem:[%s22961_s11 + $0x198] sm:$0xff] }
 0x859   : > { %v18349_v48 = vld [vmem:[%s22961_s11 + $0x118] sm:$0xff] }
 0x85b   : > { %7822 = vmatpush.bf16.msra.mxu3 %v15048_v33  ;;  %7836 = vmatpush.bf16.msra.mxu0 %v15052_v34  ;;  %v18363_v33 = vld [vmem:[%s22961_s11 + $0x188] sm:$0xff] }
 0x85c   : > { %7850 = vmatpush.bf16.msra.mxu1 %v15056_v35  ;;  %7864 = vmatpush.bf16.msra.mxu2 %v15060_v36  ;;  %v18347_v34 = vld [vmem:[%s22961_s11 + $0x108] sm:$0xff]  ;;  %v18354_v36 = vld [vmem:[%s22961_s11 + $0x140] sm:$0xff] }
 0x85d   : > { %v18371_v35 = vld [vmem:[%s22961_s11 + $0x1c8] sm:$0xff] }
 0x85e   : > { %7823 = vmatmul.bf16.vlgmr.msra.gmra.mxu3 %v20482_v32  ;;  %7837 = vmatmul.bf16.vlgmr.msra.gmra.mxu0 %v20482_v32 }
 0x85f   : > { %8961 = vmatpush.bf16.msrb.mxu0 %v18329_v38  ;;  %7851 = vmatmul.bf16.vlgmr.msra.gmra.mxu1 %v20482_v32  ;;  %v18362_v38 = vld [vmem:[%s22961_s11 + $0x180] sm:$0xff] }
 0x860   : > { %8975 = vmatpush.bf16.msrb.mxu1 %v18337_v40  ;;  %7865 = vmatmul.bf16.vlgmr.msra.gmra.mxu2 %v20482_v32  ;;  %v18335_v32 = vld [vmem:[%s22961_s11 + $0xa8] sm:$0xff]  ;;  %v18346_v40 = vld [vmem:[%s22961_s11 + $0x100] sm:$0xff] }
 0x861   : > { %8947 = vmatpush.bf16.msrb.mxu3 %v18321_v39  ;;  %8989 = vmatpush.bf16.msrb.mxu2 %v18345_v45  ;;  %v18370_v39 = vld [vmem:[%s22961_s11 + $0x1c0] sm:$0xff] }
 0x862   : > { %v21055_v45 = vld [vmem:[%s22960_s10] sm:$0xff] }
 0x863   : > { %8962 = vmatpush.bf16.msrb.mxu0 %v18328_v22 }
 0x864   : > { %8976 = vmatpush.bf16.msrb.mxu1 %v18336_v46 }
 0x865   : > { %8948 = vmatpush.bf16.msrb.mxu3 %v18320_v23  ;;  %8990 = vmatpush.bf16.msrb.mxu2 %v18344_v47  ;;  %v6976_v23 = vperm.slane %v21055_v45, 1  ;;  %v6977_v47 = vperm.slane %v21055_v45, 2 }
 0x867   : > { %8963 = vmatpush.bf16.msrb.mxu0 %v18327_v43 }
 0x868   : > { %8977 = vmatpush.bf16.msrb.mxu1 %v18335_v32 }
 0x869   : > { %8949 = vmatpush.bf16.msrb.mxu3 %v18319_v49  ;;  %8991 = vmatpush.bf16.msrb.mxu2 %v18343_v44 }
 0x86b   : > { %8964 = vmatpush.bf16.msrb.mxu0 %v18326_v53 }
 0x86c   : > { %8978 = vmatpush.bf16.msrb.mxu1 %v18334_v37  ;;  %v6975_v37 = vperm.slane %v21055_v45, 0 }
 0x86d   : > { %8950 = vmatpush.bf16.msrb.mxu3 %v18318_v11  ;;  %8992 = vmatpush.bf16.msrb.mxu2 %v18342_v55 }
 0x86f   : > { %8965 = vmatpush.bf16.msrb.mxu0 %v18325_v54  ;;  %v6978_v54 = vperm.slane %v21055_v45, 3 }
 0x870   : > { %8979 = vmatpush.bf16.msrb.mxu1 %v18333_v41 }
 0x871   : > { %8951 = vmatpush.bf16.msrb.mxu3 %v18317_v56  ;;  %8993 = vmatpush.bf16.msrb.mxu2 %v18341_v51 }
 0x873   : > { %8966 = vmatpush.bf16.msrb.mxu0 %v18324_v57 }
 0x874   : > { %8980 = vmatpush.bf16.msrb.mxu1 %v18332_v58 }
 0x875   : > { %8952 = vmatpush.bf16.msrb.mxu3 %v18316_v59  ;;  %8994 = vmatpush.bf16.msrb.mxu2 %v18340_v60  ;;  %v18393_v59 = vld [vmem:[%s22961_s11 + $0x278] sm:$0xff] }
 0x877   : > { %8967 = vmatpush.bf16.msrb.mxu0 %v18323_v61 }
 0x878   : > { %8981 = vmatpush.bf16.msrb.mxu1 %v18331_v26  ;;  %v18401_v26 = vld [vmem:[%s22961_s11 + $0x2b8] sm:$0xff] }
 0x879   : > { %8953 = vmatpush.bf16.msrb.mxu3 %v18315_v62  ;;  %8995 = vmatpush.bf16.msrb.mxu2 %v18339_v63 }
 0x87b   : > { %8968 = vmatpush.bf16.msrb.mxu0 %v18322_v0 }
 0x87c   : > { %8982 = vmatpush.bf16.msrb.mxu1 %v18330_v1 }
 0x87d   : > { %8954 = vmatpush.bf16.msrb.mxu3 %v18314_v4  ;;  %8996 = vmatpush.bf16.msrb.mxu2 %v18338_v6  ;;  %v18392_v6 = vld [vmem:[%s22961_s11 + $0x270] sm:$0xff] }
 0x87f   : > { %9017 = vmatpush.bf16.msra.mxu0 %v18361_v3 }
 0x880   : > { %9031 = vmatpush.bf16.msra.mxu1 %v18369_v2 }
 0x881   : > { %9003 = vmatpush.bf16.msra.mxu3 %v18353_v7  ;;  %9045 = vmatpush.bf16.msra.mxu2 %v18377_v8 }
 0x883   : > { %9018 = vmatpush.bf16.msra.mxu0 %v18360_v9 }
 0x884   : > { %9032 = vmatpush.bf16.msra.mxu1 %v18368_v10  ;;  %v18400_v10 = vld [vmem:[%s22961_s11 + $0x2b0] sm:$0xff] }
 0x885   : > { %9004 = vmatpush.bf16.msra.mxu3 %v18352_v13  ;;  %9046 = vmatpush.bf16.msra.mxu2 %v18376_v31 }
 0x887   : > { %9019 = vmatpush.bf16.msra.mxu0 %v18359_v12  ;;  %v18385_v12 = vld [vmem:[%s22961_s11 + $0x238] sm:$0xff] }
 0x888   : > { %9033 = vmatpush.bf16.msra.mxu1 %v18367_v5 }
 0x889   : > { %9005 = vmatpush.bf16.msra.mxu3 %v18351_v15  ;;  %9047 = vmatpush.bf16.msra.mxu2 %v18375_v14  ;;  %v6980_v15 = vperm.slane %v21055_v45, 5  ;;  %v18409_v14 = vld [vmem:[%s22961_s11 + $0x2f8] sm:$0xff] }
 0x88b   : > { %9020 = vmatpush.bf16.msra.mxu0 %v18358_v16 }
 0x88c   : > { %9034 = vmatpush.bf16.msra.mxu1 %v18366_v17  ;;  %v6981_v17 = vperm.slane %v21055_v45, 6 }
 0x88d   : > { %9006 = vmatpush.bf16.msra.mxu3 %v18350_v18  ;;  %9048 = vmatpush.bf16.msra.mxu2 %v18374_v19  ;;  %v18391_v18 = vld [vmem:[%s22961_s11 + $0x268] sm:$0xff] }
 0x88e   : > { %v18399_v19 = vld [vmem:[%s22961_s11 + $0x2a8] sm:$0xff] }
 0x88f   : > { %9021 = vmatpush.bf16.msra.mxu0 %v18357_v20 }
 0x890   : > { %9035 = vmatpush.bf16.msra.mxu1 %v18365_v21  ;;  %v18384_v21 = vld [vmem:[%s22961_s11 + $0x230] sm:$0xff] }
 0x891   : > { %9007 = vmatpush.bf16.msra.mxu3 %v18349_v48  ;;  %9049 = vmatpush.bf16.msra.mxu2 %v18373_v24 }
 0x893   : > { %9022 = vmatpush.bf16.msra.mxu0 %v18356_v27  ;;  %v18408_v27 = vld [vmem:[%s22961_s11 + $0x2f0] sm:$0xff] }
 0x894   : > { %9036 = vmatpush.bf16.msra.mxu1 %v18364_v50 }
 0x895   : > { %9008 = vmatpush.bf16.msra.mxu3 %v18348_v29  ;;  %9050 = vmatpush.bf16.msra.mxu2 %v18372_v30  ;;  %v18390_v30 = vld [vmem:[%s22961_s11 + $0x260] sm:$0xff] }
 0x897   : > { %9023 = vmatpush.bf16.msra.mxu0 %v18355_v25  ;;  %v6979_v25 = vperm.slane %v21055_v45, 4 }
 0x898   : > { %9037 = vmatpush.bf16.msra.mxu1 %v18363_v33 }
 0x899   : > { %9009 = vmatpush.bf16.msra.mxu3 %v18347_v34  ;;  %9051 = vmatpush.bf16.msra.mxu2 %v18371_v35  ;;  %v18398_v35 = vld [vmem:[%s22961_s11 + $0x2a0] sm:$0xff] }
 0x89a   : > { %v7670_v22 = vpop.f32.mrf.mxu0 }
 0x89b   : > { %9024 = vmatpush.bf16.msra.mxu0 %v18354_v36  ;;  %v7684_v46 = vpop.f32.mrf.mxu1  ;;  %v7671_v32 = vadd.f32 %v7670_v22, %v6976_v23  ;;  %v6982_v36 = vperm.slane %v21055_v45, 7  ;;  %v18389_v45 = vld [vmem:[%s22961_s11 + $0x258] sm:$0xff] }
 0x89c   : > { %9038 = vmatpush.bf16.msra.mxu1 %v18362_v38  ;;  %v7685_v44 = vadd.f32 %v7684_v46, %v6977_v47  ;;  %v18407_v46 = vld [vmem:[%s22961_s11 + $0x2e8] sm:$0xff] }
 0x89d   : > { %9010 = vmatpush.bf16.msra.mxu3 %v18346_v40  ;;  %9052 = vmatpush.bf16.msra.mxu2 %v18370_v39  ;;  %v7872_v56 = vmax.f32 %v7671_v32, 0.0  ;;  %v18383_v40 = vld [vmem:[%s22961_s11 + $0x228] sm:$0xff] }
 0x89e   : > { %v7873_v57 = vmax.f32 %v7685_v44, 0.0 }
 0x8a0   : > { %v7656_v43 = vpop.f32.mrf.mxu3 }
 0x8a1   : > { %v7698_v49 = vpop.f32.mrf.mxu2  ;;  %v7657_v60 = vadd.f32 %v7656_v43, %v6975_v37 }
 0x8a2   : > { %v7672_v53 = vpop.f32.mrf.mxu0  ;;  %v7699_v62 = vadd.f32 %v7698_v49, %v6978_v54  ;;  %v18397_v49 = vld [vmem:[%s22961_s11 + $0x298] sm:$0xff] }
 0x8a3   : > { %v7673_v11 = vadd.f32 %v7672_v53, %v6976_v23  ;;  %v7686_v55 = vpop.f32.mrf.mxu1  ;;  %v7871_v7 = vmax.f32 %v7657_v60, 0.0 }
 0x8a4   : > { %v7687_v41 = vadd.f32 %v7686_v55, %v6977_v47  ;;  %v7874_v13 = vmax.f32 %v7699_v62, 0.0 }
 0x8a5   : > { %v7888_v51 = vmax.f32 %v7673_v11, 0.0  ;;  %v18382_v11 = vld [vmem:[%s22961_s11 + $0x220] sm:$0xff] }
 0x8a6   : > { %v7889_v58 = vmax.f32 %v7687_v41, 0.0  ;;  %v18406_v41 = vld [vmem:[%s22961_s11 + $0x2e0] sm:$0xff] }
 0x8a7   : > { %v7904_v61 = vpack.c.bf16 %v7888_v51, %v7872_v56  ;;  %v18388_v51 = vld [vmem:[%s22961_s11 + $0x250] sm:$0xff] }
 0x8a8   : > { %v7905_v63 = vpack.c.bf16 %v7889_v58, %v7873_v57  ;;  %v7658_v0 = vpop.f32.mrf.mxu3 }
 0x8a9   : > { %v7659_v1 = vadd.f32 %v7658_v0, %v6975_v37  ;;  %v7700_v3 = vpop.f32.mrf.mxu2  ;;  %8969 = vmatmul.bf16.vlgmr.msrb.gmra.mxu0 %v7904_v61 }
 0x8aa   : > { %v7701_v2 = vadd.f32 %v7700_v3, %v6978_v54  ;;  %8983 = vmatmul.bf16.vlgmr.msrb.gmra.mxu1 %v7905_v63  ;;  %9073 = vmatpush.bf16.msrb.mxu0 %v18393_v59  ;;  %v7726_v4 = vpop.f32.mrf.mxu0  ;;  %v18396_v59 = vld [vmem:[%s22961_s11 + $0x290] sm:$0xff]  ;;  %v18381_v63 = vld [vmem:[%s22961_s11 + $0x218] sm:$0xff] }
 0x8ab   : > { %v7887_v8 = vmax.f32 %v7659_v1, 0.0  ;;  %9087 = vmatpush.bf16.msrb.mxu1 %v18401_v26  ;;  %v7740_v9 = vpop.f32.mrf.mxu1  ;;  %v7727_v48 = vadd.f32 %v7726_v4, %v6980_v15  ;;  %v21128_v26 = vld [vmem:[%s22960_s10 + $0x8] sm:$0xff]  ;;  %v18405_v3 = vld [vmem:[%s22961_s11 + $0x2d8] sm:$0xff] }
 0x8ac   : > { %v7890_v31 = vmax.f32 %v7701_v2, 0.0  ;;  %v7741_v50 = vadd.f32 %v7740_v9, %v6981_v17  ;;  %v18387_v4 = vld [vmem:[%s22961_s11 + $0x248] sm:$0xff]  ;;  %v18380_v9 = vld [vmem:[%s22961_s11 + $0x210] sm:$0xff] }
 0x8ad   : > { %v7903_v5 = vpack.c.bf16 %v7887_v8, %v7871_v7  ;;  %v7876_v39 = vmax.f32 %v7727_v48, 0.0  ;;  %v18395_v7 = vld [vmem:[%s22961_s11 + $0x288] sm:$0xff]  ;;  %v6985_v8 = vperm.slane %v21128_v26, 2 }
 0x8ae   : > { %v7906_v16 = vpack.c.bf16 %v7890_v31, %v7874_v13  ;;  %9074 = vmatpush.bf16.msrb.mxu0 %v18392_v6  ;;  %v7877_v23 = vmax.f32 %v7741_v50, 0.0  ;;  %v6984_v6 = vperm.slane %v21128_v26, 1  ;;  %v18386_v31 = vld [vmem:[%s22961_s11 + $0x240] sm:$0xff] }
 0x8af   : > { %9088 = vmatpush.bf16.msrb.mxu1 %v18400_v10  ;;  %8955 = vmatmul.bf16.vlgmr.msrb.gmra.mxu3 %v7903_v5  ;;  %v18404_v10 = vld [vmem:[%s22961_s11 + $0x2d0] sm:$0xff] }
 0x8b0   : > { %8997 = vmatmul.bf16.vlgmr.msrb.gmra.mxu2 %v7906_v16  ;;  %9059 = vmatpush.bf16.msrb.mxu3 %v18385_v12  ;;  %v7712_v20 = vpop.f32.mrf.mxu3 }
 0x8b1   : > { %9101 = vmatpush.bf16.msrb.mxu2 %v18409_v14  ;;  %v7754_v24 = vpop.f32.mrf.mxu2  ;;  %v7713_v43 = vadd.f32 %v7712_v20, %v6979_v25  ;;  %v18425_v14 = vld [vmem:[%s22961_s11 + $0x378] sm:$0xff]  ;;  %v6983_v20 = vperm.slane %v21128_v26, 0 }
 0x8b2   : > { %9075 = vmatpush.bf16.msrb.mxu0 %v18391_v18  ;;  %v7728_v29 = vpop.f32.mrf.mxu0  ;;  %v7755_v44 = vadd.f32 %v7754_v24, %v6982_v36  ;;  %v18433_v18 = vld [vmem:[%s22961_s11 + $0x3b8] sm:$0xff]  ;;  %v18403_v24 = vld [vmem:[%s22961_s11 + $0x2c8] sm:$0xff] }
 0x8b3   : > { %9089 = vmatpush.bf16.msrb.mxu1 %v18399_v19  ;;  %v7729_v33 = vadd.f32 %v7728_v29, %v6980_v15  ;;  %v7742_v34 = vpop.f32.mrf.mxu1  ;;  %v7875_v57 = vmax.f32 %v7713_v43, 0.0  ;;  %v18394_v15 = vld [vmem:[%s22961_s11 + $0x280] sm:$0xff]  ;;  %v18379_v19 = vld [vmem:[%s22961_s11 + $0x208] sm:$0xff] }
 0x8b4   : > { %v7743_v38 = vadd.f32 %v7742_v34, %v6981_v17  ;;  %9060 = vmatpush.bf16.msrb.mxu3 %v18384_v21  ;;  %v7878_v60 = vmax.f32 %v7755_v44, 0.0  ;;  %v18424_v34 = vld [vmem:[%s22961_s11 + $0x370] sm:$0xff]  ;;  %v18423_v44 = vld [vmem:[%s22961_s11 + $0x368] sm:$0xff] }
 0x8b5   : > { %v7892_v22 = vmax.f32 %v7729_v33, 0.0  ;;  %9102 = vmatpush.bf16.msrb.mxu2 %v18408_v27  ;;  %v6986_v27 = vperm.slane %v21128_v26, 3 }
 0x8b6   : > { %v7893_v47 = vmax.f32 %v7743_v38, 0.0  ;;  %9076 = vmatpush.bf16.msrb.mxu0 %v18390_v30  ;;  %v18432_v38 = vld [vmem:[%s22961_s11 + $0x3b0] sm:$0xff] }
 0x8b7   : > { %v7908_v32 = vpack.c.bf16 %v7892_v22, %v7876_v39  ;;  %9090 = vmatpush.bf16.msrb.mxu1 %v18398_v35 }
 0x8b8   : > { %v7909_v53 = vpack.c.bf16 %v7893_v47, %v7877_v23  ;;  %9061 = vmatpush.bf16.msrb.mxu3 %v18383_v40  ;;  %v7714_v37 = vpop.f32.mrf.mxu3  ;;  %v18378_v40 = vld [vmem:[%s22961_s11 + $0x200] sm:$0xff]  ;;  %v18417_v47 = vld [vmem:[%s22961_s11 + $0x338] sm:$0xff] }
 0x8b9   : > { %9103 = vmatpush.bf16.msrb.mxu2 %v18407_v46  ;;  %v7715_v55 = vadd.f32 %v7714_v37, %v6979_v25  ;;  %v7756_v54 = vpop.f32.mrf.mxu2  ;;  %9025 = vmatmul.bf16.vlgmr.msra.gmra.mxu0 %v7908_v32  ;;  %v18402_v23 = vld [vmem:[%s22961_s11 + $0x2c0] sm:$0xff]  ;;  %v18441_v32 = vld [vmem:[%s22961_s11 + $0x3f8] sm:$0xff] }
 0x8ba   : > { %v7757_v56 = vadd.f32 %v7756_v54, %v6982_v36  ;;  %9039 = vmatmul.bf16.vlgmr.msra.gmra.mxu1 %v7909_v53  ;;  %9077 = vmatpush.bf16.msrb.mxu0 %v18389_v45 }
 0x8bb   : > { %v7891_v58 = vmax.f32 %v7715_v55, 0.0  ;;  %9091 = vmatpush.bf16.msrb.mxu1 %v18397_v49  ;;  %v7782_v62 = vpop.f32.mrf.mxu0 }
 0x8bc   : > { %v7894_v61 = vmax.f32 %v7757_v56, 0.0  ;;  %9062 = vmatpush.bf16.msrb.mxu3 %v18382_v11  ;;  %v7783_v12 = vadd.f32 %v7782_v62, %v6984_v6  ;;  %v18431_v11 = vld [vmem:[%s22961_s11 + $0x3a8] sm:$0xff]  ;;  %v18421_v62 = vld [vmem:[%s22961_s11 + $0x358] sm:$0xff] }
 0x8bd   : > { %v7907_v0 = vpack.c.bf16 %v7891_v58, %v7875_v57  ;;  %9104 = vmatpush.bf16.msrb.mxu2 %v18406_v41  ;;  %v18416_v41 = vld [vmem:[%s22961_s11 + $0x330] sm:$0xff]  ;;  %v18422_v58 = vld [vmem:[%s22961_s11 + $0x360] sm:$0xff] }
 0x8be   : > { %v7796_v1 = vpop.f32.mrf.mxu1  ;;  %v7910_v2 = vpack.c.bf16 %v7894_v61, %v7878_v60  ;;  %9078 = vmatpush.bf16.msrb.mxu0 %v18388_v51  ;;  %v7880_v29 = vmax.f32 %v7783_v12, 0.0  ;;  %v18440_v51 = vld [vmem:[%s22961_s11 + $0x3f0] sm:$0xff]  ;;  %v18415_v60 = vld [vmem:[%s22961_s11 + $0x328] sm:$0xff] }
 0x8bf   : > { %9092 = vmatpush.bf16.msrb.mxu1 %v18396_v59  ;;  %9011 = vmatmul.bf16.vlgmr.msra.gmra.mxu3 %v7907_v0  ;;  %v7797_v16 = vadd.f32 %v7796_v1, %v6985_v8  ;;  %v18430_v59 = vld [vmem:[%s22961_s11 + $0x3a0] sm:$0xff]  ;;  %v18439_v61 = vld [vmem:[%s22961_s11 + $0x3e8] sm:$0xff]  ;;  %v18412_v12 = vld [vmem:[%s22961_s11 + $0x310] sm:$0xff] }
 0x8c0   : > { %9053 = vmatmul.bf16.vlgmr.msra.gmra.mxu2 %v7910_v2  ;;  %9063 = vmatpush.bf16.msrb.mxu3 %v18381_v63  ;;  %v18429_v63 = vld [vmem:[%s22961_s11 + $0x398] sm:$0xff]  ;;  %v18414_v0 = vld [vmem:[%s22961_s11 + $0x320] sm:$0xff] }
 0x8c1   : > { %9105 = vmatpush.bf16.msrb.mxu2 %v18405_v3  ;;  %v7768_v13 = vpop.f32.mrf.mxu3  ;;  %v7881_v25 = vmax.f32 %v7797_v16, 0.0  ;;  %v18438_v1 = vld [vmem:[%s22961_s11 + $0x3e0] sm:$0xff]  ;;  %v18420_v3 = vld [vmem:[%s22961_s11 + $0x350] sm:$0xff] }
 0x8c2   : > { %9079 = vmatpush.bf16.msrb.mxu0 %v18387_v4  ;;  %v7769_v35 = vadd.f32 %v7768_v13, %v6983_v20  ;;  %v18428_v4 = vld [vmem:[%s22961_s11 + $0x390] sm:$0xff]  ;;  %v6989_v13 = vperm.slane %v21128_v26, 6 }
 0x8c3   : > { %9093 = vmatpush.bf16.msrb.mxu1 %v18395_v7  ;;  %v7784_v17 = vpop.f32.mrf.mxu0  ;;  %v18413_v7 = vld [vmem:[%s22961_s11 + $0x318] sm:$0xff] }
 0x8c4   : > { %v7810_v5 = vpop.f32.mrf.mxu2  ;;  %9064 = vmatpush.bf16.msrb.mxu3 %v18380_v9  ;;  %v7785_v21 = vadd.f32 %v7784_v17, %v6984_v6  ;;  %v7879_v53 = vmax.f32 %v7769_v35, 0.0  ;;  %v6988_v9 = vperm.slane %v21128_v26, 5  ;;  %v18418_v17 = vld [vmem:[%s22961_s11 + $0x340] sm:$0xff] }
 0x8c5   : > { %9106 = vmatpush.bf16.msrb.mxu2 %v18404_v10  ;;  %v7811_v39 = vadd.f32 %v7810_v5, %v6986_v27  ;;  %v18419_v10 = vld [vmem:[%s22961_s11 + $0x348] sm:$0xff] }
 0x8c6   : > { %v7798_v48 = vpop.f32.mrf.mxu1  ;;  %9080 = vmatpush.bf16.msrb.mxu0 %v18386_v31  ;;  %v7896_v30 = vmax.f32 %v7785_v21, 0.0  ;;  %v18427_v31 = vld [vmem:[%s22961_s11 + $0x388] sm:$0xff]  ;;  %v6987_v21 = vperm.slane %v21128_v26, 4 }
 0x8c7   : > { %v7799_v50 = vadd.f32 %v7798_v48, %v6985_v8  ;;  %9094 = vmatpush.bf16.msrb.mxu1 %v18394_v15  ;;  %v7882_v55 = vmax.f32 %v7811_v39, 0.0  ;;  %v18437_v8 = vld [vmem:[%s22961_s11 + $0x3d8] sm:$0xff]  ;;  %v18436_v15 = vld [vmem:[%s22961_s11 + $0x3d0] sm:$0xff] }
 0x8c8   : > { %9065 = vmatpush.bf16.msrb.mxu3 %v18379_v19  ;;  %v7912_v36 = vpack.c.bf16 %v7896_v30, %v7880_v29  ;;  %v18435_v30 = vld [vmem:[%s22961_s11 + $0x3c8] sm:$0xff] }
 0x8c9   : > { %v7897_v33 = vmax.f32 %v7799_v50, 0.0  ;;  %9107 = vmatpush.bf16.msrb.mxu2 %v18403_v24  ;;  %v7770_v46 = vpop.f32.mrf.mxu3  ;;  %v6990_v50 = vperm.slane %v21128_v26, 7 }
 0x8ca   : > { %9129 = vmatpush.bf16.msra.mxu0 %v18425_v14  ;;  %v7771_v45 = vadd.f32 %v7770_v46, %v6983_v20  ;;  %v18426_v20 = vld [vmem:[%s22961_s11 + $0x380] sm:$0xff] }
 0x8cb   : > { %9143 = vmatpush.bf16.msra.mxu1 %v18433_v18  ;;  %v7913_v22 = vpack.c.bf16 %v7897_v33, %v7881_v25  ;;  %9081 = vmatmul.bf16.vlgmr.msrb.gmra.mxu0 %v7912_v36  ;;  %v18434_v46 = vld [vmem:[%s22961_s11 + $0x3c0] sm:$0xff] }
 0x8cc   : > { %v7812_v43 = vpop.f32.mrf.mxu2  ;;  %v7895_v37 = vmax.f32 %v7771_v45, 0.0  ;;  %9066 = vmatpush.bf16.msrb.mxu3 %v18378_v40  ;;  %v18410_v40 = vld [vmem:[%s22961_s11 + $0x300] sm:$0xff] }
 0x8cd   : > { %v7813_v49 = vadd.f32 %v7812_v43, %v6986_v27  ;;  %9095 = vmatmul.bf16.vlgmr.msrb.gmra.mxu1 %v7913_v22  ;;  %9108 = vmatpush.bf16.msrb.mxu2 %v18402_v23  ;;  %v18411_v27 = vld [vmem:[%s22961_s11 + $0x308] sm:$0xff] }
 0x8ce   : > { %9130 = vmatpush.bf16.msra.mxu0 %v18424_v34  ;;  %v7911_v56 = vpack.c.bf16 %v7895_v37, %v7879_v53 }
 0x8cf   : > { %9144 = vmatpush.bf16.msra.mxu1 %v18432_v38  ;;  %v7898_v54 = vmax.f32 %v7813_v49, 0.0 }
 0x8d0   : > { %9115 = vmatpush.bf16.msra.mxu3 %v18417_v47 }
 0x8d1   : > { %9157 = vmatpush.bf16.msra.mxu2 %v18441_v32  ;;  %v7914_v57 = vpack.c.bf16 %v7898_v54, %v7882_v55  ;;  %9067 = vmatmul.bf16.vlgmr.msrb.gmra.mxu3 %v7911_v56 }
 0x8d2   : > { %9131 = vmatpush.bf16.msra.mxu0 %v18423_v44 }
 0x8d3   : > { %9145 = vmatpush.bf16.msra.mxu1 %v18431_v11  ;;  %9109 = vmatmul.bf16.vlgmr.msrb.gmra.mxu2 %v7914_v57 }
 0x8d4   : > { %9116 = vmatpush.bf16.msra.mxu3 %v18416_v41 }
 0x8d5   : > { %9158 = vmatpush.bf16.msra.mxu2 %v18440_v51 }
 0x8d6   : > { %9132 = vmatpush.bf16.msra.mxu0 %v18422_v58  ;;  %v18789_v58 = vld [vmem:[%s22962_s12] ss:$0 sm:$0xff] }
 0x8d7   : > { %9146 = vmatpush.bf16.msra.mxu1 %v18430_v59 }
 0x8d8   : > { %9117 = vmatpush.bf16.msra.mxu3 %v18415_v60 }
 0x8d9   : > { %9159 = vmatpush.bf16.msra.mxu2 %v18439_v61 }
 0x8da   : > { %9133 = vmatpush.bf16.msra.mxu0 %v18421_v62 }
 0x8db   : > { %v7838_v2 = vpop.f32.mrf.mxu0  ;;  %9147 = vmatpush.bf16.msra.mxu1 %v18429_v63 }
 0x8dc   : > { %v7852_v6 = vpop.f32.mrf.mxu1  ;;  %9118 = vmatpush.bf16.msra.mxu3 %v18414_v0  ;;  %v7839_v14 = vadd.f32 %v7838_v2, %v6988_v9 }
 0x8dd   : > { %9160 = vmatpush.bf16.msra.mxu2 %v18438_v1  ;;  %v7853_v18 = vadd.f32 %v7852_v6, %v6989_v13 }
 0x8de   : > { %9134 = vmatpush.bf16.msra.mxu0 %v18420_v3  ;;  %v7884_v25 = vmax.f32 %v7839_v14, 0.0 }
 0x8df   : > { %9148 = vmatpush.bf16.msra.mxu1 %v18428_v4  ;;  %v7885_v34 = vmax.f32 %v7853_v18, 0.0 }
 0x8e0   : > { %9119 = vmatpush.bf16.msra.mxu3 %v18413_v7 }
 0x8e1   : > { %v7824_v5 = vpop.f32.mrf.mxu3  ;;  %9161 = vmatpush.bf16.msra.mxu2 %v18437_v8 }
 0x8e2   : > { %9135 = vmatpush.bf16.msra.mxu0 %v18419_v10  ;;  %v7825_v36 = vadd.f32 %v7824_v5, %v6987_v21 }
 0x8e3   : > { %v7866_v16 = vpop.f32.mrf.mxu2  ;;  %v7840_v19 = vpop.f32.mrf.mxu0  ;;  %9149 = vmatpush.bf16.msra.mxu1 %v18427_v31 }
 0x8e4   : > { %v7841_v48 = vadd.f32 %v7840_v19, %v6988_v9  ;;  %v7854_v24 = vpop.f32.mrf.mxu1  ;;  %9120 = vmatpush.bf16.msra.mxu3 %v18412_v12  ;;  %v7867_v26 = vadd.f32 %v7866_v16, %v6990_v50  ;;  %v7883_v43 = vmax.f32 %v7825_v36, 0.0 }
 0x8e5   : > { %v7855_v29 = vadd.f32 %v7854_v24, %v6989_v13  ;;  %9162 = vmatpush.bf16.msra.mxu2 %v18436_v15 }
 0x8e6   : > { %v7900_v33 = vmax.f32 %v7841_v48, 0.0  ;;  %9136 = vmatpush.bf16.msra.mxu0 %v18418_v17  ;;  %v7886_v49 = vmax.f32 %v7867_v26, 0.0 }
 0x8e7   : > { %v7901_v35 = vmax.f32 %v7855_v29, 0.0  ;;  %9150 = vmatpush.bf16.msra.mxu1 %v18426_v20 }
 0x8e8   : > { %v7916_v38 = vpack.c.bf16 %v7900_v33, %v7884_v25  ;;  %9121 = vmatpush.bf16.msra.mxu3 %v18411_v27 }
 0x8e9   : > { %v7917_v39 = vpack.c.bf16 %v7901_v35, %v7885_v34  ;;  %v7826_v22 = vpop.f32.mrf.mxu3  ;;  %9163 = vmatpush.bf16.msra.mxu2 %v18435_v30 }
 0x8ea   : > { %v7827_v23 = vadd.f32 %v7826_v22, %v6987_v21  ;;  %9137 = vmatmul.bf16.vlgmr.msra.gmra.mxu0 %v7916_v38 }
 0x8eb   : > { %v7868_v47 = vpop.f32.mrf.mxu2  ;;  %9151 = vmatmul.bf16.vlgmr.msra.gmra.mxu1 %v7917_v39 }
 0x8ec   : > { %v7869_v45 = vadd.f32 %v7868_v47, %v6990_v50  ;;  %v7899_v32 = vmax.f32 %v7827_v23, 0.0  ;;  %9122 = vmatpush.bf16.msra.mxu3 %v18410_v40 }
 0x8ed   : > { %9164 = vmatpush.bf16.msra.mxu2 %v18434_v46 }
 0x8ee   : > { %v7902_v44 = vmax.f32 %v7869_v45, 0.0  ;;  %v7915_v53 = vpack.c.bf16 %v7899_v32, %v7883_v43 }
 0x8f0   : > { %v7918_v37 = vpack.c.bf16 %v7902_v44, %v7886_v49  ;;  %9123 = vmatmul.bf16.vlgmr.msra.gmra.mxu3 %v7915_v53 }
 0x8f2   : > { %9165 = vmatmul.bf16.vlgmr.msra.gmra.mxu2 %v7918_v37 }
 0x926   : > { %v8970_v11 = vpop.f32.mrf.mxu0 }
 0x927   : > { %v8984_v54 = vpop.f32.mrf.mxu1 }
 0x92e   : > { %v8972_v56 = vpop.f32.mrf.mxu0 }
 0x92f   : > { %v8986_v57 = vpop.f32.mrf.mxu1 }
 0x932   : > { %v8956_v55 = vpop.f32.mrf.mxu3 }
 0x933   : > { %v8998_v41 = vpop.f32.mrf.mxu2  ;;  %v8957_v60 = vadd.f32 %v18789_v58, %v8956_v55 }
 0x935   : > { %v8971_v63 = vadd.f32 %v8970_v11, %v8957_v60 }
 0x936   : > { %v9026_v61 = vpop.f32.mrf.mxu0 }
 0x937   : > { %v9040_v0 = vpop.f32.mrf.mxu1  ;;  %v8985_v3 = vadd.f32 %v8984_v54, %v8971_v63 }
 0x939   : > { %v8999_v4 = vadd.f32 %v8998_v41, %v8985_v3 }
 0x93a   : > { %v8958_v51 = vpop.f32.mrf.mxu3 }
 0x93b   : > { %v9000_v59 = vpop.f32.mrf.mxu2  ;;  %v8959_v2 = vadd.f32 %v18789_v58, %v8958_v51 }
 0x93d   : > { %v8973_v6 = vadd.f32 %v8972_v56, %v8959_v2  ;;  %v16142_v2 = vld [vmem:[%s22955_s5 + $0x174] sm:$0xf0] }
 0x93e   : > { %v9028_v7 = vpop.f32.mrf.mxu0 }
 0x93f   : > { %v9042_v10 = vpop.f32.mrf.mxu1  ;;  %v8987_v13 = vadd.f32 %v8986_v57, %v8973_v6  ;;  %v18465_v6 = vld [vmem:[%s22955_s5 + $0x178] sm:$0xf0] }
 0x941   : > { %v9001_v5 = vadd.f32 %v9000_v59, %v8987_v13  ;;  %v18460_v13 = vld [vmem:[%s22955_s5 + $0x154] sm:$0xf] }
 0x942   : > { %v9012_v62 = vpop.f32.mrf.mxu3 }
 0x943   : > { %v9054_v1 = vpop.f32.mrf.mxu2  ;;  %v9013_v9 = vadd.f32 %v9012_v62, %v8999_v4  ;;  %v16148_v4 = vld [vmem:[%s22955_s5 + $0x170] sm:$0xf] }
 0x945   : > { %v9027_v12 = vadd.f32 %v9026_v61, %v9013_v9  ;;  %v16128_v9 = vld [vmem:[%s22955_s5 + $0x150] sm:$0xf] }
 0x947   : > { %v9041_v15 = vadd.f32 %v9040_v0, %v9027_v12  ;;  %v18464_v0 = vld [vmem:[%s22955_s5 + $0x170] sm:$0xf0]  ;;  %v16130_v12 = vld [vmem:[%s22955_s5 + $0x15c] sm:$0xf0] }
 0x948   : > { %v9082_v16 = vpop.f32.mrf.mxu0 }
 0x949   : > { %v9055_v19 = vadd.f32 %v9054_v1, %v9041_v15  ;;  %v18463_v1 = vld [vmem:[%s22955_s5 + $0x16c] sm:$0xf]  ;;  %v18462_v15 = vld [vmem:[%s22955_s5 + $0x160] sm:$0xf0] }
 0x94a   : > { %v9014_v8 = vpop.f32.mrf.mxu3  ;;  %v9096_v18 = vpop.f32.mrf.mxu1 }
 0x94b   : > { %v9056_v31 = vpop.f32.mrf.mxu2  ;;  %v9015_v14 = vadd.f32 %v9014_v8, %v9001_v5  ;;  %v16149_v8 = vor.u32 %v18465_v6, %v16148_v4  ;;  %v16136_v5 = vld [vmem:[%s22955_s5 + $0x158] sm:$0xf]  ;;  %v18443_v4 = vld [vmem:[%s22955_s5 + $0xc8] sm:$0xf0]  ;;  %v18442_v6 = vld [vmem:[%s22955_s5 + $0xc4] sm:$0xf] }
 0x94d   : > { %v9029_v20 = vadd.f32 %v9028_v7, %v9015_v14  ;;  %v16145_v7 = vor.u32 %v18463_v1, %v16142_v2  ;;  %9424 = vmatpush.bf16.msrb.mxu1 %v16149_v8  ;;  %v16133_v14 = vor.u32 %v18460_v13, %v16130_v12  ;;  %v16056_v2 = vld [vmem:[%s22955_s5 + $0xc0] sm:$0xf] }
 0x94e   : > { %v16057_v8 = vor.u32 %v18443_v4, %v16056_v2 }
 0x94f   : > { %v9043_v24 = vadd.f32 %v9042_v10, %v9029_v20  ;;  %9410 = vmatpush.bf16.msrb.mxu0 %v16145_v7  ;;  %v18461_v10 = vld [vmem:[%s22955_s5 + $0x158] sm:$0xf0] }
 0x950   : > { %v9084_v50 = vpop.f32.mrf.mxu0 }
 0x951   : > { %v9057_v30 = vadd.f32 %v9056_v31, %v9043_v24  ;;  %v16129_v31 = vor.u32 %v18461_v10, %v16128_v9  ;;  %v18459_v24 = vld [vmem:[%s22955_s5 + $0x148] sm:$0xf0]  ;;  %v16058_v9 = vld [vmem:[%s22955_s5 + $0xcc] sm:$0xf0]  ;;  %v16064_v10 = vld [vmem:[%s22955_s5 + $0xc8] sm:$0xf] }
 0x952   : > { %v9098_v25 = vpop.f32.mrf.mxu1  ;;  %v16061_v13 = vor.u32 %v18442_v6, %v16058_v9 }
 0x953   : > { %9411 = vmatpush.bf16.msrb.mxu0 %v16133_v14 }
 0x954   : > { %v9068_v17 = vpop.f32.mrf.mxu3 }
 0x955   : > { %v9069_v48 = vadd.f32 %v9068_v17, %v9055_v19  ;;  %v16116_v17 = vld [vmem:[%s22955_s5 + $0x138] sm:$0xf]  ;;  %v18457_v19 = vld [vmem:[%s22955_s5 + $0x13c] sm:$0xf] }
 0x956   : > { %v9110_v21 = vpop.f32.mrf.mxu2 }
 0x957   : > { %v9083_v27 = vadd.f32 %v9082_v16, %v9069_v48  ;;  %v16137_v16 = vor.u32 %v18462_v15, %v16136_v5  ;;  %v16124_v48 = vld [vmem:[%s22955_s5 + $0x140] sm:$0xf] }
 0x959   : > { %v9097_v33 = vadd.f32 %v9096_v18, %v9083_v27  ;;  %9425 = vmatpush.bf16.msrb.mxu1 %v16137_v16  ;;  %v18458_v18 = vld [vmem:[%s22955_s5 + $0x140] sm:$0xf0] }
 0x95a   : > { %v16117_v20 = vor.u32 %v18458_v18, %v16116_v17 }
 0x95b   : > { %v9111_v36 = vadd.f32 %v9110_v21, %v9097_v33  ;;  %v16118_v21 = vld [vmem:[%s22955_s5 + $0x144] sm:$0xf0] }
 0x95c   : > { %v9070_v29 = vpop.f32.mrf.mxu3  ;;  %v16121_v27 = vor.u32 %v18457_v19, %v16118_v21 }
 0x95d   : > { %v9071_v34 = vadd.f32 %v9070_v29, %v9057_v30  ;;  %v16104_v29 = vld [vmem:[%s22955_s5 + $0x120] sm:$0xf]  ;;  %v18455_v30 = vld [vmem:[%s22955_s5 + $0x128] sm:$0xf0] }
 0x95e   : > { %v9112_v35 = vpop.f32.mrf.mxu2  ;;  %9412 = vmatpush.bf16.msrb.mxu0 %v16121_v27  ;;  %v16105_v33 = vor.u32 %v18455_v30, %v16104_v29 }
 0x95f   : > { %v9085_v38 = vadd.f32 %v9084_v50, %v9071_v34  ;;  %v16125_v50 = vor.u32 %v18459_v24, %v16124_v48  ;;  %v16106_v34 = vld [vmem:[%s22955_s5 + $0x12c] sm:$0xf0] }
 0x961   : > { %v9099_v46 = vadd.f32 %v9098_v25, %v9085_v38  ;;  %9426 = vmatpush.bf16.msrb.mxu1 %v16125_v50  ;;  %v18454_v25 = vld [vmem:[%s22955_s5 + $0x124] sm:$0xf] }
 0x962   : > { %v16109_v38 = vor.u32 %v18454_v25, %v16106_v34  ;;  %v18790_v25 = vld [vmem:[%s22965_s15] ss:$0 sm:$0xff] }
 0x963   : > { %v9113_v43 = vadd.f32 %v9112_v35, %v9099_v46  ;;  %v16112_v35 = vld [vmem:[%s22955_s5 + $0x128] sm:$0xf] }
 0x964   : > { %9413 = vmatpush.bf16.msrb.mxu0 %v16109_v38 }
 0x967   : > { %v9138_v40 = vpop.f32.mrf.mxu0 }
 0x968   : > { %v9152_v22 = vpop.f32.mrf.mxu1 }
 0x96f   : > { %v9140_v37 = vpop.f32.mrf.mxu0 }
 0x970   : > { %v9154_v55 = vpop.f32.mrf.mxu1 }
 0x973   : > { %v9124_v26 = vpop.f32.mrf.mxu3 }
 0x974   : > { %v9125_v39 = vadd.f32 %v9124_v26, %v9111_v36  ;;  %v18456_v36 = vld [vmem:[%s22955_s5 + $0x130] sm:$0xf0]  ;;  %v16092_v26 = vld [vmem:[%s22955_s5 + $0x108] sm:$0xf] }
 0x975   : > { %v9166_v47 = vpop.f32.mrf.mxu2 }
 0x976   : > { %v9139_v23 = vadd.f32 %v9138_v40, %v9125_v39  ;;  %v16113_v40 = vor.u32 %v18456_v36, %v16112_v35  ;;  %v18452_v39 = vld [vmem:[%s22955_s5 + $0x110] sm:$0xf0]  ;;  %v18791_v36 = vld [vmem:[%s22966_s16] ss:$0 sm:$0xff] }
 0x977   : > { %v16093_v46 = vor.u32 %v18452_v39, %v16092_v26 }
 0x978   : > { %v9153_v45 = vadd.f32 %v9152_v22, %v9139_v23  ;;  %9427 = vmatpush.bf16.msrb.mxu1 %v16113_v40  ;;  %v18451_v22 = vld [vmem:[%s22955_s5 + $0x10c] sm:$0xf]  ;;  %v16094_v23 = vld [vmem:[%s22955_s5 + $0x114] sm:$0xf0] }
 0x97a   : > { %v9167_v32 = vadd.f32 %v9166_v47, %v9153_v45  ;;  %v16100_v47 = vld [vmem:[%s22955_s5 + $0x110] sm:$0xf]  ;;  %v18453_v45 = vld [vmem:[%s22955_s5 + $0x118] sm:$0xf0] }
 0x97b   : > { %v9126_v49 = vpop.f32.mrf.mxu3 }
 0x97c   : > { %v9127_v44 = vadd.f32 %v9126_v49, %v9113_v43  ;;  %v9171_v53 = vadd.f32 %v9167_v32, %v20467_v28  ;;  %v16097_v43 = vor.u32 %v18451_v22, %v16094_v23  ;;  %v16101_v32 = vor.u32 %v18453_v45, %v16100_v47  ;;  %v16080_v49 = vld [vmem:[%s22955_s5 + $0xf0] sm:$0xf] }
 0x97d   : > { %v9168_v41 = vpop.f32.mrf.mxu2 }
 0x97e   : > { %v9141_v11 = vadd.f32 %v9140_v37, %v9127_v44  ;;  %9175 = vadd.xlane.f32.xlu1 %v9171_v53  ;;  %9414 = vmatpush.bf16.msrb.mxu0 %v16097_v43  ;;  %v18449_v44 = vld [vmem:[%s22955_s5 + $0xf8] sm:$0xf0] }
 0x97f   : > { %9428 = vmatpush.bf16.msrb.mxu1 %v16101_v32  ;;  %v16081_v37 = vor.u32 %v18449_v44, %v16080_v49 }
 0x980   : > { %v9155_v54 = vadd.f32 %v9154_v55, %v9141_v11  ;;  %v16082_v11 = vld [vmem:[%s22955_s5 + $0xfc] sm:$0xf0]  ;;  %v16088_v55 = vld [vmem:[%s22955_s5 + $0xf8] sm:$0xf] }
 0x982   : > { %v9169_v56 = vadd.f32 %v9168_v41, %v9155_v54  ;;  %v18450_v54 = vld [vmem:[%s22955_s5 + $0x100] sm:$0xf0] }
 0x984   : > { %v9172_v51 = vadd.f32 %v9169_v56, %v20469_v52  ;;  %v16140_v52 = vld [vmem:[%s22955_s5 + $0x168] sm:$0xf]  ;;  %v16089_v56 = vor.u32 %v18450_v54, %v16088_v55 }
 0x985   : > { %v16141_v3 = vor.u32 %v18464_v0, %v16140_v52 }
 0x986   : > { %9177 = vadd.xlane.f32.xlu0 %v9172_v51  ;;  %9429 = vmatpush.bf16.msrb.mxu1 %v16089_v56 }
 0x987   : > { %9396 = vmatpush.bf16.msrb.mxu3 %v16141_v3 }
 0x98b   : > { %9397 = vmatpush.bf16.msrb.mxu3 %v16129_v31  ;;  %v18444_v31 = vld [vmem:[%s22955_s5 + $0xd0] sm:$0xf0] }
 0x98c   : > { %v16065_v12 = vor.u32 %v18444_v31, %v16064_v10 }
 0x98f   : > { %9398 = vmatpush.bf16.msrb.mxu3 %v16117_v20 }
 0x993   : > { %9399 = vmatpush.bf16.msrb.mxu3 %v16105_v33 }
 0x997   : > { %9400 = vmatpush.bf16.msrb.mxu3 %v16093_v46 }
 0x99b   : > { %9401 = vmatpush.bf16.msrb.mxu3 %v16081_v37 }
 0x9f1   : > { %v9176_v57 = vpop.xlane.xlu1 %9175 }
 0x9f2   : > { %v9179_v58 = vmul.f32 %v9176_v57, %v20164_v42  ;;  %v18446_v57 = vld [vmem:[%s22955_s5 + $0xe0] sm:$0xf0] }
 0x9f4   : > { %v21276_v59 = vsub.f32 %v9171_v53, %v9179_v58  ;;  %v18448_v53 = vld [vmem:[%s22955_s5 + $0xf4] sm:$0xf]  ;;  %v18445_v58 = vld [vmem:[%s22955_s5 + $0xdc] sm:$0xf] }
 0x9f5   : > { %v16085_v41 = vor.u32 %v18448_v53, %v16082_v11 }
 0x9f6   : > { %v9183_v60 = vmul.f32 %v21276_v59, %v21276_v59 }
 0x9f7   : > { %9415 = vmatpush.bf16.msrb.mxu0 %v16085_v41 }
 0x9f8   : > { %9185 = vadd.xlane.f32.xlu2 %v9183_v60 }
 0x9f9   : > { %v9178_v28 = vpop.xlane.xlu0 %9177 }
 0x9fa   : > { %v9180_v61 = vmul.f32 %v9178_v28, %v20164_v42  ;;  %v16070_v28 = vld [vmem:[%s22955_s5 + $0xe4] sm:$0xf0] }
 0x9fb   : > { %v16073_v0 = vor.u32 %v18445_v58, %v16070_v28 }
 0x9fc   : > { %v21281_v62 = vsub.f32 %v9172_v51, %v9180_v61  ;;  %v16068_v51 = vld [vmem:[%s22955_s5 + $0xd8] sm:$0xf]  ;;  %v16076_v61 = vld [vmem:[%s22955_s5 + $0xe0] sm:$0xf] }
 0x9fd   : > { %v16069_v60 = vor.u32 %v18446_v57, %v16068_v51  ;;  %9416 = vmatpush.bf16.msrb.mxu0 %v16073_v0 }
 0x9fe   : > { %v9184_v63 = vmul.f32 %v21281_v62, %v21281_v62 }
 0x9ff   : > { %9402 = vmatpush.bf16.msrb.mxu3 %v16069_v60 }
 0xa00   : > { %9187 = vadd.xlane.f32.xlu1 %v9184_v63  ;;  %v18447_v63 = vld [vmem:[%s22955_s5 + $0xe8] sm:$0xf0] }
 0xa01   : > { %v16077_v1 = vor.u32 %v18447_v63, %v16076_v61  ;;  %9417 = vmatpush.bf16.msrb.mxu0 %v16061_v13 }
 0xa03   : > { %9430 = vmatpush.bf16.msrb.mxu1 %v16077_v1  ;;  %9403 = vmatpush.bf16.msrb.mxu3 %v16057_v8 }
 0xa07   : > { %9431 = vmatpush.bf16.msrb.mxu1 %v16065_v12 }
 0xa6b   : > { %v9186_v52 = vpop.xlane.xlu2 %9185 }
 0xa6c   : > { %v9189_v3 = vmul.f32 %v9186_v52, %v20164_v42 }
 0xa6e   : > { %v9191_v7 = vadd.f32 1e-05, %v9189_v3 }
 0xa70   : > { %18837 = vrsqrt.f32 %v9191_v7  ;;  %vm9199_vm4 = vweird.f32 %v9191_v7 }
 0xa73   : > { %v9188_v5 = vpop.xlane.xlu1 %9187 }
 0xa74   : > { %v9190_v15 = vmul.f32 %v9188_v5, %v20164_v42 }
 0xa76   : > { %v18838_v14 = vpop.eup %18837  ;;  %v9192_v16 = vadd.f32 1e-05, %v9190_v15 }
 0xa77   : > { %v9194_v17 = vmul.f32 %v18838_v14, %v9191_v7  ;;  %vm9200_vm3 = vweird.f32 %v18838_v14 }
 0xa78   : > { %18839 = vrsqrt.f32 %v9192_v16  ;;  %vm9201_vm5 = vmor %vm9199_vm4, %vm9200_vm3  ;;  %vm9209_vm10 = vweird.f32 %v9192_v16 }
 0xa79   : > { %v9195_v18 = vmul.f32 %v18838_v14, %v9194_v17 }
 0xa7b   : > { %v9196_v19 = vmul.f32 0.5, %v9195_v18 }
 0xa7d   : > { %v9197_v20 = vsub.f32 1.5, %v9196_v19 }
 0xa7e   : > { %v18840_v21 = vpop.eup %18839 }
 0xa7f   : > { %v9198_v48 = vmul.f32 %v18838_v14, %v9197_v20  ;;  %v9204_v24 = vmul.f32 %v18840_v21, %v9192_v16  ;;  %vm9210_vm6 = vweird.f32 %v18840_v21 }
 0xa80   : > { %vm9211_vm11 = vmor %vm9209_vm10, %vm9210_vm6 }
 0xa81   : > { %v9205_v27 = vmul.f32 %v18840_v21, %v9204_v24  ;;  %v9202_v50 = vsel %vm9201_vm5, %v18838_v14, %v9198_v48 }
 0xa82   : > { %v9213_v33 = vmul.f32 %v9202_v50, %v21276_v59  ;;  %v16053_v59 = vld [vmem:[%s22956_s6 + $0x3] sm:$0x7] }
 0xa83   : > { %v9206_v29 = vmul.f32 0.5, %v9205_v27  ;;  %v9263_v23 = vperm.slane %v16053_v59, 1  ;;  %v9264_v41 = vperm.slane %v16053_v59, 2 }
 0xa84   : > { %v9218_v38 = vmul.f32 %v18790_v25, %v9213_v33 }
 0xa85   : > { %v9207_v30 = vsub.f32 1.5, %v9206_v29 }
 0xa86   : > { %v21439_v39 = vadd.f32 %v18791_v36, %v9218_v38 }
 0xa87   : > { %v9208_v34 = vmul.f32 %v18840_v21, %v9207_v30 }
 0xa89   : > { %v9212_v35 = vsel %vm9211_vm11, %v18840_v21, %v9208_v34 }
 0xa8a   : > { %v9214_v40 = vmul.f32 %v9212_v35, %v21281_v62  ;;  %v9262_v62 = vperm.slane %v16053_v59, 0 }
 0xa8c   : > { %v9219_v26 = vmul.f32 %v18790_v25, %v9214_v40 }
 0xa8e   : > { %v21441_v22 = vadd.f32 %v18791_v36, %v9219_v26 }
 0xa90   : > { %v9225_v46 = vpack.c.bf16 %v21441_v22, %v21439_v39 }
 0xa92   : > { %9404 = vmatmul.bf16.vlgmr.msrb.gmra.mxu3 %v9225_v46  ;;  %9418 = vmatmul.bf16.vlgmr.msrb.gmra.mxu0 %v9225_v46 }
 0xa93   : > { %9432 = vmatmul.bf16.vlgmr.msrb.gmra.mxu1 %v9225_v46 }
 0xb0f   : > { %v9419_v47 = vpop.f32.mrf.mxu0 }
 0xb10   : > { %v9420_v45 = vadd.f32 %v9419_v47, %v9263_v23  ;;  %v9433_v11 = vpop.f32.mrf.mxu1 }
 0xb11   : > { %v21469_v57 = vadd.f32 %v9433_v11, %v9264_v41 }
 0xb12   : > { %9454 = vrot.lane.b32.xlu2 %v9420_v45, %s18928_s29  ;;  %9458 = vrot.lane.b32.xlu0 %v9420_v45, %s18927_s28 }
 0xb13   : > { %16150 = vmatpush.xpose.msk.msrb.mxu2 %vm6083_vm1, %v9420_v45 }
 0xb15   : > { %v9405_v43 = vpop.f32.mrf.mxu3 }
 0xb16   : > { %v9406_v32 = vadd.f32 %v9405_v43, %v9262_v62 }
 0xb17   : > { %v9421_v49 = vpop.f32.mrf.mxu0 }
 0xb18   : > { %v9422_v44 = vadd.f32 %v9421_v49, %v9263_v23  ;;  %9444 = vrot.lane.b32.xlu1 %v9406_v32, %s18927_s28  ;;  %16151 = vmatmul.msk.f32.vlgmr.msrb.gmra.mxu2 %vm6083_vm1, %v9406_v32  ;;  %v9435_v54 = vpop.f32.mrf.mxu1 }
 0xb19   : > { %v21465_v56 = vadd.f32 %v9435_v54, %v9264_v41 }
 0xb1a   : > { %16152 = vmatpush.xpose.msk.msra.mxu3 %vm6083_vm1, %v9422_v44  ;;  %9460 = vrot.lane.b32.xlu2 %v9422_v44, %s18927_s28 }
 0xb1b   : > { %9456 = vrot.lane.b32.xlu0 %v9422_v44, %s18928_s29 }
 0xb1d   : > { %v9407_v53 = vpop.f32.mrf.mxu3 }
 0xb1e   : > { %v9408_v37 = vadd.f32 %v9407_v53, %v9262_v62 }
 0xb20   : > { %16153 = vmatmul.msk.f32.vlgmr.msra.gmra.mxu3 %vm6083_vm1, %v9408_v37  ;;  %9440 = vrot.lane.b32.xlu1 %v9406_v32, %s18928_s29 }
 0xb22   : > { %9442 = vrot.lane.b32.xlu2 %v9408_v37, %s18928_s29 }
 0xb23   : > { %9446 = vrot.lane.b32.xlu0 %v9408_v37, %s18927_s28 }
 0xb28   : > { %9464 = vrot.lane.b32.xlu1 %v9422_v44, %s22989_s0 }
 0xb2a   : > { %9448 = vrot.lane.b32.xlu2 %v9406_v32, %s22989_s0 }
 0xb2b   : > { %9462 = vrot.lane.b32.xlu0 %v9420_v45, %s22989_s0 }
 0xb33   : > { %9450 = vrot.lane.b32.xlu0 %v9408_v37, %s22989_s0 }
 0xb6c   : > { %v9455_v55 = vpop.permute.xlu2 %9454 }
 0xb6d   : > { %16154 = vmatpush.xpose.msk.msra.mxu0 %vm6083_vm1, %v9455_v55 }
 0xb74   : > { %v9461_v51 = vpop.permute.xlu2 %9460 }
 0xb75   : > { %16160 = vmatpush.xpose.msk.msrb.mxu3 %vm6083_vm1, %v9461_v51 }
 0xb79   : > { %9919 = vmatpush.msra.mxu3 %v21465_v56 }
 0xb7c   : > { %v9443_v61 = vpop.permute.xlu2 %9442 }
 0xb84   : > { %v9459_v58 = vpop.permute.xlu0 %9458  ;;  %v9449_v6 = vpop.permute.xlu2 %9448 }
 0xb85   : > { %16158 = vmatpush.xpose.msk.msra.mxu2 %vm6083_vm1, %v9459_v58 }
 0xb89   : > { %9896 = vmatpush.msrb.mxu2 %v21469_v57 }
 0xb8a   : > { %v9445_v60 = vpop.permute.xlu1 %9444 }
 0xb8b   : > { %16159 = vmatmul.msk.f32.vlgmr.msra.gmra.mxu2 %vm6083_vm1, %v9445_v60 }
 0xb8d   : > { %v9457_v28 = vpop.permute.xlu0 %9456 }
 0xb8e   : > { %16156 = vmatpush.xpose.msk.msra.mxu1 %vm6083_vm1, %v9457_v28 }
 0xb91   : > { %16157 = vmatmul.msk.f32.vlgmr.msra.gmra.mxu1 %vm6083_vm1, %v9443_v61 }
 0xb92   : > { %v9441_v63 = vpop.permute.xlu1 %9440 }
 0xb93   : > { %16155 = vmatmul.msk.f32.vlgmr.msra.gmra.mxu0 %vm6083_vm1, %v9441_v63 }
 0xb95   : > { %v9447_v52 = vpop.permute.xlu0 %9446 }
 0xb96   : > { %16161 = vmatmul.msk.f32.vlgmr.msrb.gmra.mxu3 %vm6083_vm1, %v9447_v52 }
 0xb9a   : > { %v9465_v0 = vpop.permute.xlu1 %9464 }
 0xb9b   : > { %v9507_v1 = vpop.f32.mrf.mxu2  ;;  %16164 = vmatpush.xpose.msk.msrb.mxu1 %vm6083_vm1, %v9465_v0 }
 0xb9c   : > { %v9678_v3 = vmul.f32 0.17677669, %v9507_v1 }
 0xb9d   : > { %v9463_v2 = vpop.permute.xlu0 %9462 }
 0xb9e   : > { %16162 = vmatpush.xpose.msk.msrb.mxu0 %vm6083_vm1, %v9463_v2  ;;  %v9686_v4 = vsel %vm6284_vm2, %v9678_v3, -inf }
 0xb9f   : > { %9687 = vmax.xlane.f32.xlu1 %v9686_v4 }
 0xba1   : > { %16163 = vmatmul.msk.f32.vlgmr.msrb.gmra.mxu0 %vm6083_vm1, %v9449_v6 }
 0xba3   : > { %v9531_v7 = vpop.f32.mrf.mxu3 }
 0xba4   : > { %v9679_v8 = vmul.f32 0.17677669, %v9531_v7 }
 0xba5   : > { %v9451_v9 = vpop.permute.xlu0 %9450 }
 0xba6   : > { %16165 = vmatmul.msk.f32.vlgmr.msrb.gmra.mxu1 %vm6083_vm1, %v9451_v9  ;;  %v9689_v10 = vsel %vm6284_vm2, %v9679_v8, -inf }
 0xba7   : > { %9690 = vmax.xlane.f32.xlu2 %v9689_v10 }
 0xc0e   : > { %v9579_v13 = vpop.f32.mrf.mxu1  ;;  %v9603_v31 = vpop.f32.mrf.mxu2 }
 0xc0f   : > { %v9681_v12 = vmul.f32 0.17677669, %v9579_v13  ;;  %v9682_v5 = vmul.f32 0.17677669, %v9603_v31 }
 0xc10   : > { %v9555_v15 = vpop.f32.mrf.mxu0 }
 0xc11   : > { %v9680_v14 = vmul.f32 0.17677669, %v9555_v15  ;;  %v9695_v16 = vsel %vm6284_vm2, %v9681_v12, -inf  ;;  %v9698_v17 = vsel %vm6284_vm2, %v9682_v5, -inf }
 0xc12   : > { %9696 = vmax.xlane.f32.xlu1 %v9695_v16  ;;  %v9688_v18 = vpop.xlane.xlu1 %9687  ;;  %9699 = vmax.xlane.f32.xlu2 %v9698_v17 }
 0xc13   : > { %v9710_v19 = vsub.f32 %v9678_v3, %v9688_v18  ;;  %v9692_v20 = vsel %vm6284_vm2, %v9680_v14, -inf }
 0xc14   : > { %9693 = vmax.xlane.f32.xlu0 %v9692_v20 }
 0xc15   : > { %v9718_v21 = vmul.f32 1.442695, %v9710_v19 }
 0xc17   : > { %18841 = vpow2.f32 %v9718_v21 }
 0xc19   : > { %v9627_v48 = vpop.f32.mrf.mxu3 }
 0xc1a   : > { %v9683_v24 = vmul.f32 0.17677669, %v9627_v48  ;;  %v9691_v27 = vpop.xlane.xlu2 %9690 }
 0xc1b   : > { %v9711_v50 = vsub.f32 %v9679_v8, %v9691_v27 }
 0xc1c   : > { %v9701_v29 = vsel %vm6284_vm2, %v9683_v24, -inf }
 0xc1d   : > { %v9720_v30 = vmul.f32 1.442695, %v9711_v50  ;;  %9702 = vmax.xlane.f32.xlu0 %v9701_v29  ;;  %v21488_v34 = vpop.eup %18841 }
 0xc1e   : > { %v9651_v25 = vpop.f32.mrf.mxu0  ;;  %v9734_v40 = vsel %vm6284_vm2, %v21488_v34, 0.0 }
 0xc1f   : > { %v9684_v33 = vmul.f32 0.17677669, %v9651_v25  ;;  %18843 = vpow2.f32 %v9720_v30 }
 0xc21   : > { %v9704_v35 = vsel %vm6284_vm2, %v9684_v33, -inf }
 0xc22   : > { %9705 = vmax.xlane.f32.xlu1 %v9704_v35 }
 0xc23   : > { %v9675_v36 = vpop.f32.mrf.mxu1 }
 0xc24   : > { %v9685_v38 = vmul.f32 0.17677669, %v9675_v36 }
 0xc25   : > { %9735 = vadd.xlane.f32.xlu0 %v9734_v40  ;;  %v21493_v26 = vpop.eup %18843  ;;  %v18769_v40 = vpack.i.bf16 %v21465_v56, %v21469_v57 }
 0xc26   : > { %v9707_v46 = vsel %vm6284_vm2, %v9685_v38, -inf  ;;  %v9737_v59 = vsel %vm6284_vm2, %v21493_v26, 0.0 }
 0xc27   : > { %9708 = vmax.xlane.f32.xlu2 %v9707_v46 }
 0xc2a   : > { %9738 = vadd.xlane.f32.xlu1 %v9737_v59 }
 0xc85   : > { %v9697_v23 = vpop.xlane.xlu1 %9696  ;;  %v9700_v47 = vpop.xlane.xlu2 %9699 }
 0xc86   : > { %v9713_v45 = vsub.f32 %v9681_v12, %v9697_v23  ;;  %v9714_v62 = vsub.f32 %v9682_v5, %v9700_v47 }
 0xc87   : > { %v9694_v43 = vpop.xlane.xlu0 %9693 }
 0xc88   : > { %v9724_v32 = vmul.f32 1.442695, %v9713_v45  ;;  %v9726_v49 = vmul.f32 1.442695, %v9714_v62  ;;  %v9712_v44 = vsub.f32 %v9680_v14, %v9694_v43 }
 0xc8a   : > { %18845 = vpow2.f32 %v9724_v32  ;;  %v9722_v53 = vmul.f32 1.442695, %v9712_v44 }
 0xc8b   : > { %18847 = vpow2.f32 %v9726_v49 }
 0xc8c   : > { %18849 = vpow2.f32 %v9722_v53 }
 0xc90   : > { %v21498_v37 = vpop.eup %18845  ;;  %v9703_v11 = vpop.xlane.xlu0 %9702 }
 0xc91   : > { %v21500_v55 = vpop.eup %18847  ;;  %v9715_v54 = vsub.f32 %v9683_v24, %v9703_v11  ;;  %v9743_v41 = vsel %vm6284_vm2, %v21498_v37, 0.0 }
 0xc92   : > { %v21504_v51 = vpop.eup %18849  ;;  %9744 = vadd.xlane.f32.xlu0 %v9743_v41  ;;  %v9746_v58 = vsel %vm6284_vm2, %v21500_v55, 0.0 }
 0xc93   : > { %v9728_v60 = vmul.f32 1.442695, %v9715_v54  ;;  %9747 = vadd.xlane.f32.xlu1 %v9746_v58  ;;  %v9740_v28 = vsel %vm6284_vm2, %v21504_v51, 0.0 }
 0xc94   : > { %9741 = vadd.xlane.f32.xlu2 %v9740_v28 }
 0xc95   : > { %18851 = vpow2.f32 %v9728_v60  ;;  %v9706_v61 = vpop.xlane.xlu1 %9705 }
 0xc96   : > { %v9716_v63 = vsub.f32 %v9684_v33, %v9706_v61 }
 0xc98   : > { %v9730_v52 = vmul.f32 1.442695, %v9716_v63  ;;  %v9736_v0 = vpop.xlane.xlu0 %9735 }
 0xc99   : > { %18853 = vrcp.f32 %v9736_v0  ;;  %v9769_v12 = vand.u32 2147483648, %v9736_v0  ;;  %v9767_v14 = vand.u32 2147483647, %v9736_v0  ;;  %vm9763_vm13 = vweird.f32 %v9736_v0 }
 0xc9a   : > { %18855 = vpow2.f32 %v9730_v52  ;;  %v9709_v1 = vpop.xlane.xlu2 %9708 }
 0xc9b   : > { %v21510_v3 = vpop.eup %18851  ;;  %v9717_v2 = vsub.f32 %v9685_v38, %v9709_v1  ;;  %v9770_v20 = vor.u32 1.1754944e-38, %v9769_v12  ;;  %vm9768_vm15 = vcmp.eq.f32.partialorder %v9767_v14, 8.507059e+37 }
 0xc9c   : > { %v9749_v4 = vsel %vm6284_vm2, %v21510_v3, 0.0 }
 0xc9d   : > { %v9732_v6 = vmul.f32 1.442695, %v9717_v2  ;;  %v9739_v7 = vpop.xlane.xlu1 %9738  ;;  %9750 = vadd.xlane.f32.xlu2 %v9749_v4 }
 0xc9e   : > { %18857 = vrcp.f32 %v9739_v7  ;;  %v9784_v24 = vand.u32 2147483648, %v9739_v7  ;;  %v9782_v29 = vand.u32 2147483647, %v9739_v7  ;;  %vm9778_vm3 = vweird.f32 %v9739_v7 }
 0xc9f   : > { %v18854_v8 = vpop.eup %18853  ;;  %18859 = vpow2.f32 %v9732_v6 }
 0xca0   : > { %v21514_v9 = vpop.eup %18855  ;;  %v9759_v10 = vmul.f32 %v18854_v8, %v9736_v0  ;;  %vm9764_vm12 = vweird.f32 %v18854_v8  ;;  %v9785_v33 = vor.u32 1.1754944e-38, %v9784_v24  ;;  %vm9783_vm5 = vcmp.eq.f32.partialorder %v9782_v29, 8.507059e+37 }
 0xca1   : > { %v9752_v13 = vsel %vm6284_vm2, %v21514_v9, 0.0  ;;  %vm9765_vm14 = vmor %vm9763_vm13, %vm9764_vm12 }
 0xca2   : > { %v9760_v31 = vsub.f32 1.0, %v9759_v10  ;;  %9753 = vadd.xlane.f32.xlu0 %v9752_v13 }
 0xca4   : > { %v18858_v5 = vpop.eup %18857  ;;  %v9761_v15 = vmul.f32 %v18854_v8, %v9760_v31 }
 0xca5   : > { %v21518_v16 = vpop.eup %18859  ;;  %v9774_v17 = vmul.f32 %v18858_v5, %v9739_v7  ;;  %vm9779_vm0 = vweird.f32 %v18858_v5 }
 0xca6   : > { %v9762_v18 = vadd.f32 %v18854_v8, %v9761_v15  ;;  %v9755_v19 = vsel %vm6284_vm2, %v21518_v16, 0.0  ;;  %vm9780_vm4 = vmor %vm9778_vm3, %vm9779_vm0 }
 0xca7   : > { %v9775_v21 = vsub.f32 1.0, %v9774_v17  ;;  %9756 = vadd.xlane.f32.xlu1 %v9755_v19 }
 0xca8   : > { %v9766_v48 = vsel %vm9765_vm14, %v18854_v8, %v9762_v18 }
 0xca9   : > { %v9771_v27 = vsel %vm9768_vm15, %v9770_v20, %v9766_v48  ;;  %v9776_v50 = vmul.f32 %v18858_v5, %v9775_v21 }
 0xcaa   : > { %v9772_v30 = vmul.f32 %v21488_v34, %v9771_v27 }
 0xcab   : > { %v9777_v25 = vadd.f32 %v18858_v5, %v9776_v50 }
 0xcac   : > { %16166 = vmatmul.msk.f32.vlgmr.msrb.gmra.mxu2 %vm6284_vm2, %v9772_v30 }
 0xcad   : > { %v9781_v35 = vsel %vm9780_vm4, %v18858_v5, %v9777_v25 }
 0xcae   : > { %v9786_v36 = vsel %vm9783_vm5, %v9785_v33, %v9781_v35 }
 0xcaf   : > { %v9787_v38 = vmul.f32 %v21493_v26, %v9786_v36 }
 0xcb1   : > { %16167 = vmatmul.msk.f32.vlgmr.msra.gmra.mxu3 %vm6284_vm2, %v9787_v38 }
 0xcb5   : > { %18770 = vrot.lane.b32.xlu2 %v18769_v40, %s18928_s29 }
 0xcb6   : > { %18775 = vrot.lane.b32.xlu0 %v18769_v40, %s18927_s28 }
 0xcc0   : > { %18780 = vrot.lane.b32.xlu1 %v18769_v40, %s22989_s0 }
 0xd05   : > { %v9745_v34 = vpop.xlane.xlu0 %9744 }
 0xd06   : > { %18861 = vrcp.f32 %v9745_v34  ;;  %v21531_v46 = vpop.xlane.xlu1 %9747  ;;  %v9814_v57 = vand.u32 2147483648, %v9745_v34  ;;  %vm9808_vm10 = vweird.f32 %v9745_v34  ;;  %v9812_v44 = vand.u32 2147483647, %v9745_v34 }
 0xd07   : > { %v9742_v59 = vpop.xlane.xlu2 %9741  ;;  %v9829_v19 = vand.u32 2147483648, %v21531_v46  ;;  %vm9823_vm5 = vweird.f32 %v21531_v46  ;;  %v9827_v48 = vand.u32 2147483647, %v21531_v46 }
 0xd08   : > { %18863 = vrcp.f32 %v9742_v59  ;;  %v9797_v53 = vand.u32 2147483647, %v9742_v59  ;;  %v9799_v11 = vand.u32 2147483648, %v9742_v59  ;;  %v9815_v28 = vor.u32 1.1754944e-38, %v9814_v57 }
 0xd09   : > { %18865 = vrcp.f32 %v21531_v46  ;;  %vm9793_vm13 = vweird.f32 %v9742_v59  ;;  %vm9813_vm14 = vcmp.eq.f32.partialorder %v9812_v44, 8.507059e+37  ;;  %v9830_v25 = vor.u32 1.1754944e-38, %v9829_v19 }
 0xd0a   : > { %v9800_v52 = vor.u32 1.1754944e-38, %v9799_v11  ;;  %vm9798_vm0 = vcmp.eq.f32.partialorder %v9797_v53, 8.507059e+37 }
 0xd0c   : > { %v18862_v26 = vpop.eup %18861 }
 0xd0d   : > { %v9804_v23 = vmul.f32 %v18862_v26, %v9745_v34  ;;  %vm9809_vm6 = vweird.f32 %v18862_v26 }
 0xd0e   : > { %v18864_v47 = vpop.eup %18863  ;;  %vm9810_vm12 = vmor %vm9808_vm10, %vm9809_vm6 }
 0xd0f   : > { %v9805_v45 = vsub.f32 1.0, %v9804_v23  ;;  %v9789_v62 = vmul.f32 %v18864_v47, %v9742_v59  ;;  %v21534_v56 = vpop.eup %18865  ;;  %vm9794_vm11 = vweird.f32 %v18864_v47 }
 0xd10   : > { %v21536_v43 = vpop.xlane.xlu2 %9750  ;;  %v9819_v41 = vmul.f32 %v21534_v56, %v21531_v46  ;;  %vm9795_vm15 = vmor %vm9793_vm13, %vm9794_vm11  ;;  %vm9824_vm3 = vweird.f32 %v21534_v56 }
 0xd11   : > { %v9806_v32 = vmul.f32 %v18862_v26, %v9805_v45  ;;  %v9790_v49 = vsub.f32 1.0, %v9789_v62  ;;  %18867 = vrcp.f32 %v21536_v43  ;;  %v9844_v24 = vand.u32 2147483648, %v21536_v43  ;;  %vm9825_vm6 = vmor %vm9823_vm5, %vm9824_vm3 }
 0xd12   : > { %v9820_v2 = vsub.f32 1.0, %v9819_v41  ;;  %vm9838_vm10 = vweird.f32 %v21536_v43  ;;  %v9842_v27 = vand.u32 2147483647, %v21536_v43 }
 0xd13   : > { %v9807_v54 = vadd.f32 %v18862_v26, %v9806_v32  ;;  %v9791_v58 = vmul.f32 %v18864_v47, %v9790_v49  ;;  %v9845_v36 = vor.u32 1.1754944e-38, %v9844_v24  ;;  %v18792_v24 = vld [vmem:[%s22958_s8 + $0x1] ss:$0 sm:$0xff] }
 0xd14   : > { %v9821_v14 = vmul.f32 %v21534_v56, %v9820_v2  ;;  %vm9843_vm13 = vcmp.eq.f32.partialorder %v9842_v27, 8.507059e+37 }
 0xd15   : > { %v9811_v60 = vsel %vm9810_vm12, %v18862_v26, %v9807_v54  ;;  %v9792_v61 = vadd.f32 %v18864_v47, %v9791_v58  ;;  %v21541_v63 = vpop.xlane.xlu0 %9753  ;;  %vm9828_vm12 = vcmp.eq.f32.partialorder %v9827_v48, 8.507059e+37 }
 0xd16   : > { %18869 = vrcp.f32 %v21541_v63  ;;  %v9816_v1 = vsel %vm9813_vm14, %v9815_v28, %v9811_v60  ;;  %v9859_v57 = vand.u32 2147483648, %v21541_v63  ;;  %v9857_v32 = vand.u32 2147483647, %v21541_v63 }
 0xd17   : > { %v18868_v0 = vpop.eup %18867  ;;  %v9796_v4 = vsel %vm9795_vm15, %v18864_v47, %v9792_v61  ;;  %v9817_v31 = vmul.f32 %v21498_v37, %v9816_v1 }
 0xd18   : > { %v9801_v6 = vsel %vm9798_vm0, %v9800_v52, %v9796_v4  ;;  %v9834_v7 = vmul.f32 %v18868_v0, %v21536_v43  ;;  %v18771_v8 = vpop.permute.xlu2 %18770  ;;  %vm9839_vm4 = vweird.f32 %v18868_v0  ;;  %vm9853_vm0 = vweird.f32 %v21541_v63 }
 0xd19   : > { %v9802_v10 = vmul.f32 %v21504_v51, %v9801_v6  ;;  %v18773_v13 = vunpack.i.h.bf16 %v18771_v8  ;;  %v18772_v5 = vunpack.i.l.bf16 %v18771_v8  ;;  %v9822_v51 = vadd.f32 %v21534_v56, %v9821_v14  ;;  %vm9840_vm11 = vmor %vm9838_vm10, %vm9839_vm4  ;;  %v18472_v8 = vld [vmem:[%s22957_s7 + $0x70] sm:$0xff] }
 0xd1a   : > { %v9835_v12 = vsub.f32 1.0, %v9834_v7  ;;  %v21547_v15 = vpop.xlane.xlu1 %9756  ;;  %v9860_v53 = vor.u32 1.1754944e-38, %v9859_v57  ;;  %v18473_v7 = vld [vmem:[%s22957_s7 + $0x78] sm:$0xff]  ;;  %v16743_v57 = vld [vmem:[%s22959_s9 + $0x740] sm:$0xf0] }
 0xd1b   : > { %18871 = vrcp.f32 %v21547_v15  ;;  %9965 = vmatpush.msra.mxu1 %v18773_v13  ;;  %9942 = vmatpush.msra.mxu0 %v18772_v5  ;;  %v9826_v30 = vsel %vm9825_vm6, %v21534_v56, %v9822_v51  ;;  %v9874_v43 = vand.u32 2147483648, %v21547_v15  ;;  %vm9868_vm4 = vweird.f32 %v21547_v15  ;;  %v18471_v13 = vld [vmem:[%s22957_s7 + $0x68] sm:$0xff]  ;;  %v18468_v5 = vld [vmem:[%s22957_s7 + $0x50] sm:$0xff] }
 0xd1c   : > { %v21551_v17 = vpop.eup %18869  ;;  %v9836_v18 = vmul.f32 %v18868_v0, %v9835_v12  ;;  %16169 = vmatmul.msk.f32.vlgmr.msra.gmra.mxu1 %vm6284_vm2, %v9817_v31  ;;  %16168 = vmatmul.msk.f32.vlgmr.msra.gmra.mxu0 %vm6284_vm2, %v9802_v10  ;;  %v9831_v38 = vsel %vm9828_vm12, %v9830_v25, %v9826_v30  ;;  %vm9858_vm6 = vcmp.eq.f32.partialorder %v9857_v32, 8.507059e+37  ;;  %v18470_v31 = vld [vmem:[%s22957_s7 + $0x60] sm:$0xff]  ;;  %v18469_v12 = vld [vmem:[%s22957_s7 + $0x58] sm:$0xff]  ;;  %v16749_v32 = vld [vmem:[%s22959_s9 + $0x708] sm:$0xf] }
 0xd1d   : > { %v9849_v37 = vmul.f32 %v21551_v17, %v21541_v63  ;;  %v9832_v26 = vmul.f32 %v21500_v55, %v9831_v38  ;;  %vm9854_vm14 = vweird.f32 %v21551_v17  ;;  %v9875_v11 = vor.u32 1.1754944e-38, %v9874_v43 }
 0xd1e   : > { %v9837_v20 = vadd.f32 %v18868_v0, %v9836_v18  ;;  %vm21575_vm3 = vmor %vm9853_vm0, %vm9854_vm14 }
 0xd1f   : > { %v9850_v50 = vsub.f32 1.0, %v9849_v37 }
 0xd20   : > { %v9841_v33 = vsel %vm9840_vm11, %v18868_v0, %v9837_v20 }
 0xd21   : > { %v18872_v21 = vpop.eup %18871  ;;  %v9851_v40 = vmul.f32 %v21551_v17, %v9850_v50  ;;  %v9846_v46 = vsel %vm9843_vm13, %v9845_v36, %v9841_v33  ;;  %v18594_v36 = vld [vmem:[%s22959_s9 + $0x7bc] sm:$0xf0] }
 0xd22   : > { %v9864_v29 = vmul.f32 %v18872_v21, %v21547_v15  ;;  %v9847_v45 = vmul.f32 %v21510_v3, %v9846_v46  ;;  %vm9869_vm15 = vweird.f32 %v18872_v21  ;;  %v9872_v3 = vand.u32 2147483647, %v21547_v15  ;;  %v18467_v15 = vld [vmem:[%s22957_s7 + $0x48] sm:$0xff] }
 0xd23   : > { %v9852_v62 = vadd.f32 %v21551_v17, %v9851_v40  ;;  %vm9870_vm5 = vmor %vm9868_vm4, %vm9869_vm15  ;;  %v16813_v40 = vld [vmem:[%s22959_s9 + $0x788] sm:$0xf]  ;;  %vm12649_vm4 = vcmask 1041409  }
 0xd24   : > { %v9865_v35 = vsub.f32 1.0, %v9864_v29  ;;  %vm9873_vm10 = vcmp.eq.f32.partialorder %v9872_v3, 8.507059e+37  ;;  %v18579_v3 = vld [vmem:[%s22959_s9 + $0x744] sm:$0xf0] }
 0xd25   : > { %v9856_v49 = vsel %vm21575_vm3, %v21551_v17, %v9852_v62  ;;  %v18466_v17 = vld [vmem:[%s22957_s7 + $0x40] sm:$0xff] }
 0xd26   : > { %v9866_v34 = vmul.f32 %v18872_v21, %v9865_v35  ;;  %v9861_v41 = vsel %vm9858_vm6, %v9860_v53, %v9856_v49  ;;  %v16805_v35 = vld [vmem:[%s22959_s9 + $0x780] sm:$0xf]  ;;  %v18571_v49 = vld [vmem:[%s22959_s9 + $0x70c] sm:$0xf] }
 0xd27   : > { %v9862_v63 = vmul.f32 %v21514_v9, %v9861_v41  ;;  %v16806_v38 = vor.u32 %v18594_v36, %v16805_v35  ;;  %v18578_v62 = vld [vmem:[%s22959_s9 + $0x73c] sm:$0xf0]  ;;  %v16751_v53 = vld [vmem:[%s22959_s9 + $0x748] sm:$0xf0] }
 0xd28   : > { %v18776_v59 = vpop.permute.xlu0 %18775  ;;  %v9867_v56 = vadd.f32 %v18872_v21, %v9866_v34  ;;  %v18595_v34 = vld [vmem:[%s22959_s9 + $0x7c4] sm:$0xf0]  ;;  %v16754_v41 = vor.u32 %v18571_v49, %v16751_v53 }
 0xd29   : > { %v18778_v23 = vunpack.i.h.bf16 %v18776_v59  ;;  %v18777_v47 = vunpack.i.l.bf16 %v18776_v59  ;;  %v16814_v59 = vor.u32 %v18595_v34, %v16813_v40  ;;  %v16429_v53 = vld [vmem:[%s22959_s9 + $0x488] sm:$0xf] }
 0xd2a   : > { %v9871_v44 = vsel %vm9870_vm5, %v18872_v21, %v9867_v56  ;;  %v18570_v56 = vld [vmem:[%s22959_s9 + $0x704] sm:$0xf] }
 0xd2b   : > { %9988 = vmatpush.msra.mxu2 %v18777_v47  ;;  %10011 = vmatpush.msrb.mxu3 %v18778_v23  ;;  %v9876_v58 = vsel %vm9873_vm10, %v9875_v11, %v9871_v44  ;;  %v16815_v23 = vld [vmem:[%s22959_s9 + $0x7c8] sm:$0xf0]  ;;  %v16741_v47 = vld [vmem:[%s22959_s9 + $0x700] sm:$0xf]  ;;  %v16746_v55 = vor.u32 %v18570_v56, %v16743_v57  ;;  %v16750_v44 = vor.u32 %v18579_v3, %v16749_v32  ;;  %v18490_v3 = vld [vmem:[%s22959_s9 + $0x484] sm:$0xf] }
 0xd2c   : > { %16170 = vmatmul.msk.f32.vlgmr.msra.gmra.mxu2 %vm6284_vm2, %v9832_v26  ;;  %16171 = vmatmul.msk.f32.vlgmr.msrb.gmra.mxu3 %vm6284_vm2, %v9847_v45  ;;  %v9877_v52 = vmul.f32 %v21518_v16, %v9876_v58  ;;  %v18587_v26 = vld [vmem:[%s22959_s9 + $0x78c] sm:$0xf]  ;;  %v16742_v43 = vor.u32 %v18578_v62, %v16741_v47  ;;  %v16677_v11 = vld [vmem:[%s22959_s9 + $0x680] sm:$0xf]  ;;  %v18554_v58 = vld [vmem:[%s22959_s9 + $0x684] sm:$0xf] }
 0xd2d   : > { %10167 = vmatpush.bf16.msrb.mxu2 %v18473_v7  ;;  %11044 = vmatpush.bf16.msra.mxu3 %v16806_v38  ;;  %v16818_v45 = vor.u32 %v18587_v26, %v16815_v23  ;;  %v16615_v7 = vld [vmem:[%s22959_s9 + $0x640] sm:$0xf0]  ;;  %v16493_v23 = vld [vmem:[%s22959_s9 + $0x508] sm:$0xf]  ;;  %v18507_v56 = vld [vmem:[%s22959_s9 + $0x50c] sm:$0xf] }
 0xd2e   : > { %v18515_v47 = vld [vmem:[%s22959_s9 + $0x544] sm:$0xf0]  ;;  %v16495_v57 = vld [vmem:[%s22959_s9 + $0x548] sm:$0xf0]  ;;  %v18498_v32 = vld [vmem:[%s22959_s9 + $0x4bc] sm:$0xf0] }
 0xd2f   : > { %v9898_v54 = vpop.f32.mrf.mxu2  ;;  %v16494_v62 = vor.u32 %v18515_v47, %v16493_v23  ;;  %v18565_v23 = vld [vmem:[%s22959_s9 + $0x6d4] sm:$0xf0] }
 0xd30   : > { %10062 = vst.msk [vmem:[#allocation3] sm:$0xff] %vm6083_vm1, %v9898_v54  ;;  %v18562_v54 = vld [vmem:[%s22959_s9 + $0x6bc] sm:$0xf0] }
 0xd31   : > { %10168 = vmatpush.bf16.msrb.mxu2 %v18472_v8  ;;  %11045 = vmatpush.bf16.msra.mxu3 %v16742_v43  ;;  %v16621_v8 = vld [vmem:[%s22959_s9 + $0x608] sm:$0xf]  ;;  %v16498_v43 = vor.u32 %v18507_v56, %v16495_v57  ;;  %v16703_v56 = vld [vmem:[%s22959_s9 + $0x6d8] sm:$0xf0] }
 0xd32   : > { %v18781_v60 = vpop.permute.xlu1 %18780 }
 0xd33   : > { %v18783_v28 = vunpack.i.h.bf16 %v18781_v60  ;;  %v18782_v61 = vunpack.i.l.bf16 %v18781_v60  ;;  %v16679_v60 = vld [vmem:[%s22959_s9 + $0x6c0] sm:$0xf0] }
 0xd34   : > { %v9921_v0 = vpop.f32.mrf.mxu3 }
 0xd35   : > { %10063 = vst.msk [vmem:[#allocation3 + $0x8] sm:$0xff] %vm6083_vm1, %v9921_v0  ;;  %10034 = vmatpush.msrb.mxu0 %v18782_v61  ;;  %10057 = vmatpush.msrb.mxu1 %v18783_v28  ;;  %v16685_v28 = vld [vmem:[%s22959_s9 + $0x688] sm:$0xf]  ;;  %v16678_v61 = vor.u32 %v18562_v54, %v16677_v11  ;;  %v16687_v0 = vld [vmem:[%s22959_s9 + $0x6c8] sm:$0xf0] }
 0xd36   : > { %16172 = vmatmul.msk.f32.vlgmr.msrb.gmra.mxu0 %vm6284_vm2, %v9862_v63  ;;  %16173 = vmatmul.msk.f32.vlgmr.msrb.gmra.mxu1 %vm6284_vm2, %v9877_v52  ;;  %v18563_v63 = vld [vmem:[%s22959_s9 + $0x6c4] sm:$0xf0]  ;;  %v18555_v52 = vld [vmem:[%s22959_s9 + $0x68c] sm:$0xf] }
 0xd37   : > { %10169 = vmatpush.bf16.msrb.mxu2 %v18471_v13  ;;  %11072 = vmatpush.bf16.msra.mxu1 %v16814_v59  ;;  %v18539_v13 = vld [vmem:[%s22959_s9 + $0x60c] sm:$0xf]  ;;  %v18506_v59 = vld [vmem:[%s22959_s9 + $0x504] sm:$0xf]  ;;  %v18499_v11 = vld [vmem:[%s22959_s9 + $0x4c4] sm:$0xf0] }
 0xd38   : > { %11046 = vmatpush.bf16.msra.mxu3 %v16678_v61  ;;  %v16357_v61 = vld [vmem:[%s22959_s9 + $0x400] sm:$0xf] }
 0xd3b   : > { %10170 = vmatpush.bf16.msrb.mxu2 %v18470_v31  ;;  %11073 = vmatpush.bf16.msra.mxu1 %v16750_v44  ;;  %v16623_v31 = vld [vmem:[%s22959_s9 + $0x648] sm:$0xf0]  ;;  %v16423_v44 = vld [vmem:[%s22959_s9 + $0x4c0] sm:$0xf0] }
 0xd3c   : > { %v16426_v54 = vor.u32 %v18490_v3, %v16423_v44  ;;  %v16637_v44 = vld [vmem:[%s22959_s9 + $0x618] sm:$0xf] }
 0xd3f   : > { %10171 = vmatpush.bf16.msrb.mxu2 %v18469_v12 }
 0xd43   : > { %10172 = vmatpush.bf16.msrb.mxu2 %v18468_v5 }
 0xd47   : > { %10173 = vmatpush.bf16.msrb.mxu2 %v18467_v15 }
 0xd4b   : > { %10174 = vmatpush.bf16.msrb.mxu2 %v18466_v17  ;;  %v18530_v17 = vld [vmem:[%s22959_s9 + $0x5bc] sm:$0xf0] }
 0xd4f   : > { %11086 = vmatpush.bf16.msra.mxu2 %v16818_v45 }
 0xd53   : > { %11087 = vmatpush.bf16.msra.mxu2 %v16754_v41  ;;  %v16430_v41 = vor.u32 %v18499_v11, %v16429_v53  ;;  %v18549_v53 = vld [vmem:[%s22959_s9 + $0x654] sm:$0xf0] }
 0xd99   : > { %v9967_v1 = vpop.f32.mrf.mxu1  ;;  %v9944_v2 = vpop.f32.mrf.mxu0 }
 0xd9a   : > { %10068 = vrot.lane.b32.xlu2 %v9967_v1, %s22989_s0  ;;  %10066 = vrot.lane.b32.xlu0 %v9944_v2, %s22989_s0  ;;  %v16682_v1 = vor.u32 %v18554_v58, %v16679_v60  ;;  %v16686_v2 = vor.u32 %v18563_v63, %v16685_v28  ;;  %v18491_v58 = vld [vmem:[%s22959_s9 + $0x48c] sm:$0xf]  ;;  %v18482_v63 = vld [vmem:[%s22959_s9 + $0x43c] sm:$0xf0] }
 0xd9b   : > { %v16431_v60 = vld [vmem:[%s22959_s9 + $0x4c8] sm:$0xf0] }
 0xd9c   : > { %11074 = vmatpush.bf16.msra.mxu1 %v16686_v2  ;;  %v16434_v28 = vor.u32 %v18491_v58, %v16431_v60  ;;  %v16365_v2 = vld [vmem:[%s22959_s9 + $0x408] sm:$0xf]  ;;  %v16639_v58 = vld [vmem:[%s22959_s9 + $0x658] sm:$0xf0] }
 0xdaf   : > { %v9990_v4 = vpop.f32.mrf.mxu2  ;;  %v10013_v6 = vpop.f32.mrf.mxu3 }
 0xdb0   : > { %10076 = vrot.lane.b32.xlu1 %v9990_v4, %s18927_s28  ;;  %10078 = vrot.lane.b32.xlu0 %v10013_v6, %s18927_s28  ;;  %v16613_v4 = vld [vmem:[%s22959_s9 + $0x600] sm:$0xf] }
 0xdb1   : > { %v18546_v6 = vld [vmem:[%s22959_s9 + $0x63c] sm:$0xf0] }
 0xdb2   : > { %v16614_v12 = vor.u32 %v18546_v6, %v16613_v4  ;;  %v18483_v4 = vld [vmem:[%s22959_s9 + $0x444] sm:$0xf0] }
 0xdb3   : > { %v10036_v9 = vpop.f32.mrf.mxu0  ;;  %v10059_v16 = vpop.f32.mrf.mxu1 }
 0xdb4   : > { %10086 = vrot.lane.b32.xlu2 %v10036_v9, %s18928_s29  ;;  %v18538_v9 = vld [vmem:[%s22959_s9 + $0x604] sm:$0xf]  ;;  %11047 = vmatpush.bf16.msra.mxu3 %v16614_v12  ;;  %v16823_v12 = vld [vmem:[%s22959_s9 + $0x7d0] sm:$0xf0] }
 0xdb5   : > { %v16618_v5 = vor.u32 %v18538_v9, %v16615_v7  ;;  %v16366_v9 = vor.u32 %v18483_v4, %v16365_v2  ;;  %v16367_v7 = vld [vmem:[%s22959_s9 + $0x448] sm:$0xf0]  ;;  %v18533_v2 = vld [vmem:[%s22959_s9 + $0x5d4] sm:$0xf0] }
 0xdb8   : > { %10088 = vrot.lane.b32.xlu1 %v10059_v16, %s18928_s29  ;;  %v16690_v16 = vor.u32 %v18555_v52, %v16687_v0  ;;  %v18474_v52 = vld [vmem:[%s22959_s9 + $0x404] sm:$0xf]  ;;  %v16358_v0 = vor.u32 %v18482_v63, %v16357_v61  ;;  %v18532_v61 = vld [vmem:[%s22959_s9 + $0x5cc] sm:$0xf0]  ;;  %v18524_v63 = vld [vmem:[%s22959_s9 + $0x594] sm:$0xf] }
 0xdba   : > { %11088 = vmatpush.bf16.msra.mxu2 %v16690_v16  ;;  %v18475_v16 = vld [vmem:[%s22959_s9 + $0x40c] sm:$0xf] }
 0xdf4   : > { %v10069_v10 = vpop.permute.xlu2 %10068 }
 0xdf5   : > { %10073 = vst.msk [vmem:[#allocation3 + $0x8] sm:$0xff] %vm6671_vm7, %v10069_v10  ;;  %v18547_v10 = vld [vmem:[%s22959_s9 + $0x644] sm:$0xf0] }
 0xdf6   : > { %v16622_v15 = vor.u32 %v18547_v10, %v16621_v8  ;;  %v16821_v8 = vld [vmem:[%s22959_s9 + $0x790] sm:$0xf]  ;;  %v16370_v10 = vor.u32 %v18475_v16, %v16367_v7  ;;  %v16575_v16 = vld [vmem:[%s22959_s9 + $0x5d8] sm:$0xf0] }
 0xdf8   : > { %11075 = vmatpush.bf16.msra.mxu1 %v16622_v15 }
 0xe0c   : > { %v10067_v14 = vpop.permute.xlu0 %10066 }
 0xe0d   : > { %10072 = vst.msk [vmem:[#allocation3] sm:$0xff] %vm6671_vm7, %v10067_v14  ;;  %v16549_v14 = vld [vmem:[%s22959_s9 + $0x580] sm:$0xf] }
 0xe0e   : > { %v10087_v51 = vpop.permute.xlu2 %10086 }
 0xe22   : > { %v10077_v18 = vpop.permute.xlu1 %10076  ;;  %v10079_v37 = vpop.permute.xlu0 %10078 }
 0xe23   : > { %10082 = vst.msk [vmem:[#allocation3] sm:$0xff] %vm6682_vm8, %v10077_v18  ;;  %v18522_v18 = vld [vmem:[%s22959_s9 + $0x584] sm:$0xf] }
 0xe24   : > { %10092 = vst.msk [vmem:[#allocation3] sm:$0xff] %vm6693_vm9, %v10087_v51  ;;  %v16551_v51 = vld [vmem:[%s22959_s9 + $0x5c0] sm:$0xf0] }
 0xe25   : > { %10083 = vst.msk [vmem:[#allocation3 + $0x8] sm:$0xff] %vm6682_vm8, %v10079_v37  ;;  %v16626_v37 = vor.u32 %v18539_v13, %v16623_v31  ;;  %v18596_v13 = vld [vmem:[%s22959_s9 + $0x7cc] sm:$0xf0]  ;;  %v18588_v31 = vld [vmem:[%s22959_s9 + $0x794] sm:$0xf] }
 0xe26   : > { %v16826_v15 = vor.u32 %v18588_v31, %v16823_v12  ;;  %v16503_v12 = vld [vmem:[%s22959_s9 + $0x550] sm:$0xf0] }
 0xe27   : > { %11089 = vmatpush.bf16.msra.mxu2 %v16626_v37 }
 0xe2a   : > { %v10089_v19 = vpop.permute.xlu1 %10088 }
 0xe2b   : > { %10093 = vst.msk [vmem:[#allocation3 + $0x8] sm:$0xff] %vm6693_vm9, %v10089_v19  ;;  %v10094_v20 = vld [vmem:[#allocation3] sm:$0xff] }
 0xe2c   : > { %v16557_v19 = vld [vmem:[%s22959_s9 + $0x588] sm:$0xf] }
 0xe32   : > { %v10095_v21 = vld [vmem:[#allocation3 + $0x8] sm:$0xff] }
 0xe33   : > { %v10096_v48 = vpack.c.bf16 %v10095_v21, %v10094_v20  ;;  %v18531_v20 = vld [vmem:[%s22959_s9 + $0x5c4] sm:$0xf0]  ;;  %v18523_v21 = vld [vmem:[%s22959_s9 + $0x58c] sm:$0xf] }
 0xe35   : > { %10175 = vmatmul.bf16.vlgmr.msrb.gmra.mxu2 %v10096_v48  ;;  %v16559_v48 = vld [vmem:[%s22959_s9 + $0x5c8] sm:$0xf0] }
 0xeb8   : > { %v10176_v27 = vpop.f32.mrf.mxu2 }
 0xeb9   : > { %v10177_v50 = vadd.f32 %v18792_v24, %v10176_v27  ;;  %v16554_v27 = vor.u32 %v18522_v18, %v16551_v51  ;;  %v18589_v18 = vld [vmem:[%s22959_s9 + $0x79c] sm:$0xf] }
 0xeba   : > { %v16831_v51 = vld [vmem:[%s22959_s9 + $0x7d8] sm:$0xf0] }
 0xebb   : > { %v21633_v29 = vadd.f32 %v10177_v50, %v21439_v39  ;;  %v18586_v39 = vld [vmem:[%s22959_s9 + $0x784] sm:$0xf]  ;;  %v16558_v50 = vor.u32 %v18531_v20, %v16557_v19  ;;  %v16757_v19 = vld [vmem:[%s22959_s9 + $0x710] sm:$0xf] }
 0xebc   : > { %v18580_v20 = vld [vmem:[%s22959_s9 + $0x74c] sm:$0xf0] }
 0xebd   : > { %10187 = vadd.xlane.f32.xlu0 %v21633_v29  ;;  %11076 = vmatpush.bf16.msra.mxu1 %v16558_v50  ;;  %v16765_v50 = vld [vmem:[%s22959_s9 + $0x718] sm:$0xf] }
 0xec0   : > { %v10178_v30 = vpop.f32.mrf.mxu2 }
 0xec1   : > { %v10179_v25 = vadd.f32 %v18792_v24, %v10178_v30  ;;  %v16550_v24 = vor.u32 %v18530_v17, %v16549_v14  ;;  %11077 = vmatpush.bf16.msra.mxu1 %v16494_v62  ;;  %v16829_v14 = vld [vmem:[%s22959_s9 + $0x798] sm:$0xf]  ;;  %v18557_v62 = vld [vmem:[%s22959_s9 + $0x69c] sm:$0xf] }
 0xec2   : > { %v18597_v17 = vld [vmem:[%s22959_s9 + $0x7d4] sm:$0xf0]  ;;  %v16706_v57 = vor.u32 %v18557_v62, %v16703_v56  ;;  %v18477_v56 = vld [vmem:[%s22959_s9 + $0x41c] sm:$0xf] }
 0xec3   : > { %v21637_v33 = vadd.f32 %v10179_v25, %v21441_v22  ;;  %v16807_v22 = vld [vmem:[%s22959_s9 + $0x7c0] sm:$0xf0]  ;;  %v16562_v25 = vor.u32 %v18523_v21, %v16559_v48  ;;  %11048 = vmatpush.bf16.msra.mxu3 %v16550_v24  ;;  %v16830_v37 = vor.u32 %v18597_v17, %v16829_v14  ;;  %v16834_v21 = vor.u32 %v18589_v18, %v16831_v51  ;;  %v18572_v24 = vld [vmem:[%s22959_s9 + $0x714] sm:$0xf]  ;;  %v16511_v51 = vld [vmem:[%s22959_s9 + $0x558] sm:$0xf0] }
 0xec4   : > { %v16810_v46 = vor.u32 %v18586_v39, %v16807_v22  ;;  %v16758_v48 = vor.u32 %v18580_v20, %v16757_v19 }
 0xec5   : > { %10189 = vadd.xlane.f32.xlu2 %v21637_v33  ;;  %11090 = vmatpush.bf16.msra.mxu2 %v16562_v25  ;;  %v18581_v25 = vld [vmem:[%s22959_s9 + $0x754] sm:$0xf0] }
 0xec6   : > { %11058 = vmatpush.bf16.msra.mxu0 %v16810_v46  ;;  %v18514_v46 = vld [vmem:[%s22959_s9 + $0x53c] sm:$0xf0]  ;;  %11078 = vmatpush.bf16.msra.mxu1 %v16430_v41  ;;  %v18541_v41 = vld [vmem:[%s22959_s9 + $0x61c] sm:$0xf] }
 0xec7   : > { %v16642_v60 = vor.u32 %v18541_v41, %v16639_v58 }
 0xec9   : > { %11091 = vmatpush.bf16.msra.mxu2 %v16498_v43  ;;  %v16629_v43 = vld [vmem:[%s22959_s9 + $0x610] sm:$0xf] }
 0xeca   : > { %11059 = vmatpush.bf16.msra.mxu0 %v16746_v55  ;;  %v16421_v55 = vld [vmem:[%s22959_s9 + $0x480] sm:$0xf]  ;;  %11079 = vmatpush.bf16.msra.mxu1 %v16366_v9  ;;  %v18525_v9 = vld [vmem:[%s22959_s9 + $0x59c] sm:$0xf] }
 0xecb   : > { %v16422_v49 = vor.u32 %v18498_v32, %v16421_v55  ;;  %v18548_v55 = vld [vmem:[%s22959_s9 + $0x64c] sm:$0xf0]  ;;  %v18540_v32 = vld [vmem:[%s22959_s9 + $0x614] sm:$0xf]  ;;  %v16578_v7 = vor.u32 %v18525_v9, %v16575_v16  ;;  %v18794_v9 = vld [vmem:[%s22964_s14 + $0x1] ss:$0 sm:$0xff] }
 0xecc   : > { %v16630_v3 = vor.u32 %v18548_v55, %v16629_v43 }
 0xecd   : > { %11092 = vmatpush.bf16.msra.mxu2 %v16434_v28  ;;  %v16565_v28 = vld [vmem:[%s22959_s9 + $0x590] sm:$0xf] }
 0xece   : > { %11060 = vmatpush.bf16.msra.mxu0 %v16682_v1  ;;  %v16359_v1 = vld [vmem:[%s22959_s9 + $0x440] sm:$0xf0]  ;;  %11128 = vmatpush.bf16.msrb.mxu1 %v16830_v37  ;;  %v18509_v37 = vld [vmem:[%s22959_s9 + $0x51c] sm:$0xf] }
 0xecf   : > { %v16362_v6 = vor.u32 %v18474_v52, %v16359_v1  ;;  %v16566_v52 = vor.u32 %v18532_v61, %v16565_v28  ;;  %v16573_v1 = vld [vmem:[%s22959_s9 + $0x598] sm:$0xf]  ;;  %v16514_v20 = vor.u32 %v18509_v37, %v16511_v51 }
 0xed1   : > { %11093 = vmatpush.bf16.msra.mxu2 %v16370_v10  ;;  %v18516_v10 = vld [vmem:[%s22959_s9 + $0x54c] sm:$0xf0] }
 0xed2   : > { %11061 = vmatpush.bf16.msra.mxu0 %v16618_v5  ;;  %v16822_v5 = vor.u32 %v18596_v13, %v16821_v8  ;;  %v16501_v8 = vld [vmem:[%s22959_s9 + $0x510] sm:$0xf]  ;;  %v18508_v13 = vld [vmem:[%s22959_s9 + $0x514] sm:$0xf] }
 0xed3   : > { %v16502_v31 = vor.u32 %v18516_v10, %v16501_v8  ;;  %v16506_v17 = vor.u32 %v18508_v13, %v16503_v12  ;;  %v16837_v10 = vld [vmem:[%s22959_s9 + $0x7a0] sm:$0xf]  ;;  %v18590_v13 = vld [vmem:[%s22959_s9 + $0x7a4] sm:$0xf] }
 0xed5   : > { %11142 = vmatpush.bf16.msrb.mxu2 %v16834_v21  ;;  %v16437_v21 = vld [vmem:[%s22959_s9 + $0x490] sm:$0xf] }
 0xed6   : > { %11062 = vmatpush.bf16.msra.mxu0 %v16554_v27  ;;  %v16759_v27 = vld [vmem:[%s22959_s9 + $0x750] sm:$0xf0] }
 0xf30   : > { %v10188_v30 = vpop.xlane.xlu0 %10187 }
 0xf31   : > { %v10191_v35 = vmul.f32 %v10188_v30, %v20164_v42  ;;  %v16762_v30 = vor.u32 %v18572_v24, %v16759_v27  ;;  %v18492_v24 = vld [vmem:[%s22959_s9 + $0x494] sm:$0xf] }
 0xf33   : > { %v21762_v36 = vsub.f32 %v21633_v29, %v10191_v35  ;;  %v16485_v29 = vld [vmem:[%s22959_s9 + $0x500] sm:$0xf]  ;;  %v18573_v35 = vld [vmem:[%s22959_s9 + $0x71c] sm:$0xf] }
 0xf34   : > { %v16486_v26 = vor.u32 %v18514_v46, %v16485_v29  ;;  %v18564_v29 = vld [vmem:[%s22959_s9 + $0x6cc] sm:$0xf0]  ;;  %v18556_v46 = vld [vmem:[%s22959_s9 + $0x694] sm:$0xf] }
 0xf35   : > { %v10195_v39 = vmul.f32 %v21762_v36, %v21762_v36 }
 0xf36   : > { %11049 = vmatpush.bf16.msra.mxu3 %v16486_v26  ;;  %v16695_v26 = vld [vmem:[%s22959_s9 + $0x6d0] sm:$0xf0] }
 0xf37   : > { %10197 = vadd.xlane.f32.xlu1 %v10195_v39  ;;  %v16767_v39 = vld [vmem:[%s22959_s9 + $0x758] sm:$0xf0]  ;;  %v16698_v47 = vor.u32 %v18556_v46, %v16695_v26  ;;  %v16373_v46 = vld [vmem:[%s22959_s9 + $0x410] sm:$0xf]  ;;  %v18476_v26 = vld [vmem:[%s22959_s9 + $0x414] sm:$0xf] }
 0xf38   : > { %v10190_v38 = vpop.xlane.xlu2 %10189 }
 0xf39   : > { %v10192_v22 = vmul.f32 %v10190_v38, %v20164_v42  ;;  %v16766_v38 = vor.u32 %v18581_v25, %v16765_v50  ;;  %v16445_v25 = vld [vmem:[%s22959_s9 + $0x498] sm:$0xf] }
 0xf3a   : > { %11050 = vmatpush.bf16.msra.mxu3 %v16422_v49  ;;  %v16631_v49 = vld [vmem:[%s22959_s9 + $0x650] sm:$0xf0] }
 0xf3b   : > { %v21768_v40 = vsub.f32 %v21637_v33, %v10192_v22  ;;  %v16487_v33 = vld [vmem:[%s22959_s9 + $0x540] sm:$0xf0]  ;;  %v16770_v22 = vor.u32 %v18573_v35, %v16767_v39  ;;  %11129 = vmatpush.bf16.msrb.mxu1 %v16766_v38  ;;  %v16634_v11 = vor.u32 %v18540_v32, %v16631_v49  ;;  %v18501_v39 = vld [vmem:[%s22959_s9 + $0x4d4] sm:$0xf0]  ;;  %v18493_v38 = vld [vmem:[%s22959_s9 + $0x49c] sm:$0xf] }
 0xf3c   : > { %v16490_v45 = vor.u32 %v18506_v59, %v16487_v33  ;;  %v16701_v33 = vld [vmem:[%s22959_s9 + $0x698] sm:$0xf] }
 0xf3d   : > { %v10196_v34 = vmul.f32 %v21768_v40, %v21768_v40  ;;  %11143 = vmatpush.bf16.msrb.mxu2 %v16770_v22  ;;  %v16447_v22 = vld [vmem:[%s22959_s9 + $0x4d8] sm:$0xf0] }
 0xf3e   : > { %11063 = vmatpush.bf16.msra.mxu0 %v16490_v45  ;;  %11051 = vmatpush.bf16.msra.mxu3 %v16358_v0  ;;  %v16702_v45 = vor.u32 %v18565_v23, %v16701_v33  ;;  %v16567_v0 = vld [vmem:[%s22959_s9 + $0x5d0] sm:$0xf0]  ;;  %v16381_v23 = vld [vmem:[%s22959_s9 + $0x418] sm:$0xf] }
 0xf3f   : > { %10199 = vadd.xlane.f32.xlu0 %v10196_v34  ;;  %v16693_v34 = vld [vmem:[%s22959_s9 + $0x690] sm:$0xf]  ;;  %v16570_v4 = vor.u32 %v18524_v63, %v16567_v0  ;;  %v16375_v33 = vld [vmem:[%s22959_s9 + $0x450] sm:$0xf0] }
 0xf40   : > { %v16694_v59 = vor.u32 %v18564_v29, %v16693_v34  ;;  %11130 = vmatpush.bf16.msrb.mxu1 %v16702_v45  ;;  %v16446_v34 = vor.u32 %v18501_v39, %v16445_v25  ;;  %v16450_v29 = vor.u32 %v18493_v38, %v16447_v22  ;;  %v16378_v62 = vor.u32 %v18476_v26, %v16375_v33  ;;  %v18575_v25 = vld [vmem:[%s22959_s9 + $0x72c] sm:$0xf]  ;;  %v16709_v22 = vld [vmem:[%s22959_s9 + $0x6a0] sm:$0xf]  ;;  %v16711_v26 = vld [vmem:[%s22959_s9 + $0x6e0] sm:$0xf0] }
 0xf41   : > { %11144 = vmatpush.bf16.msrb.mxu2 %v16706_v57  ;;  %v16383_v57 = vld [vmem:[%s22959_s9 + $0x458] sm:$0xf0]  ;;  %v16717_v33 = vld [vmem:[%s22959_s9 + $0x6a8] sm:$0xf] }
 0xf42   : > { %11064 = vmatpush.bf16.msra.mxu0 %v16426_v54  ;;  %11100 = vmatpush.bf16.msrb.mxu3 %v16822_v5  ;;  %v16638_v54 = vor.u32 %v18549_v53, %v16637_v44  ;;  %v16509_v5 = vld [vmem:[%s22959_s9 + $0x518] sm:$0xf] }
 0xf44   : > { %11131 = vmatpush.bf16.msrb.mxu1 %v16638_v54 }
 0xf45   : > { %11145 = vmatpush.bf16.msrb.mxu2 %v16642_v60 }
 0xf46   : > { %11065 = vmatpush.bf16.msra.mxu0 %v16362_v6  ;;  %11101 = vmatpush.bf16.msrb.mxu3 %v16758_v48  ;;  %v16574_v6 = vor.u32 %v18533_v2, %v16573_v1  ;;  %v18500_v48 = vld [vmem:[%s22959_s9 + $0x4cc] sm:$0xf0]  ;;  %v18793_v1 = vld [vmem:[%s22963_s13 + $0x1] ss:$0 sm:$0xff] }
 0xf47   : > { %v16438_v50 = vor.u32 %v18500_v48, %v16437_v21 }
 0xf48   : > { %11132 = vmatpush.bf16.msrb.mxu1 %v16574_v6 }
 0xf49   : > { %11146 = vmatpush.bf16.msrb.mxu2 %v16578_v7 }
 0xf4a   : > { %11114 = vmatpush.bf16.msrb.mxu0 %v16826_v15  ;;  %11102 = vmatpush.bf16.msrb.mxu3 %v16694_v59  ;;  %v18517_v15 = vld [vmem:[%s22959_s9 + $0x554] sm:$0xf0]  ;;  %v18484_v59 = vld [vmem:[%s22959_s9 + $0x44c] sm:$0xf0] }
 0xf4b   : > { %v16510_v18 = vor.u32 %v18517_v15, %v16509_v5  ;;  %v16374_v45 = vor.u32 %v18484_v59, %v16373_v46  ;;  %v18599_v15 = vld [vmem:[%s22959_s9 + $0x7e4] sm:$0xf0]  ;;  %v18558_v59 = vld [vmem:[%s22959_s9 + $0x6a4] sm:$0xf] }
 0xf4d   : > { %11133 = vmatpush.bf16.msrb.mxu1 %v16510_v18  ;;  %11147 = vmatpush.bf16.msrb.mxu2 %v16514_v20  ;;  %v18582_v20 = vld [vmem:[%s22959_s9 + $0x75c] sm:$0xf0] }
 0xf4e   : > { %11115 = vmatpush.bf16.msrb.mxu0 %v16762_v30  ;;  %11103 = vmatpush.bf16.msrb.mxu3 %v16630_v3  ;;  %v16439_v30 = vld [vmem:[%s22959_s9 + $0x4d0] sm:$0xf0]  ;;  %v16386_v3 = vor.u32 %v18477_v56, %v16383_v57  ;;  %v16714_v56 = vor.u32 %v18558_v59, %v16711_v26  ;;  %v16645_v57 = vld [vmem:[%s22959_s9 + $0x620] sm:$0xf] }
 0xf4f   : > { %v16442_v35 = vor.u32 %v18492_v24, %v16439_v30  ;;  %v18574_v24 = vld [vmem:[%s22959_s9 + $0x724] sm:$0xf]  ;;  %v18583_v30 = vld [vmem:[%s22959_s9 + $0x764] sm:$0xf0] }
 0xf51   : > { %11134 = vmatpush.bf16.msrb.mxu1 %v16446_v34  ;;  %11148 = vmatpush.bf16.msrb.mxu2 %v16450_v29  ;;  %v18566_v34 = vld [vmem:[%s22959_s9 + $0x6dc] sm:$0xf0] }
 0xf52   : > { %11116 = vmatpush.bf16.msrb.mxu0 %v16698_v47  ;;  %11104 = vmatpush.bf16.msrb.mxu3 %v16566_v52  ;;  %v18485_v47 = vld [vmem:[%s22959_s9 + $0x454] sm:$0xf0] }
 0xf53   : > { %v16382_v55 = vor.u32 %v18485_v47, %v16381_v23  ;;  %v18567_v23 = vld [vmem:[%s22959_s9 + $0x6e4] sm:$0xf0]  ;;  %v18559_v47 = vld [vmem:[%s22959_s9 + $0x6ac] sm:$0xf] }
 0xf55   : > { %11135 = vmatpush.bf16.msrb.mxu1 %v16382_v55  ;;  %11149 = vmatpush.bf16.msrb.mxu2 %v16386_v3  ;;  %v16718_v55 = vor.u32 %v18567_v23, %v16717_v33  ;;  %v18542_v3 = vld [vmem:[%s22959_s9 + $0x624] sm:$0xf]  ;;  %v16397_v33 = vld [vmem:[%s22959_s9 + $0x428] sm:$0xf] }
 0xf56   : > { %11117 = vmatpush.bf16.msrb.mxu0 %v16634_v11  ;;  %11105 = vmatpush.bf16.msrb.mxu3 %v16502_v31  ;;  %v16839_v31 = vld [vmem:[%s22959_s9 + $0x7e0] sm:$0xf0]  ;;  %v18487_v23 = vld [vmem:[%s22959_s9 + $0x464] sm:$0xf0] }
 0xf57   : > { %v16842_v51 = vor.u32 %v18590_v13, %v16839_v31  ;;  %v18510_v13 = vld [vmem:[%s22959_s9 + $0x524] sm:$0xf] }
 0xf58   : > { %v16519_v31 = vld [vmem:[%s22959_s9 + $0x560] sm:$0xf0] }
 0xf5a   : > { %11118 = vmatpush.bf16.msrb.mxu0 %v16570_v4  ;;  %11106 = vmatpush.bf16.msrb.mxu3 %v16438_v50  ;;  %v16781_v50 = vld [vmem:[%s22959_s9 + $0x728] sm:$0xf] }
 0xf5b   : > { %v16782_v29 = vor.u32 %v18583_v30, %v16781_v50  ;;  %v16461_v50 = vld [vmem:[%s22959_s9 + $0x4a8] sm:$0xf] }
 0xf5c   : > { %v18503_v30 = vld [vmem:[%s22959_s9 + $0x4e4] sm:$0xf0] }
 0xf5d   : > { %v16462_v59 = vor.u32 %v18503_v30, %v16461_v50  ;;  %v16669_v50 = vld [vmem:[%s22959_s9 + $0x638] sm:$0xf] }
 0xf5e   : > { %11119 = vmatpush.bf16.msrb.mxu0 %v16506_v17  ;;  %11107 = vmatpush.bf16.msrb.mxu3 %v16374_v45  ;;  %v16847_v17 = vld [vmem:[%s22959_s9 + $0x7e8] sm:$0xf0]  ;;  %v18553_v30 = vld [vmem:[%s22959_s9 + $0x674] sm:$0xf0] }
 0xf5f   : > { %v16719_v45 = vld [vmem:[%s22959_s9 + $0x6e8] sm:$0xf0] }
 0xf62   : > { %11120 = vmatpush.bf16.msrb.mxu0 %v16442_v35  ;;  %v16783_v35 = vld [vmem:[%s22959_s9 + $0x768] sm:$0xf0] }
 0xf63   : > { %v16786_v46 = vor.u32 %v18575_v25, %v16783_v35  ;;  %v18495_v25 = vld [vmem:[%s22959_s9 + $0x4ac] sm:$0xf] }
 0xf64   : > { %v16463_v35 = vld [vmem:[%s22959_s9 + $0x4e8] sm:$0xf0] }
 0xf65   : > { %v16466_v26 = vor.u32 %v18495_v25, %v16463_v35  ;;  %v18545_v25 = vld [vmem:[%s22959_s9 + $0x63c] sm:$0xf] }
 0xf66   : > { %11121 = vmatpush.bf16.msrb.mxu0 %v16378_v62  ;;  %v16710_v62 = vor.u32 %v18566_v34, %v16709_v22  ;;  %v18486_v34 = vld [vmem:[%s22959_s9 + $0x45c] sm:$0xf0]  ;;  %v16671_v35 = vld [vmem:[%s22959_s9 + $0x678] sm:$0xf0] }
 0xfaa   : > { %v10198_v14 = vpop.xlane.xlu1 %10197 }
 0xfab   : > { %v10201_v19 = vmul.f32 %v10198_v14, %v20164_v42  ;;  %v18591_v14 = vld [vmem:[%s22959_s9 + $0x7ac] sm:$0xf] }
 0xfac   : > { %v16850_v48 = vor.u32 %v18591_v14, %v16847_v17  ;;  %v18511_v14 = vld [vmem:[%s22959_s9 + $0x52c] sm:$0xf] }
 0xfad   : > { %v10203_v27 = vadd.f32 1e-05, %v10201_v19  ;;  %v16773_v19 = vld [vmem:[%s22959_s9 + $0x720] sm:$0xf]  ;;  %v16527_v17 = vld [vmem:[%s22959_s9 + $0x568] sm:$0xf0] }
 0xfae   : > { %v16774_v39 = vor.u32 %v18582_v20, %v16773_v19  ;;  %v16453_v19 = vld [vmem:[%s22959_s9 + $0x4a0] sm:$0xf] }
 0xfaf   : > { %18873 = vrsqrt.f32 %v10203_v27  ;;  %vm10211_vm2 = vweird.f32 %v10203_v27  ;;  %v18502_v20 = vld [vmem:[%s22959_s9 + $0x4dc] sm:$0xf0] }
 0xfb2   : > { %v10200_v43 = vpop.xlane.xlu0 %10199 }
 0xfb3   : > { %v10202_v32 = vmul.f32 %v10200_v43, %v20164_v42  ;;  %v18550_v43 = vld [vmem:[%s22959_s9 + $0x65c] sm:$0xf0] }
 0xfb5   : > { %v18874_v49 = vpop.eup %18873  ;;  %v10204_v44 = vadd.f32 1e-05, %v10202_v32  ;;  %v16722_v32 = vor.u32 %v18559_v47, %v16719_v45  ;;  %v18479_v47 = vld [vmem:[%s22959_s9 + $0x42c] sm:$0xf] }
 0xfb6   : > { %v10206_v53 = vmul.f32 %v18874_v49, %v10203_v27  ;;  %vm10212_vm1 = vweird.f32 %v18874_v49  ;;  %v16775_v27 = vld [vmem:[%s22959_s9 + $0x760] sm:$0xf0]  ;;  %v16399_v45 = vld [vmem:[%s22959_s9 + $0x468] sm:$0xf0] }
 0xfb7   : > { %18875 = vrsqrt.f32 %v10204_v44  ;;  %vm10213_vm7 = vmor %vm10211_vm2, %vm10212_vm1  ;;  %vm10221_vm9 = vweird.f32 %v10204_v44  ;;  %v16778_v38 = vor.u32 %v18574_v24, %v16775_v27  ;;  %v18494_v24 = vld [vmem:[%s22959_s9 + $0x4a4] sm:$0xf] }
 0xfb8   : > { %v10207_v11 = vmul.f32 %v18874_v49, %v10206_v53  ;;  %v18551_v53 = vld [vmem:[%s22959_s9 + $0x664] sm:$0xf0]  ;;  %v16455_v27 = vld [vmem:[%s22959_s9 + $0x4e0] sm:$0xf0] }
 0xfb9   : > { %v16458_v22 = vor.u32 %v18494_v24, %v16455_v27  ;;  %v18544_v24 = vld [vmem:[%s22959_s9 + $0x634] sm:$0xf] }
 0xfba   : > { %v10208_v54 = vmul.f32 0.5, %v10207_v11  ;;  %v18543_v11 = vld [vmem:[%s22959_s9 + $0x62c] sm:$0xf]  ;;  %v16663_v27 = vld [vmem:[%s22959_s9 + $0x670] sm:$0xf0] }
 0xfbc   : > { %v10209_v41 = vsub.f32 1.5, %v10208_v54  ;;  %v16655_v54 = vld [vmem:[%s22959_s9 + $0x668] sm:$0xf0] }
 0xfbd   : > { %v18876_v58 = vpop.eup %18875 }
 0xfbe   : > { %v10210_v60 = vmul.f32 %v18874_v49, %v10209_v41  ;;  %v10216_v28 = vmul.f32 %v18876_v58, %v10204_v44  ;;  %vm10222_vm8 = vweird.f32 %v18876_v58  ;;  %v16653_v44 = vld [vmem:[%s22959_s9 + $0x628] sm:$0xf]  ;;  %v16646_v41 = vor.u32 %v18550_v43, %v16645_v57  ;;  %v18592_v57 = vld [vmem:[%s22959_s9 + $0x7b4] sm:$0xf] }
 0xfbf   : > { %vm10223_vm11 = vmor %vm10221_vm9, %vm10222_vm8  ;;  %v16855_v43 = vld [vmem:[%s22959_s9 + $0x7f0] sm:$0xf0] }
 0xfc0   : > { %v10217_v61 = vmul.f32 %v18876_v58, %v10216_v28  ;;  %v10214_v63 = vsel %vm10213_vm7, %v18874_v49, %v10210_v60  ;;  %v16647_v49 = vld [vmem:[%s22959_s9 + $0x660] sm:$0xf0]  ;;  %v16581_v60 = vld [vmem:[%s22959_s9 + $0x5a0] sm:$0xf]  ;;  %vm12722_vm7 = vcmask 25600  }
 0xfc1   : > { %v10225_v2 = vmul.f32 %v10214_v63, %v21762_v36  ;;  %v18598_v36 = vld [vmem:[%s22959_s9 + $0x7dc] sm:$0xf0]  ;;  %v16658_v63 = vor.u32 %v18543_v11, %v16655_v54  ;;  %v16398_v11 = vor.u32 %v18487_v23, %v16397_v33  ;;  %v16402_v54 = vor.u32 %v18479_v47, %v16399_v45  ;;  %v16605_v33 = vld [vmem:[%s22959_s9 + $0x5b8] sm:$0xf]  ;;  %v18529_v47 = vld [vmem:[%s22959_s9 + $0x5bc] sm:$0xf] }
 0xfc2   : > { %v10218_v52 = vmul.f32 0.5, %v10217_v61  ;;  %v16838_v37 = vor.u32 %v18598_v36, %v16837_v10  ;;  %v18534_v28 = vld [vmem:[%s22959_s9 + $0x5dc] sm:$0xf0]  ;;  %v16654_v61 = vor.u32 %v18551_v53, %v16653_v44  ;;  %v18593_v44 = vld [vmem:[%s22959_s9 + $0x7bc] sm:$0xf] }
 0xfc3   : > { %v10230_v16 = vmul.f32 %v18793_v1, %v10225_v2  ;;  %v18535_v2 = vld [vmem:[%s22959_s9 + $0x5e4] sm:$0xf0]  ;;  %v16863_v53 = vld [vmem:[%s22959_s9 + $0x7f8] sm:$0xf0]  ;;  %v18537_v23 = vld [vmem:[%s22959_s9 + $0x5f4] sm:$0xf0] }
 0xfc4   : > { %v10219_v0 = vsub.f32 1.5, %v10218_v52  ;;  %v18526_v52 = vld [vmem:[%s22959_s9 + $0x5a4] sm:$0xf]  ;;  %v16607_v45 = vld [vmem:[%s22959_s9 + $0x5f8] sm:$0xf0] }
 0xfc5   : > { %v22061_v12 = vadd.f32 %v18794_v9, %v10230_v16 }
 0xfc6   : > { %v10220_v4 = vmul.f32 %v18876_v58, %v10219_v0  ;;  %v16583_v0 = vld [vmem:[%s22959_s9 + $0x5e0] sm:$0xf0] }
 0xfc7   : > { %v16586_v16 = vor.u32 %v18526_v52, %v16583_v0  ;;  %v18576_v52 = vld [vmem:[%s22959_s9 + $0x734] sm:$0xf] }
 0xfc8   : > { %v10224_v6 = vsel %vm10223_vm11, %v18876_v58, %v10220_v4  ;;  %v16650_v58 = vor.u32 %v18542_v3, %v16647_v49  ;;  %v18527_v4 = vld [vmem:[%s22959_s9 + $0x5ac] sm:$0xf]  ;;  %v18601_v49 = vld [vmem:[%s22959_s9 + $0x7f4] sm:$0xf0]  ;;  %v16791_v0 = vld [vmem:[%s22959_s9 + $0x770] sm:$0xf0] }
 0xfc9   : > { %v10226_v7 = vmul.f32 %v10224_v6, %v21768_v40  ;;  %v16845_v40 = vld [vmem:[%s22959_s9 + $0x7a8] sm:$0xf]  ;;  %v16591_v6 = vld [vmem:[%s22959_s9 + $0x5e8] sm:$0xf0] }
 0xfca   : > { %v16846_v21 = vor.u32 %v18599_v15, %v16845_v40  ;;  %v16594_v36 = vor.u32 %v18527_v4, %v16591_v6  ;;  %v16525_v40 = vld [vmem:[%s22959_s9 + $0x528] sm:$0xf]  ;;  %v18577_v4 = vld [vmem:[%s22959_s9 + $0x73c] sm:$0xf] }
 0xfcb   : > { %v10231_v8 = vmul.f32 %v18793_v1, %v10226_v7  ;;  %v16589_v1 = vld [vmem:[%s22959_s9 + $0x5a8] sm:$0xf]  ;;  %v16517_v7 = vld [vmem:[%s22959_s9 + $0x520] sm:$0xf]  ;;  %v16799_v6 = vld [vmem:[%s22959_s9 + $0x778] sm:$0xf0] }
 0xfcc   : > { %v16590_v10 = vor.u32 %v18535_v2, %v16589_v1  ;;  %v18519_v15 = vld [vmem:[%s22959_s9 + $0x564] sm:$0xf0]  ;;  %v16797_v1 = vld [vmem:[%s22959_s9 + $0x738] sm:$0xf] }
 0xfcd   : > { %v22063_v5 = vadd.f32 %v18794_v9, %v10231_v8  ;;  %v16582_v9 = vor.u32 %v18534_v28, %v16581_v60  ;;  %v18518_v8 = vld [vmem:[%s22959_s9 + $0x55c] sm:$0xf0]  ;;  %v16789_v60 = vld [vmem:[%s22959_s9 + $0x730] sm:$0xf]  ;;  %v18585_v2 = vld [vmem:[%s22959_s9 + $0x774] sm:$0xf0] }
 0xfce   : > { %v18584_v28 = vld [vmem:[%s22959_s9 + $0x76c] sm:$0xf0] }
 0xfcf   : > { %v22076_v18 = vpack.c.bf16 %v22063_v5, %v22061_v12 }
 0xfd1   : > { %11052 = vmatmul.bf16.vlgmr.msra.gmra.mxu3 %v22076_v18  ;;  %11066 = vmatmul.bf16.vlgmr.msra.gmra.mxu0 %v22076_v18 }
 0xfd2   : > { %11080 = vmatmul.bf16.vlgmr.msra.gmra.mxu1 %v22076_v18  ;;  %11094 = vmatmul.bf16.vlgmr.msra.gmra.mxu2 %v22076_v18 }
 0xfd3   : > { %11156 = vmatpush.bf16.msra.mxu3 %v16838_v37  ;;  %11170 = vmatpush.bf16.msra.mxu0 %v16842_v51  ;;  %v16518_v37 = vor.u32 %v18518_v8, %v16517_v7  ;;  %v16522_v51 = vor.u32 %v18510_v13, %v16519_v31  ;;  %v16725_v7 = vld [vmem:[%s22959_s9 + $0x6b0] sm:$0xf]  ;;  %v18560_v13 = vld [vmem:[%s22959_s9 + $0x6b4] sm:$0xf] }
 0xfd4   : > { %11184 = vmatpush.bf16.msra.mxu1 %v16846_v21  ;;  %11198 = vmatpush.bf16.msra.mxu2 %v16850_v48  ;;  %v16526_v21 = vor.u32 %v18519_v15, %v16525_v40  ;;  %v16530_v48 = vor.u32 %v18511_v14, %v16527_v17  ;;  %v18568_v8 = vld [vmem:[%s22959_s9 + $0x6ec] sm:$0xf0]  ;;  %v16727_v31 = vld [vmem:[%s22959_s9 + $0x6f0] sm:$0xf0]  ;;  %v16733_v40 = vld [vmem:[%s22959_s9 + $0x6b8] sm:$0xf] }
 0xfd5   : > { %v18569_v15 = vld [vmem:[%s22959_s9 + $0x6f4] sm:$0xf0]  ;;  %v18561_v14 = vld [vmem:[%s22959_s9 + $0x6bc] sm:$0xf] }
 0xfd6   : > { %v16735_v17 = vld [vmem:[%s22959_s9 + $0x6f8] sm:$0xf0] }
 0xfd7   : > { %11157 = vmatpush.bf16.msra.mxu3 %v16774_v39  ;;  %11171 = vmatpush.bf16.msra.mxu0 %v16778_v38  ;;  %v16389_v39 = vld [vmem:[%s22959_s9 + $0x420] sm:$0xf]  ;;  %v16454_v38 = vor.u32 %v18502_v20, %v16453_v19  ;;  %v16661_v19 = vld [vmem:[%s22959_s9 + $0x630] sm:$0xf] }
 0xfd8   : > { %11185 = vmatpush.bf16.msra.mxu1 %v16782_v29  ;;  %11199 = vmatpush.bf16.msra.mxu2 %v16786_v46  ;;  %v18478_v29 = vld [vmem:[%s22959_s9 + $0x424] sm:$0xf]  ;;  %v18552_v20 = vld [vmem:[%s22959_s9 + $0x66c] sm:$0xf0] }
 0xfd9   : > { %v16391_v46 = vld [vmem:[%s22959_s9 + $0x460] sm:$0xf0] }
 0xfda   : > { %v16394_v3 = vor.u32 %v18478_v29, %v16391_v46  ;;  %v16670_v29 = vor.u32 %v18553_v30, %v16669_v50  ;;  %v16674_v46 = vor.u32 %v18545_v25, %v16671_v35  ;;  %v18616_v50 = vld [vmem:[%s22961_s11 + $0x470] sm:$0xff] }
 0xfdb   : > { %11158 = vmatpush.bf16.msra.mxu3 %v16710_v62  ;;  %11172 = vmatpush.bf16.msra.mxu0 %v16714_v56  ;;  %v16853_v62 = vld [vmem:[%s22959_s9 + $0x7b0] sm:$0xf] }
 0xfdc   : > { %11186 = vmatpush.bf16.msra.mxu1 %v16718_v55  ;;  %11200 = vmatpush.bf16.msra.mxu2 %v16722_v32  ;;  %v18600_v56 = vld [vmem:[%s22959_s9 + $0x7ec] sm:$0xf0]  ;;  %v16861_v55 = vld [vmem:[%s22959_s9 + $0x7b8] sm:$0xf]  ;;  %v16390_v32 = vor.u32 %v18486_v34, %v16389_v39  ;;  %v16662_v39 = vor.u32 %v18552_v20, %v16661_v19 }
 0xfdd   : > { %v18536_v34 = vld [vmem:[%s22959_s9 + $0x5ec] sm:$0xf0] }
 0xfde   : > { %v18624_v30 = vld [vmem:[%s22961_s11 + $0x4b0] sm:$0xff] }
 0xfdf   : > { %11159 = vmatpush.bf16.msra.mxu3 %v16646_v41  ;;  %11173 = vmatpush.bf16.msra.mxu0 %v16650_v58  ;;  %v16854_v41 = vor.u32 %v18600_v56, %v16853_v62  ;;  %v16858_v58 = vor.u32 %v18592_v57, %v16855_v43  ;;  %v16533_v57 = vld [vmem:[%s22959_s9 + $0x530] sm:$0xf] }
 0xfe0   : > { %11187 = vmatpush.bf16.msra.mxu1 %v16654_v61  ;;  %11201 = vmatpush.bf16.msra.mxu2 %v16658_v63  ;;  %v16862_v61 = vor.u32 %v18601_v49, %v16861_v55  ;;  %v16866_v63 = vor.u32 %v18593_v44, %v16863_v53  ;;  %v18520_v43 = vld [vmem:[%s22959_s9 + $0x56c] sm:$0xf0]  ;;  %v16606_v55 = vor.u32 %v18537_v23, %v16605_v33  ;;  %v16535_v49 = vld [vmem:[%s22959_s9 + $0x570] sm:$0xf0]  ;;  %v16541_v44 = vld [vmem:[%s22959_s9 + $0x538] sm:$0xf] }
 0xfe1   : > { %11108 = vmatmul.bf16.vlgmr.msrb.gmra.mxu3 %v22076_v18  ;;  %11122 = vmatmul.bf16.vlgmr.msrb.gmra.mxu0 %v22076_v18  ;;  %v18521_v53 = vld [vmem:[%s22959_s9 + $0x574] sm:$0xf0]  ;;  %v18608_v25 = vld [vmem:[%s22961_s11 + $0x430] sm:$0xff] }
 0xfe2   : > { %11136 = vmatmul.bf16.vlgmr.msrb.gmra.mxu1 %v22076_v18  ;;  %11150 = vmatmul.bf16.vlgmr.msrb.gmra.mxu2 %v22076_v18  ;;  %v18632_v35 = vld [vmem:[%s22961_s11 + $0x4f0] sm:$0xff]  ;;  %v18621_v33 = vld [vmem:[%s22961_s11 + $0x498] sm:$0xff] }
 0xfe3   : > { %11160 = vmatpush.bf16.msra.mxu3 %v16582_v9  ;;  %11174 = vmatpush.bf16.msra.mxu0 %v16586_v16  ;;  %v16790_v9 = vor.u32 %v18584_v28, %v16789_v60  ;;  %v16794_v16 = vor.u32 %v18576_v52, %v16791_v0  ;;  %v16469_v60 = vld [vmem:[%s22959_s9 + $0x4b0] sm:$0xf]  ;;  %v18496_v52 = vld [vmem:[%s22959_s9 + $0x4b4] sm:$0xf]  ;;  %v18605_v23 = vld [vmem:[%s22961_s11 + $0x418] sm:$0xff] }
 0xfe4   : > { %11188 = vmatpush.bf16.msra.mxu1 %v16590_v10  ;;  %11202 = vmatpush.bf16.msra.mxu2 %v16594_v36  ;;  %v16798_v10 = vor.u32 %v18585_v2, %v16797_v1  ;;  %v16802_v36 = vor.u32 %v18577_v4, %v16799_v6  ;;  %v18504_v28 = vld [vmem:[%s22959_s9 + $0x4ec] sm:$0xf0]  ;;  %v16471_v0 = vld [vmem:[%s22959_s9 + $0x4f0] sm:$0xf0]  ;;  %v16477_v1 = vld [vmem:[%s22959_s9 + $0x4b8] sm:$0xf] }
 0xfe5   : > { %v18505_v2 = vld [vmem:[%s22959_s9 + $0x4f4] sm:$0xf0]  ;;  %v18497_v4 = vld [vmem:[%s22959_s9 + $0x4bc] sm:$0xf] }
 0xfe6   : > { %v16479_v6 = vld [vmem:[%s22959_s9 + $0x4f8] sm:$0xf0] }
 0xfe7   : > { %11161 = vmatpush.bf16.msra.mxu3 %v16518_v37  ;;  %11175 = vmatpush.bf16.msra.mxu0 %v16522_v51  ;;  %v16726_v37 = vor.u32 %v18568_v8, %v16725_v7  ;;  %v16730_v51 = vor.u32 %v18560_v13, %v16727_v31  ;;  %v16405_v7 = vld [vmem:[%s22959_s9 + $0x430] sm:$0xf]  ;;  %v18480_v13 = vld [vmem:[%s22959_s9 + $0x434] sm:$0xf] }
 0xfe8   : > { %11189 = vmatpush.bf16.msra.mxu1 %v16526_v21  ;;  %11203 = vmatpush.bf16.msra.mxu2 %v16530_v48  ;;  %v16734_v21 = vor.u32 %v18569_v15, %v16733_v40  ;;  %v16738_v48 = vor.u32 %v18561_v14, %v16735_v17  ;;  %v18488_v8 = vld [vmem:[%s22959_s9 + $0x46c] sm:$0xf0]  ;;  %v16407_v31 = vld [vmem:[%s22959_s9 + $0x470] sm:$0xf0]  ;;  %v16413_v40 = vld [vmem:[%s22959_s9 + $0x438] sm:$0xf] }
 0xfe9   : > { %v18489_v15 = vld [vmem:[%s22959_s9 + $0x474] sm:$0xf0]  ;;  %v18481_v14 = vld [vmem:[%s22959_s9 + $0x43c] sm:$0xf] }
 0xfea   : > { %v16415_v17 = vld [vmem:[%s22959_s9 + $0x478] sm:$0xf0]  ;;  %v16414_v19 = vor.u32 %v18489_v15, %v16413_v40  ;;  %v18652_v40 = vld [vmem:[%s22961_s11 + $0x590] sm:$0xff] }
 0xfeb   : > { %11162 = vmatpush.bf16.msra.mxu3 %v16454_v38  ;;  %11176 = vmatpush.bf16.msra.mxu0 %v16458_v22  ;;  %v16666_v38 = vor.u32 %v18544_v24, %v16663_v27  ;;  %v16597_v22 = vld [vmem:[%s22959_s9 + $0x5b0] sm:$0xf]  ;;  %v16418_v20 = vor.u32 %v18481_v14, %v16415_v17  ;;  %v18609_v24 = vld [vmem:[%s22961_s11 + $0x438] sm:$0xff]  ;;  %v18643_v17 = vld [vmem:[%s22961_s11 + $0x548] sm:$0xff] }
 0xfec   : > { %11190 = vmatpush.bf16.msra.mxu1 %v16462_v59  ;;  %11204 = vmatpush.bf16.msra.mxu2 %v16466_v26  ;;  %v18528_v59 = vld [vmem:[%s22959_s9 + $0x5b4] sm:$0xf]  ;;  %v16598_v62 = vor.u32 %v18536_v34, %v16597_v22  ;;  %v18633_v27 = vld [vmem:[%s22961_s11 + $0x4f8] sm:$0xff]  ;;  %v18631_v22 = vld [vmem:[%s22961_s11 + $0x4e8] sm:$0xff] }
 0xfed   : > { %v16599_v26 = vld [vmem:[%s22959_s9 + $0x5f0] sm:$0xf0]  ;;  %v18614_v34 = vld [vmem:[%s22961_s11 + $0x460] sm:$0xff] }
 0xfee   : > { %v16602_v56 = vor.u32 %v18528_v59, %v16599_v26  ;;  %v18630_v59 = vld [vmem:[%s22961_s11 + $0x4e0] sm:$0xff]  ;;  %v18613_v26 = vld [vmem:[%s22961_s11 + $0x458] sm:$0xff]  ;;  %v18636_v15 = vld [vmem:[%s22961_s11 + $0x510] sm:$0xff] }
 0xfef   : > { %11163 = vmatpush.bf16.msra.mxu3 %v16390_v32  ;;  %11177 = vmatpush.bf16.msra.mxu0 %v16394_v3  ;;  %v16610_v32 = vor.u32 %v18529_v47, %v16607_v45  ;;  %v18512_v3 = vld [vmem:[%s22959_s9 + $0x534] sm:$0xf]  ;;  %v18629_v47 = vld [vmem:[%s22961_s11 + $0x4d8] sm:$0xff] }
 0xff0   : > { %11191 = vmatpush.bf16.msra.mxu1 %v16398_v11  ;;  %11205 = vmatpush.bf16.msra.mxu2 %v16402_v54  ;;  %v18513_v11 = vld [vmem:[%s22959_s9 + $0x53c] sm:$0xf]  ;;  %v18612_v45 = vld [vmem:[%s22961_s11 + $0x450] sm:$0xff] }
 0xff1   : > { %v16543_v54 = vld [vmem:[%s22959_s9 + $0x578] sm:$0xf0]  ;;  %v18660_v14 = vld [vmem:[%s22961_s11 + $0x5d0] sm:$0xff] }
 0xff2   : > { %11164 = vmatmul.bf16.vlgmr.msra.gmra.mxu3 %v22076_v18  ;;  %11178 = vmatmul.bf16.vlgmr.msra.gmra.mxu0 %v22076_v18 }
 0xff3   : > { %11212 = vmatpush.bf16.msrb.mxu3 %v16854_v41  ;;  %11226 = vmatpush.bf16.msrb.mxu0 %v16858_v58  ;;  %v16534_v41 = vor.u32 %v18520_v43, %v16533_v57  ;;  %v16538_v58 = vor.u32 %v18512_v3, %v16535_v49  ;;  %v18628_v57 = vld [vmem:[%s22961_s11 + $0x4d0] sm:$0xff]  ;;  %v18611_v43 = vld [vmem:[%s22961_s11 + $0x448] sm:$0xff]  ;;  %v18610_v49 = vld [vmem:[%s22961_s11 + $0x440] sm:$0xff] }
 0xff4   : > { %11240 = vmatpush.bf16.msrb.mxu1 %v16862_v61  ;;  %11254 = vmatpush.bf16.msrb.mxu2 %v16866_v63  ;;  %v16542_v61 = vor.u32 %v18521_v53, %v16541_v44  ;;  %v16546_v63 = vor.u32 %v18513_v11, %v16543_v54  ;;  %v18627_v3 = vld [vmem:[%s22961_s11 + $0x4c8] sm:$0xff]  ;;  %v18618_v44 = vld [vmem:[%s22961_s11 + $0x480] sm:$0xff]  ;;  %v18649_v53 = vld [vmem:[%s22961_s11 + $0x578] sm:$0xff] }
 0xff5   : > { %11192 = vmatmul.bf16.vlgmr.msra.gmra.mxu1 %v22076_v18  ;;  %11206 = vmatmul.bf16.vlgmr.msra.gmra.mxu2 %v22076_v18  ;;  %v18657_v11 = vld [vmem:[%s22961_s11 + $0x5b8] sm:$0xff]  ;;  %v18602_v54 = vld [vmem:[%s22961_s11 + $0x400] sm:$0xff] }
 0xff7   : > { %11213 = vmatpush.bf16.msrb.mxu3 %v16790_v9  ;;  %11227 = vmatpush.bf16.msrb.mxu0 %v16794_v16  ;;  %v16470_v9 = vor.u32 %v18504_v28, %v16469_v60  ;;  %v16474_v16 = vor.u32 %v18496_v52, %v16471_v0  ;;  %v18665_v60 = vld [vmem:[%s22961_s11 + $0x5f8] sm:$0xff]  ;;  %v18648_v28 = vld [vmem:[%s22961_s11 + $0x570] sm:$0xff]  ;;  %v18647_v0 = vld [vmem:[%s22961_s11 + $0x568] sm:$0xff] }
 0xff8   : > { %11241 = vmatpush.bf16.msrb.mxu1 %v16798_v10  ;;  %11255 = vmatpush.bf16.msrb.mxu2 %v16802_v36  ;;  %v16478_v10 = vor.u32 %v18505_v2, %v16477_v1  ;;  %v16482_v36 = vor.u32 %v18497_v4, %v16479_v6  ;;  %v18664_v52 = vld [vmem:[%s22961_s11 + $0x5f0] sm:$0xff]  ;;  %v18655_v1 = vld [vmem:[%s22961_s11 + $0x5a8] sm:$0xff]  ;;  %v18646_v6 = vld [vmem:[%s22961_s11 + $0x560] sm:$0xff] }
 0xff9   : > { %v18639_v2 = vld [vmem:[%s22961_s11 + $0x528] sm:$0xff] }
 0xffa   : > { %v18663_v4 = vld [vmem:[%s22961_s11 + $0x5e8] sm:$0xff] }
 0xffb   : > { %11214 = vmatpush.bf16.msrb.mxu3 %v16726_v37  ;;  %11228 = vmatpush.bf16.msrb.mxu0 %v16730_v51  ;;  %v16406_v37 = vor.u32 %v18488_v8, %v16405_v7  ;;  %v16410_v51 = vor.u32 %v18480_v13, %v16407_v31  ;;  %v18662_v7 = vld [vmem:[%s22961_s11 + $0x5e0] sm:$0xff]  ;;  %v18645_v8 = vld [vmem:[%s22961_s11 + $0x558] sm:$0xff]  ;;  %v18644_v31 = vld [vmem:[%s22961_s11 + $0x550] sm:$0xff] }
 0xffc   : > { %11242 = vmatpush.bf16.msrb.mxu1 %v16734_v21  ;;  %11256 = vmatpush.bf16.msrb.mxu2 %v16738_v48  ;;  %v18617_v21 = vld [vmem:[%s22961_s11 + $0x478] sm:$0xff] }
 0xffd   : > { %v18625_v48 = vld [vmem:[%s22961_s11 + $0x4b8] sm:$0xff] }
 0xffe   : > { %v18661_v13 = vld [vmem:[%s22961_s11 + $0x5d8] sm:$0xff] }
 0xfff   : > { %11215 = vmatpush.bf16.msrb.mxu3 %v16662_v39  ;;  %11229 = vmatpush.bf16.msrb.mxu0 %v16666_v38  ;;  %v18615_v39 = vld [vmem:[%s22961_s11 + $0x468] sm:$0xff] }
0x1000   : > { %11243 = vmatpush.bf16.msrb.mxu1 %v16670_v29  ;;  %11257 = vmatpush.bf16.msrb.mxu2 %v16674_v46  ;;  %v18607_v38 = vld [vmem:[%s22961_s11 + $0x428] sm:$0xff]  ;;  %v18622_v29 = vld [vmem:[%s22961_s11 + $0x4a0] sm:$0xff] }
0x1001   : > { %v18606_v46 = vld [vmem:[%s22961_s11 + $0x420] sm:$0xff] }
0x1003   : > { %11216 = vmatpush.bf16.msrb.mxu3 %v16598_v62  ;;  %11230 = vmatpush.bf16.msrb.mxu0 %v16602_v56  ;;  %v18620_v62 = vld [vmem:[%s22961_s11 + $0x490] sm:$0xff] }
0x1004   : > { %11244 = vmatpush.bf16.msrb.mxu1 %v16606_v55  ;;  %11258 = vmatpush.bf16.msrb.mxu2 %v16610_v32  ;;  %v18604_v56 = vld [vmem:[%s22961_s11 + $0x410] sm:$0xff]  ;;  %v18619_v55 = vld [vmem:[%s22961_s11 + $0x488] sm:$0xff] }
0x1005   : > { %v18603_v32 = vld [vmem:[%s22961_s11 + $0x408] sm:$0xff] }
0x1007   : > { %11217 = vmatpush.bf16.msrb.mxu3 %v16534_v41  ;;  %11231 = vmatpush.bf16.msrb.mxu0 %v16538_v58  ;;  %v18626_v41 = vld [vmem:[%s22961_s11 + $0x4c0] sm:$0xff]  ;;  %v18641_v58 = vld [vmem:[%s22961_s11 + $0x538] sm:$0xff] }
0x1008   : > { %11245 = vmatpush.bf16.msrb.mxu1 %v16542_v61  ;;  %11259 = vmatpush.bf16.msrb.mxu2 %v16546_v63  ;;  %v18656_v61 = vld [vmem:[%s22961_s11 + $0x5b0] sm:$0xff] }
0x1009   : > { %v18640_v63 = vld [vmem:[%s22961_s11 + $0x530] sm:$0xff] }
0x100b   : > { %11218 = vmatpush.bf16.msrb.mxu3 %v16470_v9  ;;  %11232 = vmatpush.bf16.msrb.mxu0 %v16474_v16  ;;  %v18654_v9 = vld [vmem:[%s22961_s11 + $0x5a0] sm:$0xff] }
0x100c   : > { %11246 = vmatpush.bf16.msrb.mxu1 %v16478_v10  ;;  %11260 = vmatpush.bf16.msrb.mxu2 %v16482_v36  ;;  %v18638_v16 = vld [vmem:[%s22961_s11 + $0x520] sm:$0xff]  ;;  %v18653_v10 = vld [vmem:[%s22961_s11 + $0x598] sm:$0xff] }
0x100d   : > { %v18637_v36 = vld [vmem:[%s22961_s11 + $0x518] sm:$0xff] }
0x100f   : > { %11219 = vmatpush.bf16.msrb.mxu3 %v16406_v37  ;;  %11233 = vmatpush.bf16.msrb.mxu0 %v16410_v51  ;;  %v18651_v37 = vld [vmem:[%s22961_s11 + $0x588] sm:$0xff] }
0x1010   : > { %11247 = vmatpush.bf16.msrb.mxu1 %v16414_v19  ;;  %11261 = vmatpush.bf16.msrb.mxu2 %v16418_v20  ;;  %v18635_v51 = vld [vmem:[%s22961_s11 + $0x508] sm:$0xff]  ;;  %v18642_v20 = vld [vmem:[%s22961_s11 + $0x540] sm:$0xff] }
0x1011   : > { %v18659_v19 = vld [vmem:[%s22961_s11 + $0x5c8] sm:$0xff] }
0x1012   : > { %11220 = vmatmul.bf16.vlgmr.msrb.gmra.mxu3 %v22076_v18  ;;  %11234 = vmatmul.bf16.vlgmr.msrb.gmra.mxu0 %v22076_v18 }
0x1013   : > { %12360 = vmatpush.bf16.msra.mxu0 %v18617_v21  ;;  %11248 = vmatmul.bf16.vlgmr.msrb.gmra.mxu1 %v22076_v18  ;;  %v18650_v21 = vld [vmem:[%s22961_s11 + $0x580] sm:$0xff] }
0x1014   : > { %12374 = vmatpush.bf16.msra.mxu1 %v18625_v48  ;;  %11262 = vmatmul.bf16.vlgmr.msrb.gmra.mxu2 %v22076_v18  ;;  %v18623_v18 = vld [vmem:[%s22961_s11 + $0x4a8] sm:$0xff]  ;;  %v18634_v48 = vld [vmem:[%s22961_s11 + $0x500] sm:$0xff] }
0x1015   : > { %12346 = vmatpush.bf16.msra.mxu3 %v18609_v24  ;;  %12388 = vmatpush.bf16.msra.mxu2 %v18633_v27  ;;  %v18658_v24 = vld [vmem:[%s22961_s11 + $0x5c0] sm:$0xff]  ;;  %v22649_v27 = vld [vmem:[%s22960_s10 + $0x10] sm:$0xff] }
0x1017   : > { %12361 = vmatpush.bf16.msra.mxu0 %v18616_v50 }
0x1018   : > { %12375 = vmatpush.bf16.msra.mxu1 %v18624_v30 }
0x1019   : > { %12347 = vmatpush.bf16.msra.mxu3 %v18608_v25  ;;  %12389 = vmatpush.bf16.msra.mxu2 %v18632_v35  ;;  %v10373_v25 = vperm.slane %v22649_v27, 1  ;;  %v10374_v35 = vperm.slane %v22649_v27, 2 }
0x101b   : > { %12362 = vmatpush.bf16.msra.mxu0 %v18615_v39 }
0x101c   : > { %12376 = vmatpush.bf16.msra.mxu1 %v18623_v18 }
0x101d   : > { %12348 = vmatpush.bf16.msra.mxu3 %v18607_v38  ;;  %12390 = vmatpush.bf16.msra.mxu2 %v18631_v22 }
0x101f   : > { %12363 = vmatpush.bf16.msra.mxu0 %v18614_v34 }
0x1020   : > { %12377 = vmatpush.bf16.msra.mxu1 %v18622_v29  ;;  %v10372_v29 = vperm.slane %v22649_v27, 0 }
0x1021   : > { %12349 = vmatpush.bf16.msra.mxu3 %v18606_v46  ;;  %12391 = vmatpush.bf16.msra.mxu2 %v18630_v59 }
0x1023   : > { %12364 = vmatpush.bf16.msra.mxu0 %v18613_v26  ;;  %v10375_v26 = vperm.slane %v22649_v27, 3 }
0x1024   : > { %12378 = vmatpush.bf16.msra.mxu1 %v18621_v33 }
0x1025   : > { %12350 = vmatpush.bf16.msra.mxu3 %v18605_v23  ;;  %12392 = vmatpush.bf16.msra.mxu2 %v18629_v47 }
0x1027   : > { %12365 = vmatpush.bf16.msra.mxu0 %v18612_v45 }
0x1028   : > { %12379 = vmatpush.bf16.msra.mxu1 %v18620_v62 }
0x1029   : > { %12351 = vmatpush.bf16.msra.mxu3 %v18604_v56  ;;  %12393 = vmatpush.bf16.msra.mxu2 %v18628_v57  ;;  %v18681_v56 = vld [vmem:[%s22961_s11 + $0x678] sm:$0xff] }
0x102b   : > { %12366 = vmatpush.bf16.msra.mxu0 %v18611_v43 }
0x102c   : > { %12380 = vmatpush.bf16.msra.mxu1 %v18619_v55  ;;  %v18689_v55 = vld [vmem:[%s22961_s11 + $0x6b8] sm:$0xff] }
0x102d   : > { %12352 = vmatpush.bf16.msra.mxu3 %v18603_v32  ;;  %12394 = vmatpush.bf16.msra.mxu2 %v18627_v3 }
0x102f   : > { %12367 = vmatpush.bf16.msra.mxu0 %v18610_v49 }
0x1030   : > { %12381 = vmatpush.bf16.msra.mxu1 %v18618_v44 }
0x1031   : > { %12353 = vmatpush.bf16.msra.mxu3 %v18602_v54  ;;  %12395 = vmatpush.bf16.msra.mxu2 %v18626_v41  ;;  %v18680_v41 = vld [vmem:[%s22961_s11 + $0x670] sm:$0xff] }
0x1033   : > { %12416 = vmatpush.bf16.msrb.mxu0 %v18649_v53 }
0x1034   : > { %12430 = vmatpush.bf16.msrb.mxu1 %v18657_v11 }
0x1035   : > { %12402 = vmatpush.bf16.msrb.mxu3 %v18641_v58  ;;  %12444 = vmatpush.bf16.msrb.mxu2 %v18665_v60 }
0x1037   : > { %12417 = vmatpush.bf16.msrb.mxu0 %v18648_v28 }
0x1038   : > { %12431 = vmatpush.bf16.msrb.mxu1 %v18656_v61  ;;  %v18688_v61 = vld [vmem:[%s22961_s11 + $0x6b0] sm:$0xff] }
0x1039   : > { %12403 = vmatpush.bf16.msrb.mxu3 %v18640_v63  ;;  %12445 = vmatpush.bf16.msrb.mxu2 %v18664_v52 }
0x103b   : > { %12418 = vmatpush.bf16.msrb.mxu0 %v18647_v0  ;;  %v18673_v0 = vld [vmem:[%s22961_s11 + $0x638] sm:$0xff] }
0x103c   : > { %12432 = vmatpush.bf16.msrb.mxu1 %v18655_v1 }
0x103d   : > { %12404 = vmatpush.bf16.msrb.mxu3 %v18639_v2  ;;  %12446 = vmatpush.bf16.msrb.mxu2 %v18663_v4  ;;  %v10377_v2 = vperm.slane %v22649_v27, 5  ;;  %v18697_v4 = vld [vmem:[%s22961_s11 + $0x6f8] sm:$0xff] }
0x103f   : > { %12419 = vmatpush.bf16.msrb.mxu0 %v18646_v6 }
0x1040   : > { %12433 = vmatpush.bf16.msrb.mxu1 %v18654_v9  ;;  %v10378_v9 = vperm.slane %v22649_v27, 6 }
0x1041   : > { %12405 = vmatpush.bf16.msrb.mxu3 %v18638_v16  ;;  %12447 = vmatpush.bf16.msrb.mxu2 %v18662_v7  ;;  %v18679_v16 = vld [vmem:[%s22961_s11 + $0x668] sm:$0xff] }
0x1042   : > { %v18687_v7 = vld [vmem:[%s22961_s11 + $0x6a8] sm:$0xff] }
0x1043   : > { %12420 = vmatpush.bf16.msrb.mxu0 %v18645_v8 }
0x1044   : > { %12434 = vmatpush.bf16.msrb.mxu1 %v18653_v10  ;;  %v18672_v10 = vld [vmem:[%s22961_s11 + $0x630] sm:$0xff] }
0x1045   : > { %12406 = vmatpush.bf16.msrb.mxu3 %v18637_v36  ;;  %12448 = vmatpush.bf16.msrb.mxu2 %v18661_v13 }
0x1047   : > { %12421 = vmatpush.bf16.msrb.mxu0 %v18644_v31  ;;  %v18696_v31 = vld [vmem:[%s22961_s11 + $0x6f0] sm:$0xff] }
0x1048   : > { %12435 = vmatpush.bf16.msrb.mxu1 %v18652_v40 }
0x1049   : > { %12407 = vmatpush.bf16.msrb.mxu3 %v18636_v15  ;;  %12449 = vmatpush.bf16.msrb.mxu2 %v18660_v14  ;;  %v18678_v14 = vld [vmem:[%s22961_s11 + $0x660] sm:$0xff] }
0x104b   : > { %12422 = vmatpush.bf16.msrb.mxu0 %v18643_v17  ;;  %v10376_v17 = vperm.slane %v22649_v27, 4 }
0x104c   : > { %12436 = vmatpush.bf16.msrb.mxu1 %v18651_v37 }
0x104d   : > { %12408 = vmatpush.bf16.msrb.mxu3 %v18635_v51  ;;  %12450 = vmatpush.bf16.msrb.mxu2 %v18659_v19  ;;  %v18686_v19 = vld [vmem:[%s22961_s11 + $0x6a0] sm:$0xff] }
0x104e   : > { %v11067_v50 = vpop.f32.mrf.mxu0 }
0x104f   : > { %12423 = vmatpush.bf16.msrb.mxu0 %v18642_v20  ;;  %v11081_v30 = vpop.f32.mrf.mxu1  ;;  %v11068_v18 = vadd.f32 %v11067_v50, %v10373_v25  ;;  %v10379_v20 = vperm.slane %v22649_v27, 7  ;;  %v18677_v27 = vld [vmem:[%s22961_s11 + $0x658] sm:$0xff] }
0x1050   : > { %12437 = vmatpush.bf16.msrb.mxu1 %v18650_v21  ;;  %v11082_v22 = vadd.f32 %v11081_v30, %v10374_v35  ;;  %v18695_v30 = vld [vmem:[%s22961_s11 + $0x6e8] sm:$0xff] }
0x1051   : > { %12409 = vmatpush.bf16.msrb.mxu3 %v18634_v48  ;;  %12451 = vmatpush.bf16.msrb.mxu2 %v18658_v24  ;;  %v11269_v23 = vmax.f32 %v11068_v18, 0.0  ;;  %v18671_v48 = vld [vmem:[%s22961_s11 + $0x628] sm:$0xff] }
0x1052   : > { %v11270_v45 = vmax.f32 %v11082_v22, 0.0 }
0x1054   : > { %v11053_v39 = vpop.f32.mrf.mxu3 }
0x1055   : > { %v11095_v38 = vpop.f32.mrf.mxu2  ;;  %v11054_v57 = vadd.f32 %v11053_v39, %v10372_v29 }
0x1056   : > { %v11069_v34 = vpop.f32.mrf.mxu0  ;;  %v11096_v32 = vadd.f32 %v11095_v38, %v10375_v26  ;;  %v18685_v38 = vld [vmem:[%s22961_s11 + $0x698] sm:$0xff] }
0x1057   : > { %v11070_v46 = vadd.f32 %v11069_v34, %v10373_v25  ;;  %v11083_v59 = vpop.f32.mrf.mxu1  ;;  %v11268_v58 = vmax.f32 %v11054_v57, 0.0 }
0x1058   : > { %v11084_v33 = vadd.f32 %v11083_v59, %v10374_v35  ;;  %v11271_v63 = vmax.f32 %v11096_v32, 0.0 }
0x1059   : > { %v11285_v47 = vmax.f32 %v11070_v46, 0.0  ;;  %v18670_v46 = vld [vmem:[%s22961_s11 + $0x620] sm:$0xff] }
0x105a   : > { %v11286_v62 = vmax.f32 %v11084_v33, 0.0  ;;  %v18694_v33 = vld [vmem:[%s22961_s11 + $0x6e0] sm:$0xff] }
0x105b   : > { %v11301_v43 = vpack.c.bf16 %v11285_v47, %v11269_v23  ;;  %v18676_v47 = vld [vmem:[%s22961_s11 + $0x650] sm:$0xff] }
0x105c   : > { %v11302_v3 = vpack.c.bf16 %v11286_v62, %v11270_v45  ;;  %v11055_v49 = vpop.f32.mrf.mxu3 }
0x105d   : > { %v11056_v44 = vadd.f32 %v11055_v49, %v10372_v29  ;;  %v11097_v53 = vpop.f32.mrf.mxu2  ;;  %12368 = vmatmul.bf16.vlgmr.msra.gmra.mxu0 %v11301_v43 }
0x105e   : > { %v11098_v11 = vadd.f32 %v11097_v53, %v10375_v26  ;;  %12382 = vmatmul.bf16.vlgmr.msra.gmra.mxu1 %v11302_v3  ;;  %12472 = vmatpush.bf16.msra.mxu0 %v18681_v56  ;;  %v11123_v54 = vpop.f32.mrf.mxu0  ;;  %v18684_v56 = vld [vmem:[%s22961_s11 + $0x690] sm:$0xff]  ;;  %v18669_v3 = vld [vmem:[%s22961_s11 + $0x618] sm:$0xff] }
0x105f   : > { %v11284_v60 = vmax.f32 %v11056_v44, 0.0  ;;  %12486 = vmatpush.bf16.msra.mxu1 %v18689_v55  ;;  %v11137_v28 = vpop.f32.mrf.mxu1  ;;  %v11124_v36 = vadd.f32 %v11123_v54, %v10377_v2  ;;  %v22722_v55 = vld [vmem:[%s22960_s10 + $0x18] sm:$0xff]  ;;  %v18675_v54 = vld [vmem:[%s22961_s11 + $0x648] sm:$0xff] }
0x1060   : > { %v11287_v52 = vmax.f32 %v11098_v11, 0.0  ;;  %v11138_v40 = vadd.f32 %v11137_v28, %v10378_v9  ;;  %v18693_v53 = vld [vmem:[%s22961_s11 + $0x6d8] sm:$0xff]  ;;  %v18668_v28 = vld [vmem:[%s22961_s11 + $0x610] sm:$0xff] }
0x1061   : > { %v11300_v1 = vpack.c.bf16 %v11284_v60, %v11268_v58  ;;  %v11273_v24 = vmax.f32 %v11124_v36, 0.0  ;;  %v18683_v58 = vld [vmem:[%s22961_s11 + $0x688] sm:$0xff]  ;;  %v10382_v60 = vperm.slane %v22722_v55, 2 }
0x1062   : > { %v11303_v6 = vpack.c.bf16 %v11287_v52, %v11271_v63  ;;  %12473 = vmatpush.bf16.msra.mxu0 %v18680_v41  ;;  %v11274_v25 = vmax.f32 %v11138_v40, 0.0  ;;  %v10381_v41 = vperm.slane %v22722_v55, 1  ;;  %v18674_v52 = vld [vmem:[%s22961_s11 + $0x640] sm:$0xff] }
0x1063   : > { %12487 = vmatpush.bf16.msra.mxu1 %v18688_v61  ;;  %12354 = vmatmul.bf16.vlgmr.msra.gmra.mxu3 %v11300_v1  ;;  %v18692_v61 = vld [vmem:[%s22961_s11 + $0x6d0] sm:$0xff] }
0x1064   : > { %12396 = vmatmul.bf16.vlgmr.msra.gmra.mxu2 %v11303_v6  ;;  %12458 = vmatpush.bf16.msra.mxu3 %v18673_v0  ;;  %v11109_v8 = vpop.f32.mrf.mxu3 }
0x1065   : > { %12500 = vmatpush.bf16.msra.mxu2 %v18697_v4  ;;  %v11151_v13 = vpop.f32.mrf.mxu2  ;;  %v11110_v39 = vadd.f32 %v11109_v8, %v10376_v17  ;;  %v18713_v4 = vld [vmem:[%s22961_s11 + $0x778] sm:$0xff]  ;;  %v10380_v8 = vperm.slane %v22722_v55, 0 }
0x1066   : > { %12474 = vmatpush.bf16.msra.mxu0 %v18679_v16  ;;  %v11125_v15 = vpop.f32.mrf.mxu0  ;;  %v11152_v22 = vadd.f32 %v11151_v13, %v10379_v20  ;;  %v18721_v16 = vld [vmem:[%s22961_s11 + $0x7b8] sm:$0xff]  ;;  %v18691_v13 = vld [vmem:[%s22961_s11 + $0x6c8] sm:$0xff] }
0x1067   : > { %12488 = vmatpush.bf16.msra.mxu1 %v18687_v7  ;;  %v11126_v37 = vadd.f32 %v11125_v15, %v10377_v2  ;;  %v11139_v51 = vpop.f32.mrf.mxu1  ;;  %v11272_v45 = vmax.f32 %v11110_v39, 0.0  ;;  %v18682_v2 = vld [vmem:[%s22961_s11 + $0x680] sm:$0xff]  ;;  %v18667_v7 = vld [vmem:[%s22961_s11 + $0x608] sm:$0xff] }
0x1068   : > { %v11140_v21 = vadd.f32 %v11139_v51, %v10378_v9  ;;  %12459 = vmatpush.bf16.msra.mxu3 %v18672_v10  ;;  %v11275_v57 = vmax.f32 %v11152_v22, 0.0  ;;  %v18712_v51 = vld [vmem:[%s22961_s11 + $0x770] sm:$0xff]  ;;  %v18711_v22 = vld [vmem:[%s22961_s11 + $0x768] sm:$0xff] }
0x1069   : > { %v11289_v50 = vmax.f32 %v11126_v37, 0.0  ;;  %12501 = vmatpush.bf16.msra.mxu2 %v18696_v31  ;;  %v10383_v31 = vperm.slane %v22722_v55, 3 }
0x106a   : > { %v11290_v35 = vmax.f32 %v11140_v21, 0.0  ;;  %12475 = vmatpush.bf16.msra.mxu0 %v18678_v14  ;;  %v18720_v21 = vld [vmem:[%s22961_s11 + $0x7b0] sm:$0xff] }
0x106b   : > { %v11305_v18 = vpack.c.bf16 %v11289_v50, %v11273_v24  ;;  %12489 = vmatpush.bf16.msra.mxu1 %v18686_v19 }
0x106c   : > { %v11306_v34 = vpack.c.bf16 %v11290_v35, %v11274_v25  ;;  %12460 = vmatpush.bf16.msra.mxu3 %v18671_v48  ;;  %v11111_v29 = vpop.f32.mrf.mxu3  ;;  %v18666_v48 = vld [vmem:[%s22961_s11 + $0x600] sm:$0xff]  ;;  %v18705_v35 = vld [vmem:[%s22961_s11 + $0x738] sm:$0xff] }
0x106d   : > { %12502 = vmatpush.bf16.msra.mxu2 %v18695_v30  ;;  %v11112_v59 = vadd.f32 %v11111_v29, %v10376_v17  ;;  %v11153_v26 = vpop.f32.mrf.mxu2  ;;  %12424 = vmatmul.bf16.vlgmr.msrb.gmra.mxu0 %v11305_v18  ;;  %v18690_v25 = vld [vmem:[%s22961_s11 + $0x6c0] sm:$0xff]  ;;  %v18729_v18 = vld [vmem:[%s22961_s11 + $0x7f8] sm:$0xff] }
0x106e   : > { %v11154_v23 = vadd.f32 %v11153_v26, %v10379_v20  ;;  %12438 = vmatmul.bf16.vlgmr.msrb.gmra.mxu1 %v11306_v34  ;;  %12476 = vmatpush.bf16.msra.mxu0 %v18677_v27 }
0x106f   : > { %v11288_v62 = vmax.f32 %v11112_v59, 0.0  ;;  %12490 = vmatpush.bf16.msra.mxu1 %v18685_v38  ;;  %v11179_v32 = vpop.f32.mrf.mxu0 }
0x1070   : > { %v11291_v43 = vmax.f32 %v11154_v23, 0.0  ;;  %12461 = vmatpush.bf16.msra.mxu3 %v18670_v46  ;;  %v11180_v0 = vadd.f32 %v11179_v32, %v10381_v41  ;;  %v18719_v46 = vld [vmem:[%s22961_s11 + $0x7a8] sm:$0xff]  ;;  %v18709_v32 = vld [vmem:[%s22961_s11 + $0x758] sm:$0xff] }
0x1071   : > { %v11304_v49 = vpack.c.bf16 %v11288_v62, %v11272_v45  ;;  %12503 = vmatpush.bf16.msra.mxu2 %v18694_v33  ;;  %v18704_v33 = vld [vmem:[%s22961_s11 + $0x730] sm:$0xff]  ;;  %v18710_v62 = vld [vmem:[%s22961_s11 + $0x760] sm:$0xff] }
0x1072   : > { %v11193_v44 = vpop.f32.mrf.mxu1  ;;  %v11307_v11 = vpack.c.bf16 %v11291_v43, %v11275_v57  ;;  %12477 = vmatpush.bf16.msra.mxu0 %v18676_v47  ;;  %v11277_v15 = vmax.f32 %v11180_v0, 0.0  ;;  %v18728_v47 = vld [vmem:[%s22961_s11 + $0x7f0] sm:$0xff]  ;;  %v18703_v57 = vld [vmem:[%s22961_s11 + $0x728] sm:$0xff] }
0x1073   : > { %12491 = vmatpush.bf16.msra.mxu1 %v18684_v56  ;;  %12410 = vmatmul.bf16.vlgmr.msrb.gmra.mxu3 %v11304_v49  ;;  %v11194_v6 = vadd.f32 %v11193_v44, %v10382_v60  ;;  %v18718_v56 = vld [vmem:[%s22961_s11 + $0x7a0] sm:$0xff]  ;;  %v18727_v43 = vld [vmem:[%s22961_s11 + $0x7e8] sm:$0xff]  ;;  %v18700_v0 = vld [vmem:[%s22961_s11 + $0x710] sm:$0xff] }
0x1074   : > { %12452 = vmatmul.bf16.vlgmr.msrb.gmra.mxu2 %v11307_v11  ;;  %12462 = vmatpush.bf16.msra.mxu3 %v18669_v3  ;;  %v18717_v3 = vld [vmem:[%s22961_s11 + $0x798] sm:$0xff]  ;;  %v18702_v49 = vld [vmem:[%s22961_s11 + $0x720] sm:$0xff] }
0x1075   : > { %12504 = vmatpush.bf16.msra.mxu2 %v18693_v53  ;;  %v11165_v63 = vpop.f32.mrf.mxu3  ;;  %v11278_v17 = vmax.f32 %v11194_v6, 0.0  ;;  %v18726_v44 = vld [vmem:[%s22961_s11 + $0x7e0] sm:$0xff]  ;;  %v18708_v53 = vld [vmem:[%s22961_s11 + $0x750] sm:$0xff] }
0x1076   : > { %12478 = vmatpush.bf16.msra.mxu0 %v18675_v54  ;;  %v11166_v19 = vadd.f32 %v11165_v63, %v10380_v8  ;;  %v18716_v54 = vld [vmem:[%s22961_s11 + $0x790] sm:$0xff]  ;;  %v10386_v63 = vperm.slane %v22722_v55, 6 }
0x1077   : > { %12492 = vmatpush.bf16.msra.mxu1 %v18683_v58  ;;  %v11181_v9 = vpop.f32.mrf.mxu0  ;;  %v18701_v58 = vld [vmem:[%s22961_s11 + $0x718] sm:$0xff] }
0x1078   : > { %v11207_v1 = vpop.f32.mrf.mxu2  ;;  %12463 = vmatpush.bf16.msra.mxu3 %v18668_v28  ;;  %v11182_v10 = vadd.f32 %v11181_v9, %v10381_v41  ;;  %v11276_v34 = vmax.f32 %v11166_v19, 0.0  ;;  %v10385_v28 = vperm.slane %v22722_v55, 5  ;;  %v18706_v9 = vld [vmem:[%s22961_s11 + $0x740] sm:$0xff] }
0x1079   : > { %12505 = vmatpush.bf16.msra.mxu2 %v18692_v61  ;;  %v11208_v24 = vadd.f32 %v11207_v1, %v10383_v31  ;;  %v18707_v61 = vld [vmem:[%s22961_s11 + $0x748] sm:$0xff] }
0x107a   : > { %v11195_v36 = vpop.f32.mrf.mxu1  ;;  %12479 = vmatpush.bf16.msra.mxu0 %v18674_v52  ;;  %v11293_v14 = vmax.f32 %v11182_v10, 0.0  ;;  %v18715_v52 = vld [vmem:[%s22961_s11 + $0x788] sm:$0xff]  ;;  %v10384_v10 = vperm.slane %v22722_v55, 4 }
0x107b   : > { %v11196_v40 = vadd.f32 %v11195_v36, %v10382_v60  ;;  %12493 = vmatpush.bf16.msra.mxu1 %v18682_v2  ;;  %v11279_v59 = vmax.f32 %v11208_v24, 0.0  ;;  %v18725_v60 = vld [vmem:[%s22961_s11 + $0x7d8] sm:$0xff]  ;;  %v18724_v2 = vld [vmem:[%s22961_s11 + $0x7d0] sm:$0xff] }
0x107c   : > { %12464 = vmatpush.bf16.msra.mxu3 %v18667_v7  ;;  %v11309_v20 = vpack.c.bf16 %v11293_v14, %v11277_v15  ;;  %v18723_v14 = vld [vmem:[%s22961_s11 + $0x7c8] sm:$0xff] }
0x107d   : > { %v11294_v37 = vmax.f32 %v11196_v40, 0.0  ;;  %12506 = vmatpush.bf16.msra.mxu2 %v18691_v13  ;;  %v11167_v30 = vpop.f32.mrf.mxu3  ;;  %v10387_v40 = vperm.slane %v22722_v55, 7 }
0x107e   : > { %12528 = vmatpush.bf16.msrb.mxu0 %v18713_v4  ;;  %v11168_v27 = vadd.f32 %v11167_v30, %v10380_v8  ;;  %v18714_v8 = vld [vmem:[%s22961_s11 + $0x780] sm:$0xff] }
0x107f   : > { %12542 = vmatpush.bf16.msrb.mxu1 %v18721_v16  ;;  %v11310_v50 = vpack.c.bf16 %v11294_v37, %v11278_v17  ;;  %12480 = vmatmul.bf16.vlgmr.msra.gmra.mxu0 %v11309_v20  ;;  %v18722_v30 = vld [vmem:[%s22961_s11 + $0x7c0] sm:$0xff] }
0x1080   : > { %v11209_v39 = vpop.f32.mrf.mxu2  ;;  %v11292_v29 = vmax.f32 %v11168_v27, 0.0  ;;  %12465 = vmatpush.bf16.msra.mxu3 %v18666_v48  ;;  %v18698_v48 = vld [vmem:[%s22961_s11 + $0x700] sm:$0xff] }
0x1081   : > { %v11210_v38 = vadd.f32 %v11209_v39, %v10383_v31  ;;  %12494 = vmatmul.bf16.vlgmr.msra.gmra.mxu1 %v11310_v50  ;;  %12507 = vmatpush.bf16.msra.mxu2 %v18690_v25  ;;  %v18699_v31 = vld [vmem:[%s22961_s11 + $0x708] sm:$0xff] }
0x1082   : > { %12529 = vmatpush.bf16.msrb.mxu0 %v18712_v51  ;;  %v11308_v23 = vpack.c.bf16 %v11292_v29, %v11276_v34 }
0x1083   : > { %12543 = vmatpush.bf16.msrb.mxu1 %v18720_v21  ;;  %v11295_v26 = vmax.f32 %v11210_v38, 0.0 }
0x1084   : > { %12514 = vmatpush.bf16.msrb.mxu3 %v18705_v35 }
0x1085   : > { %12556 = vmatpush.bf16.msrb.mxu2 %v18729_v18  ;;  %v11311_v45 = vpack.c.bf16 %v11295_v26, %v11279_v59  ;;  %12466 = vmatmul.bf16.vlgmr.msra.gmra.mxu3 %v11308_v23 }
0x1086   : > { %12530 = vmatpush.bf16.msrb.mxu0 %v18711_v22 }
0x1087   : > { %12544 = vmatpush.bf16.msrb.mxu1 %v18719_v46  ;;  %12508 = vmatmul.bf16.vlgmr.msra.gmra.mxu2 %v11311_v45 }
0x1088   : > { %12515 = vmatpush.bf16.msrb.mxu3 %v18704_v33 }
0x1089   : > { %12557 = vmatpush.bf16.msrb.mxu2 %v18728_v47 }
0x108a   : > { %12531 = vmatpush.bf16.msrb.mxu0 %v18710_v62  ;;  %v18795_v62 = vld [vmem:[%s22962_s12 + $0x1] ss:$0 sm:$0xff] }
0x108b   : > { %12545 = vmatpush.bf16.msrb.mxu1 %v18718_v56 }
0x108c   : > { %12516 = vmatpush.bf16.msrb.mxu3 %v18703_v57 }
0x108d   : > { %12558 = vmatpush.bf16.msrb.mxu2 %v18727_v43 }
0x108e   : > { %12532 = vmatpush.bf16.msrb.mxu0 %v18709_v32 }
0x108f   : > { %v11235_v11 = vpop.f32.mrf.mxu0  ;;  %12546 = vmatpush.bf16.msrb.mxu1 %v18717_v3 }
0x1090   : > { %v11249_v41 = vpop.f32.mrf.mxu1  ;;  %12517 = vmatpush.bf16.msrb.mxu3 %v18702_v49  ;;  %v11236_v4 = vadd.f32 %v11235_v11, %v10385_v28 }
0x1091   : > { %12559 = vmatpush.bf16.msrb.mxu2 %v18726_v44  ;;  %v11250_v16 = vadd.f32 %v11249_v41, %v10386_v63 }
0x1092   : > { %12533 = vmatpush.bf16.msrb.mxu0 %v18708_v53  ;;  %v11281_v17 = vmax.f32 %v11236_v4, 0.0 }
0x1093   : > { %12547 = vmatpush.bf16.msrb.mxu1 %v18716_v54  ;;  %v11282_v51 = vmax.f32 %v11250_v16, 0.0 }
0x1094   : > { %12518 = vmatpush.bf16.msrb.mxu3 %v18701_v58 }
0x1095   : > { %v11221_v1 = vpop.f32.mrf.mxu3  ;;  %12560 = vmatpush.bf16.msrb.mxu2 %v18725_v60 }
0x1096   : > { %12534 = vmatpush.bf16.msrb.mxu0 %v18707_v61  ;;  %v11222_v20 = vadd.f32 %v11221_v1, %v10384_v10 }
0x1097   : > { %v11263_v6 = vpop.f32.mrf.mxu2  ;;  %v11237_v7 = vpop.f32.mrf.mxu0  ;;  %12548 = vmatpush.bf16.msrb.mxu1 %v18715_v52 }
0x1098   : > { %v11238_v36 = vadd.f32 %v11237_v7, %v10385_v28  ;;  %v11251_v13 = vpop.f32.mrf.mxu1  ;;  %12519 = vmatpush.bf16.msrb.mxu3 %v18700_v0  ;;  %v11264_v55 = vadd.f32 %v11263_v6, %v10387_v40  ;;  %v11280_v39 = vmax.f32 %v11222_v20, 0.0 }
0x1099   : > { %v11252_v15 = vadd.f32 %v11251_v13, %v10386_v63  ;;  %12561 = vmatpush.bf16.msrb.mxu2 %v18724_v2 }
0x109a   : > { %v11297_v37 = vmax.f32 %v11238_v36, 0.0  ;;  %12535 = vmatpush.bf16.msrb.mxu0 %v18706_v9  ;;  %v11283_v38 = vmax.f32 %v11264_v55, 0.0 }
0x109b   : > { %v11298_v19 = vmax.f32 %v11252_v15, 0.0  ;;  %12549 = vmatpush.bf16.msrb.mxu1 %v18714_v8 }
0x109c   : > { %v11313_v21 = vpack.c.bf16 %v11297_v37, %v11281_v17  ;;  %12520 = vmatpush.bf16.msrb.mxu3 %v18699_v31 }
0x109d   : > { %v11314_v24 = vpack.c.bf16 %v11298_v19, %v11282_v51  ;;  %v11223_v50 = vpop.f32.mrf.mxu3  ;;  %12562 = vmatpush.bf16.msrb.mxu2 %v18723_v14 }
0x109e   : > { %v11224_v25 = vadd.f32 %v11223_v50, %v10384_v10  ;;  %12536 = vmatmul.bf16.vlgmr.msrb.gmra.mxu0 %v11313_v21 }
0x109f   : > { %v11265_v35 = vpop.f32.mrf.mxu2  ;;  %12550 = vmatmul.bf16.vlgmr.msrb.gmra.mxu1 %v11314_v24 }
0x10a0   : > { %v11266_v27 = vadd.f32 %v11265_v35, %v10387_v40  ;;  %v11296_v18 = vmax.f32 %v11224_v25, 0.0  ;;  %12521 = vmatpush.bf16.msrb.mxu3 %v18698_v48 }
0x10a1   : > { %12563 = vmatpush.bf16.msrb.mxu2 %v18722_v30 }
0x10a2   : > { %v11299_v22 = vmax.f32 %v11266_v27, 0.0  ;;  %v11312_v34 = vpack.c.bf16 %v11296_v18, %v11280_v39 }
0x10a4   : > { %v11315_v29 = vpack.c.bf16 %v11299_v22, %v11283_v38  ;;  %12522 = vmatmul.bf16.vlgmr.msrb.gmra.mxu3 %v11312_v34 }
0x10a6   : > { %12564 = vmatmul.bf16.vlgmr.msrb.gmra.mxu2 %v11315_v29 }
0x10da   : > { %v12369_v46 = vpop.f32.mrf.mxu0 }
0x10db   : > { %v12383_v26 = vpop.f32.mrf.mxu1 }
0x10e2   : > { %v12371_v23 = vpop.f32.mrf.mxu0 }
0x10e3   : > { %v12385_v45 = vpop.f32.mrf.mxu1 }
0x10e6   : > { %v12355_v59 = vpop.f32.mrf.mxu3 }
0x10e7   : > { %v12397_v33 = vpop.f32.mrf.mxu2  ;;  %v12356_v57 = vadd.f32 %v18795_v62, %v12355_v59 }
0x10e9   : > { %v12370_v3 = vadd.f32 %v12369_v46, %v12356_v57 }
0x10ea   : > { %v12425_v43 = vpop.f32.mrf.mxu0 }
0x10eb   : > { %v12439_v49 = vpop.f32.mrf.mxu1  ;;  %v12384_v53 = vadd.f32 %v12383_v26, %v12370_v3 }
0x10ed   : > { %v12398_v54 = vadd.f32 %v12397_v33, %v12384_v53  ;;  %v12638_v53 = vld [vmem:[%s22967_s17 + $0x60] sm:$0xff] }
0x10ee   : > { %v12357_v47 = vpop.f32.mrf.mxu3 }
0x10ef   : > { %v12399_v56 = vpop.f32.mrf.mxu2  ;;  %v12358_v11 = vadd.f32 %v18795_v62, %v12357_v47 }
0x10f1   : > { %v12372_v41 = vadd.f32 %v12371_v23, %v12358_v11  ;;  %v12637_v11 = vld [vmem:[%s22967_s17 + $0x58] sm:$0xff] }
0x10f2   : > { %v12427_v58 = vpop.f32.mrf.mxu0 }
0x10f3   : > { %v12441_v61 = vpop.f32.mrf.mxu1  ;;  %v12386_v63 = vadd.f32 %v12385_v45, %v12372_v41  ;;  %v12635_v41 = vld [vmem:[%s22967_s17 + $0x48] sm:$0xff] }
0x10f5   : > { %v12400_v1 = vadd.f32 %v12399_v56, %v12386_v63  ;;  %v12630_v63 = vld [vmem:[%s22967_s17 + $0x20] sm:$0xff] }
0x10f6   : > { %v12411_v32 = vpop.f32.mrf.mxu3 }
0x10f7   : > { %v12453_v44 = vpop.f32.mrf.mxu2  ;;  %v12412_v28 = vadd.f32 %v12411_v32, %v12398_v54  ;;  %v12636_v54 = vld [vmem:[%s22967_s17 + $0x50] sm:$0xff] }
0x10f9   : > { %v12426_v0 = vadd.f32 %v12425_v43, %v12412_v28  ;;  %v12632_v28 = vld [vmem:[%s22967_s17 + $0x30] sm:$0xff] }
0x10fb   : > { %v12440_v2 = vadd.f32 %v12439_v49, %v12426_v0  ;;  %v12640_v49 = vld [vmem:[%s22967_s17 + $0x70] sm:$0xff] }
0x10fc   : > { %v12481_v6 = vpop.f32.mrf.mxu0 }
0x10fd   : > { %v12454_v7 = vadd.f32 %v12453_v44, %v12440_v2  ;;  %v12639_v44 = vld [vmem:[%s22967_s17 + $0x68] sm:$0xff]  ;;  %v12628_v2 = vld [vmem:[%s22967_s17 + $0x10] sm:$0xff] }
0x10fe   : > { %v12413_v60 = vpop.f32.mrf.mxu3  ;;  %v12495_v16 = vpop.f32.mrf.mxu1 }
0x10ff   : > { %v12455_v52 = vpop.f32.mrf.mxu2  ;;  %v12414_v4 = vadd.f32 %v12413_v60, %v12400_v1  ;;  %v12633_v60 = vld [vmem:[%s22967_s17 + $0x38] sm:$0xff] }
0x1100   : > { %v12629_v1 = vld [vmem:[%s22967_s17 + $0x18] sm:$0xff] }
0x1101   : > { %v12428_v8 = vadd.f32 %v12427_v58, %v12414_v4  ;;  %v12634_v58 = vld [vmem:[%s22967_s17 + $0x40] sm:$0xff] }
0x1103   : > { %v12442_v13 = vadd.f32 %v12441_v61, %v12428_v8  ;;  %v12631_v61 = vld [vmem:[%s22967_s17 + $0x28] sm:$0xff] }
0x1104   : > { %v12483_v40 = vpop.f32.mrf.mxu0 }
0x1105   : > { %v12456_v14 = vadd.f32 %v12455_v52, %v12442_v13 }
0x1106   : > { %v12497_v17 = vpop.f32.mrf.mxu1 }
0x1108   : > { %v12467_v9 = vpop.f32.mrf.mxu3 }
0x1109   : > { %v12468_v36 = vadd.f32 %v12467_v9, %v12454_v7  ;;  %v12626_v9 = vld [vmem:[%s22967_s17] sm:$0xff] }
0x110a   : > { %v12509_v10 = vpop.f32.mrf.mxu2 }
0x110b   : > { %v12482_v31 = vadd.f32 %v12481_v6, %v12468_v36  ;;  %v12627_v6 = vld [vmem:[%s22967_s17 + $0x8] sm:$0xff] }
0x110d   : > { %v12496_v37 = vadd.f32 %v12495_v16, %v12482_v31 }
0x110f   : > { %v12510_v20 = vadd.f32 %v12509_v10, %v12496_v37 }
0x1110   : > { %v12469_v15 = vpop.f32.mrf.mxu3 }
0x1111   : > { %v12470_v51 = vadd.f32 %v12469_v15, %v12456_v14 }
0x1112   : > { %v12511_v19 = vpop.f32.mrf.mxu2 }
0x1113   : > { %v12484_v21 = vadd.f32 %v12483_v40, %v12470_v51 }
0x1115   : > { %v12498_v30 = vadd.f32 %v12497_v17, %v12484_v21 }
0x1117   : > { %v12512_v39 = vadd.f32 %v12511_v19, %v12498_v30 }
0x111b   : > { %v12537_v48 = vpop.f32.mrf.mxu0 }
0x111c   : > { %v12551_v50 = vpop.f32.mrf.mxu1 }
0x1123   : > { %v12539_v29 = vpop.f32.mrf.mxu0 }
0x1124   : > { %v12553_v59 = vpop.f32.mrf.mxu1 }
0x1127   : > { %v12523_v55 = vpop.f32.mrf.mxu3 }
0x1128   : > { %v12524_v24 = vadd.f32 %v12523_v55, %v12510_v20 }
0x1129   : > { %v12565_v35 = vpop.f32.mrf.mxu2 }
0x112a   : > { %v12538_v25 = vadd.f32 %v12537_v48, %v12524_v24 }
0x112c   : > { %v12552_v27 = vadd.f32 %v12551_v50, %v12538_v25  ;;  %v18797_v25 = vld [vmem:[%s22966_s16 + $0x1] ss:$0 sm:$0xff] }
0x112e   : > { %v12566_v18 = vadd.f32 %v12565_v35, %v12552_v27 }
0x112f   : > { %v12525_v38 = vpop.f32.mrf.mxu3 }
0x1130   : > { %v12526_v22 = vadd.f32 %v12525_v38, %v12512_v39  ;;  %v12570_v34 = vadd.f32 %v12566_v18, %v22061_v12  ;;  %v18931_v38 = vmov 0  }
0x1131   : > { %v12567_v33 = vpop.f32.mrf.mxu2  ;;  %18784 = vset.pattern.permute.xlu1 %v18931_v38  ;;  %18785 = vset.pattern.permute.xlu0 %v18931_v38 }
0x1132   : > { %v12540_v46 = vadd.f32 %v12539_v29, %v12526_v22  ;;  %12576 = vadd.xlane.f32.xlu1 %v12570_v34  ;;  %v18798_v22 = vld [vmem:[#allocation4] ss:$0 sm:$0xff] }
0x1134   : > { %v12554_v26 = vadd.f32 %v12553_v59, %v12540_v46 }
0x1136   : > { %v12568_v23 = vadd.f32 %v12567_v33, %v12554_v26 }
0x1138   : > { %v12571_v47 = vadd.f32 %v12568_v23, %v22063_v5  ;;  %v12641_v5 = vld [vmem:[%s22967_s17 + $0x78] sm:$0xff] }
0x1139   : > { %12652 = vmatpush.msra.mxu3 %v12641_v5 }
0x113a   : > { %12578 = vadd.xlane.f32.xlu2 %v12571_v47 }
0x113b   : > { %12653 = vmatpush.msra.mxu3 %v12640_v49 }
0x113d   : > { %12654 = vmatpush.msra.mxu3 %v12639_v44 }
0x113f   : > { %12655 = vmatpush.msra.mxu3 %v12638_v53 }
0x1141   : > { %12656 = vmatpush.msra.mxu3 %v12637_v11  ;;  %v18932_v11 = vmov 224.0  }
0x1143   : > { %12657 = vmatpush.msra.mxu3 %v12636_v54 }
0x1145   : > { %12658 = vmatpush.msra.mxu3 %v12635_v41 }
0x1147   : > { %12659 = vmatpush.msra.mxu3 %v12634_v58 }
0x1149   : > { %12660 = vmatpush.msra.mxu3 %v12633_v60 }
0x114b   : > { %12661 = vmatpush.msra.mxu3 %v12632_v28  ;;  %v12693_v28 = vld [vmem:[%s22954_s4] sm:$0x3] }
0x114d   : > { %12662 = vmatpush.msra.mxu3 %v12631_v61 }
0x114f   : > { %12663 = vmatpush.msra.mxu3 %v12630_v63 }
0x1151   : > { %12664 = vmatpush.msra.mxu3 %v12629_v1 }
0x1153   : > { %12665 = vmatpush.msra.mxu3 %v12628_v2 }
0x1155   : > { %12666 = vmatpush.msra.mxu3 %v12627_v6 }
0x1157   : > { %12667 = vmatpush.msra.mxu3 %v12626_v9 }
0x11a5   : > { %v12577_v45 = vpop.xlane.xlu1 %12576 }
0x11a6   : > { %v12580_v62 = vmul.f32 %v12577_v45, %v20164_v42 }
0x11a8   : > { %v22870_v56 = vsub.f32 %v12570_v34, %v12580_v62 }
0x11aa   : > { %v12584_v57 = vmul.f32 %v22870_v56, %v22870_v56 }
0x11ac   : > { %12586 = vadd.xlane.f32.xlu2 %v12584_v57 }
0x11ad   : > { %v12579_v12 = vpop.xlane.xlu2 %12578 }
0x11ae   : > { %v12581_v43 = vmul.f32 %v12579_v12, %v20164_v42 }
0x11b0   : > { %v22875_v32 = vsub.f32 %v12571_v47, %v12581_v43 }
0x11b2   : > { %v12585_v3 = vmul.f32 %v22875_v32, %v22875_v32 }
0x11b4   : > { %12588 = vadd.xlane.f32.xlu0 %v12585_v3 }
0x121f   : > { %v12587_v52 = vpop.xlane.xlu2 %12586 }
0x1220   : > { %v12590_v0 = vmul.f32 %v12587_v52, %v20164_v42  ;;  %v12694_v52 = vld [vmem:[%s22954_s4 + $0x2] sm:$0x3] }
0x1222   : > { %v12592_v4 = vadd.f32 1e-05, %v12590_v0 }
0x1224   : > { %18877 = vrsqrt.f32 %v12592_v4  ;;  %vm12600_vm13 = vweird.f32 %v12592_v4 }
0x1227   : > { %v12589_v16 = vpop.xlane.xlu0 %12588 }
0x1228   : > { %v12591_v7 = vmul.f32 %v12589_v16, %v20164_v42  ;;  %v18796_v42 = vld [vmem:[%s22965_s15 + $0x1] ss:$0 sm:$0xff] }
0x122a   : > { %v18878_v8 = vpop.eup %18877  ;;  %v12593_v10 = vadd.f32 1e-05, %v12591_v7 }
0x122b   : > { %v12595_v36 = vmul.f32 %v18878_v8, %v12592_v4  ;;  %vm12601_vm12 = vweird.f32 %v18878_v8 }
0x122c   : > { %18879 = vrsqrt.f32 %v12593_v10  ;;  %vm12602_vm14 = vmor %vm12600_vm13, %vm12601_vm12  ;;  %vm12610_vm0 = vweird.f32 %v12593_v10 }
0x122d   : > { %v12596_v13 = vmul.f32 %v18878_v8, %v12595_v36 }
0x122f   : > { %v12597_v31 = vmul.f32 0.5, %v12596_v13 }
0x1231   : > { %v12598_v40 = vsub.f32 1.5, %v12597_v31 }
0x1232   : > { %v18880_v15 = vpop.eup %18879 }
0x1233   : > { %v12605_v14 = vmul.f32 %v18880_v15, %v12593_v10  ;;  %v12599_v17 = vmul.f32 %v18878_v8, %v12598_v40  ;;  %vm12611_vm15 = vweird.f32 %v18880_v15 }
0x1234   : > { %vm12612_vm3 = vmor %vm12610_vm0, %vm12611_vm15 }
0x1235   : > { %v12606_v37 = vmul.f32 %v18880_v15, %v12605_v14  ;;  %v12603_v19 = vsel %vm12602_vm14, %v18878_v8, %v12599_v17 }
0x1236   : > { %v12614_v48 = vmul.f32 %v12603_v19, %v22870_v56 }
0x1237   : > { %v12607_v51 = vmul.f32 0.5, %v12606_v37 }
0x1238   : > { %v12619_v50 = vmul.f32 %v18796_v42, %v12614_v48 }
0x1239   : > { %v12608_v20 = vsub.f32 1.5, %v12607_v51 }
0x123a   : > { %v12624_v27 = vadd.f32 %v18797_v25, %v12619_v50 }
0x123b   : > { %v12609_v21 = vmul.f32 %v18880_v15, %v12608_v20 }
0x123d   : > { %v12613_v55 = vsel %vm12612_vm3, %v18880_v15, %v12609_v21 }
0x123e   : > { %v12615_v24 = vmul.f32 %v12613_v55, %v22875_v32 }
0x1240   : > { %v12620_v30 = vmul.f32 %v18796_v42, %v12615_v24 }
0x1242   : > { %v12625_v35 = vadd.f32 %v18797_v25, %v12620_v30 }
0x1244   : > { %v12648_v39 = vrot.slane %v12625_v35, 7 }
0x1246   : > { %v12650_v18 = vsel %vm12649_vm4, %v12648_v39, %v12624_v27 }
0x1247   : > { %12668 = vmatmul.f32.vlgmr.msra.gmra.mxu3 %v12650_v18 }
0x12ca   : > { %v12669_v34 = vpop.f32.mrf.mxu3 }
0x12cb   : > { %v12670_v29 = vadd.f32 %v18798_v22, %v12669_v34 }
0x12cd   : > { %v12672_v46 = vsub.f32 0.0, %v12670_v29 }
0x12cf   : > { %v12673_v59 = vmul.f32 1.442695, %v12672_v46 }
0x12d1   : > { %18881 = vpow2.f32 %v12673_v59 }
0x12d7   : > { %v18882_v26 = vpop.eup %18881 }
0x12d8   : > { %v12675_v33 = vadd.f32 1.0, %v18882_v26 }
0x12da   : > { %18883 = vrcp.f32 %v12675_v33  ;;  %v12687_v62 = vand.u32 2147483648, %v12675_v33  ;;  %v12685_v57 = vand.u32 2147483647, %v12675_v33  ;;  %vm12681_vm6 = vweird.f32 %v12675_v33 }
0x12db   : > { %18885 = vrcp.f32 %v18932_v11 }
0x12dc   : > { %v12688_v43 = vor.u32 1.1754944e-38, %v12687_v62  ;;  %vm12686_vm1 = vcmp.eq.f32.partialorder %v12685_v57, 8.507059e+37 }
0x12e0   : > { %v18884_v23 = vpop.eup %18883 }
0x12e1   : > { %v12677_v47 = vmul.f32 %v18884_v23, %v12675_v33  ;;  %vm12682_vm5 = vweird.f32 %v18884_v23  ;;  %v18886_v54 = vpop.eup %18885 }
0x12e2   : > { %vm12683_vm10 = vmor %vm12681_vm6, %vm12682_vm5  ;;  %v12712_v41 = vmul.f32 224.0, %v18886_v54  ;;  %vm12716_vm2 = vweird.f32 %v18886_v54 }
0x12e3   : > { %v12678_v45 = vsub.f32 1.0, %v12677_v47 }
0x12e4   : > { %v12713_v58 = vsub.f32 1.0, %v12712_v41 }
0x12e5   : > { %v12679_v56 = vmul.f32 %v18884_v23, %v12678_v45 }
0x12e6   : > { %v12714_v60 = vmul.f32 %v18886_v54, %v12713_v58 }
0x12e7   : > { %v12680_v12 = vadd.f32 %v18884_v23, %v12679_v56 }
0x12e8   : > { %v12715_v61 = vadd.f32 %v18886_v54, %v12714_v60 }
0x12e9   : > { %v12684_v32 = vsel %vm12683_vm10, %v18884_v23, %v12680_v12 }
0x12ea   : > { %v12689_v3 = vsel %vm12686_vm1, %v12688_v43, %v12684_v32  ;;  %v12717_v6 = vsel %vm12716_vm2, %v18886_v54, %v12715_v61 }
0x12eb   : > { %v12690_v5 = vmul.f32 50.0, %v12689_v3 }
0x12ed   : > { %v12695_v49 = vperm.slane %v12690_v5, 0  ;;  %v12692_v44 = vrot.slane %v12690_v5, 1 }
0x12ef   : > { %12698 = vperm.xlu1 %18784, %v12695_v49   ;;  %v12696_v53 = vperm.slane %v12692_v44, 0 }
0x12f1   : > { %12702 = vperm.xlu0 %18785, %v12696_v53  }
0x1361   : > { %v12699_v63 = vpop.permute.xlu1 %12698 }
0x1362   : > { %v12705_v0 = vadd.f32 %v12699_v63, %v12693_v28 }
0x1363   : > { %v12703_v1 = vpop.permute.xlu0 %12702 }
0x1364   : > { %v12707_v2 = vmax.f32 %v12705_v0, 0.0  ;;  %v12706_v4 = vadd.f32 %v12703_v1, %v12694_v52 }
0x1366   : > { %v12709_v9 = vmin.f32 %v12707_v2, 223.0  ;;  %v12708_v16 = vmax.f32 %v12706_v4, 0.0 }
0x1368   : > { %v12718_v7 = vmul.f32 %v12717_v6, %v12709_v9  ;;  %v12710_v8 = vmin.f32 %v12708_v16, 223.0 }
0x136a   : > { %v12720_v10 = vmul.f32 1024.0, %v12718_v7  ;;  %v12719_v36 = vmul.f32 %v12717_v6, %v12710_v8 }
0x136c   : > { %12723 = vst.msk [vmem:[#allocation5] sm:$0x3] %vm12722_vm7, %v12720_v10  ;;  %v12721_v13 = vmul.f32 1024.0, %v12719_v36 }
0x136e   : > { %12724 = vst.msk [vmem:[#allocation5 + $0x2] sm:$0x3] %vm12722_vm7, %v12721_v13 }
0x136f PF: > { %p18734_p7 = scmp.eq.s32.totalorder %s19045_s21, 1  ;;  %s18933_s23 = smov [#allocation5]  }
0x1370   : > { %s12730_s24 = sshll.u32 %s18933_s23, 4  ;;  %s12732_s3 = sshll.u32 %s22969_s19, 4  ;;  %s12731_s24 = int_to_ptr.vmem [resolvable:$true] %s12730_s24  ;;  %s12733_s3 = int_to_ptr.hbm [resolvable:$true] %s12732_s3 }
0x1371   : > { %s18934_s26 = smov 32   ;;  %s18935_s27 = smov 2  }
0x1372   : > { %18731 = dma.vmem_to_hbm [thread:$0]  (%p18734_p7), %s12731_s24, 64, %s12733_s3, [#allocation6], %s18934_s26, %s18934_s26, %s18935_s27  }
0x1373   : > { %18920 = dma.done.wait (%p18734_p7), [#allocation6], 64  }
0x1374   : > { %18922 = vsyncadd (%p18734_p7), [#allocation6], 4294967232 }
0x1375 PF: > { %s22992_s30 = sld [smem:[#allocation8_spill]] }
0x137b   : > { %s32_s20 = sadd.s32 1, %s22992_s30  }
0x137c   : > { %p29_p8 = scmp.ge.s32.totalorder %s32_s20, 4  }
0x137e   :  { %31 = sbr.rel (!%p29_p8) target bundleno = 6 (0x6), region = 146 }
0x1383   :  { %12749 = vsyncpa [#allocation6], 1 }
0x1384   :  { %12751 = vsyncpa [#allocation6 + $0x1], 1 }

</bundles_post_ra>
